<compile_context>
chip_gen: v7x
topology: tpu7x:2x2x1
jax: 0.10.0
libtpu: 0.0.40
codegen_flags: <defaults>
</compile_context>

<pallas_src>
import jax
import jax.numpy as jnp
from jax import lax
from jax.experimental import pallas as pl
from jax.experimental.pallas import tpu as pltpu

jax.config.update("jax_default_matmul_precision", "highest")

_VMEM_SPEC = pl.BlockSpec(memory_space=pltpu.MemorySpace.VMEM)


# ----------------------------- fused kernel ---------------------------------


def make_fused_kernel(T, B, H, out_w):
    """Build the fused forward kernel for static (T, B, H)."""
    R = 4 * B          # stacked rows per step: [mag, aminer, kw_mag, kw_aminer] x B
    G = 4 * H          # packed gate width (i, f, g, o)

    def kernel(x_ref, win1_ref, whh1_ref, w2_ref, b12_ref,
               hw1_ref, hw2_ref, hw3_ref, hb_ref, out_ref):
        E = x_ref.shape[1]

        # ---- hoisted weight / bias loads (outside the time loop) ----
        whh1 = whh1_ref[...]                       # [2H, G]  = [whh1_seq ; whh1_key]
        w2 = w2_ref[...]                           # [G, G]   = [wih2_s;wih2_k;whh2_s;whh2_k]
        b12 = b12_ref[...]                         # [4, G]   rows: b1_s, b1_k, b2_s, b2_k

        # Row-group masks (float): rows [0,2B) -> "seq" stack, [2B,4B) -> "keyword".
        seqf_g = (lax.broadcasted_iota(jnp.int32, (R, G), 0) < 2 * B).astype(jnp.float32)
        rm = seqf_g[:, 0:H]                        # [R, H]
        km = 1.0 - rm
        mask2 = jnp.concatenate([rm, km], axis=-1)             # [R, 2H]
        mask4 = jnp.concatenate([rm, km, rm, km], axis=-1)     # [R, G]

        # ---- layer-1 input projection (+bias) for ALL timesteps, off the
        # serial chain.  Two full matmuls + a row-group select (trivial MACs,
        # no zero padding of x / no extra HBM bytes). ----
        x = x_ref[...]                                          # [T*R, E]
        xp_s = jnp.dot(x, win1_ref[0:E, :],
                       preferred_element_type=jnp.float32) + b12[0:1, :]
        xp_k = jnp.dot(x, win1_ref[E:2 * E, :],
                       preferred_element_type=jnp.float32) + b12[1:2, :]
        seqf_x = jnp.concatenate([seqf_g] * T, axis=0)          # [T*R, G]
        xproj = xp_s * seqf_x + xp_k * (1.0 - seqf_x)           # [T*R, G]

        # Hoisted per-row layer-2 bias.
        b2_rows = b12[2:3, :] * seqf_g + b12[3:4, :] * (1.0 - seqf_g)   # [R, G]

        def lstm_gates(gates, c):
            # g-gate weight/bias columns were pre-scaled by 2 at param-prep, so
            # a single full-vreg sigmoid suffices: tanh(x) = 2*sigmoid(2x) - 1.
            sg = jax.nn.sigmoid(gates)
            i = sg[:, 0 * H:1 * H]
            f = sg[:, 1 * H:2 * H]
            g = 2.0 * sg[:, 2 * H:3 * H] - 1.0
            o = sg[:, 3 * H:4 * H]
            c_new = f * c + i * g
            h_new = o * jnp.tanh(c_new)
            return h_new, c_new

        zero = jnp.zeros((R, H), jnp.float32)
        h1, c1, h2, c2 = zero, zero, zero, zero

        # Fully unrolled recurrence (T small & static): 2 MXU pushes + 2 EUP
        # sigmoids per step; the LLO scheduler overlaps across timesteps.
        for t in range(T):
            # layer 1
            h1cat = jnp.concatenate([h1, h1], axis=-1) * mask2          # [R, 2H]
            g1 = xproj[t * R:(t + 1) * R, :] + jnp.dot(
                h1cat, whh1, preferred_element_type=jnp.float32)
            h1, c1 = lstm_gates(g1, c1)
            # layer 2 (single K=4H=128 stacked matmul)
            hcat = jnp.concatenate([h1, h1, h2, h2], axis=-1) * mask4   # [R, G]
            g2 = b2_rows + jnp.dot(hcat, w2, preferred_element_type=jnp.float32)
            h2, c2 = lstm_gates(g2, c2)

        # ---- final layer-2 hidden state per stream ----
        mag_h = h2[0 * B:1 * B, :]
        am_h = h2[1 * B:2 * B, :]
        kmag_h = h2[2 * B:3 * B, :]
        kam_h = h2[3 * B:4 * B, :]

        # concat_input = (minus, minus_key, mag, aminer, kw_mag, kw_aminer)
        # exactly as the PyTorch reference computes it.
        feat = jnp.concatenate(
            [kmag_h - kam_h, mag_h - am_h, mag_h, am_h, kmag_h, kam_h],
            axis=-1)                                            # [B, 6H]

        # ---- MLP head: (Linear+ReLU) x2 -> Linear -> log_softmax ----
        d1 = hw1_ref.shape[1]
        d2 = hw2_ref.shape[1]
        d3 = hw3_ref.shape[1]
        hh = jnp.maximum(
            jnp.dot(feat, hw1_ref[...], preferred_element_type=jnp.float32)
            + hb_ref[0:1, 0:d1], 0.0)
        hh = jnp.maximum(
            jnp.dot(hh, hw2_ref[...], preferred_element_type=jnp.float32)
            + hb_ref[1:2, 0:d2], 0.0)
        logits = (jnp.dot(hh, hw3_ref[...], preferred_element_type=jnp.float32)
                  + hb_ref[2:3, 0:d3])
        m = jnp.max(logits, axis=-1, keepdims=True)
        z = logits - m
        logp = z - jnp.log(jnp.sum(jnp.exp(z), axis=-1, keepdims=True))

        # Single lane-dense padded output slab: [feat | logp | 0-pad].
        pieces = [feat, logp]
        pad = out_w - (6 * H + 2)
        if pad > 0:
            pieces.append(jnp.zeros((B, pad), jnp.float32))
        out_ref[...] = jnp.concatenate(pieces, axis=-1)

    return kernel


# ----------------------------- parameter setup -------------------------------


def init_lstm_layer(key, in_dim, hidden):
    """PyTorch-style uniform(-1/sqrt(H), 1/sqrt(H)); weights pre-transposed to [in, 4H]."""
    k1, k2, k3, k4 = jax.random.split(key, 4)
    bound = 1.0 / jnp.sqrt(hidden)
    w_ih = jax.random.uniform(k1, (in_dim, 4 * hidden), jnp.float32, -bound, bound)
    w_hh = jax.random.uniform(k2, (hidden, 4 * hidden), jnp.float32, -bound, bound)
    b_ih = jax.random.uniform(k3, (4 * hidden,), jnp.float32, -bound, bound)
    b_hh = jax.random.uniform(k4, (4 * hidden,), jnp.float32, -bound, bound)
    return w_ih, w_hh, b_ih + b_hh          # combined bias [4H]


def init_linear(key, in_dim, out_dim):
    k1, k2 = jax.random.split(key)
    bound = 1.0 / jnp.sqrt(in_dim)
    w = jax.random.uniform(k1, (in_dim, out_dim), jnp.float32, -bound, bound)
    b = jax.random.uniform(k2, (out_dim,), jnp.float32, -bound, bound)
    return w, b


def init_raw_params(key, vocab_size, embedding_size, hidden_size):
    """Raw (PyTorch-equivalent) parameters — used for the pure-JAX reference."""
    keys = jax.random.split(key, 8)
    emb = jax.random.normal(keys[0], (vocab_size + 1, embedding_size), jnp.float32) * 0.1

    wih1_s, whh1_s, b1_s = init_lstm_layer(keys[1], embedding_size, hidden_size)  # lstm_seq1
    wih2_s, whh2_s, b2_s = init_lstm_layer(keys[2], hidden_size, hidden_size)     # lstm_seq2
    wih1_k, whh1_k, b1_k = init_lstm_layer(keys[3], embedding_size, hidden_size)  # lstm_key_seq1
    wih2_k, whh2_k, b2_k = init_lstm_layer(keys[4], hidden_size, hidden_size)     # lstm_key_seq2

    hw1, hb1 = init_linear(keys[5], 6 * hidden_size, 64)
    hw2, hb2 = init_linear(keys[6], 64, 16)
    hw3, hb3 = init_linear(keys[7], 16, 2)

    return dict(emb=emb,
                wih1_s=wih1_s, whh1_s=whh1_s, b1_s=b1_s,
                wih2_s=wih2_s, whh2_s=whh2_s, b2_s=b2_s,
                wih1_k=wih1_k, whh1_k=whh1_k, b1_k=b1_k,
                wih2_k=wih2_k, whh2_k=whh2_k, b2_k=b2_k,
                hw1=hw1, hb1=hb1, hw2=hw2, hb2=hb2, hw3=hw3, hb3=hb3)


def pack_params(raw, hidden_size):
    """One-time packing / reparameterization for the kernel:
       * stack recurrent weights into the stacked-K slabs,
       * stack the 4 combined biases into one [4, 4H] slab,
       * scale the g-gate columns by 2 (sigmoid-only gate trick),
       * pack the three head biases into one [3, 64] slab."""
    H = hidden_size

    def scale_g(w):
        return w.at[..., 2 * H:3 * H].multiply(2.0)

    win1 = scale_g(jnp.concatenate([raw["wih1_s"], raw["wih1_k"]], axis=0))      # [2E, 4H]
    whh1 = scale_g(jnp.concatenate([raw["whh1_s"], raw["whh1_k"]], axis=0))      # [2H, 4H]
    w2 = scale_g(jnp.concatenate(
        [raw["wih2_s"], raw["wih2_k"], raw["whh2_s"], raw["whh2_k"]], axis=0))   # [4H, 4H]
    b12 = scale_g(jnp.stack(
        [raw["b1_s"], raw["b1_k"], raw["b2_s"], raw["b2_k"]], axis=0))           # [4, 4H]

    d1 = raw["hw1"].shape[1]
    hb = jnp.zeros((3, d1), jnp.float32)
    hb = hb.at[0, :raw["hb1"].shape[0]].set(raw["hb1"])
    hb = hb.at[1, :raw["hb2"].shape[0]].set(raw["hb2"])
    hb = hb.at[2, :raw["hb3"].shape[0]].set(raw["hb3"])

    return dict(emb=raw["emb"], win1=win1, whh1=whh1, w2=w2, b12=b12,
                hw1=raw["hw1"], hw2=raw["hw2"], hw3=raw["hw3"], hb=hb)


# ----------------------------- full forward ----------------------------------


@jax.jit
def bilstm_forward(packed, mag, aminer, keyword_mag, keyword_aminer):
    """use_seq_num=2, rsv_layer=3 path of the PyTorch module (eval mode)."""
    B, T = mag.shape
    emb = packed["emb"]
    E = emb.shape[1]
    H = packed["whh1"].shape[0] // 2
    OUT_W = ((6 * H + 2 + 127) // 128) * 128

    def embed(ids):                     # [B, T] int32 -> [B, T, E]
        return jnp.take(emb, ids, axis=0)

    # Stack the 4 streams to 4B rows per timestep, time-major, no zero padding:
    # rows per step = [mag(B), aminer(B), kw_mag(B), kw_aminer(B)].
    x = jnp.concatenate([embed(mag), embed(aminer),
                         embed(keyword_mag), embed(keyword_aminer)], axis=0)   # [4B, T, E]
    x = jnp.transpose(x, (1, 0, 2)).reshape(T * 4 * B, E)                      # [T*4B, E]

    kernel = make_fused_kernel(T=T, B=B, H=H, out_w=OUT_W)
    out = pl.pallas_call(
        kernel,
        out_shape=jax.ShapeDtypeStruct((B, OUT_W), jnp.float32),
        in_specs=[_VMEM_SPEC] * 9,
        out_specs=_VMEM_SPEC,
    )(x, packed["win1"], packed["whh1"], packed["w2"], packed["b12"],
      packed["hw1"], packed["hw2"], packed["hw3"], packed["hb"])

    log_probs = out[:, 6 * H:6 * H + 2]
    concat_input = out[:, :6 * H]       # rsv_layer == 3 -> return concat_input
    return log_probs, concat_input


# ----------------------------- pure-JAX reference -----------------------------


def _lstm_ref(x, wih, whh, b, H):
    """x: [B, T, in] -> outputs [B, T, H] (standard PyTorch LSTM cell)."""
    Bb, Tt, _ = x.shape
    h = jnp.zeros((Bb, H), jnp.float32)
    c = jnp.zeros((Bb, H), jnp.float32)
    outs = []
    for t in range(Tt):
        gates = x[:, t, :] @ wih + h @ whh + b
        i = jax.nn.sigmoid(gates[:, 0 * H:1 * H])
        f = jax.nn.sigmoid(gates[:, 1 * H:2 * H])
        g = jnp.tanh(gates[:, 2 * H:3 * H])
        o = jax.nn.sigmoid(gates[:, 3 * H:4 * H])
        c = f * c + i * g
        h = o * jnp.tanh(c)
        outs.append(h)
    return jnp.stack(outs, axis=1)


def bilstm_reference(raw, mag, aminer, keyword_mag, keyword_aminer):
    H = raw["whh1_s"].shape[0]
    emb = raw["emb"]

    def embed(ids):
        return jnp.take(emb, ids, axis=0)

    def run_stack(x, w):
        y = _lstm_ref(x, raw[f"wih1_{w}"], raw[f"whh1_{w}"], raw[f"b1_{w}"], H)
        y = _lstm_ref(y, raw[f"wih2_{w}"], raw[f"whh2_{w}"], raw[f"b2_{w}"], H)
        return y[:, -1, :]

    m = run_stack(embed(mag), "s")
    a = run_stack(embed(aminer), "s")
    km = run_stack(embed(keyword_mag), "k")
    ka = run_stack(embed(keyword_aminer), "k")
    concat = jnp.concatenate([km - ka, m - a, m, a, km, ka], axis=-1)
    hh = jax.nn.relu(concat @ raw["hw1"] + raw["hb1"])
    hh = jax.nn.relu(hh @ raw["hw2"] + raw["hb2"])
    logits = hh @ raw["hw3"] + raw["hb3"]
    return jax.nn.log_softmax(logits, axis=-1), concat


# ----------------------------- main ------------------------------------------

if __name__ == "__main__":
    B, T, E, H = 2, 8, 128, 32
    VOCAB = 50

    key = jax.random.PRNGKey(0)
    kp, k1, k2, k3, k4 = jax.random.split(key, 5)
    raw = init_raw_params(kp, VOCAB, E, H)
    packed = pack_params(raw, H)

    mag = jax.random.randint(k1, (B, T), 0, VOCAB + 1, jnp.int32)
    aminer = jax.random.randint(k2, (B, T), 0, VOCAB + 1, jnp.int32)
    keyword_mag = jax.random.randint(k3, (B, T), 0, VOCAB + 1, jnp.int32)
    keyword_aminer = jax.random.randint(k4, (B, T), 0, VOCAB + 1, jnp.int32)

    log_probs, hidden = bilstm_forward(packed, mag, aminer, keyword_mag,
                                       keyword_aminer)
    jax.block_until_ready((log_probs, hidden))

    assert log_probs.shape == (B, 2)
    assert hidden.shape == (B, 6 * H)
    # log_softmax rows should (approximately) exp-sum to 1
    assert jnp.allclose(jnp.sum(jnp.exp(log_probs), axis=1), 1.0, atol=1e-4)

    # Validate against the pure-JAX reference of the PyTorch forward.
    ref_logp, ref_concat = bilstm_reference(raw, mag, aminer, keyword_mag,
                                            keyword_aminer)
    assert jnp.allclose(hidden, ref_concat, atol=1e-3, rtol=1e-3)
    assert jnp.allclose(log_probs, ref_logp, atol=1e-3, rtol=1e-3)

    print("KERNEL_OK")
</pallas_src>

<mosaic_0001>
module attributes {stable_mosaic.version = 11 : i64} {
  func.func @kernel(%arg0: memref<64x128xf32, #tpu.memory_space<vmem>>, %arg1: memref<256x128xf32, #tpu.memory_space<vmem>>, %arg2: memref<64x128xf32, #tpu.memory_space<vmem>>, %arg3: memref<128x128xf32, #tpu.memory_space<vmem>>, %arg4: memref<4x128xf32, #tpu.memory_space<vmem>>, %arg5: memref<192x64xf32, #tpu.memory_space<vmem>>, %arg6: memref<64x16xf32, #tpu.memory_space<vmem>>, %arg7: memref<16x2xf32, #tpu.memory_space<vmem>>, %arg8: memref<3x64xf32, #tpu.memory_space<vmem>>, %arg9: memref<2x256xf32, #tpu.memory_space<vmem>>) attributes {dimension_semantics = [], scalar_prefetch = 0 : i64, scratch_operands = 0 : i64, tpu.core_type = #tpu.core_type<tc>} {
    %c0 = arith.constant 0 : index
    %c0_0 = arith.constant 0 : index
    %0 = vector.load %arg2[%c0, %c0_0] : memref<64x128xf32, #tpu.memory_space<vmem>>, vector<64x128xf32>
    %c0_1 = arith.constant 0 : index
    %c0_2 = arith.constant 0 : index
    %1 = vector.load %arg3[%c0_1, %c0_2] : memref<128x128xf32, #tpu.memory_space<vmem>>, vector<128x128xf32>
    %c0_3 = arith.constant 0 : index
    %c0_4 = arith.constant 0 : index
    %2 = vector.load %arg4[%c0_3, %c0_4] : memref<4x128xf32, #tpu.memory_space<vmem>>, vector<4x128xf32>
    %3 = tpu.iota {dimensions = array<i32: 0>} : vector<8x128xi32>
    %c4_i32 = arith.constant 4 : i32
    %4 = vector.broadcast %c4_i32 : i32 to vector<8x128xi32>
    %5 = arith.cmpi slt, %3, %4 : vector<8x128xi32>
    %6 = arith.extui %5 : vector<8x128xi1> to vector<8x128xi32>
    %7 = arith.sitofp %6 : vector<8x128xi32> to vector<8x128xf32>
    %8 = vector.extract_strided_slice %7 {offsets = [0, 0], sizes = [8, 32], strides = [1, 1]} : vector<8x128xf32> to vector<8x32xf32>
    %cst = arith.constant 1.000000e+00 : f32
    %9 = vector.broadcast %cst : f32 to vector<8x32xf32>
    %10 = arith.subf %9, %8 : vector<8x32xf32>
    %11 = tpu.concatenate %8, %10 in 1 : vector<8x32xf32>, vector<8x32xf32> -> vector<8x64xf32>
    %12 = tpu.concatenate %8, %10, %8, %10 in 1 : vector<8x32xf32>, vector<8x32xf32>, vector<8x32xf32>, vector<8x32xf32> -> vector<8x128xf32>
    %c0_5 = arith.constant 0 : index
    %c0_6 = arith.constant 0 : index
    %13 = vector.load %arg0[%c0_5, %c0_6] : memref<64x128xf32, #tpu.memory_space<vmem>>, vector<64x128xf32>
    %c0_7 = arith.constant 0 : index
    %c0_8 = arith.constant 0 : index
    %14 = vector.load %arg1[%c0_7, %c0_8] : memref<256x128xf32, #tpu.memory_space<vmem>>, vector<128x128xf32>
    %cst_9 = arith.constant dense<0.000000e+00> : vector<64x128xf32>
    %15 = tpu.matmul %13, %14, %cst_9 {dimension_numbers = #tpu.dot_dimension_numbers<[1], [0], [0], [1], [0, 0, 1, 1], [], []>, precision = #tpu.contract_precision<fp32>} : vector<64x128xf32>, vector<128x128xf32>, vector<64x128xf32> -> vector<64x128xf32>
    %16 = vector.extract_strided_slice %2 {offsets = [0, 0], sizes = [1, 128], strides = [1, 1]} : vector<4x128xf32> to vector<1x128xf32>
    %17 = vector.broadcast %16 : vector<1x128xf32> to vector<64x128xf32>
    %18 = arith.addf %15, %17 : vector<64x128xf32>
    %c128 = arith.constant 128 : index
    %c0_10 = arith.constant 0 : index
    %19 = vector.load %arg1[%c128, %c0_10] : memref<256x128xf32, #tpu.memory_space<vmem>>, vector<128x128xf32>
    %cst_11 = arith.constant dense<0.000000e+00> : vector<64x128xf32>
    %20 = tpu.matmul %13, %19, %cst_11 {dimension_numbers = #tpu.dot_dimension_numbers<[1], [0], [0], [1], [0, 0, 1, 1], [], []>, precision = #tpu.contract_precision<fp32>} : vector<64x128xf32>, vector<128x128xf32>, vector<64x128xf32> -> vector<64x128xf32>
    %21 = vector.extract_strided_slice %2 {offsets = [1, 0], sizes = [1, 128], strides = [1, 1]} : vector<4x128xf32> to vector<1x128xf32>
    %22 = vector.broadcast %21 : vector<1x128xf32> to vector<64x128xf32>
    %23 = arith.addf %20, %22 : vector<64x128xf32>
    %24 = tpu.concatenate %7, %7, %7, %7, %7, %7, %7, %7 in 0 : vector<8x128xf32>, vector<8x128xf32>, vector<8x128xf32>, vector<8x128xf32>, vector<8x128xf32>, vector<8x128xf32>, vector<8x128xf32>, vector<8x128xf32> -> vector<64x128xf32>
    %25 = arith.mulf %18, %24 : vector<64x128xf32>
    %cst_12 = arith.constant 1.000000e+00 : f32
    %26 = vector.broadcast %cst_12 : f32 to vector<64x128xf32>
    %27 = arith.subf %26, %24 : vector<64x128xf32>
    %28 = arith.mulf %23, %27 : vector<64x128xf32>
    %29 = arith.addf %25, %28 : vector<64x128xf32>
    %30 = vector.extract_strided_slice %2 {offsets = [2, 0], sizes = [1, 128], strides = [1, 1]} : vector<4x128xf32> to vector<1x128xf32>
    %31 = vector.broadcast %30 : vector<1x128xf32> to vector<8x128xf32>
    %32 = arith.mulf %31, %7 : vector<8x128xf32>
    %33 = vector.extract_strided_slice %2 {offsets = [3, 0], sizes = [1, 128], strides = [1, 1]} : vector<4x128xf32> to vector<1x128xf32>
    %cst_13 = arith.constant 1.000000e+00 : f32
    %34 = vector.broadcast %cst_13 : f32 to vector<8x128xf32>
    %35 = arith.subf %34, %7 : vector<8x128xf32>
    %36 = vector.broadcast %33 : vector<1x128xf32> to vector<8x128xf32>
    %37 = arith.mulf %36, %35 : vector<8x128xf32>
    %38 = arith.addf %32, %37 : vector<8x128xf32>
    %cst_14 = arith.constant 0.000000e+00 : f32
    %39 = vector.broadcast %cst_14 : f32 to vector<8x32xf32>
    %40 = tpu.concatenate %39, %39 in 1 : vector<8x32xf32>, vector<8x32xf32> -> vector<8x64xf32>
    %41 = arith.mulf %40, %11 : vector<8x64xf32>
    %42 = vector.extract_strided_slice %29 {offsets = [0, 0], sizes = [8, 128], strides = [1, 1]} : vector<64x128xf32> to vector<8x128xf32>
    %cst_15 = arith.constant dense<0.000000e+00> : vector<8x128xf32>
    %43 = tpu.matmul %41, %0, %cst_15 {dimension_numbers = #tpu.dot_dimension_numbers<[1], [0], [0], [1], [0, 0, 1, 1], [], []>, precision = #tpu.contract_precision<fp32>} : vector<8x64xf32>, vector<64x128xf32>, vector<8x128xf32> -> vector<8x128xf32>
    %44 = arith.addf %42, %43 : vector<8x128xf32>
    %45 = arith.negf %44 : vector<8x128xf32>
    %46 = math.exp %45 : vector<8x128xf32>
    %cst_16 = arith.constant 1.000000e+00 : f32
    %47 = vector.broadcast %cst_16 : f32 to vector<8x128xf32>
    %48 = arith.addf %47, %46 : vector<8x128xf32>
    %49 = arith.divf %47, %48 : vector<8x128xf32>
    %50 = vector.extract_strided_slice %49 {offsets = [0, 0], sizes = [8, 32], strides = [1, 1]} : vector<8x128xf32> to vector<8x32xf32>
    %51 = vector.extract_strided_slice %49 {offsets = [0, 32], sizes = [8, 32], strides = [1, 1]} : vector<8x128xf32> to vector<8x32xf32>
    %52 = vector.extract_strided_slice %49 {offsets = [0, 64], sizes = [8, 32], strides = [1, 1]} : vector<8x128xf32> to vector<8x32xf32>
    %cst_17 = arith.constant 2.000000e+00 : f32
    %53 = vector.broadcast %cst_17 : f32 to vector<8x32xf32>
    %54 = arith.mulf %53, %52 : vector<8x32xf32>
    %cst_18 = arith.constant 1.000000e+00 : f32
    %55 = vector.broadcast %cst_18 : f32 to vector<8x32xf32>
    %56 = arith.subf %54, %55 : vector<8x32xf32>
    %57 = vector.extract_strided_slice %49 {offsets = [0, 96], sizes = [8, 32], strides = [1, 1]} : vector<8x128xf32> to vector<8x32xf32>
    %58 = arith.mulf %51, %39 : vector<8x32xf32>
    %59 = arith.mulf %50, %56 : vector<8x32xf32>
    %60 = arith.addf %58, %59 : vector<8x32xf32>
    %61 = math.tanh %60 : vector<8x32xf32>
    %62 = arith.mulf %57, %61 : vector<8x32xf32>
    %63 = tpu.concatenate %62, %62, %39, %39 in 1 : vector<8x32xf32>, vector<8x32xf32>, vector<8x32xf32>, vector<8x32xf32> -> vector<8x128xf32>
    %64 = arith.mulf %63, %12 : vector<8x128xf32>
    %cst_19 = arith.constant dense<0.000000e+00> : vector<8x128xf32>
    %65 = tpu.matmul %64, %1, %cst_19 {dimension_numbers = #tpu.dot_dimension_numbers<[1], [0], [0], [1], [0, 0, 1, 1], [], []>, precision = #tpu.contract_precision<fp32>} : vector<8x128xf32>, vector<128x128xf32>, vector<8x128xf32> -> vector<8x128xf32>
    %66 = arith.addf %38, %65 : vector<8x128xf32>
    %67 = arith.negf %66 : vector<8x128xf32>
    %68 = math.exp %67 : vector<8x128xf32>
    %cst_20 = arith.constant 1.000000e+00 : f32
    %69 = vector.broadcast %cst_20 : f32 to vector<8x128xf32>
    %70 = arith.addf %69, %68 : vector<8x128xf32>
    %71 = arith.divf %69, %70 : vector<8x128xf32>
    %72 = vector.extract_strided_slice %71 {offsets = [0, 0], sizes = [8, 32], strides = [1, 1]} : vector<8x128xf32> to vector<8x32xf32>
    %73 = vector.extract_strided_slice %71 {offsets = [0, 32], sizes = [8, 32], strides = [1, 1]} : vector<8x128xf32> to vector<8x32xf32>
    %74 = vector.extract_strided_slice %71 {offsets = [0, 64], sizes = [8, 32], strides = [1, 1]} : vector<8x128xf32> to vector<8x32xf32>
    %cst_21 = arith.constant 2.000000e+00 : f32
    %75 = vector.broadcast %cst_21 : f32 to vector<8x32xf32>
    %76 = arith.mulf %75, %74 : vector<8x32xf32>
    %cst_22 = arith.constant 1.000000e+00 : f32
    %77 = vector.broadcast %cst_22 : f32 to vector<8x32xf32>
    %78 = arith.subf %76, %77 : vector<8x32xf32>
    %79 = vector.extract_strided_slice %71 {offsets = [0, 96], sizes = [8, 32], strides = [1, 1]} : vector<8x128xf32> to vector<8x32xf32>
    %80 = arith.mulf %73, %39 : vector<8x32xf32>
    %81 = arith.mulf %72, %78 : vector<8x32xf32>
    %82 = arith.addf %80, %81 : vector<8x32xf32>
    %83 = math.tanh %82 : vector<8x32xf32>
    %84 = arith.mulf %79, %83 : vector<8x32xf32>
    %85 = tpu.concatenate %62, %62 in 1 : vector<8x32xf32>, vector<8x32xf32> -> vector<8x64xf32>
    %86 = arith.mulf %85, %11 : vector<8x64xf32>
    %87 = vector.extract_strided_slice %29 {offsets = [8, 0], sizes = [8, 128], strides = [1, 1]} : vector<64x128xf32> to vector<8x128xf32>
    %cst_23 = arith.constant dense<0.000000e+00> : vector<8x128xf32>
    %88 = tpu.matmul %86, %0, %cst_23 {dimension_numbers = #tpu.dot_dimension_numbers<[1], [0], [0], [1], [0, 0, 1, 1], [], []>, precision = #tpu.contract_precision<fp32>} : vector<8x64xf32>, vector<64x128xf32>, vector<8x128xf32> -> vector<8x128xf32>
    %89 = arith.addf %87, %88 : vector<8x128xf32>
    %90 = arith.negf %89 : vector<8x128xf32>
    %91 = math.exp %90 : vector<8x128xf32>
    %cst_24 = arith.constant 1.000000e+00 : f32
    %92 = vector.broadcast %cst_24 : f32 to vector<8x128xf32>
    %93 = arith.addf %92, %91 : vector<8x128xf32>
    %94 = arith.divf %92, %93 : vector<8x128xf32>
    %95 = vector.extract_strided_slice %94 {offsets = [0, 0], sizes = [8, 32], strides = [1, 1]} : vector<8x128xf32> to vector<8x32xf32>
    %96 = vector.extract_strided_slice %94 {offsets = [0, 32], sizes = [8, 32], strides = [1, 1]} : vector<8x128xf32> to vector<8x32xf32>
    %97 = vector.extract_strided_slice %94 {offsets = [0, 64], sizes = [8, 32], strides = [1, 1]} : vector<8x128xf32> to vector<8x32xf32>
    %cst_25 = arith.constant 2.000000e+00 : f32
    %98 = vector.broadcast %cst_25 : f32 to vector<8x32xf32>
    %99 = arith.mulf %98, %97 : vector<8x32xf32>
    %cst_26 = arith.constant 1.000000e+00 : f32
    %100 = vector.broadcast %cst_26 : f32 to vector<8x32xf32>
    %101 = arith.subf %99, %100 : vector<8x32xf32>
    %102 = vector.extract_strided_slice %94 {offsets = [0, 96], sizes = [8, 32], strides = [1, 1]} : vector<8x128xf32> to vector<8x32xf32>
    %103 = arith.mulf %96, %60 : vector<8x32xf32>
    %104 = arith.mulf %95, %101 : vector<8x32xf32>
    %105 = arith.addf %103, %104 : vector<8x32xf32>
    %106 = math.tanh %105 : vector<8x32xf32>
    %107 = arith.mulf %102, %106 : vector<8x32xf32>
    %108 = tpu.concatenate %107, %107, %84, %84 in 1 : vector<8x32xf32>, vector<8x32xf32>, vector<8x32xf32>, vector<8x32xf32> -> vector<8x128xf32>
    %109 = arith.mulf %108, %12 : vector<8x128xf32>
    %cst_27 = arith.constant dense<0.000000e+00> : vector<8x128xf32>
    %110 = tpu.matmul %109, %1, %cst_27 {dimension_numbers = #tpu.dot_dimension_numbers<[1], [0], [0], [1], [0, 0, 1, 1], [], []>, precision = #tpu.contract_precision<fp32>} : vector<8x128xf32>, vector<128x128xf32>, vector<8x128xf32> -> vector<8x128xf32>
    %111 = arith.addf %38, %110 : vector<8x128xf32>
    %112 = arith.negf %111 : vector<8x128xf32>
    %113 = math.exp %112 : vector<8x128xf32>
    %cst_28 = arith.constant 1.000000e+00 : f32
    %114 = vector.broadcast %cst_28 : f32 to vector<8x128xf32>
    %115 = arith.addf %114, %113 : vector<8x128xf32>
    %116 = arith.divf %114, %115 : vector<8x128xf32>
    %117 = vector.extract_strided_slice %116 {offsets = [0, 0], sizes = [8, 32], strides = [1, 1]} : vector<8x128xf32> to vector<8x32xf32>
    %118 = vector.extract_strided_slice %116 {offsets = [0, 32], sizes = [8, 32], strides = [1, 1]} : vector<8x128xf32> to vector<8x32xf32>
    %119 = vector.extract_strided_slice %116 {offsets = [0, 64], sizes = [8, 32], strides = [1, 1]} : vector<8x128xf32> to vector<8x32xf32>
    %cst_29 = arith.constant 2.000000e+00 : f32
    %120 = vector.broadcast %cst_29 : f32 to vector<8x32xf32>
    %121 = arith.mulf %120, %119 : vector<8x32xf32>
    %cst_30 = arith.constant 1.000000e+00 : f32
    %122 = vector.broadcast %cst_30 : f32 to vector<8x32xf32>
    %123 = arith.subf %121, %122 : vector<8x32xf32>
    %124 = vector.extract_strided_slice %116 {offsets = [0, 96], sizes = [8, 32], strides = [1, 1]} : vector<8x128xf32> to vector<8x32xf32>
    %125 = arith.mulf %118, %82 : vector<8x32xf32>
    %126 = arith.mulf %117, %123 : vector<8x32xf32>
    %127 = arith.addf %125, %126 : vector<8x32xf32>
    %128 = math.tanh %127 : vector<8x32xf32>
    %129 = arith.mulf %124, %128 : vector<8x32xf32>
    %130 = tpu.concatenate %107, %107 in 1 : vector<8x32xf32>, vector<8x32xf32> -> vector<8x64xf32>
    %131 = arith.mulf %130, %11 : vector<8x64xf32>
    %132 = vector.extract_strided_slice %29 {offsets = [16, 0], sizes = [8, 128], strides = [1, 1]} : vector<64x128xf32> to vector<8x128xf32>
    %cst_31 = arith.constant dense<0.000000e+00> : vector<8x128xf32>
    %133 = tpu.matmul %131, %0, %cst_31 {dimension_numbers = #tpu.dot_dimension_numbers<[1], [0], [0], [1], [0, 0, 1, 1], [], []>, precision = #tpu.contract_precision<fp32>} : vector<8x64xf32>, vector<64x128xf32>, vector<8x128xf32> -> vector<8x128xf32>
    %134 = arith.addf %132, %133 : vector<8x128xf32>
    %135 = arith.negf %134 : vector<8x128xf32>
    %136 = math.exp %135 : vector<8x128xf32>
    %cst_32 = arith.constant 1.000000e+00 : f32
    %137 = vector.broadcast %cst_32 : f32 to vector<8x128xf32>
    %138 = arith.addf %137, %136 : vector<8x128xf32>
    %139 = arith.divf %137, %138 : vector<8x128xf32>
    %140 = vector.extract_strided_slice %139 {offsets = [0, 0], sizes = [8, 32], strides = [1, 1]} : vector<8x128xf32> to vector<8x32xf32>
    %141 = vector.extract_strided_slice %139 {offsets = [0, 32], sizes = [8, 32], strides = [1, 1]} : vector<8x128xf32> to vector<8x32xf32>
    %142 = vector.extract_strided_slice %139 {offsets = [0, 64], sizes = [8, 32], strides = [1, 1]} : vector<8x128xf32> to vector<8x32xf32>
    %cst_33 = arith.constant 2.000000e+00 : f32
    %143 = vector.broadcast %cst_33 : f32 to vector<8x32xf32>
    %144 = arith.mulf %143, %142 : vector<8x32xf32>
    %cst_34 = arith.constant 1.000000e+00 : f32
    %145 = vector.broadcast %cst_34 : f32 to vector<8x32xf32>
    %146 = arith.subf %144, %145 : vector<8x32xf32>
    %147 = vector.extract_strided_slice %139 {offsets = [0, 96], sizes = [8, 32], strides = [1, 1]} : vector<8x128xf32> to vector<8x32xf32>
    %148 = arith.mulf %141, %105 : vector<8x32xf32>
    %149 = arith.mulf %140, %146 : vector<8x32xf32>
    %150 = arith.addf %148, %149 : vector<8x32xf32>
    %151 = math.tanh %150 : vector<8x32xf32>
    %152 = arith.mulf %147, %151 : vector<8x32xf32>
    %153 = tpu.concatenate %152, %152, %129, %129 in 1 : vector<8x32xf32>, vector<8x32xf32>, vector<8x32xf32>, vector<8x32xf32> -> vector<8x128xf32>
    %154 = arith.mulf %153, %12 : vector<8x128xf32>
    %cst_35 = arith.constant dense<0.000000e+00> : vector<8x128xf32>
    %155 = tpu.matmul %154, %1, %cst_35 {dimension_numbers = #tpu.dot_dimension_numbers<[1], [0], [0], [1], [0, 0, 1, 1], [], []>, precision = #tpu.contract_precision<fp32>} : vector<8x128xf32>, vector<128x128xf32>, vector<8x128xf32> -> vector<8x128xf32>
    %156 = arith.addf %38, %155 : vector<8x128xf32>
    %157 = arith.negf %156 : vector<8x128xf32>
    %158 = math.exp %157 : vector<8x128xf32>
    %cst_36 = arith.constant 1.000000e+00 : f32
    %159 = vector.broadcast %cst_36 : f32 to vector<8x128xf32>
    %160 = arith.addf %159, %158 : vector<8x128xf32>
    %161 = arith.divf %159, %160 : vector<8x128xf32>
    %162 = vector.extract_strided_slice %161 {offsets = [0, 0], sizes = [8, 32], strides = [1, 1]} : vector<8x128xf32> to vector<8x32xf32>
    %163 = vector.extract_strided_slice %161 {offsets = [0, 32], sizes = [8, 32], strides = [1, 1]} : vector<8x128xf32> to vector<8x32xf32>
    %164 = vector.extract_strided_slice %161 {offsets = [0, 64], sizes = [8, 32], strides = [1, 1]} : vector<8x128xf32> to vector<8x32xf32>
    %cst_37 = arith.constant 2.000000e+00 : f32
    %165 = vector.broadcast %cst_37 : f32 to vector<8x32xf32>
    %166 = arith.mulf %165, %164 : vector<8x32xf32>
    %cst_38 = arith.constant 1.000000e+00 : f32
    %167 = vector.broadcast %cst_38 : f32 to vector<8x32xf32>
    %168 = arith.subf %166, %167 : vector<8x32xf32>
    %169 = vector.extract_strided_slice %161 {offsets = [0, 96], sizes = [8, 32], strides = [1, 1]} : vector<8x128xf32> to vector<8x32xf32>
    %170 = arith.mulf %163, %127 : vector<8x32xf32>
    %171 = arith.mulf %162, %168 : vector<8x32xf32>
    %172 = arith.addf %170, %171 : vector<8x32xf32>
    %173 = math.tanh %172 : vector<8x32xf32>
    %174 = arith.mulf %169, %173 : vector<8x32xf32>
    %175 = tpu.concatenate %152, %152 in 1 : vector<8x32xf32>, vector<8x32xf32> -> vector<8x64xf32>
    %176 = arith.mulf %175, %11 : vector<8x64xf32>
    %177 = vector.extract_strided_slice %29 {offsets = [24, 0], sizes = [8, 128], strides = [1, 1]} : vector<64x128xf32> to vector<8x128xf32>
    %cst_39 = arith.constant dense<0.000000e+00> : vector<8x128xf32>
    %178 = tpu.matmul %176, %0, %cst_39 {dimension_numbers = #tpu.dot_dimension_numbers<[1], [0], [0], [1], [0, 0, 1, 1], [], []>, precision = #tpu.contract_precision<fp32>} : vector<8x64xf32>, vector<64x128xf32>, vector<8x128xf32> -> vector<8x128xf32>
    %179 = arith.addf %177, %178 : vector<8x128xf32>
    %180 = arith.negf %179 : vector<8x128xf32>
    %181 = math.exp %180 : vector<8x128xf32>
    %cst_40 = arith.constant 1.000000e+00 : f32
    %182 = vector.broadcast %cst_40 : f32 to vector<8x128xf32>
    %183 = arith.addf %182, %181 : vector<8x128xf32>
    %184 = arith.divf %182, %183 : vector<8x128xf32>
    %185 = vector.extract_strided_slice %184 {offsets = [0, 0], sizes = [8, 32], strides = [1, 1]} : vector<8x128xf32> to vector<8x32xf32>
    %186 = vector.extract_strided_slice %184 {offsets = [0, 32], sizes = [8, 32], strides = [1, 1]} : vector<8x128xf32> to vector<8x32xf32>
    %187 = vector.extract_strided_slice %184 {offsets = [0, 64], sizes = [8, 32], strides = [1, 1]} : vector<8x128xf32> to vector<8x32xf32>
    %cst_41 = arith.constant 2.000000e+00 : f32
    %188 = vector.broadcast %cst_41 : f32 to vector<8x32xf32>
    %189 = arith.mulf %188, %187 : vector<8x32xf32>
    %cst_42 = arith.constant 1.000000e+00 : f32
    %190 = vector.broadcast %cst_42 : f32 to vector<8x32xf32>
    %191 = arith.subf %189, %190 : vector<8x32xf32>
    %192 = vector.extract_strided_slice %184 {offsets = [0, 96], sizes = [8, 32], strides = [1, 1]} : vector<8x128xf32> to vector<8x32xf32>
    %193 = arith.mulf %186, %150 : vector<8x32xf32>
    %194 = arith.mulf %185, %191 : vector<8x32xf32>
    %195 = arith.addf %193, %194 : vector<8x32xf32>
    %196 = math.tanh %195 : vector<8x32xf32>
    %197 = arith.mulf %192, %196 : vector<8x32xf32>
    %198 = tpu.concatenate %197, %197, %174, %174 in 1 : vector<8x32xf32>, vector<8x32xf32>, vector<8x32xf32>, vector<8x32xf32> -> vector<8x128xf32>
    %199 = arith.mulf %198, %12 : vector<8x128xf32>
    %cst_43 = arith.constant dense<0.000000e+00> : vector<8x128xf32>
    %200 = tpu.matmul %199, %1, %cst_43 {dimension_numbers = #tpu.dot_dimension_numbers<[1], [0], [0], [1], [0, 0, 1, 1], [], []>, precision = #tpu.contract_precision<fp32>} : vector<8x128xf32>, vector<128x128xf32>, vector<8x128xf32> -> vector<8x128xf32>
    %201 = arith.addf %38, %200 : vector<8x128xf32>
    %202 = arith.negf %201 : vector<8x128xf32>
    %203 = math.exp %202 : vector<8x128xf32>
    %cst_44 = arith.constant 1.000000e+00 : f32
    %204 = vector.broadcast %cst_44 : f32 to vector<8x128xf32>
    %205 = arith.addf %204, %203 : vector<8x128xf32>
    %206 = arith.divf %204, %205 : vector<8x128xf32>
    %207 = vector.extract_strided_slice %206 {offsets = [0, 0], sizes = [8, 32], strides = [1, 1]} : vector<8x128xf32> to vector<8x32xf32>
    %208 = vector.extract_strided_slice %206 {offsets = [0, 32], sizes = [8, 32], strides = [1, 1]} : vector<8x128xf32> to vector<8x32xf32>
    %209 = vector.extract_strided_slice %206 {offsets = [0, 64], sizes = [8, 32], strides = [1, 1]} : vector<8x128xf32> to vector<8x32xf32>
    %cst_45 = arith.constant 2.000000e+00 : f32
    %210 = vector.broadcast %cst_45 : f32 to vector<8x32xf32>
    %211 = arith.mulf %210, %209 : vector<8x32xf32>
    %cst_46 = arith.constant 1.000000e+00 : f32
    %212 = vector.broadcast %cst_46 : f32 to vector<8x32xf32>
    %213 = arith.subf %211, %212 : vector<8x32xf32>
    %214 = vector.extract_strided_slice %206 {offsets = [0, 96], sizes = [8, 32], strides = [1, 1]} : vector<8x128xf32> to vector<8x32xf32>
    %215 = arith.mulf %208, %172 : vector<8x32xf32>
    %216 = arith.mulf %207, %213 : vector<8x32xf32>
    %217 = arith.addf %215, %216 : vector<8x32xf32>
    %218 = math.tanh %217 : vector<8x32xf32>
    %219 = arith.mulf %214, %218 : vector<8x32xf32>
    %220 = tpu.concatenate %197, %197 in 1 : vector<8x32xf32>, vector<8x32xf32> -> vector<8x64xf32>
    %221 = arith.mulf %220, %11 : vector<8x64xf32>
    %222 = vector.extract_strided_slice %29 {offsets = [32, 0], sizes = [8, 128], strides = [1, 1]} : vector<64x128xf32> to vector<8x128xf32>
    %cst_47 = arith.constant dense<0.000000e+00> : vector<8x128xf32>
    %223 = tpu.matmul %221, %0, %cst_47 {dimension_numbers = #tpu.dot_dimension_numbers<[1], [0], [0], [1], [0, 0, 1, 1], [], []>, precision = #tpu.contract_precision<fp32>} : vector<8x64xf32>, vector<64x128xf32>, vector<8x128xf32> -> vector<8x128xf32>
    %224 = arith.addf %222, %223 : vector<8x128xf32>
    %225 = arith.negf %224 : vector<8x128xf32>
    %226 = math.exp %225 : vector<8x128xf32>
    %cst_48 = arith.constant 1.000000e+00 : f32
    %227 = vector.broadcast %cst_48 : f32 to vector<8x128xf32>
    %228 = arith.addf %227, %226 : vector<8x128xf32>
    %229 = arith.divf %227, %228 : vector<8x128xf32>
    %230 = vector.extract_strided_slice %229 {offsets = [0, 0], sizes = [8, 32], strides = [1, 1]} : vector<8x128xf32> to vector<8x32xf32>
    %231 = vector.extract_strided_slice %229 {offsets = [0, 32], sizes = [8, 32], strides = [1, 1]} : vector<8x128xf32> to vector<8x32xf32>
    %232 = vector.extract_strided_slice %229 {offsets = [0, 64], sizes = [8, 32], strides = [1, 1]} : vector<8x128xf32> to vector<8x32xf32>
    %cst_49 = arith.constant 2.000000e+00 : f32
    %233 = vector.broadcast %cst_49 : f32 to vector<8x32xf32>
    %234 = arith.mulf %233, %232 : vector<8x32xf32>
    %cst_50 = arith.constant 1.000000e+00 : f32
    %235 = vector.broadcast %cst_50 : f32 to vector<8x32xf32>
    %236 = arith.subf %234, %235 : vector<8x32xf32>
    %237 = vector.extract_strided_slice %229 {offsets = [0, 96], sizes = [8, 32], strides = [1, 1]} : vector<8x128xf32> to vector<8x32xf32>
    %238 = arith.mulf %231, %195 : vector<8x32xf32>
    %239 = arith.mulf %230, %236 : vector<8x32xf32>
    %240 = arith.addf %238, %239 : vector<8x32xf32>
    %241 = math.tanh %240 : vector<8x32xf32>
    %242 = arith.mulf %237, %241 : vector<8x32xf32>
    %243 = tpu.concatenate %242, %242, %219, %219 in 1 : vector<8x32xf32>, vector<8x32xf32>, vector<8x32xf32>, vector<8x32xf32> -> vector<8x128xf32>
    %244 = arith.mulf %243, %12 : vector<8x128xf32>
    %cst_51 = arith.constant dense<0.000000e+00> : vector<8x128xf32>
    %245 = tpu.matmul %244, %1, %cst_51 {dimension_numbers = #tpu.dot_dimension_numbers<[1], [0], [0], [1], [0, 0, 1, 1], [], []>, precision = #tpu.contract_precision<fp32>} : vector<8x128xf32>, vector<128x128xf32>, vector<8x128xf32> -> vector<8x128xf32>
    %246 = arith.addf %38, %245 : vector<8x128xf32>
    %247 = arith.negf %246 : vector<8x128xf32>
    %248 = math.exp %247 : vector<8x128xf32>
    %cst_52 = arith.constant 1.000000e+00 : f32
    %249 = vector.broadcast %cst_52 : f32 to vector<8x128xf32>
    %250 = arith.addf %249, %248 : vector<8x128xf32>
    %251 = arith.divf %249, %250 : vector<8x128xf32>
    %252 = vector.extract_strided_slice %251 {offsets = [0, 0], sizes = [8, 32], strides = [1, 1]} : vector<8x128xf32> to vector<8x32xf32>
    %253 = vector.extract_strided_slice %251 {offsets = [0, 32], sizes = [8, 32], strides = [1, 1]} : vector<8x128xf32> to vector<8x32xf32>
    %254 = vector.extract_strided_slice %251 {offsets = [0, 64], sizes = [8, 32], strides = [1, 1]} : vector<8x128xf32> to vector<8x32xf32>
    %cst_53 = arith.constant 2.000000e+00 : f32
    %255 = vector.broadcast %cst_53 : f32 to vector<8x32xf32>
    %256 = arith.mulf %255, %254 : vector<8x32xf32>
    %cst_54 = arith.constant 1.000000e+00 : f32
    %257 = vector.broadcast %cst_54 : f32 to vector<8x32xf32>
    %258 = arith.subf %256, %257 : vector<8x32xf32>
    %259 = vector.extract_strided_slice %251 {offsets = [0, 96], sizes = [8, 32], strides = [1, 1]} : vector<8x128xf32> to vector<8x32xf32>
    %260 = arith.mulf %253, %217 : vector<8x32xf32>
    %261 = arith.mulf %252, %258 : vector<8x32xf32>
    %262 = arith.addf %260, %261 : vector<8x32xf32>
    %263 = math.tanh %262 : vector<8x32xf32>
    %264 = arith.mulf %259, %263 : vector<8x32xf32>
    %265 = tpu.concatenate %242, %242 in 1 : vector<8x32xf32>, vector<8x32xf32> -> vector<8x64xf32>
    %266 = arith.mulf %265, %11 : vector<8x64xf32>
    %267 = vector.extract_strided_slice %29 {offsets = [40, 0], sizes = [8, 128], strides = [1, 1]} : vector<64x128xf32> to vector<8x128xf32>
    %cst_55 = arith.constant dense<0.000000e+00> : vector<8x128xf32>
    %268 = tpu.matmul %266, %0, %cst_55 {dimension_numbers = #tpu.dot_dimension_numbers<[1], [0], [0], [1], [0, 0, 1, 1], [], []>, precision = #tpu.contract_precision<fp32>} : vector<8x64xf32>, vector<64x128xf32>, vector<8x128xf32> -> vector<8x128xf32>
    %269 = arith.addf %267, %268 : vector<8x128xf32>
    %270 = arith.negf %269 : vector<8x128xf32>
    %271 = math.exp %270 : vector<8x128xf32>
    %cst_56 = arith.constant 1.000000e+00 : f32
    %272 = vector.broadcast %cst_56 : f32 to vector<8x128xf32>
    %273 = arith.addf %272, %271 : vector<8x128xf32>
    %274 = arith.divf %272, %273 : vector<8x128xf32>
    %275 = vector.extract_strided_slice %274 {offsets = [0, 0], sizes = [8, 32], strides = [1, 1]} : vector<8x128xf32> to vector<8x32xf32>
    %276 = vector.extract_strided_slice %274 {offsets = [0, 32], sizes = [8, 32], strides = [1, 1]} : vector<8x128xf32> to vector<8x32xf32>
    %277 = vector.extract_strided_slice %274 {offsets = [0, 64], sizes = [8, 32], strides = [1, 1]} : vector<8x128xf32> to vector<8x32xf32>
    %cst_57 = arith.constant 2.000000e+00 : f32
    %278 = vector.broadcast %cst_57 : f32 to vector<8x32xf32>
    %279 = arith.mulf %278, %277 : vector<8x32xf32>
    %cst_58 = arith.constant 1.000000e+00 : f32
    %280 = vector.broadcast %cst_58 : f32 to vector<8x32xf32>
    %281 = arith.subf %279, %280 : vector<8x32xf32>
    %282 = vector.extract_strided_slice %274 {offsets = [0, 96], sizes = [8, 32], strides = [1, 1]} : vector<8x128xf32> to vector<8x32xf32>
    %283 = arith.mulf %276, %240 : vector<8x32xf32>
    %284 = arith.mulf %275, %281 : vector<8x32xf32>
    %285 = arith.addf %283, %284 : vector<8x32xf32>
    %286 = math.tanh %285 : vector<8x32xf32>
    %287 = arith.mulf %282, %286 : vector<8x32xf32>
    %288 = tpu.concatenate %287, %287, %264, %264 in 1 : vector<8x32xf32>, vector<8x32xf32>, vector<8x32xf32>, vector<8x32xf32> -> vector<8x128xf32>
    %289 = arith.mulf %288, %12 : vector<8x128xf32>
    %cst_59 = arith.constant dense<0.000000e+00> : vector<8x128xf32>
    %290 = tpu.matmul %289, %1, %cst_59 {dimension_numbers = #tpu.dot_dimension_numbers<[1], [0], [0], [1], [0, 0, 1, 1], [], []>, precision = #tpu.contract_precision<fp32>} : vector<8x128xf32>, vector<128x128xf32>, vector<8x128xf32> -> vector<8x128xf32>
    %291 = arith.addf %38, %290 : vector<8x128xf32>
    %292 = arith.negf %291 : vector<8x128xf32>
    %293 = math.exp %292 : vector<8x128xf32>
    %cst_60 = arith.constant 1.000000e+00 : f32
    %294 = vector.broadcast %cst_60 : f32 to vector<8x128xf32>
    %295 = arith.addf %294, %293 : vector<8x128xf32>
    %296 = arith.divf %294, %295 : vector<8x128xf32>
    %297 = vector.extract_strided_slice %296 {offsets = [0, 0], sizes = [8, 32], strides = [1, 1]} : vector<8x128xf32> to vector<8x32xf32>
    %298 = vector.extract_strided_slice %296 {offsets = [0, 32], sizes = [8, 32], strides = [1, 1]} : vector<8x128xf32> to vector<8x32xf32>
    %299 = vector.extract_strided_slice %296 {offsets = [0, 64], sizes = [8, 32], strides = [1, 1]} : vector<8x128xf32> to vector<8x32xf32>
    %cst_61 = arith.constant 2.000000e+00 : f32
    %300 = vector.broadcast %cst_61 : f32 to vector<8x32xf32>
    %301 = arith.mulf %300, %299 : vector<8x32xf32>
    %cst_62 = arith.constant 1.000000e+00 : f32
    %302 = vector.broadcast %cst_62 : f32 to vector<8x32xf32>
    %303 = arith.subf %301, %302 : vector<8x32xf32>
    %304 = vector.extract_strided_slice %296 {offsets = [0, 96], sizes = [8, 32], strides = [1, 1]} : vector<8x128xf32> to vector<8x32xf32>
    %305 = arith.mulf %298, %262 : vector<8x32xf32>
    %306 = arith.mulf %297, %303 : vector<8x32xf32>
    %307 = arith.addf %305, %306 : vector<8x32xf32>
    %308 = math.tanh %307 : vector<8x32xf32>
    %309 = arith.mulf %304, %308 : vector<8x32xf32>
    %310 = tpu.concatenate %287, %287 in 1 : vector<8x32xf32>, vector<8x32xf32> -> vector<8x64xf32>
    %311 = arith.mulf %310, %11 : vector<8x64xf32>
    %312 = vector.extract_strided_slice %29 {offsets = [48, 0], sizes = [8, 128], strides = [1, 1]} : vector<64x128xf32> to vector<8x128xf32>
    %cst_63 = arith.constant dense<0.000000e+00> : vector<8x128xf32>
    %313 = tpu.matmul %311, %0, %cst_63 {dimension_numbers = #tpu.dot_dimension_numbers<[1], [0], [0], [1], [0, 0, 1, 1], [], []>, precision = #tpu.contract_precision<fp32>} : vector<8x64xf32>, vector<64x128xf32>, vector<8x128xf32> -> vector<8x128xf32>
    %314 = arith.addf %312, %313 : vector<8x128xf32>
    %315 = arith.negf %314 : vector<8x128xf32>
    %316 = math.exp %315 : vector<8x128xf32>
    %cst_64 = arith.constant 1.000000e+00 : f32
    %317 = vector.broadcast %cst_64 : f32 to vector<8x128xf32>
    %318 = arith.addf %317, %316 : vector<8x128xf32>
    %319 = arith.divf %317, %318 : vector<8x128xf32>
    %320 = vector.extract_strided_slice %319 {offsets = [0, 0], sizes = [8, 32], strides = [1, 1]} : vector<8x128xf32> to vector<8x32xf32>
    %321 = vector.extract_strided_slice %319 {offsets = [0, 32], sizes = [8, 32], strides = [1, 1]} : vector<8x128xf32> to vector<8x32xf32>
    %322 = vector.extract_strided_slice %319 {offsets = [0, 64], sizes = [8, 32], strides = [1, 1]} : vector<8x128xf32> to vector<8x32xf32>
    %cst_65 = arith.constant 2.000000e+00 : f32
    %323 = vector.broadcast %cst_65 : f32 to vector<8x32xf32>
    %324 = arith.mulf %323, %322 : vector<8x32xf32>
    %cst_66 = arith.constant 1.000000e+00 : f32
    %325 = vector.broadcast %cst_66 : f32 to vector<8x32xf32>
    %326 = arith.subf %324, %325 : vector<8x32xf32>
    %327 = vector.extract_strided_slice %319 {offsets = [0, 96], sizes = [8, 32], strides = [1, 1]} : vector<8x128xf32> to vector<8x32xf32>
    %328 = arith.mulf %321, %285 : vector<8x32xf32>
    %329 = arith.mulf %320, %326 : vector<8x32xf32>
    %330 = arith.addf %328, %329 : vector<8x32xf32>
    %331 = math.tanh %330 : vector<8x32xf32>
    %332 = arith.mulf %327, %331 : vector<8x32xf32>
    %333 = tpu.concatenate %332, %332, %309, %309 in 1 : vector<8x32xf32>, vector<8x32xf32>, vector<8x32xf32>, vector<8x32xf32> -> vector<8x128xf32>
    %334 = arith.mulf %333, %12 : vector<8x128xf32>
    %cst_67 = arith.constant dense<0.000000e+00> : vector<8x128xf32>
    %335 = tpu.matmul %334, %1, %cst_67 {dimension_numbers = #tpu.dot_dimension_numbers<[1], [0], [0], [1], [0, 0, 1, 1], [], []>, precision = #tpu.contract_precision<fp32>} : vector<8x128xf32>, vector<128x128xf32>, vector<8x128xf32> -> vector<8x128xf32>
    %336 = arith.addf %38, %335 : vector<8x128xf32>
    %337 = arith.negf %336 : vector<8x128xf32>
    %338 = math.exp %337 : vector<8x128xf32>
    %cst_68 = arith.constant 1.000000e+00 : f32
    %339 = vector.broadcast %cst_68 : f32 to vector<8x128xf32>
    %340 = arith.addf %339, %338 : vector<8x128xf32>
    %341 = arith.divf %339, %340 : vector<8x128xf32>
    %342 = vector.extract_strided_slice %341 {offsets = [0, 0], sizes = [8, 32], strides = [1, 1]} : vector<8x128xf32> to vector<8x32xf32>
    %343 = vector.extract_strided_slice %341 {offsets = [0, 32], sizes = [8, 32], strides = [1, 1]} : vector<8x128xf32> to vector<8x32xf32>
    %344 = vector.extract_strided_slice %341 {offsets = [0, 64], sizes = [8, 32], strides = [1, 1]} : vector<8x128xf32> to vector<8x32xf32>
    %cst_69 = arith.constant 2.000000e+00 : f32
    %345 = vector.broadcast %cst_69 : f32 to vector<8x32xf32>
    %346 = arith.mulf %345, %344 : vector<8x32xf32>
    %cst_70 = arith.constant 1.000000e+00 : f32
    %347 = vector.broadcast %cst_70 : f32 to vector<8x32xf32>
    %348 = arith.subf %346, %347 : vector<8x32xf32>
    %349 = vector.extract_strided_slice %341 {offsets = [0, 96], sizes = [8, 32], strides = [1, 1]} : vector<8x128xf32> to vector<8x32xf32>
    %350 = arith.mulf %343, %307 : vector<8x32xf32>
    %351 = arith.mulf %342, %348 : vector<8x32xf32>
    %352 = arith.addf %350, %351 : vector<8x32xf32>
    %353 = math.tanh %352 : vector<8x32xf32>
    %354 = arith.mulf %349, %353 : vector<8x32xf32>
    %355 = tpu.concatenate %332, %332 in 1 : vector<8x32xf32>, vector<8x32xf32> -> vector<8x64xf32>
    %356 = arith.mulf %355, %11 : vector<8x64xf32>
    %357 = vector.extract_strided_slice %29 {offsets = [56, 0], sizes = [8, 128], strides = [1, 1]} : vector<64x128xf32> to vector<8x128xf32>
    %cst_71 = arith.constant dense<0.000000e+00> : vector<8x128xf32>
    %358 = tpu.matmul %356, %0, %cst_71 {dimension_numbers = #tpu.dot_dimension_numbers<[1], [0], [0], [1], [0, 0, 1, 1], [], []>, precision = #tpu.contract_precision<fp32>} : vector<8x64xf32>, vector<64x128xf32>, vector<8x128xf32> -> vector<8x128xf32>
    %359 = arith.addf %357, %358 : vector<8x128xf32>
    %360 = arith.negf %359 : vector<8x128xf32>
    %361 = math.exp %360 : vector<8x128xf32>
    %cst_72 = arith.constant 1.000000e+00 : f32
    %362 = vector.broadcast %cst_72 : f32 to vector<8x128xf32>
    %363 = arith.addf %362, %361 : vector<8x128xf32>
    %364 = arith.divf %362, %363 : vector<8x128xf32>
    %365 = vector.extract_strided_slice %364 {offsets = [0, 0], sizes = [8, 32], strides = [1, 1]} : vector<8x128xf32> to vector<8x32xf32>
    %366 = vector.extract_strided_slice %364 {offsets = [0, 32], sizes = [8, 32], strides = [1, 1]} : vector<8x128xf32> to vector<8x32xf32>
    %367 = vector.extract_strided_slice %364 {offsets = [0, 64], sizes = [8, 32], strides = [1, 1]} : vector<8x128xf32> to vector<8x32xf32>
    %cst_73 = arith.constant 2.000000e+00 : f32
    %368 = vector.broadcast %cst_73 : f32 to vector<8x32xf32>
    %369 = arith.mulf %368, %367 : vector<8x32xf32>
    %cst_74 = arith.constant 1.000000e+00 : f32
    %370 = vector.broadcast %cst_74 : f32 to vector<8x32xf32>
    %371 = arith.subf %369, %370 : vector<8x32xf32>
    %372 = vector.extract_strided_slice %364 {offsets = [0, 96], sizes = [8, 32], strides = [1, 1]} : vector<8x128xf32> to vector<8x32xf32>
    %373 = arith.mulf %366, %330 : vector<8x32xf32>
    %374 = arith.mulf %365, %371 : vector<8x32xf32>
    %375 = arith.addf %373, %374 : vector<8x32xf32>
    %376 = math.tanh %375 : vector<8x32xf32>
    %377 = arith.mulf %372, %376 : vector<8x32xf32>
    %378 = tpu.concatenate %377, %377, %354, %354 in 1 : vector<8x32xf32>, vector<8x32xf32>, vector<8x32xf32>, vector<8x32xf32> -> vector<8x128xf32>
    %379 = arith.mulf %378, %12 : vector<8x128xf32>
    %cst_75 = arith.constant dense<0.000000e+00> : vector<8x128xf32>
    %380 = tpu.matmul %379, %1, %cst_75 {dimension_numbers = #tpu.dot_dimension_numbers<[1], [0], [0], [1], [0, 0, 1, 1], [], []>, precision = #tpu.contract_precision<fp32>} : vector<8x128xf32>, vector<128x128xf32>, vector<8x128xf32> -> vector<8x128xf32>
    %381 = arith.addf %38, %380 : vector<8x128xf32>
    %382 = arith.negf %381 : vector<8x128xf32>
    %383 = math.exp %382 : vector<8x128xf32>
    %cst_76 = arith.constant 1.000000e+00 : f32
    %384 = vector.broadcast %cst_76 : f32 to vector<8x128xf32>
    %385 = arith.addf %384, %383 : vector<8x128xf32>
    %386 = arith.divf %384, %385 : vector<8x128xf32>
    %387 = vector.extract_strided_slice %386 {offsets = [0, 0], sizes = [8, 32], strides = [1, 1]} : vector<8x128xf32> to vector<8x32xf32>
    %388 = vector.extract_strided_slice %386 {offsets = [0, 32], sizes = [8, 32], strides = [1, 1]} : vector<8x128xf32> to vector<8x32xf32>
    %389 = vector.extract_strided_slice %386 {offsets = [0, 64], sizes = [8, 32], strides = [1, 1]} : vector<8x128xf32> to vector<8x32xf32>
    %cst_77 = arith.constant 2.000000e+00 : f32
    %390 = vector.broadcast %cst_77 : f32 to vector<8x32xf32>
    %391 = arith.mulf %390, %389 : vector<8x32xf32>
    %cst_78 = arith.constant 1.000000e+00 : f32
    %392 = vector.broadcast %cst_78 : f32 to vector<8x32xf32>
    %393 = arith.subf %391, %392 : vector<8x32xf32>
    %394 = vector.extract_strided_slice %386 {offsets = [0, 96], sizes = [8, 32], strides = [1, 1]} : vector<8x128xf32> to vector<8x32xf32>
    %395 = arith.mulf %388, %352 : vector<8x32xf32>
    %396 = arith.mulf %387, %393 : vector<8x32xf32>
    %397 = arith.addf %395, %396 : vector<8x32xf32>
    %398 = math.tanh %397 : vector<8x32xf32>
    %399 = arith.mulf %394, %398 : vector<8x32xf32>
    %400 = vector.extract_strided_slice %399 {offsets = [0, 0], sizes = [2, 32], strides = [1, 1]} : vector<8x32xf32> to vector<2x32xf32>
    %401 = vector.extract_strided_slice %399 {offsets = [2, 0], sizes = [2, 32], strides = [1, 1]} : vector<8x32xf32> to vector<2x32xf32>
    %402 = vector.extract_strided_slice %399 {offsets = [4, 0], sizes = [2, 32], strides = [1, 1]} : vector<8x32xf32> to vector<2x32xf32>
    %403 = vector.extract_strided_slice %399 {offsets = [6, 0], sizes = [2, 32], strides = [1, 1]} : vector<8x32xf32> to vector<2x32xf32>
    %404 = arith.subf %402, %403 : vector<2x32xf32>
    %405 = arith.subf %400, %401 : vector<2x32xf32>
    %406 = tpu.concatenate %404, %405, %400, %401, %402, %403 in 1 : vector<2x32xf32>, vector<2x32xf32>, vector<2x32xf32>, vector<2x32xf32>, vector<2x32xf32>, vector<2x32xf32> -> vector<2x192xf32>
    %c0_79 = arith.constant 0 : index
    %c0_80 = arith.constant 0 : index
    %407 = vector.load %arg5[%c0_79, %c0_80] : memref<192x64xf32, #tpu.memory_space<vmem>>, vector<192x64xf32>
    %cst_81 = arith.constant dense<0.000000e+00> : vector<2x64xf32>
    %408 = tpu.matmul %406, %407, %cst_81 {dimension_numbers = #tpu.dot_dimension_numbers<[1], [0], [0], [1], [0, 0, 1, 1], [], []>, precision = #tpu.contract_precision<fp32>} : vector<2x192xf32>, vector<192x64xf32>, vector<2x64xf32> -> vector<2x64xf32>
    %c0_82 = arith.constant 0 : index
    %c0_83 = arith.constant 0 : index
    %409 = vector.load %arg8[%c0_82, %c0_83] : memref<3x64xf32, #tpu.memory_space<vmem>>, vector<1x64xf32>
    %410 = vector.broadcast %409 : vector<1x64xf32> to vector<2x64xf32>
    %411 = arith.addf %408, %410 : vector<2x64xf32>
    %cst_84 = arith.constant 0.000000e+00 : f32
    %412 = vector.broadcast %cst_84 : f32 to vector<2x64xf32>
    %413 = arith.maximumf %411, %412 : vector<2x64xf32>
    %c0_85 = arith.constant 0 : index
    %c0_86 = arith.constant 0 : index
    %414 = vector.load %arg6[%c0_85, %c0_86] : memref<64x16xf32, #tpu.memory_space<vmem>>, vector<64x16xf32>
    %cst_87 = arith.constant dense<0.000000e+00> : vector<2x16xf32>
    %415 = tpu.matmul %413, %414, %cst_87 {dimension_numbers = #tpu.dot_dimension_numbers<[1], [0], [0], [1], [0, 0, 1, 1], [], []>, precision = #tpu.contract_precision<fp32>} : vector<2x64xf32>, vector<64x16xf32>, vector<2x16xf32> -> vector<2x16xf32>
    %c1 = arith.constant 1 : index
    %c0_88 = arith.constant 0 : index
    %416 = vector.load %arg8[%c1, %c0_88] : memref<3x64xf32, #tpu.memory_space<vmem>>, vector<1x16xf32>
    %417 = vector.broadcast %416 : vector<1x16xf32> to vector<2x16xf32>
    %418 = arith.addf %415, %417 : vector<2x16xf32>
    %cst_89 = arith.constant 0.000000e+00 : f32
    %419 = vector.broadcast %cst_89 : f32 to vector<2x16xf32>
    %420 = arith.maximumf %418, %419 : vector<2x16xf32>
    %c0_90 = arith.constant 0 : index
    %c0_91 = arith.constant 0 : index
    %421 = vector.load %arg7[%c0_90, %c0_91] : memref<16x2xf32, #tpu.memory_space<vmem>>, vector<16x2xf32>
    %cst_92 = arith.constant dense<0.000000e+00> : vector<2x2xf32>
    %422 = tpu.matmul %420, %421, %cst_92 {dimension_numbers = #tpu.dot_dimension_numbers<[1], [0], [0], [1], [0, 0, 1, 1], [], []>, precision = #tpu.contract_precision<fp32>} : vector<2x16xf32>, vector<16x2xf32>, vector<2x2xf32> -> vector<2x2xf32>
    %c2 = arith.constant 2 : index
    %c0_93 = arith.constant 0 : index
    %423 = vector.load %arg8[%c2, %c0_93] : memref<3x64xf32, #tpu.memory_space<vmem>>, vector<1x2xf32>
    %424 = vector.broadcast %423 : vector<1x2xf32> to vector<2x2xf32>
    %425 = arith.addf %422, %424 : vector<2x2xf32>
    %cst_94 = arith.constant dense<0xFF800000> : vector<2xf32>
    %426 = vector.multi_reduction <maximumf>, %425, %cst_94 [1] : vector<2x2xf32> to vector<2xf32>
    %427 = vector.shape_cast %426 : vector<2xf32> to vector<2x1xf32>
    %428 = vector.broadcast %427 : vector<2x1xf32> to vector<2x2xf32>
    %429 = arith.subf %425, %428 : vector<2x2xf32>
    %430 = math.exp %429 : vector<2x2xf32>
    %cst_95 = arith.constant dense<0.000000e+00> : vector<2xf32>
    %431 = vector.multi_reduction <add>, %430, %cst_95 [1] : vector<2x2xf32> to vector<2xf32>
    %432 = vector.shape_cast %431 : vector<2xf32> to vector<2x1xf32>
    %433 = math.log %432 : vector<2x1xf32>
    %434 = vector.broadcast %433 : vector<2x1xf32> to vector<2x2xf32>
    %435 = arith.subf %429, %434 : vector<2x2xf32>
    %cst_96 = arith.constant 0.000000e+00 : f32
    %436 = vector.broadcast %cst_96 : f32 to vector<2x62xf32>
    %437 = tpu.concatenate %406, %435, %436 in 1 : vector<2x192xf32>, vector<2x2xf32>, vector<2x62xf32> -> vector<2x256xf32>
    %c0_97 = arith.constant 0 : index
    %c0_98 = arith.constant 0 : index
    %438 = vector.load %arg9[%c0_97, %c0_98] : memref<2x256xf32, #tpu.memory_space<vmem>>, vector<2x256xf32>
    tpu.vector_store %arg9[%c0_97, %c0_98], %437 {strides = array<i32>} : memref<2x256xf32, #tpu.memory_space<vmem>>, vector<2x256xf32>,
    return
  }
}

</mosaic_0001>

<bundles_post_ra>
// kernel: bilstm_forward.1
= control target key start
LH: loop header
LB: loop body
LE: loop exit
PB: predicated region body
PF: predicated region fallthrough
CT: control target
= control target key end

     0   :  { %vm63_vm1 = vcmask 261120   ;;  %vm65_vm2 = vcmask 523264   ;;  %vm21482_vm3 = vmmov 0   ;;  %s21484_s19 = smov 32   ;;  %vm67_vm4 = vcmask 785408   ;;  %s25189_s1 = inlined_call_operand.vmem [shape: f32[256,128], index: 1, kind: input, shape index: {}]   ;;  %s25190_s0 = inlined_call_operand.vmem [shape: f32[64,128], index: 0, kind: input, shape index: {}]   ;;  %s25191_s2 = inlined_call_operand.vmem [shape: f32[64,128], index: 2, kind: input, shape index: {}]   ;;  %s25192_s4 = inlined_call_operand.vmem [shape: f32[4,128], index: 4, kind: input, shape index: {}]   ;;  %s25193_s3 = inlined_call_operand.vmem [shape: f32[128,128], index: 3, kind: input, shape index: {}]   ;;  %s25194_s5 = inlined_call_operand.vmem [shape: f32[192,64], index: 5, kind: input, shape index: {}]   ;;  %s25195_s6 = inlined_call_operand.vmem [shape: f32[64,16], index: 6, kind: input, shape index: {}]   ;;  %s25196_s8 = inlined_call_operand.vmem [shape: f32[3,64], index: 8, kind: input, shape index: {}]   ;;  %s25197_s7 = inlined_call_operand.vmem [shape: f32[16,2], index: 7, kind: input, shape index: {}]   ;;  %s25198_s9 = inlined_call_operand.vmem [shape: f32[2,256], index: 9, kind: output, shape index: {}]  }
   0x1   :  { %v77_v0 = vld [vmem:[%s25189_s1] sm:$0xff]  ;;  %v78_v1 = vld [vmem:[%s25189_s1 + $0x8] sm:$0xff]  ;;  %v79_v2 = vld [vmem:[%s25189_s1 + $0x10] sm:$0xff]  ;;  %vm13408_vm5 = vcmask 130048   ;;  %vm13871_vm6 = vcmask 9216   ;;  %vm13890_vm7 = vcmask 539648  }
   0x2   :  { %v98_v3 = vand.u32 4294901760, %v77_v0  ;;  %v101_v4 = vand.u32 4294901760, %v78_v1  ;;  %v80_v5 = vld [vmem:[%s25189_s1 + $0x18] sm:$0xff]  ;;  %v104_v6 = vand.u32 4294901760, %v79_v2  ;;  %v81_v7 = vld [vmem:[%s25189_s1 + $0x20] sm:$0xff]  ;;  %v82_v8 = vld [vmem:[%s25189_s1 + $0x28] sm:$0xff] }
   0x3   :  { %v107_v9 = vand.u32 4294901760, %v80_v5  ;;  %v110_v10 = vand.u32 4294901760, %v81_v7  ;;  %v113_v11 = vand.u32 4294901760, %v82_v8  ;;  %v83_v12 = vld [vmem:[%s25189_s1 + $0x30] sm:$0xff]  ;;  %v84_v13 = vld [vmem:[%s25189_s1 + $0x38] sm:$0xff]  ;;  %v85_v18 = vld [vmem:[%s25189_s1 + $0x40] sm:$0xff] }
   0x4   :  { %v21560_v14 = vpack.c.bf16 %v101_v4, %v98_v3  ;;  %v21562_v15 = vsub.f32 %v77_v0, %v98_v3  ;;  %v21564_v16 = vsub.f32 %v78_v1, %v101_v4  ;;  %v116_v17 = vand.u32 4294901760, %v83_v12  ;;  %v86_v26 = vld [vmem:[%s25189_s1 + $0x48] sm:$0xff]  ;;  %v87_v27 = vld [vmem:[%s25189_s1 + $0x50] sm:$0xff]  ;;  %v88_v36 = vld [vmem:[%s25189_s1 + $0x58] sm:$0xff] }
   0x5   :  { %v21569_v19 = vpack.c.bf16 %v107_v9, %v104_v6  ;;  %v119_v20 = vand.u32 4294901760, %v84_v13  ;;  %v21571_v21 = vsub.f32 %v79_v2, %v104_v6  ;;  %v21574_v22 = vpack.c.bf16 %v113_v11, %v110_v10  ;;  %v89_v53 = vld [vmem:[%s25189_s1 + $0x60] sm:$0xff]  ;;  %v90_v57 = vld [vmem:[%s25189_s1 + $0x68] sm:$0xff]  ;;  %v21637_v58 = vld [vmem:[%s25189_s1 + $0x70] sm:$0xff] }
   0x6   :  { %18829 = vmatprep.subr.bf16.mxu1 %v21560_v14  ;;  %v25214_v23 = vand.u32 4294901760, %v21562_v15  ;;  %v25213_v24 = vand.u32 4294901760, %v21564_v16  ;;  %v21578_v25 = vsub.f32 %v80_v5, %v107_v9  ;;  %v122_v30 = vand.u32 4294901760, %v85_v18  ;;  %v21653_v3 = vld [vmem:[%s25189_s1 + $0x78] sm:$0xff]  ;;  %v69_v4 = vld [vmem:[%s25190_s0] sm:$0xff]  ;;  %v70_v9 = vld [vmem:[%s25190_s0 + $0x8] sm:$0xff] }
   0x7   :  { %25373 = vst [vmem:[#allocation2_spill] sm:$0xff] %v21569_v19  ;;  %25374 = vst [vmem:[#allocation3_spill] sm:$0xff] %v21574_v22  ;;  %18831 = vmatpush3.bf16.msra.mxu1 %v21560_v14  ;;  %v21587_v28 = vpack.c.bf16 %v119_v20, %v116_v17  ;;  %v25212_v29 = vand.u32 4294901760, %v21571_v21  ;;  %v21590_v31 = vsub.f32 %v81_v7, %v110_v10  ;;  %v125_v38 = vand.u32 4294901760, %v86_v26 }
   0x8   :  { %18833 = vmatprep.subr.bf16.mxu1 %v21569_v19  ;;  %v262_v32 = vsub.f32 %v21562_v15, %v25214_v23  ;;  %v269_v33 = vsub.f32 %v21564_v16, %v25213_v24  ;;  %v25211_v34 = vand.u32 4294901760, %v21578_v25  ;;  %v21600_v35 = vsub.f32 %v82_v8, %v113_v11  ;;  %v21844_v24 = vld [vmem:[%s25189_s1 + $0xb8] sm:$0xff] }
   0x9   :  { %25375 = vst [vmem:[#allocation4_spill] sm:$0xff] %v21587_v28  ;;  %v276_v37 = vsub.f32 %v21571_v21, %v25212_v29  ;;  %v25210_v39 = vand.u32 4294901760, %v21590_v31  ;;  %v128_v40 = vand.u32 4294901760, %v87_v27  ;;  %v131_v47 = vand.u32 4294901760, %v88_v36 }
   0xa   :  { %v263_v41 = vand.u32 4294901760, %v262_v32  ;;  %v270_v42 = vand.u32 4294901760, %v269_v33  ;;  %v283_v43 = vsub.f32 %v21578_v25, %v25211_v34  ;;  %v25209_v44 = vand.u32 4294901760, %v21600_v35 }
   0xb   :  { %18835 = vmatpush3.bf16.msra.mxu1 %v21569_v19  ;;  %v277_v45 = vand.u32 4294901760, %v276_v37  ;;  %v290_v46 = vsub.f32 %v21590_v31, %v25210_v39  ;;  %v21617_v48 = vsub.f32 %v83_v12, %v116_v17  ;;  %v21623_v52 = vsub.f32 %v84_v13, %v119_v20  ;;  %v76_v39 = vld [vmem:[%s25190_s0 + $0x38] sm:$0xff] }
   0xc   :  { %18837 = vmatprep.subr.bf16.mxu1 %v21574_v22  ;;  %v18860_v49 = vpack.c.bf16 %v270_v42, %v263_v41  ;;  %v284_v50 = vand.u32 4294901760, %v283_v43  ;;  %v297_v51 = vsub.f32 %v21600_v35, %v25209_v44  ;;  %v21628_v54 = vpack.c.bf16 %v125_v38, %v122_v30 }
   0xd   :  { %v291_v55 = vand.u32 4294901760, %v290_v46  ;;  %v25208_v56 = vand.u32 4294901760, %v21617_v48  ;;  %v21639_v61 = vpack.c.bf16 %v131_v47, %v128_v40  ;;  %v25207_v62 = vand.u32 4294901760, %v21623_v52 }
   0xe   :  { %25376 = vst [vmem:[#allocation5_spill] sm:$0xff] %v21628_v54  ;;  %18861 = vmatprep.subr.bf16.mxu0 %v18860_v49  ;;  %v18864_v59 = vpack.c.bf16 %v284_v50, %v277_v45  ;;  %v298_v60 = vand.u32 4294901760, %v297_v51  ;;  %v134_v0 = vand.u32 4294901760, %v89_v53  ;;  %v21646_v1 = vsub.f32 %v85_v18, %v122_v30 }
   0xf   :  { %25377 = vst [vmem:[#allocation6_spill] sm:$0xff] %v21639_v61  ;;  %18839 = vmatpush3.bf16.msra.mxu1 %v21574_v22  ;;  %18863 = vmatpush3.bf16.msra.mxu0 %v18860_v49  ;;  %v304_v63 = vsub.f32 %v21617_v48, %v25208_v56  ;;  %v21648_v2 = vsub.f32 %v86_v26, %v125_v38  ;;  %v137_v7 = vand.u32 4294901760, %v90_v57  ;;  %v140_v8 = vand.u32 4294901760, %v21637_v58  ;;  %v21818_v56 = vld [vmem:[%s25189_s1 + $0xb0] sm:$0xff] }
  0x10   :  { %18841 = vmatprep.subr.bf16.mxu1 %v21587_v28  ;;  %18865 = vmatprep.subr.bf16.mxu0 %v18864_v59  ;;  %v18868_v5 = vpack.c.bf16 %v298_v60, %v291_v55  ;;  %v311_v6 = vsub.f32 %v21623_v52, %v25207_v62  ;;  %v25206_v11 = vand.u32 4294901760, %v21646_v1  ;;  %v21668_v13 = vsub.f32 %v87_v27, %v128_v40 }
  0x11   :  { %v305_v10 = vand.u32 4294901760, %v304_v63  ;;  %v25205_v12 = vand.u32 4294901760, %v21648_v2  ;;  %v143_v18 = vand.u32 4294901760, %v21653_v3  ;;  %v21671_v20 = vsub.f32 %v88_v36, %v131_v47 }
  0x12   :  { %v312_v17 = vand.u32 4294901760, %v311_v6  ;;  %v21673_v26 = vand.u32 4294901760, %v69_v4  ;;  %v318_v30 = vsub.f32 %v21646_v1, %v25206_v11  ;;  %v25204_v27 = vand.u32 4294901760, %v21668_v13  ;;  %v75_v11 = vld [vmem:[%s25190_s0 + $0x30] sm:$0xff] }
  0x13   :  { %18843 = vmatpush3.bf16.msra.mxu1 %v21587_v28  ;;  %18867 = vmatpush3.bf16.msra.mxu0 %v18864_v59  ;;  %v325_v32 = vsub.f32 %v21648_v2, %v25205_v12  ;;  %v21683_v33 = vand.u32 4294901760, %v70_v9  ;;  %v25203_v37 = vand.u32 4294901760, %v21671_v20  ;;  %v21690_v40 = vsub.f32 %v89_v53, %v134_v0  ;;  %v74_v12 = vld [vmem:[%s25190_s0 + $0x28] sm:$0xff]  ;;  %v22005_v28 = vld [vmem:[%s25189_s1 + $0xf0] sm:$0xff] }
  0x14   :  { %25378 = vst [vmem:[#allocation7_spill] sm:$0xff] %v21673_v26  ;;  %18845 = vmatprep.subr.bf16.mxu1 %v21628_v54  ;;  %18869 = vmatprep.subr.bf16.mxu0 %v18868_v5  ;;  %v18872_v36 = vpack.c.bf16 %v312_v17, %v305_v10  ;;  %v21688_v38 = vsub.f32 %v69_v4, %v21673_v26  ;;  %v319_v41 = vand.u32 4294901760, %v318_v30  ;;  %v21726_v4 = vld [vmem:[%s25189_s1 + $0x88] sm:$0xff]  ;;  %v25430_v22 = vand.u32 4294901760, %v21818_v56 }
  0x15   :  { %25379 = vst [vmem:[#allocation8_spill] sm:$0xff] %v21683_v33  ;;  %v326_v42 = vand.u32 4294901760, %v325_v32  ;;  %v332_v43 = vsub.f32 %v21668_v13, %v25204_v27  ;;  %v21696_v45 = vsub.f32 %v70_v9, %v21683_v33  ;;  %15628 = vmatprep.mubr.f32.mxu0 %v21673_v26  ;;  %v339_v46 = vsub.f32 %v21671_v20, %v25203_v37  ;;  %v73_v27 = vld [vmem:[%s25190_s0 + $0x20] sm:$0xff] }
  0x16   :  { %v21703_v47 = vand.u32 4294901760, %v21688_v38  ;;  %v25202_v49 = vand.u32 4294901760, %v21690_v40  ;;  %v21706_v50 = vsub.f32 %v90_v57, %v137_v7  ;;  %v21709_v51 = vpack.c.bf16 %v137_v7, %v134_v0  ;;  %v21721_v0 = vld [vmem:[%s25189_s1 + $0x80] sm:$0xff] }
  0x17   :  { %25380 = vst [vmem:[#allocation9_spill] sm:$0xff] %v21696_v45  ;;  %18847 = vmatpush3.bf16.msra.mxu1 %v21628_v54  ;;  %18871 = vmatpush3.bf16.msra.mxu0 %v18868_v5  ;;  %v18876_v53 = vpack.c.bf16 %v326_v42, %v319_v41  ;;  %v333_v55 = vand.u32 4294901760, %v332_v43  ;;  %v340_v59 = vand.u32 4294901760, %v339_v46  ;;  %v21729_v5 = vsub.f32 %v21637_v58, %v140_v8  ;;  %v21758_v46 = vld [vmem:[%s25189_s1 + $0x98] sm:$0xff] }
  0x18   :  { %25381 = vst [vmem:[#allocation10_spill] sm:$0xff] %v21703_v47  ;;  %25382 = vst [vmem:[#allocation11_spill] sm:$0xff] %v21709_v51  ;;  %18849 = vmatprep.subr.bf16.mxu1 %v21639_v61  ;;  %18873 = vmatprep.subr.bf16.mxu0 %v18872_v36  ;;  %v181_v60 = vsub.f32 %v21688_v38, %v21703_v47  ;;  %v346_v63 = vsub.f32 %v21690_v40, %v25202_v49  ;;  %v25201_v57 = vand.u32 4294901760, %v21706_v50 }
  0x19   :  { %v21732_v6 = vsub.f32 %v21653_v3, %v143_v18  ;;  %v21737_v9 = vand.u32 4294901760, %v21696_v45  ;;  %v25218_v17 = vand.u32 4294901760, %v21721_v0  ;;  %v25217_v58 = vand.u32 4294901760, %v21726_v4 }
  0x1a   :  { %v21734_v7 = vand.u32 4294901760, %v181_v60  ;;  %v353_v10 = vsub.f32 %v21706_v50, %v25201_v57  ;;  %v25200_v30 = vand.u32 4294901760, %v21729_v5  ;;  %v21748_v32 = vpack.c.bf16 %v143_v18, %v140_v8  ;;  %v72_v60 = vld [vmem:[%s25190_s0 + $0x18] sm:$0xff] }
  0x1b   :  { %25383 = vst [vmem:[#allocation12_spill] sm:$0xff] %v21737_v9  ;;  %18851 = vmatpush3.bf16.msra.mxu1 %v21639_v61  ;;  %18875 = vmatpush3.bf16.msra.mxu0 %v18872_v36  ;;  %v25199_v3 = vand.u32 4294901760, %v21732_v6  ;;  %v18880_v41 = vpack.c.bf16 %v340_v59, %v333_v55  ;;  %v347_v42 = vand.u32 4294901760, %v346_v63  ;;  %v21753_v36 = vld [vmem:[%s25189_s1 + $0x90] sm:$0xff]  ;;  %v191_v59 = vsub.f32 %v21696_v45, %v21737_v9 }
  0x1c   :  { %18853 = vmatprep.subr.bf16.mxu1 %v21709_v51  ;;  %18877 = vmatprep.subr.bf16.mxu0 %v18876_v53  ;;  %25384 = vst [vmem:[#allocation13_spill] sm:$0xff] %v21748_v32  ;;  %v354_v43 = vand.u32 4294901760, %v353_v10  ;;  %v360_v8 = vsub.f32 %v21729_v5, %v25200_v30  ;;  %v71_v55 = vld [vmem:[%s25190_s0 + $0x10] sm:$0xff]  ;;  %v21780_v63 = vpack.c.bf16 %v25217_v58, %v25218_v17  ;;  %v25216_v10 = vand.u32 4294901760, %v21753_v36 }
  0x1d   :  { %15584 = vmatprep.mubr.f32.mxu1 %v21734_v7  ;;  %v367_v18 = vsub.f32 %v21732_v6, %v25199_v3  ;;  %v25215_v3 = vand.u32 4294901760, %v21758_v46  ;;  %v21790_v37 = vand.u32 4294901760, %v71_v55  ;;  %v21823_v44 = vand.u32 4294901760, %v73_v27 }
  0x1e   :  { %25385 = vst [vmem:[#allocation14_spill] sm:$0xff] %v21780_v63  ;;  %v18884_v30 = vpack.c.bf16 %v354_v43, %v347_v42  ;;  %v361_v57 = vand.u32 4294901760, %v360_v8  ;;  %v21801_v42 = vld [vmem:[%s25189_s1 + $0xa8] sm:$0xff]  ;;  %v21803_v43 = vand.u32 4294901760, %v72_v60  ;;  %v21805_v8 = vand.u32 4294901760, %v191_v59 }
  0x1f   :  { %18855 = vmatpush3.bf16.msra.mxu1 %v21709_v51  ;;  %18879 = vmatpush3.bf16.msra.mxu0 %v18876_v53  ;;  %v368_v49 = vand.u32 4294901760, %v367_v18  ;;  %v21788_v53 = vld [vmem:[%s25189_s1 + $0xa0] sm:$0xff]  ;;  %25386 = vst [vmem:[#allocation15_spill] sm:$0xff] %v21790_v37  ;;  %v21808_v18 = vsub.f32 %v71_v55, %v21790_v37  ;;  %25390 = vst [vmem:[#allocation19_spill] sm:$0xff] %v21823_v44  ;;  %v21825_v55 = vand.u32 4294901760, %v74_v12  ;;  %v21898_v51 = vld [vmem:[%s25189_s1 + $0xc8] sm:$0xff] }
  0x20   :  { %18857 = vmatprep.subr.bf16.mxu1 %v21748_v32  ;;  %18881 = vmatprep.subr.bf16.mxu0 %v18880_v41  ;;  %25387 = vst [vmem:[#allocation16_spill] sm:$0xff] %v21803_v43  ;;  %v21821_v59 = vsub.f32 %v72_v60, %v21803_v43  ;;  %v21835_v34 = vpack.c.bf16 %v25215_v3, %v25216_v10  ;;  %v21855_v3 = vand.u32 4294901760, %v75_v11  ;;  %v21863_v60 = vand.u32 4294901760, %v76_v39 }
  0x21   :  { %25388 = vst [vmem:[#allocation17_spill] sm:$0xff] %v21808_v18  ;;  %25391 = vst [vmem:[#allocation20_spill] sm:$0xff] %v21825_v55  ;;  %v21839_v29 = vand.u32 4294901760, %v21808_v18  ;;  %v18892_v10 = vpack.c.bf16 %v21564_v16, %v21562_v15  ;;  %v25402_v58 = vand.u32 4294901760, %v21788_v53  ;;  %v25410_v47 = vand.u32 4294901760, %v21726_v4 }
  0x22   :  { %25389 = vst [vmem:[#allocation18_spill] sm:$0xff] %v21821_v59  ;;  %25392 = vst [vmem:[#allocation21_spill] sm:$0xff] %v21835_v34  ;;  %v21847_v23 = vand.u32 4294901760, %v21821_v59  ;;  %v21875_v9 = vsub.f32 %v75_v11, %v21855_v3  ;;  %v21893_v11 = vld [vmem:[%s25189_s1 + $0xc0] sm:$0xff]  ;;  %v25425_v26 = vand.u32 4294901760, %v21801_v42 }
  0x23   :  { %18859 = vmatpush3.bf16.msra.mxu1 %v21748_v32  ;;  %18883 = vmatpush3.bf16.msra.mxu0 %v18880_v41  ;;  %v18888_v41 = vpack.c.bf16 %v368_v49, %v361_v57  ;;  %25393 = vst [vmem:[#allocation22_spill] sm:$0xff] %v21839_v29  ;;  %v21850_v49 = vsub.f32 %v73_v27, %v21823_v44  ;;  %25397 = vst [vmem:[#allocation26_spill] sm:$0xff] %v21855_v3 }
  0x24   :  { %18885 = vmatprep.subr.bf16.mxu0 %v18884_v30  ;;  %19021 = vmatprep.subr.bf16.mxu1 %v21780_v63  ;;  %25394 = vst [vmem:[#allocation23_spill] sm:$0xff] %v21847_v23  ;;  %v21853_v57 = vsub.f32 %v74_v12, %v21825_v55  ;;  %v201_v17 = vsub.f32 %v21808_v18, %v21839_v29  ;;  %25398 = vst [vmem:[#allocation27_spill] sm:$0xff] %v21863_v60 }
  0x25   :  { %25395 = vst [vmem:[#allocation24_spill] sm:$0xff] %v21850_v49  ;;  %v211_v12 = vsub.f32 %v21821_v59, %v21847_v23  ;;  %v21869_v27 = vand.u32 4294901760, %v21850_v49  ;;  %25401 = vst [vmem:[#allocation30_spill] sm:$0xff] %v21875_v9  ;;  %v21888_v32 = vsub.f32 %v76_v39, %v21863_v60  ;;  %v21907_v39 = vand.u32 4294901760, %v21875_v9 }
  0x26   :  { %25396 = vst [vmem:[#allocation25_spill] sm:$0xff] %v21853_v57  ;;  %15585 = vmatmul.mubr.f32.vlgmr.msra.gmra.mrb[0].mxu1 %v21805_v8  ;;  %v21872_v62 = vand.u32 4294901760, %v21853_v57  ;;  %v21885_v29 = vand.u32 4294901760, %v201_v17  ;;  %v21926_v54 = vsub.f32 %v21726_v4, %v25410_v47  ;;  %v21943_v47 = vld [vmem:[%s25189_s1 + $0xd0] sm:$0xff]  ;;  %v21948_v4 = vld [vmem:[%s25189_s1 + $0xd8] sm:$0xff]  ;;  %v25431_v59 = vand.u32 4294901760, %v21844_v24 }
  0x27   :  { %18887 = vmatpush3.bf16.msra.mxu0 %v18884_v30  ;;  %19023 = vmatpush3.bf16.msra.mxu1 %v21780_v63  ;;  %25399 = vst [vmem:[#allocation28_spill] sm:$0xff] %v21869_v27  ;;  %v25403_v30 = vand.u32 4294901760, %v21801_v42  ;;  %25405 = vst [vmem:[#allocation32_spill] sm:$0xff] %v21888_v32  ;;  %v21900_v61 = vand.u32 4294901760, %v211_v12  ;;  %v241_v12 = vsub.f32 %v21875_v9, %v21907_v39 }
  0x28   :  { %25400 = vst [vmem:[#allocation29_spill] sm:$0xff] %v21872_v62  ;;  %18889 = vmatprep.subr.bf16.mxu0 %v18888_v41  ;;  %19025 = vmatprep.subr.bf16.mxu1 %v21835_v34  ;;  %v231_v17 = vsub.f32 %v21853_v57, %v21872_v62  ;;  %25406 = vst [vmem:[#allocation33_spill] sm:$0xff] %v21907_v39 }
  0x29   :  { %v21882_v63 = vpack.c.bf16 %v25403_v30, %v25402_v58  ;;  %v221_v58 = vsub.f32 %v21850_v49, %v21869_v27  ;;  %15587 = vmatprep.mubr.f32.mxu1 %v21885_v29  ;;  %v21911_v30 = vand.u32 4294901760, %v21888_v32  ;;  %v25409_v27 = vand.u32 4294901760, %v21721_v0 }
  0x2a   :  { %15588 = vmatmul.mubr.f32.gmra.mrb[2].mxu1 %v21900_v61  ;;  %v21950_v9 = vand.u32 4294901760, %v231_v17  ;;  %v22010_v17 = vld [vmem:[%s25189_s1 + $0xf8] sm:$0xff]  ;;  %v22025_v49 = vsub.f32 %v21801_v42, %v25425_v26  ;;  %v1102_v26 = vand.u32 4294901760, %v22005_v28 }
  0x2b   :  { %25404 = vst [vmem:[#allocation31_spill] sm:$0xff] %v21882_v63  ;;  %25407 = vst [vmem:[#allocation34_spill] sm:$0xff] %v21911_v30  ;;  %18891 = vmatpush3.bf16.msra.mxu0 %v18888_v41  ;;  %19027 = vmatpush3.bf16.msra.mxu1 %v21835_v34  ;;  %v21914_v23 = vand.u32 4294901760, %v221_v58  ;;  %v21921_v62 = vsub.f32 %v21721_v0, %v25409_v27  ;;  %v18896_v41 = vpack.c.bf16 %v21578_v25, %v21571_v21 }
  0x2c   :  { %18893 = vmatprep.subr.bf16.mxu0 %v18892_v10  ;;  %19029 = vmatprep.subr.bf16.mxu1 %v21882_v63  ;;  %v25411_v58 = vand.u32 4294901760, %v21818_v56  ;;  %v25412_v34 = vand.u32 4294901760, %v21844_v24  ;;  %25414 = vst [vmem:[#allocation37_spill] sm:$0xff] %v21950_v9  ;;  %v25416_v27 = vand.u32 4294901760, %v21753_v36  ;;  %v1105_v42 = vand.u32 4294901760, %v22010_v17 }
  0x2d   :  { %25408 = vst [vmem:[#allocation35_spill] sm:$0xff] %v21914_v23  ;;  %15590 = vmatprep.mubr.f32.mxu1 %v21914_v23 }
  0x2e   :  { %v21935_v39 = vpack.c.bf16 %v25412_v34, %v25411_v58  ;;  %v251_v34 = vsub.f32 %v21888_v32, %v21911_v30  ;;  %15629 = vmatmul.mubr.f32.vlgmr.msra.gmra.mrb[0].mxu0 %v21683_v33  ;;  %v21956_v58 = vand.u32 4294901760, %v241_v12  ;;  %v21961_v0 = vsub.f32 %v21753_v36, %v25416_v27  ;;  %15591 = vmatmul.mubr.f32.gmra.mrb[4].mxu1 %v21950_v9 }
  0x2f   :  { %18895 = vmatpush3.bf16.msra.mxu0 %v18892_v10  ;;  %19031 = vmatpush3.bf16.msra.mxu1 %v21882_v63  ;;  %v25417_v30 = vand.u32 4294901760, %v21758_v46  ;;  %v18900_v12 = vpack.c.bf16 %v21600_v35, %v21590_v31  ;;  %v25418_v36 = vand.u32 4294901760, %v21893_v11  ;;  %v25419_v10 = vand.u32 4294901760, %v21898_v51 }
  0x30   :  { %25413 = vst [vmem:[#allocation36_spill] sm:$0xff] %v21935_v39  ;;  %25415 = vst [vmem:[#allocation38_spill] sm:$0xff] %v21956_v58  ;;  %18897 = vmatprep.subr.bf16.mxu0 %v18896_v41  ;;  %19033 = vmatprep.subr.bf16.mxu1 %v21935_v39  ;;  %v21993_v63 = vand.u32 4294901760, %v251_v34  ;;  %v25426_v34 = vand.u32 4294901760, %v21943_v47 }
  0x31   :  { %v21969_v33 = vsub.f32 %v21758_v46, %v25417_v30  ;;  %v21978_v27 = vpack.c.bf16 %v25419_v10, %v25418_v36  ;;  %v21986_v46 = vld [vmem:[%s25189_s1 + $0xe0] sm:$0xff]  ;;  %v21991_v30 = vld [vmem:[%s25189_s1 + $0xe8] sm:$0xff]  ;;  %15631 = vmatprep.mubr.f32.mxu0 %v21790_v37  ;;  %v25422_v36 = vand.u32 4294901760, %v21788_v53  ;;  %15593 = vmatprep.mubr.f32.mxu1 %v21956_v58  ;;  %v25424_v37 = vand.u32 4294901760, %v21926_v54 }
  0x32   :  { %25421 = vst [vmem:[#allocation40_spill] sm:$0xff] %v21993_v63  ;;  %15632 = vmatmul.mubr.f32.gmra.mrb[2].mxu0 %v21803_v43  ;;  %v1099_v57 = vand.u32 4294901760, %v21991_v30  ;;  %15594 = vmatmul.mubr.f32.gmra.mrb[6].mxu1 %v21993_v63  ;;  %v22051_v63 = vsub.f32 %v21818_v56, %v25430_v22  ;;  %v22056_v58 = vsub.f32 %v21844_v24, %v25431_v59 }
  0x33   :  { %25420 = vst [vmem:[#allocation39_spill] sm:$0xff] %v21978_v27  ;;  %v21999_v10 = vsub.f32 %v21788_v53, %v25422_v36  ;;  %18899 = vmatpush3.bf16.msra.mxu0 %v18896_v41  ;;  %19035 = vmatpush3.bf16.msra.mxu1 %v21935_v39  ;;  %v25423_v53 = vand.u32 4294901760, %v21921_v62  ;;  %v1231_v32 = vsub.f32 %v21926_v54, %v25424_v37  ;;  %v1096_v37 = vand.u32 4294901760, %v21986_v46 }
  0x34   :  { %18901 = vmatprep.subr.bf16.mxu0 %v18900_v12  ;;  %19037 = vmatprep.subr.bf16.mxu1 %v21978_v27  ;;  %v18904_v41 = vpack.c.bf16 %v21623_v52, %v21617_v48  ;;  %v18908_v22 = vpack.c.bf16 %v21648_v2, %v21646_v1  ;;  %v18912_v24 = vpack.c.bf16 %v21671_v20, %v21668_v13  ;;  %v1265_v18 = vand.u32 4294901760, %v22051_v63 }
  0x35   :  { %v1224_v36 = vsub.f32 %v21921_v62, %v25423_v53  ;;  %v25427_v53 = vand.u32 4294901760, %v21948_v4  ;;  %15634 = vmatprep.mubr.f32.mxu0 %v21823_v44  ;;  %15848 = vmatprep.mubr.f32.mxu1 %v21734_v7  ;;  %v1232_v43 = vand.u32 4294901760, %v1231_v32  ;;  %v22066_v56 = vpack.c.bf16 %v1099_v57, %v1096_v37 }
  0x36   :  { %15635 = vmatmul.mubr.f32.gmra.mrb[4].mxu0 %v21825_v55  ;;  %v25432_v55 = vand.u32 4294901760, %v21969_v33  ;;  %v22070_v59 = vpack.c.bf16 %v1105_v42, %v1102_v26  ;;  %v18916_v32 = vpack.c.bf16 %v21706_v50, %v21690_v40  ;;  %v1272_v19 = vand.u32 4294901760, %v22056_v58 }
  0x37   :  { %v22034_v39 = vpack.c.bf16 %v25427_v53, %v25426_v34  ;;  %v25429_v34 = vand.u32 4294901760, %v21961_v0  ;;  %18903 = vmatpush3.bf16.msra.mxu0 %v18900_v12  ;;  %19039 = vmatpush3.bf16.msra.mxu1 %v21978_v27  ;;  %v1225_v7 = vand.u32 4294901760, %v1224_v36  ;;  %v22082_v36 = vpack.c.bf16 %v21732_v6, %v21729_v5 }
  0x38   :  { %v1245_v44 = vsub.f32 %v21969_v33, %v25432_v55  ;;  %18905 = vmatprep.subr.bf16.mxu0 %v18904_v41  ;;  %15637 = vmatprep.mubr.f32.mxu0 %v21855_v3  ;;  %v25433_v55 = vand.u32 4294901760, %v21999_v10 }
  0x39   :  { %25428 = vst [vmem:[#allocation41_spill] sm:$0xff] %v22034_v39  ;;  %v1238_v53 = vsub.f32 %v21961_v0, %v25429_v34  ;;  %v1258_v34 = vand.u32 4294901760, %v22025_v49  ;;  %19041 = vmatprep.subr.bf16.mxu1 %v22034_v39  ;;  %v19052_v3 = vpack.c.bf16 %v1232_v43, %v1225_v7 }
  0x3a   :  { %v22078_v12 = vsub.f32 %v21999_v10, %v25433_v55  ;;  %15638 = vmatmul.mubr.f32.gmra.mrb[6].mxu0 %v21863_v60  ;;  %v1246_v9 = vand.u32 4294901760, %v1245_v44  ;;  %v25434_v55 = vand.u32 4294901760, %v21893_v11  ;;  %v25437_v44 = vand.u32 4294901760, %v21948_v4 }
  0x3b   :  { %v1239_v27 = vand.u32 4294901760, %v1238_v53  ;;  %18907 = vmatpush3.bf16.msra.mxu0 %v18904_v41  ;;  %19043 = vmatpush3.bf16.msra.mxu1 %v22034_v39  ;;  %v1259_v45 = vsub.f32 %v22025_v49, %v1258_v34  ;;  %v25435_v53 = vand.u32 4294901760, %v21898_v51  ;;  %v25436_v41 = vand.u32 4294901760, %v21943_v47 }
  0x3c   :  { %v22092_v23 = vsub.f32 %v21893_v11, %v25434_v55  ;;  %18909 = vmatprep.subr.bf16.mxu0 %v18908_v22  ;;  %19045 = vmatprep.subr.bf16.mxu1 %v22066_v56  ;;  %v22108_v7 = vsub.f32 %v21948_v4, %v25437_v44  ;;  %v1253_v11 = vand.u32 4294901760, %v22078_v12  ;;  %v22113_v55 = vsub.f32 %v21986_v46, %v1096_v37 }
  0x3d   :  { %v22098_v60 = vsub.f32 %v21898_v51, %v25435_v53  ;;  %v22103_v43 = vsub.f32 %v21943_v47, %v25436_v41  ;;  %15672 = vmatprep.mubr.f32.mxu0 %v21688_v38  ;;  %v22116_v51 = vsub.f32 %v21991_v30, %v1099_v57  ;;  %v25438_v53 = vand.u32 4294901760, %v21562_v15 }
  0x3e   :  { %v25439_v47 = vand.u32 4294901760, %v21564_v16  ;;  %v1266_v39 = vsub.f32 %v22051_v63, %v1265_v18  ;;  %v1273_v4 = vsub.f32 %v22056_v58, %v1272_v19  ;;  %v22127_v44 = vsub.f32 %v22005_v28, %v1102_v26 }
  0x3f   :  { %v25440_v12 = vand.u32 4294901760, %v21571_v21  ;;  %v25441_v46 = vand.u32 4294901760, %v21578_v25  ;;  %18911 = vmatpush3.bf16.msra.mxu0 %v18908_v22  ;;  %19047 = vmatpush3.bf16.msra.mxu1 %v22066_v56  ;;  %v19056_v15 = vpack.c.bf16 %v1246_v9, %v1239_v27  ;;  %v1279_v16 = vand.u32 4294901760, %v22092_v23 }
  0x40   :  { %v22122_v41 = vpack.c.bf16 %v25439_v47, %v25438_v53  ;;  %v22138_v57 = vsub.f32 %v22010_v17, %v1105_v42  ;;  %v25442_v30 = vand.u32 4294901760, %v21590_v31  ;;  %v25443_v28 = vand.u32 4294901760, %v21600_v35  ;;  %18913 = vmatprep.subr.bf16.mxu0 %v18912_v24  ;;  %19049 = vmatprep.subr.bf16.mxu1 %v22070_v59 }
  0x41   :  { %v22133_v37 = vpack.c.bf16 %v25441_v46, %v25440_v12  ;;  %v1286_v21 = vand.u32 4294901760, %v22098_v60  ;;  %v1293_v25 = vand.u32 4294901760, %v22103_v43  ;;  %v1300_v9 = vand.u32 4294901760, %v22108_v7 }
  0x42   :  { %v22144_v26 = vpack.c.bf16 %v25443_v28, %v25442_v30  ;;  %v25444_v27 = vand.u32 4294901760, %v21617_v48  ;;  %v25445_v17 = vand.u32 4294901760, %v21623_v52  ;;  %v1307_v31 = vand.u32 4294901760, %v22113_v55 }
  0x43   :  { %v1314_v35 = vand.u32 4294901760, %v22116_v51  ;;  %v25446_v22 = vand.u32 4294901760, %v21646_v1  ;;  %v25447_v53 = vand.u32 4294901760, %v21648_v2  ;;  %v25448_v12 = vand.u32 4294901760, %v21668_v13  ;;  %18915 = vmatpush3.bf16.msra.mxu0 %v18912_v24  ;;  %19051 = vmatpush3.bf16.msra.mxu1 %v22070_v59 }
  0x44   :  { %v22154_v42 = vpack.c.bf16 %v25445_v17, %v25444_v27  ;;  %v25449_v46 = vand.u32 4294901760, %v21671_v20  ;;  %v1321_v48 = vand.u32 4294901760, %v22127_v44  ;;  %v25450_v52 = vand.u32 4294901760, %v21690_v40  ;;  %18917 = vmatprep.subr.bf16.mxu0 %v18916_v32  ;;  %19053 = vmatprep.subr.bf16.mxu1 %v19052_v3 }
  0x45   :  { %v22162_v47 = vpack.c.bf16 %v25447_v53, %v25446_v22  ;;  %v25451_v28 = vand.u32 4294901760, %v21706_v50  ;;  %v25452_v1 = vand.u32 4294901760, %v21729_v5  ;;  %v25453_v2 = vand.u32 4294901760, %v21732_v6 }
  0x46   :  { %v22168_v30 = vpack.c.bf16 %v25449_v46, %v25448_v12  ;;  %v25454_v13 = vand.u32 4294901760, %v21921_v62  ;;  %v25455_v20 = vand.u32 4294901760, %v21926_v54  ;;  %v1328_v40 = vand.u32 4294901760, %v22138_v57  ;;  %15849 = vmatmul.mubr.f32.vlgmr.msra.gmra.mrb[8].mxu1 %v21805_v8 }
  0x47   :  { %v22175_v27 = vpack.c.bf16 %v25451_v28, %v25450_v52  ;;  %v22181_v17 = vpack.c.bf16 %v25453_v2, %v25452_v1  ;;  %v25456_v50 = vand.u32 4294901760, %v21961_v0  ;;  %v25457_v53 = vand.u32 4294901760, %v21969_v33  ;;  %18919 = vmatpush3.bf16.msra.mxu0 %v18916_v32  ;;  %19055 = vmatpush3.bf16.msra.mxu1 %v19052_v3 }
  0x48   :  { %v22187_v22 = vpack.c.bf16 %v25455_v20, %v25454_v13  ;;  %v25458_v6 = vand.u32 4294901760, %v21999_v10  ;;  %v22201_v46 = vpack.c.bf16 %v1272_v19, %v1265_v18  ;;  %v1260_v52 = vand.u32 4294901760, %v1259_v45  ;;  %18921 = vmatprep.subr.bf16.mxu0 %v22082_v36  ;;  %19057 = vmatprep.subr.bf16.mxu1 %v19056_v15 }
  0x49   :  { %v22195_v5 = vpack.c.bf16 %v25457_v53, %v25456_v50  ;;  %v22203_v24 = vpack.c.bf16 %v1286_v21, %v1279_v16  ;;  %v22205_v28 = vpack.c.bf16 %v1300_v9, %v1293_v25  ;;  %v22207_v1 = vpack.c.bf16 %v1314_v35, %v1307_v31  ;;  %15851 = vmatprep.mubr.f32.mxu1 %v21885_v29  ;;  %v25461_v29 = vld [vmem:[#allocation37_spill] sm:$0xff]  ;;  %v25464_v50 = vld [vmem:[#allocation38_spill] sm:$0xff] }
  0x4a   :  { %v22199_v12 = vpack.c.bf16 %v1258_v34, %v25458_v6  ;;  %v22209_v2 = vpack.c.bf16 %v1328_v40, %v1321_v48  ;;  %v1267_v13 = vand.u32 4294901760, %v1266_v39  ;;  %v19060_v19 = vpack.c.bf16 %v1260_v52, %v1253_v11  ;;  %15852 = vmatmul.mubr.f32.gmra.mrb[10].mxu1 %v21900_v61  ;;  %v25465_v53 = vld [vmem:[#allocation18_spill] sm:$0xff]  ;;  %v25466_v6 = vld [vmem:[#allocation40_spill] sm:$0xff] }
  0x4b   :  { %v1274_v18 = vand.u32 4294901760, %v1273_v4  ;;  %v1280_v45 = vsub.f32 %v22092_v23, %v1279_v16  ;;  %v1287_v34 = vsub.f32 %v22098_v60, %v1286_v21  ;;  %18923 = vmatpush3.bf16.msra.mxu0 %v22082_v36  ;;  %19059 = vmatpush3.bf16.msra.mxu1 %v19056_v15  ;;  %v1294_v8 = vsub.f32 %v22103_v43, %v1293_v25  ;;  %v25459_v4 = vld [vmem:[#allocation35_spill] sm:$0xff]  ;;  %v25460_v16 = vld [vmem:[#allocation9_spill] sm:$0xff]  ;;  %v25462_v36 = vld [vmem:[#allocation2_spill] sm:$0xff] }
  0x4c   :  { %18925 = vmatprep.subr.bf16.mxu0 %v21560_v14  ;;  %19061 = vmatprep.subr.bf16.mxu1 %v19060_v19  ;;  %v1301_v11 = vsub.f32 %v22108_v7, %v1300_v9  ;;  %v1308_v25 = vsub.f32 %v22113_v55, %v1307_v31  ;;  %v1315_v20 = vsub.f32 %v22116_v51, %v1314_v35  ;;  %v25463_v9 = vld [vmem:[#allocation17_spill] sm:$0xff] }
  0x4d   :  { %v19064_v3 = vpack.c.bf16 %v1274_v18, %v1267_v13  ;;  %v1281_v39 = vand.u32 4294901760, %v1280_v45  ;;  %v1288_v32 = vand.u32 4294901760, %v1287_v34  ;;  %15854 = vmatprep.mubr.f32.mxu1 %v25459_v4  ;;  %v1295_v61 = vand.u32 4294901760, %v1294_v8  ;;  %v25467_v13 = vld [vmem:[#allocation3_spill] sm:$0xff]  ;;  %v25468_v45 = vld [vmem:[#allocation24_spill] sm:$0xff]  ;;  %v25470_v8 = vld [vmem:[#allocation25_spill] sm:$0xff] }
  0x4e   :  { %15673 = vmatmul.mubr.f32.vlgmr.msra.gmra.mrb[0].mxu0 %v25460_v16  ;;  %15855 = vmatmul.mubr.f32.gmra.mrb[12].mxu1 %v25461_v29  ;;  %v1302_v21 = vand.u32 4294901760, %v1301_v11  ;;  %v1322_v52 = vsub.f32 %v22127_v44, %v1321_v48  ;;  %v1309_v31 = vand.u32 4294901760, %v1308_v25  ;;  %v1316_v18 = vand.u32 4294901760, %v1315_v20  ;;  %v25469_v34 = vld [vmem:[#allocation7_spill] sm:$0xff]  ;;  %v25472_v11 = vld [vmem:[#allocation30_spill] sm:$0xff]  ;;  %v25473_v4 = vld [vmem:[#allocation32_spill] sm:$0xff] }
  0x4f   :  { %18927 = vmatpush3.bf16.msra.mxu0 %v21560_v14  ;;  %19063 = vmatpush3.bf16.msra.mxu1 %v19060_v19  ;;  %v19068_v15 = vpack.c.bf16 %v1288_v32, %v1281_v39  ;;  %v1329_v35 = vsub.f32 %v22138_v57, %v1328_v40  ;;  %v25474_v40 = vld [vmem:[#allocation5_spill] sm:$0xff]  ;;  %v25477_v25 = vld [vmem:[#allocation11_spill] sm:$0xff]  ;;  %v19088_v20 = vpack.c.bf16 %v21969_v33, %v21961_v0 }
  0x50   :  { %18929 = vmatprep.subr.bf16.mxu0 %v25462_v36  ;;  %19065 = vmatprep.subr.bf16.mxu1 %v19064_v3  ;;  %v19072_v19 = vpack.c.bf16 %v1302_v21, %v1295_v61  ;;  %v19076_v48 = vpack.c.bf16 %v1316_v18, %v1309_v31  ;;  %v1323_v39 = vand.u32 4294901760, %v1322_v52  ;;  %v25475_v61 = vld [vmem:[#allocation10_spill] sm:$0xff]  ;;  %v19084_v21 = vpack.c.bf16 %v21926_v54, %v21921_v62  ;;  %v25480_v62 = vld [vmem:[#allocation15_spill] sm:$0xff]  ;;  %v25481_v52 = vld [vmem:[#allocation16_spill] sm:$0xff] }
  0x51   :  { %15675 = vmatprep.mubr.f32.mxu0 %v25463_v9  ;;  %15857 = vmatprep.mubr.f32.mxu1 %v25464_v50  ;;  %v1330_v32 = vand.u32 4294901760, %v1329_v35  ;;  %v25478_v50 = vld [vmem:[#allocation8_spill] sm:$0xff]  ;;  %v19092_v54 = vpack.c.bf16 %v22025_v49, %v21999_v10  ;;  %v19096_v33 = vpack.c.bf16 %v22056_v58, %v22051_v63  ;;  %v25482_v0 = vld [vmem:[#allocation19_spill] sm:$0xff]  ;;  %v19100_v49 = vpack.c.bf16 %v22098_v60, %v22092_v23  ;;  %v25485_v10 = vld [vmem:[#allocation22_spill] sm:$0xff] }
  0x52   :  { %15676 = vmatmul.mubr.f32.gmra.mrb[2].mxu0 %v25465_v53  ;;  %15858 = vmatmul.mubr.f32.gmra.mrb[14].mxu1 %v25466_v6  ;;  %v25479_v6 = vld [vmem:[#allocation13_spill] sm:$0xff]  ;;  %v25484_v31 = vld [vmem:[#allocation20_spill] sm:$0xff]  ;;  %v25486_v18 = vld [vmem:[#allocation26_spill] sm:$0xff]  ;;  %v19108_v60 = vpack.c.bf16 %v22116_v51, %v22113_v55 }
  0x53   :  { %18931 = vmatpush3.bf16.msra.mxu0 %v25462_v36  ;;  %19067 = vmatpush3.bf16.msra.mxu1 %v19064_v3  ;;  %v25471_v3 = vld [vmem:[#allocation4_spill] sm:$0xff]  ;;  %v19080_v29 = vpack.c.bf16 %v1330_v32, %v1323_v39  ;;  %v25487_v63 = vld [vmem:[#allocation23_spill] sm:$0xff]  ;;  %v25490_v23 = vld [vmem:[#allocation29_spill] sm:$0xff] }
  0x54   :  { %18933 = vmatprep.subr.bf16.mxu0 %v25467_v13  ;;  %19069 = vmatprep.subr.bf16.mxu1 %v19068_v15  ;;  %v25488_v58 = vld [vmem:[#allocation27_spill] sm:$0xff]  ;;  %v25489_v35 = vld [vmem:[#allocation28_spill] sm:$0xff] }
  0x55   :  { %15678 = vmatprep.mubr.f32.mxu0 %v25468_v45  ;;  %15892 = vmatprep.mubr.f32.mxu1 %v25469_v34  ;;  %v25495_v55 = vld [vmem:[#allocation31_spill] sm:$0xff]  ;;  %v25496_v51 = vld [vmem:[#allocation36_spill] sm:$0xff] }
  0x56   :  { %15679 = vmatmul.mubr.f32.gmra.mrb[4].mxu0 %v25470_v8 }
  0x57   :  { %18935 = vmatpush3.bf16.msra.mxu0 %v25467_v13  ;;  %19071 = vmatpush3.bf16.msra.mxu1 %v19068_v15  ;;  %v25476_v15 = vld [vmem:[#allocation6_spill] sm:$0xff] }
  0x58   :  { %18937 = vmatprep.subr.bf16.mxu0 %v25471_v3  ;;  %19073 = vmatprep.subr.bf16.mxu1 %v19072_v19 }
  0x59   :  { %15681 = vmatprep.mubr.f32.mxu0 %v25472_v11 }
  0x5a   :  { %15682 = vmatmul.mubr.f32.gmra.mrb[6].mxu0 %v25473_v4 }
  0x5b   :  { %18939 = vmatpush3.bf16.msra.mxu0 %v25471_v3  ;;  %19075 = vmatpush3.bf16.msra.mxu1 %v19072_v19  ;;  %v25483_v19 = vld [vmem:[#allocation12_spill] sm:$0xff] }
  0x5c   :  { %18941 = vmatprep.subr.bf16.mxu0 %v25474_v40  ;;  %19077 = vmatprep.subr.bf16.mxu1 %v19076_v48 }
  0x5d   :  { %15716 = vmatprep.mubr.f32.mxu0 %v25475_v61 }
  0x5f   :  { %18943 = vmatpush3.bf16.msra.mxu0 %v25474_v40  ;;  %19079 = vmatpush3.bf16.msra.mxu1 %v19076_v48  ;;  %v25492_v48 = vld [vmem:[#allocation34_spill] sm:$0xff] }
  0x60   :  { %18945 = vmatprep.subr.bf16.mxu0 %v25476_v15  ;;  %19081 = vmatprep.subr.bf16.mxu1 %v19080_v29 }
  0x63   :  { %18947 = vmatpush3.bf16.msra.mxu0 %v25476_v15  ;;  %19083 = vmatpush3.bf16.msra.mxu1 %v19080_v29 }
  0x64   :  { %18949 = vmatprep.subr.bf16.mxu0 %v25477_v25  ;;  %19085 = vmatprep.subr.bf16.mxu1 %v19084_v21 }
  0x66   :  { %15893 = vmatmul.mubr.f32.vlgmr.msra.gmra.mrb[8].mxu1 %v25478_v50 }
  0x67   :  { %18951 = vmatpush3.bf16.msra.mxu0 %v25477_v25  ;;  %19087 = vmatpush3.bf16.msra.mxu1 %v19084_v21 }
  0x68   :  { %18953 = vmatprep.subr.bf16.mxu0 %v25479_v6  ;;  %19089 = vmatprep.subr.bf16.mxu1 %v19088_v20 }
  0x69   :  { %15895 = vmatprep.mubr.f32.mxu1 %v25480_v62 }
  0x6a   :  { %15896 = vmatmul.mubr.f32.gmra.mrb[10].mxu1 %v25481_v52 }
  0x6b   :  { %18955 = vmatpush3.bf16.msra.mxu0 %v25479_v6  ;;  %19091 = vmatpush3.bf16.msra.mxu1 %v19088_v20 }
  0x6c   :  { %18957 = vmatprep.subr.bf16.mxu0 %v22122_v41  ;;  %19093 = vmatprep.subr.bf16.mxu1 %v19092_v54 }
  0x6d   :  { %15898 = vmatprep.mubr.f32.mxu1 %v25482_v0 }
  0x6e   :  { %15717 = vmatmul.mubr.f32.vlgmr.msra.gmra.mrb[0].mxu0 %v25483_v19  ;;  %15899 = vmatmul.mubr.f32.gmra.mrb[12].mxu1 %v25484_v31 }
  0x6f   :  { %18959 = vmatpush3.bf16.msra.mxu0 %v22122_v41  ;;  %19095 = vmatpush3.bf16.msra.mxu1 %v19092_v54  ;;  %v19104_v41 = vpack.c.bf16 %v22108_v7, %v22103_v43  ;;  %v25493_v43 = vld [vmem:[#allocation14_spill] sm:$0xff]  ;;  %v25494_v7 = vld [vmem:[#allocation21_spill] sm:$0xff] }
  0x70   :  { %18961 = vmatprep.subr.bf16.mxu0 %v22133_v37  ;;  %19097 = vmatprep.subr.bf16.mxu1 %v19096_v33 }
  0x71   :  { %15719 = vmatprep.mubr.f32.mxu0 %v25485_v10  ;;  %15901 = vmatprep.mubr.f32.mxu1 %v25486_v18 }
  0x72   :  { %15720 = vmatmul.mubr.f32.gmra.mrb[2].mxu0 %v25487_v63  ;;  %15902 = vmatmul.mubr.f32.gmra.mrb[14].mxu1 %v25488_v58 }
  0x73   :  { %18963 = vmatpush3.bf16.msra.mxu0 %v22133_v37  ;;  %19099 = vmatpush3.bf16.msra.mxu1 %v19096_v33  ;;  %v25491_v37 = vld [vmem:[#allocation33_spill] sm:$0xff] }
  0x74   :  { %18965 = vmatprep.subr.bf16.mxu0 %v22144_v26  ;;  %19101 = vmatprep.subr.bf16.mxu1 %v19100_v49 }
  0x75   :  { %15722 = vmatprep.mubr.f32.mxu0 %v25489_v35  ;;  %15936 = vmatprep.mubr.f32.mxu1 %v21688_v38  ;;  %v19112_v38 = vpack.c.bf16 %v22138_v57, %v22127_v44  ;;  %v57_v44 = vlaneseq }
  0x76   :  { %15723 = vmatmul.mubr.f32.gmra.mrb[4].mxu0 %v25490_v23 }
  0x77   :  { %18967 = vmatpush3.bf16.msra.mxu0 %v22144_v26  ;;  %19103 = vmatpush3.bf16.msra.mxu1 %v19100_v49  ;;  %v22330_v57 = vshrl.u32 %v57_v44, 7  ;;  %v25498_v26 = vld [vmem:[#allocation41_spill] sm:$0xff] }
  0x78   :  { %18969 = vmatprep.subr.bf16.mxu0 %v22154_v42  ;;  %19105 = vmatprep.subr.bf16.mxu1 %v19104_v41 }
  0x79   :  { %15725 = vmatprep.mubr.f32.mxu0 %v25491_v37  ;;  %vm59_vm0 = vcmp.lt.s32.totalorder %v22330_v57, 4 }
  0x7a   :  { %15726 = vmatmul.mubr.f32.gmra.mrb[6].mxu0 %v25492_v48 }
  0x7b   :  { %18971 = vmatpush3.bf16.msra.mxu0 %v22154_v42  ;;  %19107 = vmatpush3.bf16.msra.mxu1 %v19104_v41  ;;  %v25301_v42 = vmov 0.0  }
  0x7c   :  { %18973 = vmatprep.subr.bf16.mxu0 %v22162_v47  ;;  %19109 = vmatprep.subr.bf16.mxu1 %v19108_v60 }
  0x7d   :  { %15760 = vmatprep.mubr.f32.mxu0 %v25469_v34 }
  0x7f   :  { %18975 = vmatpush3.bf16.msra.mxu0 %v22162_v47  ;;  %19111 = vmatpush3.bf16.msra.mxu1 %v19108_v60  ;;  %v22343_v47 = vsel %vm59_vm0, 1.0, %v25301_v42 }
  0x80   :  { %18977 = vmatprep.subr.bf16.mxu0 %v22168_v30  ;;  %19113 = vmatprep.subr.bf16.mxu1 %v19112_v38  ;;  %25499 = vst [vmem:[#allocation35_spill] sm:$0xff] %v22343_v47 }
  0x83   :  { %18979 = vmatpush3.bf16.msra.mxu0 %v22168_v30  ;;  %19115 = vmatpush3.bf16.msra.mxu1 %v19112_v38  ;;  %v22350_v30 = vsub.f32 1.0, %v22343_v47 }
  0x84   :  { %18981 = vmatprep.subr.bf16.mxu0 %v22175_v27  ;;  %19117 = vmatprep.subr.bf16.mxu1 %v25493_v43 }
  0x86   :  { %15937 = vmatmul.mubr.f32.vlgmr.msra.gmra.mrb[8].mxu1 %v25460_v16  ;;  %v22370_v16 = vld [vmem:[%s25191_s2 + $0x8] sm:$0xff] }
  0x87   :  { %18983 = vmatpush3.bf16.msra.mxu0 %v22175_v27  ;;  %19119 = vmatpush3.bf16.msra.mxu1 %v25493_v43  ;;  %v22359_v27 = vsel %vm63_vm1, %v22343_v47, %v22350_v30 }
  0x88   :  { %18985 = vmatprep.subr.bf16.mxu0 %v22181_v17  ;;  %19121 = vmatprep.subr.bf16.mxu1 %v25494_v7 }
  0x89   :  { %15939 = vmatprep.mubr.f32.mxu1 %v25463_v9 }
  0x8a   :  { %15940 = vmatmul.mubr.f32.gmra.mrb[10].mxu1 %v25465_v53  ;;  %v2044_v53 = vand.u32 4294901760, %v22370_v16 }
  0x8b   :  { %18987 = vmatpush3.bf16.msra.mxu0 %v22181_v17  ;;  %19123 = vmatpush3.bf16.msra.mxu1 %v25494_v7  ;;  %v22365_v17 = vld [vmem:[%s25191_s2] sm:$0xff] }
  0x8c   :  { %18989 = vmatprep.subr.bf16.mxu0 %v21560_v14  ;;  %19125 = vmatprep.subr.bf16.mxu1 %v25495_v55  ;;  %v2041_v9 = vand.u32 4294901760, %v22365_v17 }
  0x8d   :  { %15942 = vmatprep.mubr.f32.mxu1 %v25468_v45 }
  0x8e   :  { %15761 = vmatmul.mubr.f32.vlgmr.msra.gmra.mrb[0].mxu0 %v25478_v50  ;;  %15943 = vmatmul.mubr.f32.gmra.mrb[12].mxu1 %v25470_v8  ;;  %v22387_v45 = vpack.c.bf16 %v2044_v53, %v2041_v9  ;;  %v34_v8 = vld [vmem:[%s25191_s2 + $0x10] sm:$0xff]  ;;  %v22450_v33 = vsub.f32 %v22365_v17, %v2041_v9 }
  0x8f   :  { %18991 = vmatpush3.bf16.msra.mxu0 %v21560_v14  ;;  %19127 = vmatpush3.bf16.msra.mxu1 %v25495_v55  ;;  %v25497_v14 = vld [vmem:[#allocation39_spill] sm:$0xff]  ;;  %v2047_v39 = vand.u32 4294901760, %v34_v8 }
  0x90   :  { %18993 = vmatprep.subr.bf16.mxu0 %v25462_v36  ;;  %19129 = vmatprep.subr.bf16.mxu1 %v25496_v51 }
  0x91   :  { %15763 = vmatprep.mubr.f32.mxu0 %v25480_v62  ;;  %15945 = vmatprep.mubr.f32.mxu1 %v25472_v11  ;;  %v36_v11 = vld [vmem:[%s25191_s2 + $0x20] sm:$0xff] }
  0x92   :  { %15764 = vmatmul.mubr.f32.gmra.mrb[2].mxu0 %v25481_v52  ;;  %15946 = vmatmul.mubr.f32.gmra.mrb[14].mxu1 %v25473_v4  ;;  %v2053_v29 = vand.u32 4294901760, %v36_v11 }
  0x93   :  { %18995 = vmatpush3.bf16.msra.mxu0 %v25462_v36  ;;  %19131 = vmatpush3.bf16.msra.mxu1 %v25496_v51  ;;  %v2036_v36 = vmul.f32 0.0, %v22359_v27 }
  0x94   :  { %18997 = vmatprep.subr.bf16.mxu0 %v25467_v13  ;;  %19133 = vmatprep.subr.bf16.mxu1 %v25497_v14  ;;  %v22472_v41 = vsub.f32 %v36_v11, %v2053_v29 }
  0x95   :  { %15766 = vmatprep.mubr.f32.mxu0 %v25482_v0  ;;  %15980 = vmatprep.mubr.f32.mxu1 %v25475_v61 }
  0x96   :  { %15767 = vmatmul.mubr.f32.gmra.mrb[4].mxu0 %v25484_v31 }
  0x97   :  { %18999 = vmatpush3.bf16.msra.mxu0 %v25467_v13  ;;  %19135 = vmatpush3.bf16.msra.mxu1 %v25497_v14  ;;  %v25310_v13 = vmov 0.0|0.0  }
  0x98   :  { %19001 = vmatprep.subr.bf16.mxu0 %v25471_v3  ;;  %19137 = vmatprep.subr.bf16.mxu1 %v25498_v26 }
  0x99   :  { %15769 = vmatprep.mubr.f32.mxu0 %v25486_v18 }
  0x9a   :  { %15770 = vmatmul.mubr.f32.gmra.mrb[6].mxu0 %v25488_v58 }
  0x9b   :  { %19003 = vmatpush3.bf16.msra.mxu0 %v25471_v3  ;;  %19139 = vmatpush3.bf16.msra.mxu1 %v25498_v26  ;;  %v35_v3 = vld [vmem:[%s25191_s2 + $0x18] sm:$0xff] }
  0x9c   :  { %19005 = vmatprep.subr.bf16.mxu0 %v25474_v40  ;;  %19141 = vmatprep.subr.bf16.mxu1 %v22066_v56  ;;  %v2050_v32 = vand.u32 4294901760, %v35_v3 }
  0x9d   :  { %15804 = vmatprep.mubr.f32.mxu0 %v25469_v34 }
  0x9f   :  { %19007 = vmatpush3.bf16.msra.mxu0 %v25474_v40  ;;  %19143 = vmatpush3.bf16.msra.mxu1 %v22066_v56  ;;  %v22419_v40 = vpack.c.bf16 %v2050_v32, %v2047_v39 }
  0xa0   :  { %19009 = vmatprep.subr.bf16.mxu0 %v25476_v15  ;;  %19145 = vmatprep.subr.bf16.mxu1 %v22070_v59 }
  0xa3   :  { %19011 = vmatpush3.bf16.msra.mxu0 %v25476_v15  ;;  %19147 = vmatpush3.bf16.msra.mxu1 %v22070_v59  ;;  %v38_v15 = vld [vmem:[%s25191_s2 + $0x30] sm:$0xff] }
  0xa4   :  { %19013 = vmatprep.subr.bf16.mxu0 %v25477_v25  ;;  %19149 = vmatprep.subr.bf16.mxu1 %v22187_v22  ;;  %v2059_v20 = vand.u32 4294901760, %v38_v15 }
  0xa6   :  { %15981 = vmatmul.mubr.f32.vlgmr.msra.gmra.mrb[8].mxu1 %v25483_v19 }
  0xa7   :  { %19015 = vmatpush3.bf16.msra.mxu0 %v25477_v25  ;;  %19151 = vmatpush3.bf16.msra.mxu1 %v22187_v22  ;;  %v2038_v22 = vsel %vm65_vm2, %v2036_v36, 0 }
  0xa8   :  { %19017 = vmatprep.subr.bf16.mxu0 %v25479_v6  ;;  %19153 = vmatprep.subr.bf16.mxu1 %v22195_v5 }
  0xa9   :  { %15983 = vmatprep.mubr.f32.mxu1 %v25485_v10  ;;  %v2139_v10 = vsub.f32 %v34_v8, %v2047_v39 }
  0xaa   :  { %15984 = vmatmul.mubr.f32.gmra.mrb[10].mxu1 %v25487_v63  ;;  %v2146_v63 = vsub.f32 %v35_v3, %v2050_v32 }
  0xab   :  { %19019 = vmatpush3.bf16.msra.mxu0 %v25479_v6  ;;  %19155 = vmatpush3.bf16.msra.mxu1 %v22195_v5  ;;  %v22399_v5 = vand.u32 4294901760, %v2038_v22 }
  0xac   :  { %19157 = vmatprep.subr.bf16.mxu1 %v22199_v12  ;;  %15986 = vmatprep.mubr.f32.mxu1 %v25489_v35 }
  0xad   :  { %19212 = vmatprep.subr.bf16.mxu0 %v25310_v13  ;;  %v22415_v4 = vsub.f32 %v2038_v22, %v22399_v5 }
  0xae   :  { %15805 = vmatmul.mubr.f32.vlgmr.msra.gmra.mrb[0].mxu0 %v25478_v50  ;;  %15987 = vmatmul.mubr.f32.gmra.mrb[12].mxu1 %v25490_v23  ;;  %v22486_v23 = vsub.f32 %v38_v15, %v2059_v20 }
  0xaf   :  { %19159 = vmatpush3.bf16.msra.mxu1 %v22199_v12  ;;  %15807 = vmatprep.mubr.f32.mxu0 %v25480_v62  ;;  %v37_v12 = vld [vmem:[%s25191_s2 + $0x28] sm:$0xff]  ;;  %v2115_v21 = vand.u32 4294901760, %v22415_v4 }
  0xb0   :  { %19161 = vmatprep.subr.bf16.mxu1 %v22201_v46  ;;  %15989 = vmatprep.mubr.f32.mxu1 %v25491_v37  ;;  %v2056_v61 = vand.u32 4294901760, %v37_v12 }
  0xb1   :  { %19214 = vmatpush3.bf16.msra.mxu0 %v22387_v45 }
  0xb2   :  { %15808 = vmatmul.mubr.f32.gmra.mrb[2].mxu0 %v25481_v52  ;;  %15990 = vmatmul.mubr.f32.gmra.mrb[14].mxu1 %v25492_v48  ;;  %v22434_v25 = vpack.c.bf16 %v2056_v61, %v2053_v29  ;;  %v22474_v35 = vsub.f32 %v37_v12, %v2056_v61  ;;  %v2126_v48 = vand.u32 4294901760, %v22450_v33 }
  0xb3   :  { %19163 = vmatpush3.bf16.msra.mxu1 %v22201_v46  ;;  %15810 = vmatprep.mubr.f32.mxu0 %v25482_v0  ;;  %v39_v46 = vld [vmem:[%s25191_s2 + $0x38] sm:$0xff] }
  0xb4   :  { %19165 = vmatprep.subr.bf16.mxu1 %v22203_v24  ;;  %16024 = vmatprep.mubr.f32.mxu1 %v25469_v34  ;;  %v2062_v6 = vand.u32 4294901760, %v39_v46 }
  0xb5   :  { %19215 = vmatprep.subr.bf16.mxu0 %v25310_v13 }
  0xb6   :  { %15811 = vmatmul.mubr.f32.gmra.mrb[4].mxu0 %v25484_v31  ;;  %v22446_v54 = vpack.c.bf16 %v2062_v6, %v2059_v20  ;;  %v22488_v60 = vsub.f32 %v39_v46, %v2062_v6 }
  0xb7   :  { %19167 = vmatpush3.bf16.msra.mxu1 %v22203_v24  ;;  %15813 = vmatprep.mubr.f32.mxu0 %v25486_v18  ;;  %v2116_v24 = vsub.f32 %v22415_v4, %v2115_v21 }
  0xb8   :  { %19169 = vmatprep.subr.bf16.mxu1 %v22205_v28  ;;  %19217 = vmatpush3.bf16.msra.mxu0 %v22419_v40  ;;  %v22496_v37 = vpack.c.bf16 %v22488_v60, %v22486_v23  ;;  %v2175_v9 = vand.u32 4294901760, %v22488_v60 }
  0xb9   :  { %19218 = vmatprep.subr.bf16.mxu0 %v25310_v13  ;;  %v2117_v19 = vand.u32 4294901760, %v2116_v24 }
  0xba   :  { %15814 = vmatmul.mubr.f32.gmra.mrb[6].mxu0 %v25488_v58  ;;  %v2176_v46 = vsub.f32 %v22488_v60, %v2175_v9 }
  0xbb   :  { %19171 = vmatpush3.bf16.msra.mxu1 %v22205_v28  ;;  %16096 = vmatprep.mubr.msk.f32.mxu0 %vm21482_vm3, %v25301_v42  ;;  %v22453_v28 = vsub.f32 %v22370_v16, %v2044_v53  ;;  %v2127_v16 = vsub.f32 %v22450_v33, %v2126_v48 }
  0xbc   :  { %19173 = vmatprep.subr.bf16.mxu1 %v22207_v1  ;;  %19220 = vmatpush3.bf16.msra.mxu0 %v22434_v25  ;;  %v2177_v6 = vand.u32 4294901760, %v2176_v46  ;;  %v1057_v46 = vsub.s32 1, %v22330_v57 }
  0xbd   :  { %19221 = vmatprep.subr.bf16.mxu0 %v25310_v13  ;;  %v22460_v49 = vpack.c.bf16 %v22453_v28, %v22450_v33  ;;  %v2133_v38 = vand.u32 4294901760, %v22453_v28 }
  0xbf   :  { %19175 = vmatpush3.bf16.msra.mxu1 %v22207_v1  ;;  %v22466_v1 = vpack.c.bf16 %v2146_v63, %v2139_v10  ;;  %v2134_v36 = vsub.f32 %v22453_v28, %v2133_v38 }
  0xc0   :  { %19177 = vmatprep.subr.bf16.mxu1 %v22209_v2  ;;  %19223 = vmatpush3.bf16.msra.mxu0 %v22446_v54 }
  0xc1   :  { %19236 = vmatprep.subr.bf16.mxu0 %v25310_v13  ;;  %v2135_v3 = vand.u32 4294901760, %v2134_v36 }
  0xc3   :  { %19179 = vmatpush3.bf16.msra.mxu1 %v22209_v2  ;;  %16097 = vmatmul.mubr.f32.vlgmr.msra.gmra.mrb[8].mxu0 %v2117_v19  ;;  %v22482_v2 = vpack.c.bf16 %v22474_v35, %v22472_v41 }
  0xc4   :  { %19181 = vmatprep.subr.bf16.mxu1 %v25493_v43  ;;  %19238 = vmatpush3.bf16.msra.mxu0 %v22460_v49 }
  0xc5   :  { %19239 = vmatprep.subr.bf16.mxu0 %v25310_v13  ;;  %16134 = vmatprep.mubr.msk.f32.mxu0 %vm21482_vm3, %v25301_v42 }
  0xc6   :  { %16025 = vmatmul.mubr.f32.vlgmr.msra.gmra.mrb[8].mxu1 %v25478_v50 }
  0xc7   :  { %19183 = vmatpush3.bf16.msra.mxu1 %v25493_v43  ;;  %16027 = vmatprep.mubr.f32.mxu1 %v25480_v62  ;;  %v22507_v43 = vpack.c.bf16 %v2133_v38, %v2126_v48 }
  0xc8   :  { %19185 = vmatprep.subr.bf16.mxu1 %v25494_v7  ;;  %19241 = vmatpush3.bf16.msra.mxu0 %v22466_v1 }
  0xc9   :  { %19242 = vmatprep.subr.bf16.mxu0 %v25310_v13  ;;  %25500 = vst [vmem:[#allocation9_spill] sm:$0xff] %v22507_v43 }
  0xca   :  { %16028 = vmatmul.mubr.f32.gmra.mrb[10].mxu1 %v25481_v52 }
  0xcb   :  { %19187 = vmatpush3.bf16.msra.mxu1 %v25494_v7  ;;  %16030 = vmatprep.mubr.f32.mxu1 %v25482_v0  ;;  %v2140_v7 = vand.u32 4294901760, %v2139_v10 }
  0xcc   :  { %19189 = vmatprep.subr.bf16.mxu1 %v25495_v55  ;;  %19244 = vmatpush3.bf16.msra.mxu0 %v22482_v2 }
  0xcd   :  { %19245 = vmatprep.subr.bf16.mxu0 %v25310_v13  ;;  %v2141_v22 = vsub.f32 %v2139_v10, %v2140_v7 }
  0xce   :  { %16031 = vmatmul.mubr.f32.gmra.mrb[12].mxu1 %v25484_v31 }
  0xcf   :  { %19191 = vmatpush3.bf16.msra.mxu1 %v25495_v55  ;;  %16033 = vmatprep.mubr.f32.mxu1 %v25486_v18  ;;  %v2147_v55 = vand.u32 4294901760, %v2146_v63  ;;  %v2142_v39 = vand.u32 4294901760, %v2141_v22 }
  0xd0   :  { %19193 = vmatprep.subr.bf16.mxu1 %v25496_v51  ;;  %19247 = vmatpush3.bf16.msra.mxu0 %v22496_v37 }
  0xd1   :  { %19260 = vmatprep.subr.bf16.mxu0 %v25310_v13  ;;  %v22515_v44 = vpack.c.bf16 %v2147_v55, %v2140_v7  ;;  %v2148_v8 = vsub.f32 %v2146_v63, %v2147_v55 }
  0xd2   :  { %16034 = vmatmul.mubr.f32.gmra.mrb[14].mxu1 %v25488_v58 }
  0xd3   :  { %19195 = vmatpush3.bf16.msra.mxu1 %v25496_v51  ;;  %16068 = vmatprep.mubr.f32.mxu1 %v25469_v34  ;;  %25501 = vst [vmem:[#allocation37_spill] sm:$0xff] %v22515_v44  ;;  %v2154_v51 = vand.u32 4294901760, %v22472_v41  ;;  %v2161_v34 = vand.u32 4294901760, %v22474_v35  ;;  %v2149_v32 = vand.u32 4294901760, %v2148_v8 }
  0xd4   :  { %19197 = vmatprep.subr.bf16.mxu1 %v25497_v14  ;;  %16135 = vmatmul.mubr.f32.vlgmr.msra.gmra.mrb[10].mxu0 %v22415_v4 }
  0xd5   :  { %19262 = vmatpush3.bf16.msra.mxu0 %v22507_v43  ;;  %16172 = vmatprep.mubr.msk.f32.mxu0 %vm21482_vm3, %v25301_v42  ;;  %v22525_v17 = vpack.c.bf16 %v2161_v34, %v2154_v51  ;;  %v2155_v12 = vsub.f32 %v22472_v41, %v2154_v51  ;;  %v2162_v29 = vsub.f32 %v22474_v35, %v2161_v34 }
  0xd6   :  { %19263 = vmatprep.subr.bf16.mxu0 %v25310_v13 }
  0xd7   :  { %19199 = vmatpush3.bf16.msra.mxu1 %v25497_v14  ;;  %25502 = vst [vmem:[#allocation2_spill] sm:$0xff] %v22525_v17  ;;  %v2168_v14 = vand.u32 4294901760, %v22486_v23  ;;  %v2163_v61 = vand.u32 4294901760, %v2162_v29 }
  0xd8   :  { %19201 = vmatprep.subr.bf16.mxu1 %v25498_v26 }
  0xd9   :  { %19265 = vmatpush3.bf16.msra.mxu0 %v22515_v44  ;;  %v22535_v53 = vpack.c.bf16 %v2175_v9, %v2168_v14  ;;  %v2169_v15 = vsub.f32 %v22486_v23, %v2168_v14 }
  0xda   :  { %19266 = vmatprep.subr.bf16.mxu0 %v25310_v13 }
  0xdb   :  { %19203 = vmatpush3.bf16.msra.mxu1 %v25498_v26  ;;  %25503 = vst [vmem:[#allocation17_spill] sm:$0xff] %v22535_v53  ;;  %v2128_v26 = vand.u32 4294901760, %v2127_v16  ;;  %v2170_v20 = vand.u32 4294901760, %v2169_v15 }
  0xdc   :  { %19205 = vmatprep.subr.bf16.mxu1 %v22066_v56 }
  0xdd   :  { %19268 = vmatpush3.bf16.msra.mxu0 %v22525_v17  ;;  %v22543_v11 = vpack.c.bf16 %v2135_v3, %v2128_v26 }
  0xde   :  { %19269 = vmatprep.subr.bf16.mxu0 %v25310_v13 }
  0xdf   :  { %19207 = vmatpush3.bf16.msra.mxu1 %v22066_v56  ;;  %v22552_v56 = vpack.c.bf16 %v2149_v32, %v2142_v39 }
  0xe0   :  { %19209 = vmatprep.subr.bf16.mxu1 %v22070_v59 }
  0xe1   :  { %19271 = vmatpush3.bf16.msra.mxu0 %v22535_v53 }
  0xe2   :  { %19284 = vmatprep.subr.bf16.mxu0 %v25310_v13 }
  0xe3   :  { %19211 = vmatpush3.bf16.msra.mxu1 %v22070_v59  ;;  %v2156_v59 = vand.u32 4294901760, %v2155_v12 }
  0xe4   :  { %19224 = vmatprep.subr.bf16.mxu1 %v25310_v13  ;;  %16173 = vmatmul.mubr.f32.vlgmr.msra.gmra.mrb[12].mxu0 %v22399_v5 }
  0xe5   :  { %16226 = vmatprep.mubr.msk.f32.mxu0 %vm21482_vm3, %v25301_v42 }
  0xe6   :  { %16069 = vmatmul.mubr.f32.vlgmr.msra.gmra.mrb[8].mxu1 %v25478_v50  ;;  %v22562_v50 = vpack.c.bf16 %v2163_v61, %v2156_v59 }
  0xe7   :  { %19226 = vmatpush3.bf16.msra.mxu1 %v22543_v11  ;;  %16071 = vmatprep.mubr.f32.mxu1 %v25480_v62  ;;  %v22568_v62 = vpack.c.bf16 %v2177_v6, %v2170_v20 }
  0xe8   :  { %19227 = vmatprep.subr.bf16.mxu1 %v25310_v13 }
  0xea   :  { %16072 = vmatmul.mubr.f32.gmra.mrb[10].mxu1 %v25481_v52  ;;  %v95_v52 = vsub.s32 0, %v22330_v57 }
  0xeb   :  { %19229 = vmatpush3.bf16.msra.mxu1 %v22552_v56  ;;  %16074 = vmatprep.mubr.f32.mxu1 %v25482_v0  ;;  %v22579_v0 = vld [vmem:[%s25192_s4] sm:$0xf]  ;;  %s21483_s4 = smov 64  }
  0xec   :  { %19230 = vmatprep.subr.bf16.mxu1 %v25310_v13  ;;  %v1058_v20 = vrot.slane %v22579_v0, %v1057_v46 }
  0xee   :  { %16075 = vmatmul.mubr.f32.gmra.mrb[12].mxu1 %v25484_v31  ;;  %v96_v31 = vrot.slane %v22579_v0, %v95_v52 }
  0xef   :  { %19232 = vmatpush3.bf16.msra.mxu1 %v22562_v50  ;;  %16077 = vmatprep.mubr.f32.mxu1 %v25486_v18 }
  0xf0   :  { %19233 = vmatprep.subr.bf16.mxu1 %v25310_v13 }
  0xf2   :  { %16078 = vmatmul.mubr.f32.gmra.mrb[14].mxu1 %v25488_v58 }
  0xf3   :  { %19235 = vmatpush3.bf16.msra.mxu1 %v22568_v62  ;;  %16115 = vmatprep.mubr.msk.f32.mxu1 %vm21482_vm3, %v25301_v42 }
  0xf4   :  { %19248 = vmatprep.subr.bf16.mxu1 %v25310_v13 }
  0xf6   :  { %16116 = vmatmul.mubr.f32.vlgmr.msra.gmra.mrb[16].mxu1 %v22399_v5 }
  0xf7   :  { %19250 = vmatpush3.bf16.msra.mxu1 %v22387_v45  ;;  %16153 = vmatprep.mubr.msk.f32.mxu1 %vm21482_vm3, %v25301_v42 }
  0xf8   :  { %19251 = vmatprep.subr.bf16.mxu1 %v25310_v13 }
  0xf9   :  { %v15586_v18 = vpop.f32.mrb[0].mxu1 }
  0xfa   :  { %v195_v58 = vadd.f32 %v15586_v18, %v96_v31  ;;  %v184_v24 = vpop.f32.mrb[1].mxu1 }
  0xfb   :  { %19253 = vmatpush3.bf16.msra.mxu1 %v22419_v40  ;;  %v185_v4 = vadd.f32 %v184_v24, %v96_v31 }
  0xfc   :  { %19254 = vmatprep.subr.bf16.mxu1 %v25310_v13 }
  0xfd   :  { %v15589_v33 = vpop.f32.mrb[2].mxu1 }
  0xfe   :  { %v215_v28 = vadd.f32 %v15589_v33, %v96_v31  ;;  %v204_v19 = vpop.f32.mrb[3].mxu1 }
  0xff   :  { %19256 = vmatpush3.bf16.msra.mxu1 %v22434_v25  ;;  %v205_v10 = vadd.f32 %v204_v19, %v96_v31 }
 0x100   :  { %19257 = vmatprep.subr.bf16.mxu1 %v25310_v13 }
 0x101   :  { %v15592_v63 = vpop.f32.mrb[4].mxu1 }
 0x102   :  { %v235_v41 = vadd.f32 %v15592_v63, %v96_v31  ;;  %v224_v35 = vpop.f32.mrb[5].mxu1 }
 0x103   :  { %19259 = vmatpush3.bf16.msra.mxu1 %v22446_v54  ;;  %v225_v23 = vadd.f32 %v224_v35, %v96_v31 }
 0x104   :  { %19272 = vmatprep.subr.bf16.mxu1 %v25310_v13 }
 0x105   :  { %v15595_v60 = vpop.f32.mrb[6].mxu1 }
 0x106   :  { %16154 = vmatmul.mubr.f32.vlgmr.msra.gmra.mrb[18].mxu1 %v2115_v21  ;;  %v255_v48 = vadd.f32 %v15595_v60, %v96_v31  ;;  %v244_v38 = vpop.f32.mrb[7].mxu1 }
 0x107   :  { %19274 = vmatpush3.bf16.msra.mxu1 %v22387_v45  ;;  %16191 = vmatprep.mubr.msk.f32.mxu1 %vm21482_vm3, %v25301_v42  ;;  %v245_v7 = vadd.f32 %v244_v38, %v96_v31 }
 0x108   :  { %19275 = vmatprep.subr.bf16.mxu1 %v25310_v13 }
 0x10b   :  { %19277 = vmatpush3.bf16.msra.mxu1 %v22419_v40 }
 0x10c   :  { %19278 = vmatprep.subr.bf16.mxu1 %v25310_v13 }
 0x10f   :  { %19280 = vmatpush3.bf16.msra.mxu1 %v22434_v25 }
 0x110   :  { %19281 = vmatprep.subr.bf16.mxu1 %v25310_v13 }
 0x113   :  { %19283 = vmatpush3.bf16.msra.mxu1 %v22446_v54 }
 0x114   :  { %19308 = vmatprep.subr.bf16.mxu1 %v25310_v13 }
 0x116   :  { %16192 = vmatmul.mubr.f32.vlgmr.msra.gmra.mrb[20].mxu1 %v22399_v5 }
 0x117   :  { %16261 = vmatprep.mubr.msk.f32.mxu1 %vm21482_vm3, %v25301_v42 }
 0x181   :  { %v15806_v21 = vpop.f32.mrb[0].mxu0 }
 0x182   :  { %v21247_v55 = vadd.f32 %v15806_v21, %v195_v58  ;;  %v993_v51 = vpop.f32.mrb[1].mxu0 }
 0x183   :  { %v21249_v34 = vadd.f32 %v993_v51, %v185_v4 }
 0x184   :  { %v2002_v33 = vmul.f32 %v21247_v55, %v22343_v47 }
 0x185   :  { %v15809_v16 = vpop.f32.mrb[2].mxu0  ;;  %v2001_v19 = vmul.f32 %v21249_v34, %v22343_v47 }
 0x186   :  { %v21251_v36 = vadd.f32 %v15809_v16, %v215_v28  ;;  %v1005_v14 = vpop.f32.mrb[3].mxu0 }
 0x187   :  { %v21253_v9 = vadd.f32 %v1005_v14, %v205_v10 }
 0x188   :  { %v2004_v38 = vmul.f32 %v21251_v36, %v22343_v47 }
 0x189   :  { %v15812_v22 = vpop.f32.mrb[4].mxu0  ;;  %v2003_v4 = vmul.f32 %v21253_v9, %v22343_v47 }
 0x18a   :  { %v21255_v8 = vadd.f32 %v15812_v22, %v235_v41  ;;  %v1017_v26 = vpop.f32.mrb[5].mxu0 }
 0x18b   :  { %v21257_v3 = vadd.f32 %v1017_v26, %v225_v23 }
 0x18c   :  { %v2006_v26 = vmul.f32 %v21255_v8, %v22343_v47 }
 0x18d   :  { %v15815_v39 = vpop.f32.mrb[6].mxu0  ;;  %v2005_v36 = vmul.f32 %v21257_v3, %v22343_v47 }
 0x18e   :  { %v21259_v32 = vadd.f32 %v15815_v39, %v255_v48  ;;  %v1029_v12 = vpop.f32.mrb[7].mxu0 }
 0x18f   :  { %v21261_v5 = vadd.f32 %v1029_v12, %v245_v7 }
 0x191   :  { %v2007_v8 = vmul.f32 %v21261_v5, %v22343_v47 }
 0x196   :  { %v2119_v29 = vpop.f32.mrb[8].mxu0 }
 0x197   :  { %v16098_v59 = vpop.f32.mrb[9].mxu0 }
 0x1a7   :  { %v2318_v61 = vpop.f32.mrb[10].mxu0 }
 0x1a8   :  { %v16136_v15 = vpop.f32.mrb[11].mxu0 }
 0x1b7   :  { %v2494_v6 = vpop.f32.mrb[12].mxu0 }
 0x1b8   :  { %v16174_v52 = vpop.f32.mrb[13].mxu0 }
 0x1b9   :  { %v16070_v31 = vpop.f32.mrb[8].mxu1 }
 0x1ba   :  { %v21262_v18 = vadd.f32 %v16070_v31, %v1058_v20  ;;  %v1955_v58 = vpop.f32.mrb[9].mxu1 }
 0x1bb   :  { %v21263_v24 = vadd.f32 %v1955_v58, %v1058_v20 }
 0x1bc   :  { %v2010_v28 = vmul.f32 %v21262_v18, %v22350_v30  ;;  %v2008_v18 = vmul.f32 %v21259_v32, %v22343_v47 }
 0x1bd   :  { %v2009_v10 = vmul.f32 %v21263_v24, %v22350_v30  ;;  %v16073_v63 = vpop.f32.mrb[10].mxu1 }
 0x1be   :  { %v22615_v41 = vadd.f32 %v2010_v28, %v2002_v33  ;;  %v21264_v35 = vadd.f32 %v16073_v63, %v1058_v20  ;;  %v1967_v23 = vpop.f32.mrb[11].mxu1 }
 0x1bf   :  { %v21265_v60 = vadd.f32 %v1967_v23, %v1058_v20  ;;  %v2017_v48 = vadd.f32 %v2009_v10, %v2001_v19 }
 0x1c0   :  { %25504 = vst [vmem:[#allocation38_spill] sm:$0xff] %v22615_v41  ;;  %v2012_v7 = vmul.f32 %v21264_v35, %v22350_v30 }
 0x1c1   :  { %v2011_v21 = vmul.f32 %v21265_v60, %v22350_v30  ;;  %v16076_v55 = vpop.f32.mrb[12].mxu1 }
 0x1c2   :  { %v22621_v51 = vadd.f32 %v2012_v7, %v2004_v38  ;;  %v21266_v34 = vadd.f32 %v16076_v55, %v1058_v20  ;;  %v1979_v16 = vpop.f32.mrb[13].mxu1 }
 0x1c3   :  { %v22623_v14 = vadd.f32 %v2011_v21, %v2003_v4  ;;  %v21267_v22 = vadd.f32 %v1979_v16, %v1058_v20 }
 0x1c4   :  { %25505 = vst [vmem:[#allocation18_spill] sm:$0xff] %v22621_v51  ;;  %v2014_v39 = vmul.f32 %v21266_v34, %v22350_v30 }
 0x1c5   :  { %25506 = vst [vmem:[#allocation40_spill] sm:$0xff] %v22623_v14  ;;  %v2013_v12 = vmul.f32 %v21267_v22, %v22350_v30  ;;  %v16079_v59 = vpop.f32.mrb[14].mxu1 }
 0x1c6   :  { %v22629_v9 = vadd.f32 %v2014_v39, %v2006_v26  ;;  %v21268_v15 = vadd.f32 %v16079_v59, %v1058_v20  ;;  %v1991_v46 = vpop.f32.mrb[15].mxu1  ;;  %v40_v39 = vld [vmem:[%s25193_s3] sm:$0xff] }
 0x1c7   :  { %v22631_v52 = vadd.f32 %v2013_v12, %v2005_v36  ;;  %v21269_v31 = vadd.f32 %v1991_v46, %v1058_v20  ;;  %v41_v36 = vld [vmem:[%s25193_s3 + $0x8] sm:$0xff]  ;;  %v42_v12 = vld [vmem:[%s25193_s3 + $0x10] sm:$0xff]  ;;  %v2615_v59 = vand.u32 4294901760, %v40_v39  ;;  %v43_v46 = vld [vmem:[%s25193_s3 + $0x18] sm:$0xff] }
 0x1c8   :  { %25507 = vst [vmem:[#allocation3_spill] sm:$0xff] %v22629_v9  ;;  %v2016_v58 = vmul.f32 %v21268_v15, %v22350_v30  ;;  %v2618_v15 = vand.u32 4294901760, %v41_v36 }
 0x1c9   :  { %25508 = vst [vmem:[#allocation24_spill] sm:$0xff] %v22631_v52  ;;  %v2015_v24 = vmul.f32 %v21269_v31, %v22350_v30  ;;  %v2230_v33 = vpop.f32.mrb[16].mxu1  ;;  %v2621_v31 = vand.u32 4294901760, %v42_v12 }
 0x1ca   :  { %v22637_v3 = vadd.f32 %v2016_v58, %v2008_v18  ;;  %v2231_v28 = vadd.f32 %v2230_v33, %v2119_v29  ;;  %v16117_v19 = vpop.f32.mrb[17].mxu1  ;;  %v44_v18 = vld [vmem:[%s25193_s3 + $0x20] sm:$0xff]  ;;  %v45_v58 = vld [vmem:[%s25193_s3 + $0x28] sm:$0xff] }
 0x1cb   :  { %v22639_v10 = vadd.f32 %v2015_v24, %v2007_v8  ;;  %v2624_v8 = vand.u32 4294901760, %v43_v46  ;;  %v2627_v24 = vand.u32 4294901760, %v44_v18  ;;  %v2630_v33 = vand.u32 4294901760, %v45_v58 }
 0x1cc   :  { %25509 = vst [vmem:[#allocation7_spill] sm:$0xff] %v22637_v3  ;;  %v2319_v63 = vadd.f32 %v2318_v61, %v2231_v28  ;;  %v22669_v28 = vpack.c.bf16 %v2618_v15, %v2615_v59  ;;  %v22671_v19 = vsub.f32 %v40_v39, %v2615_v59 }
 0x1cd   :  { %25510 = vst [vmem:[#allocation25_spill] sm:$0xff] %v22639_v10 }
 0x1ce   :  { %19286 = vmatpush3.bf16.msra.mxu0 %v22669_v28 }
 0x1cf   :  { %19287 = vmatprep.subr.bf16.mxu0 %v25310_v13 }
 0x1d9   :  { %v2399_v35 = vpop.f32.mrb[18].mxu1 }
 0x1da   :  { %v2400_v23 = vadd.f32 %v2399_v35, %v2319_v63  ;;  %v16155_v60 = vpop.f32.mrb[19].mxu1  ;;  %v22673_v63 = vsub.f32 %v41_v36, %v2618_v15  ;;  %v22675_v35 = vsub.f32 %v42_v12, %v2621_v31  ;;  %v22711_v12 = vpack.c.bf16 %v2630_v33, %v2627_v24 }
 0x1db   :  { %v47_v60 = vld [vmem:[%s25193_s3 + $0x38] sm:$0xff] }
 0x1dc   :  { %v2495_v20 = vadd.f32 %v2494_v6, %v2400_v23  ;;  %v46_v23 = vld [vmem:[%s25193_s3 + $0x30] sm:$0xff] }
 0x1e9   :  { %v2573_v38 = vpop.f32.mrb[20].mxu1 }
 0x1ea   :  { %v2574_v32 = vadd.f32 %v2573_v38, %v2495_v20  ;;  %v16193_v7 = vpop.f32.mrb[21].mxu1  ;;  %v22683_v20 = vpack.c.bf16 %v2624_v8, %v2621_v31  ;;  %v22685_v38 = vsub.f32 %v43_v46, %v2624_v8  ;;  %v48_v46 = vld [vmem:[%s25193_s3 + $0x40] sm:$0xff]  ;;  %v49_v31 = vld [vmem:[%s25193_s3 + $0x48] sm:$0xff] }
 0x1eb   :  { %v25300_v7 = vand.u32 4294901760, %v22671_v19 }
 0x1ec   :  { %v2577_v4 = vadd.f32 %v2574_v32, %v2017_v48  ;;  %v22687_v32 = vsub.f32 %v44_v18, %v2627_v24  ;;  %19289 = vmatpush3.bf16.msra.mxu0 %v22683_v20 }
 0x1ed   :  { %19290 = vmatprep.subr.bf16.mxu0 %v25310_v13 }
 0x1ee   :  { %v13908_v21 = vmul.f32 -1.442695, %v2577_v4  ;;  %v25298_v4 = vand.u32 4294901760, %v22673_v63 }
 0x1f0   :  { %21380 = vpow2.f32 %v13908_v21  ;;  %v25297_v21 = vand.u32 4294901760, %v22675_v35  ;;  %19292 = vmatpush3.bf16.msra.mxu0 %v22711_v12 }
 0x1f1   :  { %19293 = vmatprep.subr.bf16.mxu0 %v25310_v13 }
 0x1fa   :  { %v21381_v5 = vpop.eup %21380 }
 0x1fb   :  { %v2581_v55 = vadd.f32 1.0, %v21381_v5  ;;  %v22693_v5 = vsub.f32 %v45_v58, %v2630_v33  ;;  %v50_v33 = vld [vmem:[%s25193_s3 + $0x50] sm:$0xff] }
 0x1fd   :  { %21382 = vrcp.f32 %v2581_v55  ;;  %v25295_v55 = vand.u32 4294901760, %v22685_v38  ;;  %v25299_v39 = vand.u32 4294901760, %v22693_v5 }
 0x1ff   :  { %v2730_v36 = vsub.f32 %v22685_v38, %v25295_v55  ;;  %v2744_v24 = vsub.f32 %v22693_v5, %v25299_v39  ;;  %v2639_v39 = vand.u32 4294901760, %v48_v46 }
 0x207   :  { %v22641_v34 = vpop.eup %21382 }
 0x208   :  { %v2584_v29 = vmul.f32 2.0, %v22641_v34  ;;  %v2586_v48 = vmul.f32 0.0, %v22641_v34 }
 0x20a   :  { %v13909_v16 = vadd.f32 -1.0, %v2584_v29  ;;  %v25296_v29 = vand.u32 4294901760, %v22687_v32 }
 0x20c   :  { %2588 = vrot.lane.b32.xlu0 %v13909_v16, %s21483_s4  ;;  %v2633_v16 = vand.u32 4294901760, %v46_v23  ;;  %v2737_v59 = vsub.f32 %v22687_v32, %v25296_v29 }
 0x20e   :  { %v22716_v15 = vsub.f32 %v46_v23, %v2633_v16  ;;  %v2731_v23 = vand.u32 4294901760, %v2730_v36  ;;  %v2738_v29 = vand.u32 4294901760, %v2737_v59  ;;  %v2645_v59 = vand.u32 4294901760, %v50_v33 }
 0x27e   :  { %v2589_v61 = vpop.permute.xlu0 %2588 }
 0x27f   :  { %v2591_v6 = vmul.f32 %v22641_v34, %v2589_v61  ;;  %v2636_v61 = vand.u32 4294901760, %v47_v60 }
 0x281   :  { %2593 = vrot.lane.b32.xlu0 %v2591_v6, %s21484_s19  ;;  %v2709_v6 = vsub.f32 %v22671_v19, %v25300_v7  ;;  %v2642_v7 = vand.u32 4294901760, %v49_v31  ;;  %v22741_v42 = vpack.c.bf16 %v2636_v61, %v2633_v16  ;;  %v22756_v16 = vsub.f32 %v48_v46, %v2639_v39 }
 0x283   :  { %v2710_v58 = vand.u32 4294901760, %v2709_v6  ;;  %v51_v6 = vld [vmem:[%s25193_s3 + $0x58] sm:$0xff]  ;;  %v22765_v3 = vsub.f32 %v49_v31, %v2642_v7  ;;  %v25304_v46 = vand.u32 4294901760, %v22756_v16  ;;  %v22776_v31 = vpack.c.bf16 %v2642_v7, %v2639_v39  ;;  %19295 = vmatpush3.bf16.msra.mxu0 %v22741_v42 }
 0x284   :  { %19296 = vmatprep.subr.bf16.mxu0 %v25310_v13 }
 0x285   :  { %v25306_v9 = vand.u32 4294901760, %v22765_v3 }
 0x287   :  { %19298 = vmatpush3.bf16.msra.mxu0 %v22776_v31 }
 0x288   :  { %19299 = vmatprep.subr.bf16.mxu0 %v25310_v13 }
 0x2f3   :  { %v2594_v22 = vpop.permute.xlu0 %2593 }
 0x2f4   :  { %v22648_v26 = vadd.f32 %v2594_v22, %v2586_v48  ;;  %v2716_v48 = vsub.f32 %v22673_v63, %v25298_v4  ;;  %v2723_v22 = vsub.f32 %v22675_v35, %v25297_v21  ;;  %v25303_v21 = vand.u32 4294901760, %v22716_v15 }
 0x2f5   :  { %v22733_v4 = vsub.f32 %v47_v60, %v2636_v61  ;;  %v2648_v61 = vand.u32 4294901760, %v51_v6 }
 0x2f6   :  { %25511 = vst [vmem:[#allocation4_spill] sm:$0xff] %v22648_v26  ;;  %21384 = vtanh.f32 %v22648_v26  ;;  %v2717_v8 = vand.u32 4294901760, %v2716_v48  ;;  %v2724_v55 = vand.u32 4294901760, %v2723_v22  ;;  %v2745_v22 = vand.u32 4294901760, %v2744_v24  ;;  %v53_v24 = vld [vmem:[%s25193_s3 + $0x68] sm:$0xff] }
 0x2f7   :  { %v2751_v36 = vsub.f32 %v22716_v15, %v25303_v21  ;;  %v25305_v60 = vand.u32 4294901760, %v22733_v4  ;;  %v2654_v51 = vand.u32 4294901760, %v53_v24  ;;  %v22792_v39 = vpack.c.bf16 %v2648_v61, %v2645_v59 }
 0x2f8   :  { %v22739_v48 = vpack.c.bf16 %v2717_v8, %v2710_v58  ;;  %v22751_v58 = vpack.c.bf16 %v2731_v23, %v2724_v55  ;;  %v22753_v8 = vpack.c.bf16 %v2745_v22, %v2738_v29  ;;  %v22768_v55 = vsub.f32 %v50_v33, %v2645_v59 }
 0x2f9   :  { %v2758_v21 = vsub.f32 %v22733_v4, %v25305_v60  ;;  %v2752_v29 = vand.u32 4294901760, %v2751_v36  ;;  %v22771_v23 = vsub.f32 %v51_v6, %v2648_v61  ;;  %v2765_v33 = vsub.f32 %v22756_v16, %v25304_v46  ;;  %19301 = vmatpush3.bf16.msra.mxu0 %v22792_v39 }
 0x2fa   :  { %25512 = vst [vmem:[#allocation30_spill] sm:$0xff] %v22739_v48  ;;  %19310 = vmatpush3.bf16.msra.mxu1 %v22739_v48  ;;  %25513 = vst [vmem:[#allocation32_spill] sm:$0xff] %v22751_v58  ;;  %v25309_v52 = vand.u32 4294901760, %v22768_v55  ;;  %v22797_v60 = vsub.f32 %v53_v24, %v2654_v51  ;;  %19302 = vmatprep.subr.bf16.mxu0 %v25310_v13 }
 0x2fb   :  { %25514 = vst [vmem:[#allocation5_spill] sm:$0xff] %v22753_v8  ;;  %19311 = vmatprep.subr.bf16.mxu1 %v25310_v13  ;;  %v2759_v10 = vand.u32 4294901760, %v2758_v21  ;;  %v2772_v21 = vsub.f32 %v22765_v3, %v25306_v9  ;;  %v25516_v14 = vand.u32 4294901760, %v22771_v23 }
 0x2fc   :  { %v2779_v46 = vsub.f32 %v22768_v55, %v25309_v52  ;;  %v25307_v59 = vand.u32 4294901760, %v22797_v60 }
 0x2fd   :  { %v22790_v7 = vpack.c.bf16 %v2759_v10, %v2752_v29  ;;  %v2773_v6 = vand.u32 4294901760, %v2772_v21  ;;  %v2786_v9 = vsub.f32 %v22771_v23, %v25516_v14 }
 0x2fe   :  { %19313 = vmatpush3.bf16.msra.mxu1 %v22751_v58  ;;  %v2780_v61 = vand.u32 4294901760, %v2779_v46  ;;  %v2800_v21 = vsub.f32 %v22797_v60, %v25307_v59 }
 0x2ff   :  { %19314 = vmatprep.subr.bf16.mxu1 %v25310_v13  ;;  %25515 = vst [vmem:[#allocation10_spill] sm:$0xff] %v22790_v7 }
 0x300   :  { %v21385_v18 = vpop.eup %21384 }
 0x301   :  { %2599 = vrot.lane.b32.xlu1 %v21385_v18, %s21483_s4  ;;  %v52_v18 = vld [vmem:[%s25193_s3 + $0x60] sm:$0xff] }
 0x302   :  { %v2651_v22 = vand.u32 4294901760, %v52_v18  ;;  %19316 = vmatpush3.bf16.msra.mxu1 %v22753_v8 }
 0x303   :  { %19317 = vmatprep.subr.bf16.mxu1 %v25310_v13 }
 0x304   :  { %v22783_v36 = vsub.f32 %v52_v18, %v2651_v22  ;;  %v2766_v18 = vand.u32 4294901760, %v2765_v33  ;;  %v22808_v24 = vpack.c.bf16 %v2654_v51, %v2651_v22  ;;  %v2787_v33 = vand.u32 4294901760, %v2786_v9 }
 0x305   :  { %v2801_v9 = vand.u32 4294901760, %v2800_v21 }
 0x306   :  { %v25308_v10 = vand.u32 4294901760, %v22783_v36  ;;  %19319 = vmatpush3.bf16.msra.mxu1 %v22790_v7  ;;  %v22811_v29 = vpack.c.bf16 %v2773_v6, %v2766_v18  ;;  %v22823_v51 = vpack.c.bf16 %v2787_v33, %v2780_v61  ;;  %19304 = vmatpush3.bf16.msra.mxu0 %v22808_v24  ;;  %v54_v6 = vld [vmem:[%s25193_s3 + $0x70] sm:$0xff]  ;;  %v55_v18 = vld [vmem:[%s25193_s3 + $0x78] sm:$0xff]  ;;  %s21485_s3 = smov 96  }
 0x307   :  { %19320 = vmatprep.subr.bf16.mxu1 %v25310_v13  ;;  %19305 = vmatprep.subr.bf16.mxu0 %v25310_v13  ;;  %v2657_v61 = vand.u32 4294901760, %v54_v6  ;;  %v2660_v33 = vand.u32 4294901760, %v55_v18 }
 0x308   :  { %25517 = vst [vmem:[#allocation6_spill] sm:$0xff] %v22811_v29  ;;  %v2793_v14 = vsub.f32 %v22783_v36, %v25308_v10  ;;  %25518 = vst [vmem:[#allocation11_spill] sm:$0xff] %v22823_v51 }
 0x309   :  { %v22842_v21 = vsub.f32 %v55_v18, %v2660_v33  ;;  %v22856_v18 = vpack.c.bf16 %v2660_v33, %v2657_v61 }
 0x30a   :  { %19322 = vmatpush3.bf16.msra.mxu1 %v22811_v29  ;;  %v2794_v46 = vand.u32 4294901760, %v2793_v14  ;;  %v22840_v14 = vsub.f32 %v54_v6, %v2657_v61  ;;  %v25521_v6 = vmov 0.0|0.0  }
 0x30b   :  { %19323 = vmatprep.subr.bf16.mxu1 %v25310_v13  ;;  %19307 = vmatpush3.bf16.msra.mxu0 %v22856_v18 }
 0x30c   :  { %v22829_v22 = vpack.c.bf16 %v2801_v9, %v2794_v46  ;;  %v25313_v46 = vand.u32 4294901760, %v22840_v14  ;;  %v25314_v9 = vand.u32 4294901760, %v22842_v21  ;;  %19332 = vmatprep.subr.bf16.mxu0 %v25521_v6 }
 0x30e   :  { %19325 = vmatpush3.bf16.msra.mxu1 %v22823_v51  ;;  %25519 = vst [vmem:[#allocation8_spill] sm:$0xff] %v22829_v22  ;;  %v2807_v59 = vsub.f32 %v22840_v14, %v25313_v46  ;;  %v2814_v10 = vsub.f32 %v22842_v21, %v25314_v9 }
 0x30f   :  { %19326 = vmatprep.subr.bf16.mxu1 %v25310_v13 }
 0x310   :  { %v2808_v52 = vand.u32 4294901760, %v2807_v59 }
 0x312   :  { %19328 = vmatpush3.bf16.msra.mxu1 %v22829_v22 }
 0x313   :  { %19329 = vmatprep.subr.bf16.mxu1 %v25310_v13  ;;  %v2815_v13 = vand.u32 4294901760, %v2814_v10 }
 0x315   :  { %v22852_v26 = vpack.c.bf16 %v2815_v13, %v2808_v52  ;;  %v22865_v13 = vpack.c.bf16 %v22842_v21, %v22840_v14  ;;  %v66_v52 = vsel %vm65_vm2, %v22359_v27, %v22343_v47 }
 0x316   :  { %v22872_v61 = vsel %vm67_vm4, %v66_v52, %v22350_v30  ;;  %v25523_v52 = vmov 0.0  }
 0x317   :  { %25520 = vst [vmem:[#allocation13_spill] sm:$0xff] %v22852_v26  ;;  %19331 = vmatpush3.bf16.msra.mxu1 %v22852_v26  ;;  %25522 = vst [vmem:[#allocation15_spill] sm:$0xff] %v22865_v13 }
 0x318   :  { %19356 = vmatprep.subr.bf16.mxu1 %v25521_v6 }
 0x373   :  { %v2600_v41 = vpop.permute.xlu1 %2599 }
 0x374   :  { %v2602_v46 = vmul.f32 %v22641_v34, %v2600_v41 }
 0x376   :  { %2607 = vrot.lane.b32.xlu0 %v2602_v46, %s21483_s4  ;;  %2604 = vrot.lane.b32.xlu1 %v2602_v46, %s21484_s19 }
 0x3e8   :  { %v2608_v10 = vpop.permute.xlu0 %2607  ;;  %v2605_v59 = vpop.permute.xlu1 %2604 }
 0x3e9   :  { %v22875_v41 = vsel %vm63_vm1, %v2605_v59, %v2608_v10 }
 0x3ea   :  { %v2611_v34 = vsel %vm65_vm2, %v22875_v41, 0.0 }
 0x3eb   :  { %v2612_v33 = vsel %vm67_vm4, %v2611_v34, 0.0  ;;  %v22892_v34 = vpack.c.bf16 %v22673_v63, %v22671_v19 }
 0x3ec   :  { %v2613_v46 = vmul.f32 %v2612_v33, %v22872_v61 }
 0x3ed   :  { %25524 = vst [vmem:[#allocation16_spill] sm:$0xff] %v22892_v34 }
 0x3ee   :  { %v22881_v9 = vand.u32 4294901760, %v2613_v46 }
 0x3f0   :  { %v2696_v47 = vsub.f32 %v2613_v46, %v22881_v9  ;;  %16262 = vmatmul.mubr.f32.vlgmr.msra.gmra.mrb[22].mxu1 %v22881_v9  ;;  %v22899_v46 = vpack.c.bf16 %v22685_v38, %v22675_v35 }
 0x3f1   :  { %19358 = vmatpush3.bf16.msra.mxu1 %v22669_v28  ;;  %16331 = vmatprep.mubr.msk.f32.mxu1 %vm21482_vm3, %v25523_v52 }
 0x3f2   :  { %19359 = vmatprep.subr.bf16.mxu1 %v25521_v6  ;;  %v2697_v10 = vand.u32 4294901760, %v2696_v47  ;;  %25525 = vst [vmem:[#allocation19_spill] sm:$0xff] %v22899_v46 }
 0x3f4   :  { %v2698_v59 = vsub.f32 %v2696_v47, %v2697_v10 }
 0x3f5   :  { %19361 = vmatpush3.bf16.msra.mxu1 %v22683_v20 }
 0x3f6   :  { %19362 = vmatprep.subr.bf16.mxu1 %v25521_v6  ;;  %v2699_v33 = vand.u32 4294901760, %v2698_v59  ;;  %v22909_v59 = vpack.c.bf16 %v22693_v5, %v22687_v32 }
 0x3f8   :  { %16227 = vmatmul.mubr.f32.vlgmr.msra.gmra.mrb[14].mxu0 %v2699_v33  ;;  %25526 = vst [vmem:[#allocation12_spill] sm:$0xff] %v22909_v59  ;;  %v22917_v33 = vpack.c.bf16 %v22733_v4, %v22716_v15 }
 0x3f9   :  { %19334 = vmatpush3.bf16.msra.mxu0 %v22892_v34  ;;  %19364 = vmatpush3.bf16.msra.mxu1 %v22711_v12 }
 0x3fa   :  { %19335 = vmatprep.subr.bf16.mxu0 %v25521_v6  ;;  %19365 = vmatprep.subr.bf16.mxu1 %v25521_v6  ;;  %25527 = vst [vmem:[#allocation20_spill] sm:$0xff] %v22917_v33 }
 0x3fb   :  { %16296 = vmatprep.mubr.msk.f32.mxu0 %vm21482_vm3, %v25523_v52 }
 0x3fd   :  { %19337 = vmatpush3.bf16.msra.mxu0 %v22899_v46  ;;  %19367 = vmatpush3.bf16.msra.mxu1 %v22741_v42  ;;  %v22925_v46 = vpack.c.bf16 %v22765_v3, %v22756_v16 }
 0x3fe   :  { %19338 = vmatprep.subr.bf16.mxu0 %v25521_v6  ;;  %19368 = vmatprep.subr.bf16.mxu1 %v25521_v6 }
 0x3ff   :  { %25528 = vst [vmem:[#allocation22_spill] sm:$0xff] %v22925_v46 }
 0x401   :  { %19340 = vmatpush3.bf16.msra.mxu0 %v22909_v59  ;;  %19370 = vmatpush3.bf16.msra.mxu1 %v22776_v31  ;;  %v22933_v59 = vpack.c.bf16 %v22771_v23, %v22768_v55 }
 0x402   :  { %19341 = vmatprep.subr.bf16.mxu0 %v25521_v6  ;;  %19371 = vmatprep.subr.bf16.mxu1 %v25521_v6 }
 0x403   :  { %25529 = vst [vmem:[#allocation26_spill] sm:$0xff] %v22933_v59 }
 0x405   :  { %19343 = vmatpush3.bf16.msra.mxu0 %v22917_v33  ;;  %19373 = vmatpush3.bf16.msra.mxu1 %v22792_v39  ;;  %v22941_v33 = vpack.c.bf16 %v22797_v60, %v22783_v36 }
 0x406   :  { %19344 = vmatprep.subr.bf16.mxu0 %v25521_v6  ;;  %19374 = vmatprep.subr.bf16.mxu1 %v25521_v6 }
 0x407   :  { %25530 = vst [vmem:[#allocation23_spill] sm:$0xff] %v22941_v33 }
 0x409   :  { %19346 = vmatpush3.bf16.msra.mxu0 %v22925_v46  ;;  %19376 = vmatpush3.bf16.msra.mxu1 %v22808_v24  ;;  %v25532_v46 = vand.u32 4294901760, %v22673_v63 }
 0x40a   :  { %19347 = vmatprep.subr.bf16.mxu0 %v25521_v6  ;;  %19377 = vmatprep.subr.bf16.mxu1 %v25521_v6 }
 0x40d   :  { %19349 = vmatpush3.bf16.msra.mxu0 %v22933_v59  ;;  %19379 = vmatpush3.bf16.msra.mxu1 %v22856_v18  ;;  %v25531_v59 = vand.u32 4294901760, %v22671_v19  ;;  %v25536_v19 = vand.u32 4294901760, %v22693_v5  ;;  %v25540_v5 = vand.u32 4294901760, %v22765_v3  ;;  %v25543_v3 = vand.u32 4294901760, %v22783_v36 }
 0x40e   :  { %19350 = vmatprep.subr.bf16.mxu0 %v25521_v6  ;;  %19404 = vmatprep.subr.bf16.mxu1 %v25521_v6  ;;  %v25546_v36 = vand.u32 4294901760, %v22842_v21 }
 0x410   :  { %16332 = vmatmul.mubr.f32.vlgmr.msra.gmra.mrb[24].mxu1 %v2697_v10  ;;  %v22957_v10 = vpack.c.bf16 %v25532_v46, %v25531_v59 }
 0x411   :  { %19352 = vmatpush3.bf16.msra.mxu0 %v22941_v33  ;;  %19406 = vmatpush3.bf16.msra.mxu1 %v22669_v28  ;;  %v25533_v33 = vand.u32 4294901760, %v22675_v35  ;;  %v25537_v35 = vand.u32 4294901760, %v22716_v15  ;;  %v25542_v15 = vand.u32 4294901760, %v22771_v23  ;;  %v25545_v23 = vand.u32 4294901760, %v22840_v14 }
 0x412   :  { %19353 = vmatprep.subr.bf16.mxu0 %v25521_v6  ;;  %19407 = vmatprep.subr.bf16.mxu1 %v25521_v6 }
 0x413   :  { %16401 = vmatprep.mubr.msk.f32.mxu1 %vm21482_vm3, %v25523_v52 }
 0x415   :  { %19355 = vmatpush3.bf16.msra.mxu0 %v22865_v13  ;;  %19409 = vmatpush3.bf16.msra.mxu1 %v22683_v20  ;;  %v25534_v13 = vand.u32 4294901760, %v22685_v38  ;;  %v25538_v38 = vand.u32 4294901760, %v22733_v4  ;;  %v25541_v4 = vand.u32 4294901760, %v22768_v55  ;;  %v3281_v55 = vmul.f32 %v22875_v41, %v22359_v27 }
 0x416   :  { %19380 = vmatprep.subr.bf16.mxu0 %v25521_v6  ;;  %19410 = vmatprep.subr.bf16.mxu1 %v25521_v6 }
 0x417   :  { %v22967_v34 = vpack.c.bf16 %v25534_v13, %v25533_v33  ;;  %v22989_v13 = vpack.c.bf16 %v25538_v38, %v25537_v35  ;;  %v23009_v59 = vpack.c.bf16 %v25542_v15, %v25541_v4 }
 0x418   :  { %16297 = vmatmul.mubr.f32.vlgmr.msra.gmra.mrb[16].mxu0 %v2696_v47  ;;  %v25535_v47 = vand.u32 4294901760, %v22687_v32  ;;  %v25539_v32 = vand.u32 4294901760, %v22756_v16  ;;  %v25544_v16 = vand.u32 4294901760, %v22797_v60  ;;  %v23032_v60 = vpack.c.bf16 %v25546_v36, %v25545_v23 }
 0x419   :  { %19382 = vmatpush3.bf16.msra.mxu0 %v22957_v10  ;;  %19412 = vmatpush3.bf16.msra.mxu1 %v22711_v12 }
 0x41a   :  { %19383 = vmatprep.subr.bf16.mxu0 %v25521_v6  ;;  %19413 = vmatprep.subr.bf16.mxu1 %v25521_v6  ;;  %v22979_v63 = vpack.c.bf16 %v25536_v19, %v25535_v47  ;;  %v22999_v46 = vpack.c.bf16 %v25540_v5, %v25539_v32  ;;  %v23019_v33 = vpack.c.bf16 %v25544_v16, %v25543_v3  ;;  %v3283_v47 = vsel %vm65_vm2, %v3281_v55, 0 }
 0x41b   :  { %16366 = vmatprep.mubr.msk.f32.mxu0 %vm21482_vm3, %v25523_v52  ;;  %v23041_v41 = vand.u32 4294901760, %v3283_v47 }
 0x41d   :  { %19385 = vmatpush3.bf16.msra.mxu0 %v22967_v34  ;;  %19415 = vmatpush3.bf16.msra.mxu1 %v22741_v42  ;;  %v3359_v14 = vsub.f32 %v3283_v47, %v23041_v41  ;;  %v2027_v47 = vsub.s32 2, %v22330_v57 }
 0x41e   :  { %19386 = vmatprep.subr.bf16.mxu0 %v25521_v6  ;;  %19416 = vmatprep.subr.bf16.mxu1 %v25521_v6 }
 0x41f   :  { %v3360_v21 = vand.u32 4294901760, %v3359_v14 }
 0x421   :  { %19388 = vmatpush3.bf16.msra.mxu0 %v22979_v63  ;;  %19418 = vmatpush3.bf16.msra.mxu1 %v22776_v31 }
 0x422   :  { %19389 = vmatprep.subr.bf16.mxu0 %v25521_v6  ;;  %19419 = vmatprep.subr.bf16.mxu1 %v25521_v6 }
 0x425   :  { %19391 = vmatpush3.bf16.msra.mxu0 %v22989_v13  ;;  %19421 = vmatpush3.bf16.msra.mxu1 %v22792_v39 }
 0x426   :  { %19392 = vmatprep.subr.bf16.mxu0 %v25521_v6  ;;  %19422 = vmatprep.subr.bf16.mxu1 %v25521_v6 }
 0x429   :  { %19394 = vmatpush3.bf16.msra.mxu0 %v22999_v46  ;;  %19424 = vmatpush3.bf16.msra.mxu1 %v22808_v24 }
 0x42a   :  { %19395 = vmatprep.subr.bf16.mxu0 %v25521_v6  ;;  %19425 = vmatprep.subr.bf16.mxu1 %v25521_v6 }
 0x42d   :  { %19397 = vmatpush3.bf16.msra.mxu0 %v23009_v59  ;;  %19427 = vmatpush3.bf16.msra.mxu1 %v22856_v18 }
 0x42e   :  { %19398 = vmatprep.subr.bf16.mxu0 %v25521_v6  ;;  %19440 = vmatprep.subr.bf16.mxu1 %v25521_v6 }
 0x430   :  { %16402 = vmatmul.mubr.f32.vlgmr.msra.gmra.mrb[26].mxu1 %v22881_v9 }
 0x431   :  { %19400 = vmatpush3.bf16.msra.mxu0 %v23019_v33  ;;  %19442 = vmatpush3.bf16.msra.mxu1 %v22543_v11 }
 0x432   :  { %19401 = vmatprep.subr.bf16.mxu0 %v25521_v6  ;;  %19443 = vmatprep.subr.bf16.mxu1 %v25521_v6 }
 0x433   :  { %16439 = vmatprep.mubr.msk.f32.mxu1 %vm21482_vm3, %v25523_v52 }
 0x435   :  { %19403 = vmatpush3.bf16.msra.mxu0 %v23032_v60  ;;  %19445 = vmatpush3.bf16.msra.mxu1 %v22552_v56 }
 0x436   :  { %19428 = vmatprep.subr.bf16.mxu0 %v25521_v6  ;;  %19446 = vmatprep.subr.bf16.mxu1 %v25521_v6 }
 0x438   :  { %16367 = vmatmul.mubr.f32.vlgmr.msra.gmra.mrb[18].mxu0 %v22881_v9  ;;  %v3361_v9 = vsub.f32 %v3359_v14, %v3360_v21 }
 0x439   :  { %19430 = vmatpush3.bf16.msra.mxu0 %v22387_v45  ;;  %19448 = vmatpush3.bf16.msra.mxu1 %v22562_v50 }
 0x43a   :  { %19431 = vmatprep.subr.bf16.mxu0 %v25521_v6  ;;  %19449 = vmatprep.subr.bf16.mxu1 %v25521_v6  ;;  %v3362_v19 = vand.u32 4294901760, %v3361_v9  ;;  %v2028_v9 = vrot.slane %v22579_v0, %v2027_v47 }
 0x43b   :  { %16420 = vmatprep.mubr.msk.f32.mxu0 %vm21482_vm3, %v25523_v52 }
 0x43d   :  { %19433 = vmatpush3.bf16.msra.mxu0 %v22419_v40  ;;  %19451 = vmatpush3.bf16.msra.mxu1 %v22568_v62 }
 0x43e   :  { %19434 = vmatprep.subr.bf16.mxu0 %v25521_v6  ;;  %19464 = vmatprep.subr.bf16.mxu1 %v25521_v6 }
 0x440   :  { %16440 = vmatmul.mubr.f32.vlgmr.msra.gmra.mrb[28].mxu1 %v23041_v41 }
 0x441   :  { %19436 = vmatpush3.bf16.msra.mxu0 %v22434_v25  ;;  %19466 = vmatpush3.bf16.msra.mxu1 %v22387_v45 }
 0x442   :  { %19437 = vmatprep.subr.bf16.mxu0 %v25521_v6  ;;  %19467 = vmatprep.subr.bf16.mxu1 %v25521_v6 }
 0x443   :  { %16477 = vmatprep.mubr.msk.f32.mxu1 %vm21482_vm3, %v25523_v52 }
 0x445   :  { %19439 = vmatpush3.bf16.msra.mxu0 %v22446_v54  ;;  %19469 = vmatpush3.bf16.msra.mxu1 %v22419_v40 }
 0x446   :  { %19452 = vmatprep.subr.bf16.mxu0 %v25521_v6  ;;  %19470 = vmatprep.subr.bf16.mxu1 %v25521_v6 }
 0x448   :  { %16421 = vmatmul.mubr.f32.vlgmr.msra.gmra.mrb[20].mxu0 %v3362_v19 }
 0x449   :  { %19454 = vmatpush3.bf16.msra.mxu0 %v22460_v49  ;;  %19472 = vmatpush3.bf16.msra.mxu1 %v22434_v25 }
 0x44a   :  { %19455 = vmatprep.subr.bf16.mxu0 %v25521_v6  ;;  %19473 = vmatprep.subr.bf16.mxu1 %v25521_v6 }
 0x44b   :  { %16458 = vmatprep.mubr.msk.f32.mxu0 %vm21482_vm3, %v25523_v52 }
 0x44d   :  { %19457 = vmatpush3.bf16.msra.mxu0 %v22466_v1  ;;  %19475 = vmatpush3.bf16.msra.mxu1 %v22446_v54 }
 0x44e   :  { %19458 = vmatprep.subr.bf16.mxu0 %v25521_v6  ;;  %19488 = vmatprep.subr.bf16.mxu1 %v25521_v6 }
 0x450   :  { %16478 = vmatmul.mubr.f32.vlgmr.msra.gmra.mrb[30].mxu1 %v3360_v21 }
 0x451   :  { %19460 = vmatpush3.bf16.msra.mxu0 %v22482_v2  ;;  %19490 = vmatpush3.bf16.msra.mxu1 %v22387_v45 }
 0x452   :  { %19461 = vmatprep.subr.bf16.mxu0 %v25521_v6  ;;  %19491 = vmatprep.subr.bf16.mxu1 %v25521_v6 }
 0x453   :  { %16515 = vmatprep.mubr.msk.f32.mxu1 %vm21482_vm3, %v25523_v52 }
 0x455   :  { %19463 = vmatpush3.bf16.msra.mxu0 %v22496_v37  ;;  %19493 = vmatpush3.bf16.msra.mxu1 %v22419_v40 }
 0x456   :  { %19476 = vmatprep.subr.bf16.mxu0 %v25521_v6  ;;  %19494 = vmatprep.subr.bf16.mxu1 %v25521_v6 }
 0x458   :  { %16459 = vmatmul.mubr.f32.vlgmr.msra.gmra.mrb[22].mxu0 %v3359_v14 }
 0x459   :  { %19478 = vmatpush3.bf16.msra.mxu0 %v22507_v43  ;;  %19496 = vmatpush3.bf16.msra.mxu1 %v22434_v25 }
 0x45a   :  { %19479 = vmatprep.subr.bf16.mxu0 %v25521_v6  ;;  %19497 = vmatprep.subr.bf16.mxu1 %v25521_v6 }
 0x45b   :  { %16496 = vmatprep.mubr.msk.f32.mxu0 %vm21482_vm3, %v25523_v52 }
 0x45d   :  { %19481 = vmatpush3.bf16.msra.mxu0 %v22515_v44  ;;  %19499 = vmatpush3.bf16.msra.mxu1 %v22446_v54 }
 0x45e   :  { %19482 = vmatprep.subr.bf16.mxu0 %v25521_v6  ;;  %19524 = vmatprep.subr.bf16.mxu1 %v25521_v6 }
 0x460   :  { %16516 = vmatmul.mubr.f32.vlgmr.msra.gmra.mrb[32].mxu1 %v23041_v41 }
 0x461   :  { %19484 = vmatpush3.bf16.msra.mxu0 %v22525_v17  ;;  %19526 = vmatpush3.bf16.msra.mxu1 %v22739_v48 }
 0x462   :  { %19485 = vmatprep.subr.bf16.mxu0 %v25521_v6  ;;  %19527 = vmatprep.subr.bf16.mxu1 %v25521_v6 }
 0x463   :  { %16585 = vmatprep.mubr.msk.f32.mxu1 %vm21482_vm3, %v25523_v52 }
 0x465   :  { %19487 = vmatpush3.bf16.msra.mxu0 %v22535_v53  ;;  %19529 = vmatpush3.bf16.msra.mxu1 %v22751_v58 }
 0x466   :  { %19500 = vmatprep.subr.bf16.mxu0 %v25521_v6  ;;  %19530 = vmatprep.subr.bf16.mxu1 %v25521_v6 }
 0x468   :  { %16497 = vmatmul.mubr.f32.vlgmr.msra.gmra.mrb[24].mxu0 %v23041_v41  ;;  %v2032_v41 = vsub.s32 3, %v22330_v57 }
 0x469   :  { %19502 = vmatpush3.bf16.msra.mxu0 %v22669_v28  ;;  %19532 = vmatpush3.bf16.msra.mxu1 %v22753_v8 }
 0x46a   :  { %19503 = vmatprep.subr.bf16.mxu0 %v25521_v6  ;;  %19533 = vmatprep.subr.bf16.mxu1 %v25521_v6  ;;  %v2033_v19 = vrot.slane %v22579_v0, %v2032_v41 }
 0x46b   :  { %16550 = vmatprep.mubr.msk.f32.mxu0 %vm21482_vm3, %v25523_v52 }
 0x46d   :  { %19505 = vmatpush3.bf16.msra.mxu0 %v22683_v20  ;;  %19535 = vmatpush3.bf16.msra.mxu1 %v22790_v7 }
 0x46e   :  { %19506 = vmatprep.subr.bf16.mxu0 %v25521_v6  ;;  %19536 = vmatprep.subr.bf16.mxu1 %v25521_v6 }
 0x471   :  { %19508 = vmatpush3.bf16.msra.mxu0 %v22711_v12  ;;  %19538 = vmatpush3.bf16.msra.mxu1 %v22811_v29 }
 0x472   :  { %19509 = vmatprep.subr.bf16.mxu0 %v25521_v6  ;;  %19539 = vmatprep.subr.bf16.mxu1 %v25521_v6 }
 0x475   :  { %19511 = vmatpush3.bf16.msra.mxu0 %v22741_v42  ;;  %19541 = vmatpush3.bf16.msra.mxu1 %v22823_v51 }
 0x476   :  { %19512 = vmatprep.subr.bf16.mxu0 %v25521_v6  ;;  %19542 = vmatprep.subr.bf16.mxu1 %v25521_v6 }
 0x479   :  { %19514 = vmatpush3.bf16.msra.mxu0 %v22776_v31  ;;  %19544 = vmatpush3.bf16.msra.mxu1 %v22829_v22 }
 0x47a   :  { %19515 = vmatprep.subr.bf16.mxu0 %v25521_v6  ;;  %19545 = vmatprep.subr.bf16.mxu1 %v25521_v6 }
 0x47d   :  { %19517 = vmatpush3.bf16.msra.mxu0 %v22792_v39  ;;  %19547 = vmatpush3.bf16.msra.mxu1 %v22852_v26 }
 0x47e   :  { %19518 = vmatprep.subr.bf16.mxu0 %v25521_v6  ;;  %19572 = vmatprep.subr.bf16.mxu1 %v25521_v6 }
 0x481   :  { %19520 = vmatpush3.bf16.msra.mxu0 %v22808_v24 }
 0x482   :  { %19521 = vmatprep.subr.bf16.mxu0 %v25521_v6 }
 0x485   :  { %19523 = vmatpush3.bf16.msra.mxu0 %v22856_v18 }
 0x486   :  { %19548 = vmatprep.subr.bf16.mxu0 %v25521_v6 }
 0x4c3   :  { %v2852_v35 = vpop.f32.mrb[22].mxu1 }
 0x4c4   :  { %v16263_v38 = vpop.f32.mrb[23].mxu1 }
 0x4c5   :  { %v25547_v38 = vld [vmem:[#allocation35_spill] sm:$0xff] }
 0x4c6   :  { %v2029_v26 = vmul.f32 %v25547_v38, %v2028_v9 }
 0x4cb   :  { %v2701_v32 = vpop.f32.mrb[14].mxu0 }
 0x4cc   :  { %v2853_v5 = vadd.f32 %v2852_v35, %v2701_v32  ;;  %v16228_v4 = vpop.f32.mrb[15].mxu0  ;;  %v2034_v35 = vmul.f32 %v2033_v19, %v22350_v30 }
 0x4ce   :  { %v23146_v4 = vadd.f32 %v2034_v35, %v2029_v26 }
 0x4e3   :  { %v3045_v15 = vpop.f32.mrb[24].mxu1 }
 0x4e4   :  { %v16333_v3 = vpop.f32.mrb[25].mxu1 }
 0x4eb   :  { %v2956_v16 = vpop.f32.mrb[16].mxu0 }
 0x4ec   :  { %v2957_v55 = vadd.f32 %v2956_v16, %v2853_v5  ;;  %v16298_v23 = vpop.f32.mrb[17].mxu0 }
 0x4ee   :  { %v3046_v36 = vadd.f32 %v3045_v15, %v2957_v55 }
 0x503   :  { %v3251_v14 = vpop.f32.mrb[26].mxu1 }
 0x504   :  { %v16403_v21 = vpop.f32.mrb[27].mxu1 }
 0x50b   :  { %v3164_v32 = vpop.f32.mrb[18].mxu0 }
 0x50c   :  { %v3165_v5 = vadd.f32 %v3164_v32, %v3046_v36  ;;  %v16368_v3 = vpop.f32.mrb[19].mxu0 }
 0x50e   :  { %v3252_v15 = vadd.f32 %v3251_v14, %v3165_v5 }
 0x510   :  { %v3255_v16 = vadd.f32 %v3252_v15, %v23146_v4 }
 0x512   :  { %v13910_v55 = vmul.f32 -1.442695, %v3255_v16 }
 0x513   :  { %v3475_v57 = vpop.f32.mrb[28].mxu1 }
 0x514   :  { %21386 = vpow2.f32 %v13910_v55  ;;  %v16441_v23 = vpop.f32.mrb[29].mxu1 }
 0x51b   :  { %v3364_v21 = vpop.f32.mrb[20].mxu0 }
 0x51c   :  { %v3476_v47 = vadd.f32 %v3475_v57, %v3364_v21  ;;  %v16422_v22 = vpop.f32.mrb[21].mxu0  ;;  %v25548_v57 = vld [vmem:[#allocation38_spill] sm:$0xff] }
 0x51e   :  { %v21387_v0 = vpop.eup %21386 }
 0x51f   :  { %v3259_v41 = vadd.f32 1.0, %v21387_v0 }
 0x521   :  { %21388 = vrcp.f32 %v3259_v41 }
 0x523   :  { %v3644_v9 = vpop.f32.mrb[30].mxu1 }
 0x524   :  { %v16479_v30 = vpop.f32.mrb[31].mxu1 }
 0x52b   :  { %v21389_v19 = vpop.eup %21388  ;;  %v3563_v26 = vpop.f32.mrb[22].mxu0 }
 0x52c   :  { %v3564_v38 = vadd.f32 %v3563_v26, %v3476_v47  ;;  %v16460_v36 = vpop.f32.mrb[23].mxu0  ;;  %v3262_v35 = vmul.f32 2.0, %v21389_v19 }
 0x52e   :  { %v13911_v14 = vadd.f32 -1.0, %v3262_v35  ;;  %v3645_v32 = vadd.f32 %v3644_v9, %v3564_v38 }
 0x530   :  { %3266 = vrot.lane.b32.xlu0 %v13911_v14, %s21483_s4  ;;  %v3264_v14 = vmul.f32 0.0, %v21389_v19 }
 0x533   :  { %v3818_v5 = vpop.f32.mrb[32].mxu1 }
 0x534   :  { %v16517_v3 = vpop.f32.mrb[33].mxu1 }
 0x53b   :  { %v3739_v15 = vpop.f32.mrb[24].mxu0 }
 0x53c   :  { %v3740_v16 = vadd.f32 %v3739_v15, %v3645_v32  ;;  %v16498_v55 = vpop.f32.mrb[25].mxu0  ;;  %v25549_v15 = vld [vmem:[#allocation4_spill] sm:$0xff] }
 0x53e   :  { %v3819_v22 = vadd.f32 %v3818_v5, %v3740_v16 }
 0x540   :  { %v3822_v23 = vadd.f32 %v3819_v22, %v25548_v57 }
 0x542   :  { %v13912_v21 = vmul.f32 -1.442695, %v3822_v23 }
 0x544   :  { %21390 = vpow2.f32 %v13912_v21 }
 0x54e   :  { %v21391_v0 = vpop.eup %21390 }
 0x54f   :  { %v3826_v41 = vadd.f32 1.0, %v21391_v0 }
 0x551   :  { %21392 = vrcp.f32 %v3826_v41 }
 0x55b   :  { %v21393_v47 = vpop.eup %21392 }
 0x55c   :  { %v3829_v30 = vmul.f32 2.0, %v21393_v47  ;;  %v3831_v16 = vmul.f32 %v21393_v47, %v25549_v15 }
 0x55e   :  { %v13913_v26 = vadd.f32 -1.0, %v3829_v30 }
 0x560   :  { %3833 = vrot.lane.b32.xlu1 %v13913_v26, %s21483_s4 }
 0x5a2   :  { %v3267_v9 = vpop.permute.xlu0 %3266 }
 0x5a3   :  { %v3269_v38 = vmul.f32 %v21389_v19, %v3267_v9 }
 0x5a5   :  { %3271 = vrot.lane.b32.xlu0 %v3269_v38, %s21484_s19 }
 0x5d2   :  { %v3834_v36 = vpop.permute.xlu1 %3833 }
 0x5d3   :  { %v3836_v35 = vmul.f32 %v21393_v47, %v3834_v36 }
 0x5d5   :  { %3838 = vrot.lane.b32.xlu1 %v3836_v35, %s21484_s19 }
 0x617   :  { %v3272_v32 = vpop.permute.xlu0 %3271 }
 0x618   :  { %v23154_v5 = vadd.f32 %v3272_v32, %v3264_v14 }
 0x61a   :  { %21394 = vtanh.f32 %v23154_v5 }
 0x624   :  { %v21395_v3 = vpop.eup %21394 }
 0x625   :  { %3277 = vrot.lane.b32.xlu0 %v21395_v3, %s21483_s4 }
 0x647   :  { %v3839_v55 = vpop.permute.xlu1 %3838 }
 0x648   :  { %v23159_v22 = vadd.f32 %v3839_v55, %v3831_v16  ;;  %v25550_v16 = vld [vmem:[#allocation16_spill] sm:$0xff]  ;;  %v25551_v55 = vld [vmem:[#allocation19_spill] sm:$0xff] }
 0x64a   :  { %21396 = vtanh.f32 %v23159_v22 }
 0x654   :  { %v21397_v57 = vpop.eup %21396 }
 0x655   :  { %3844 = vrot.lane.b32.xlu1 %v21397_v57, %s21483_s4  ;;  %v25552_v57 = vld [vmem:[#allocation12_spill] sm:$0xff] }
 0x697   :  { %v3278_v0 = vpop.permute.xlu0 %3277 }
 0x698   :  { %v3280_v41 = vmul.f32 %v21389_v19, %v3278_v0  ;;  %v25555_v0 = vld [vmem:[#allocation26_spill] sm:$0xff] }
 0x6c7   :  { %v3845_v23 = vpop.permute.xlu1 %3844 }
 0x6c8   :  { %v3847_v21 = vmul.f32 %v21393_v47, %v3845_v23  ;;  %v25553_v23 = vld [vmem:[#allocation20_spill] sm:$0xff] }
 0x6ca   :  { %3852 = vrot.lane.b32.xlu0 %v3847_v21, %s21483_s4  ;;  %3849 = vrot.lane.b32.xlu1 %v3847_v21, %s21484_s19  ;;  %v25554_v21 = vld [vmem:[#allocation22_spill] sm:$0xff] }
 0x6ce   :  { %3856 = vrot.lane.b32.xlu1 %v3280_v41, %s21485_s3 }
 0x73c   :  { %v3850_v30 = vpop.permute.xlu1 %3849  ;;  %v3853_v26 = vpop.permute.xlu0 %3852 }
 0x73d   :  { %v23167_v9 = vsel %vm63_vm1, %v3850_v30, %v3853_v26  ;;  %v25557_v30 = vld [vmem:[#allocation15_spill] sm:$0xff] }
 0x73e   :  { %v4530_v26 = vmul.f32 %v23167_v9, %v22359_v27 }
 0x740   :  { %v3857_v38 = vpop.permute.xlu1 %3856 }
 0x741   :  { %v3860_v36 = vsel %vm65_vm2, %v23167_v9, %v3857_v38  ;;  %v4532_v38 = vsel %vm65_vm2, %v4530_v26, 0 }
 0x742   :  { %v3861_v47 = vsel %vm67_vm4, %v3860_v36, %v3280_v41  ;;  %v25556_v41 = vld [vmem:[#allocation23_spill] sm:$0xff]  ;;  %v23257_v9 = vand.u32 4294901760, %v4532_v38 }
 0x743   :  { %v3862_v35 = vmul.f32 %v3861_v47, %v22872_v61 }
 0x744   :  { %v4608_v36 = vsub.f32 %v4532_v38, %v23257_v9 }
 0x745   :  { %v23173_v14 = vand.u32 4294901760, %v3862_v35 }
 0x746   :  { %v4609_v47 = vand.u32 4294901760, %v4608_v36 }
 0x747   :  { %v3945_v19 = vsub.f32 %v3862_v35, %v23173_v14  ;;  %16586 = vmatmul.mubr.f32.vlgmr.msra.gmra.mrb[34].mxu1 %v23173_v14 }
 0x748   :  { %19574 = vmatpush3.bf16.msra.mxu1 %v22669_v28  ;;  %16655 = vmatprep.mubr.msk.f32.mxu1 %vm21482_vm3, %v25523_v52  ;;  %v4610_v35 = vsub.f32 %v4608_v36, %v4609_v47 }
 0x749   :  { %19575 = vmatprep.subr.bf16.mxu1 %v25521_v6  ;;  %v3946_v32 = vand.u32 4294901760, %v3945_v19 }
 0x74b   :  { %v3947_v3 = vsub.f32 %v3945_v19, %v3946_v32 }
 0x74c   :  { %19577 = vmatpush3.bf16.msra.mxu1 %v22683_v20 }
 0x74d   :  { %19578 = vmatprep.subr.bf16.mxu1 %v25521_v6  ;;  %v3948_v15 = vand.u32 4294901760, %v3947_v3 }
 0x74f   :  { %16551 = vmatmul.mubr.f32.vlgmr.msra.gmra.mrb[26].mxu0 %v3948_v15 }
 0x750   :  { %19550 = vmatpush3.bf16.msra.mxu0 %v25550_v16  ;;  %19580 = vmatpush3.bf16.msra.mxu1 %v22711_v12 }
 0x751   :  { %19551 = vmatprep.subr.bf16.mxu0 %v25521_v6  ;;  %19581 = vmatprep.subr.bf16.mxu1 %v25521_v6 }
 0x752   :  { %16620 = vmatprep.mubr.msk.f32.mxu0 %vm21482_vm3, %v25523_v52 }
 0x754   :  { %19553 = vmatpush3.bf16.msra.mxu0 %v25551_v55  ;;  %19583 = vmatpush3.bf16.msra.mxu1 %v22741_v42 }
 0x755   :  { %19554 = vmatprep.subr.bf16.mxu0 %v25521_v6  ;;  %19584 = vmatprep.subr.bf16.mxu1 %v25521_v6 }
 0x758   :  { %19556 = vmatpush3.bf16.msra.mxu0 %v25552_v57  ;;  %19586 = vmatpush3.bf16.msra.mxu1 %v22776_v31 }
 0x759   :  { %19557 = vmatprep.subr.bf16.mxu0 %v25521_v6  ;;  %19587 = vmatprep.subr.bf16.mxu1 %v25521_v6 }
 0x75c   :  { %19559 = vmatpush3.bf16.msra.mxu0 %v25553_v23  ;;  %19589 = vmatpush3.bf16.msra.mxu1 %v22792_v39 }
 0x75d   :  { %19560 = vmatprep.subr.bf16.mxu0 %v25521_v6  ;;  %19590 = vmatprep.subr.bf16.mxu1 %v25521_v6 }
 0x760   :  { %19562 = vmatpush3.bf16.msra.mxu0 %v25554_v21  ;;  %19592 = vmatpush3.bf16.msra.mxu1 %v22808_v24 }
 0x761   :  { %19563 = vmatprep.subr.bf16.mxu0 %v25521_v6  ;;  %19593 = vmatprep.subr.bf16.mxu1 %v25521_v6 }
 0x764   :  { %19565 = vmatpush3.bf16.msra.mxu0 %v25555_v0  ;;  %19595 = vmatpush3.bf16.msra.mxu1 %v22856_v18 }
 0x765   :  { %19566 = vmatprep.subr.bf16.mxu0 %v25521_v6  ;;  %19620 = vmatprep.subr.bf16.mxu1 %v25521_v6 }
 0x767   :  { %16656 = vmatmul.mubr.f32.vlgmr.msra.gmra.mrb[36].mxu1 %v3946_v32  ;;  %v25559_v32 = vld [vmem:[#allocation13_spill] sm:$0xff] }
 0x768   :  { %19568 = vmatpush3.bf16.msra.mxu0 %v25556_v41  ;;  %19622 = vmatpush3.bf16.msra.mxu1 %v22669_v28 }
 0x769   :  { %19569 = vmatprep.subr.bf16.mxu0 %v25521_v6  ;;  %19623 = vmatprep.subr.bf16.mxu1 %v25521_v6 }
 0x76a   :  { %16725 = vmatprep.mubr.msk.f32.mxu1 %vm21482_vm3, %v25523_v52 }
 0x76c   :  { %19571 = vmatpush3.bf16.msra.mxu0 %v25557_v30  ;;  %19625 = vmatpush3.bf16.msra.mxu1 %v22683_v20 }
 0x76d   :  { %19596 = vmatprep.subr.bf16.mxu0 %v25521_v6  ;;  %19626 = vmatprep.subr.bf16.mxu1 %v25521_v6 }
 0x76f   :  { %16621 = vmatmul.mubr.f32.vlgmr.msra.gmra.mrb[28].mxu0 %v3945_v19  ;;  %v25558_v19 = vld [vmem:[#allocation8_spill] sm:$0xff] }
 0x770   :  { %19598 = vmatpush3.bf16.msra.mxu0 %v22957_v10  ;;  %19628 = vmatpush3.bf16.msra.mxu1 %v22711_v12 }
 0x771   :  { %19599 = vmatprep.subr.bf16.mxu0 %v25521_v6  ;;  %19629 = vmatprep.subr.bf16.mxu1 %v25521_v6 }
 0x772   :  { %16690 = vmatprep.mubr.msk.f32.mxu0 %vm21482_vm3, %v25523_v52 }
 0x774   :  { %19601 = vmatpush3.bf16.msra.mxu0 %v22967_v34  ;;  %19631 = vmatpush3.bf16.msra.mxu1 %v22741_v42 }
 0x775   :  { %19602 = vmatprep.subr.bf16.mxu0 %v25521_v6  ;;  %19632 = vmatprep.subr.bf16.mxu1 %v25521_v6 }
 0x778   :  { %19604 = vmatpush3.bf16.msra.mxu0 %v22979_v63  ;;  %19634 = vmatpush3.bf16.msra.mxu1 %v22776_v31 }
 0x779   :  { %19605 = vmatprep.subr.bf16.mxu0 %v25521_v6  ;;  %19635 = vmatprep.subr.bf16.mxu1 %v25521_v6 }
 0x77c   :  { %19607 = vmatpush3.bf16.msra.mxu0 %v22989_v13  ;;  %19637 = vmatpush3.bf16.msra.mxu1 %v22792_v39 }
 0x77d   :  { %19608 = vmatprep.subr.bf16.mxu0 %v25521_v6  ;;  %19638 = vmatprep.subr.bf16.mxu1 %v25521_v6 }
 0x780   :  { %19610 = vmatpush3.bf16.msra.mxu0 %v22999_v46  ;;  %19640 = vmatpush3.bf16.msra.mxu1 %v22808_v24 }
 0x781   :  { %19611 = vmatprep.subr.bf16.mxu0 %v25521_v6  ;;  %19641 = vmatprep.subr.bf16.mxu1 %v25521_v6 }
 0x784   :  { %19613 = vmatpush3.bf16.msra.mxu0 %v23009_v59  ;;  %19643 = vmatpush3.bf16.msra.mxu1 %v22856_v18 }
 0x785   :  { %19614 = vmatprep.subr.bf16.mxu0 %v25521_v6  ;;  %19656 = vmatprep.subr.bf16.mxu1 %v25521_v6 }
 0x787   :  { %16726 = vmatmul.mubr.f32.vlgmr.msra.gmra.mrb[38].mxu1 %v23173_v14 }
 0x788   :  { %19616 = vmatpush3.bf16.msra.mxu0 %v23019_v33  ;;  %19658 = vmatpush3.bf16.msra.mxu1 %v22543_v11 }
 0x789   :  { %19617 = vmatprep.subr.bf16.mxu0 %v25521_v6  ;;  %19659 = vmatprep.subr.bf16.mxu1 %v25521_v6 }
 0x78a   :  { %16763 = vmatprep.mubr.msk.f32.mxu1 %vm21482_vm3, %v25523_v52 }
 0x78c   :  { %19619 = vmatpush3.bf16.msra.mxu0 %v23032_v60  ;;  %19661 = vmatpush3.bf16.msra.mxu1 %v22552_v56 }
 0x78d   :  { %19644 = vmatprep.subr.bf16.mxu0 %v25521_v6  ;;  %19662 = vmatprep.subr.bf16.mxu1 %v25521_v6 }
 0x78f   :  { %16691 = vmatmul.mubr.f32.vlgmr.msra.gmra.mrb[30].mxu0 %v23173_v14  ;;  %v4611_v14 = vand.u32 4294901760, %v4610_v35 }
 0x790   :  { %19646 = vmatpush3.bf16.msra.mxu0 %v22387_v45  ;;  %19664 = vmatpush3.bf16.msra.mxu1 %v22562_v50 }
 0x791   :  { %19647 = vmatprep.subr.bf16.mxu0 %v25521_v6  ;;  %19665 = vmatprep.subr.bf16.mxu1 %v25521_v6 }
 0x792   :  { %16744 = vmatprep.mubr.msk.f32.mxu0 %vm21482_vm3, %v25523_v52 }
 0x794   :  { %19649 = vmatpush3.bf16.msra.mxu0 %v22419_v40  ;;  %19667 = vmatpush3.bf16.msra.mxu1 %v22568_v62 }
 0x795   :  { %19650 = vmatprep.subr.bf16.mxu0 %v25521_v6  ;;  %19680 = vmatprep.subr.bf16.mxu1 %v25521_v6 }
 0x797   :  { %16764 = vmatmul.mubr.f32.vlgmr.msra.gmra.mrb[40].mxu1 %v23257_v9 }
 0x798   :  { %19652 = vmatpush3.bf16.msra.mxu0 %v22434_v25  ;;  %19682 = vmatpush3.bf16.msra.mxu1 %v22387_v45 }
 0x799   :  { %19653 = vmatprep.subr.bf16.mxu0 %v25521_v6  ;;  %19683 = vmatprep.subr.bf16.mxu1 %v25521_v6 }
 0x79a   :  { %16801 = vmatprep.mubr.msk.f32.mxu1 %vm21482_vm3, %v25523_v52 }
 0x79c   :  { %19655 = vmatpush3.bf16.msra.mxu0 %v22446_v54  ;;  %19685 = vmatpush3.bf16.msra.mxu1 %v22419_v40 }
 0x79d   :  { %19668 = vmatprep.subr.bf16.mxu0 %v25521_v6  ;;  %19686 = vmatprep.subr.bf16.mxu1 %v25521_v6 }
 0x79f   :  { %16745 = vmatmul.mubr.f32.vlgmr.msra.gmra.mrb[32].mxu0 %v4611_v14 }
 0x7a0   :  { %19670 = vmatpush3.bf16.msra.mxu0 %v22460_v49  ;;  %19688 = vmatpush3.bf16.msra.mxu1 %v22434_v25 }
 0x7a1   :  { %19671 = vmatprep.subr.bf16.mxu0 %v25521_v6  ;;  %19689 = vmatprep.subr.bf16.mxu1 %v25521_v6 }
 0x7a2   :  { %16782 = vmatprep.mubr.msk.f32.mxu0 %vm21482_vm3, %v25523_v52 }
 0x7a4   :  { %19673 = vmatpush3.bf16.msra.mxu0 %v22466_v1  ;;  %19691 = vmatpush3.bf16.msra.mxu1 %v22446_v54 }
 0x7a5   :  { %19674 = vmatprep.subr.bf16.mxu0 %v25521_v6  ;;  %19704 = vmatprep.subr.bf16.mxu1 %v25521_v6 }
 0x7a7   :  { %16802 = vmatmul.mubr.f32.vlgmr.msra.gmra.mrb[42].mxu1 %v4609_v47 }
 0x7a8   :  { %19676 = vmatpush3.bf16.msra.mxu0 %v22482_v2  ;;  %19706 = vmatpush3.bf16.msra.mxu1 %v22387_v45 }
 0x7a9   :  { %19677 = vmatprep.subr.bf16.mxu0 %v25521_v6  ;;  %19707 = vmatprep.subr.bf16.mxu1 %v25521_v6 }
 0x7aa   :  { %16839 = vmatprep.mubr.msk.f32.mxu1 %vm21482_vm3, %v25523_v52 }
 0x7ac   :  { %19679 = vmatpush3.bf16.msra.mxu0 %v22496_v37  ;;  %19709 = vmatpush3.bf16.msra.mxu1 %v22419_v40 }
 0x7ad   :  { %19692 = vmatprep.subr.bf16.mxu0 %v25521_v6  ;;  %19710 = vmatprep.subr.bf16.mxu1 %v25521_v6 }
 0x7af   :  { %16783 = vmatmul.mubr.f32.vlgmr.msra.gmra.mrb[34].mxu0 %v4608_v36 }
 0x7b0   :  { %19694 = vmatpush3.bf16.msra.mxu0 %v22507_v43  ;;  %19712 = vmatpush3.bf16.msra.mxu1 %v22434_v25 }
 0x7b1   :  { %19695 = vmatprep.subr.bf16.mxu0 %v25521_v6  ;;  %19713 = vmatprep.subr.bf16.mxu1 %v25521_v6 }
 0x7b2   :  { %16820 = vmatprep.mubr.msk.f32.mxu0 %vm21482_vm3, %v25523_v52 }
 0x7b4   :  { %19697 = vmatpush3.bf16.msra.mxu0 %v22515_v44  ;;  %19715 = vmatpush3.bf16.msra.mxu1 %v22446_v54 }
 0x7b5   :  { %19698 = vmatprep.subr.bf16.mxu0 %v25521_v6  ;;  %19740 = vmatprep.subr.bf16.mxu1 %v25521_v6 }
 0x7b7   :  { %16840 = vmatmul.mubr.f32.vlgmr.msra.gmra.mrb[44].mxu1 %v23257_v9 }
 0x7b8   :  { %19700 = vmatpush3.bf16.msra.mxu0 %v22525_v17  ;;  %19742 = vmatpush3.bf16.msra.mxu1 %v22739_v48 }
 0x7b9   :  { %19701 = vmatprep.subr.bf16.mxu0 %v25521_v6  ;;  %19743 = vmatprep.subr.bf16.mxu1 %v25521_v6 }
 0x7ba   :  { %16909 = vmatprep.mubr.msk.f32.mxu1 %vm21482_vm3, %v25523_v52 }
 0x7bc   :  { %19703 = vmatpush3.bf16.msra.mxu0 %v22535_v53  ;;  %19745 = vmatpush3.bf16.msra.mxu1 %v22751_v58 }
 0x7bd   :  { %19716 = vmatprep.subr.bf16.mxu0 %v25521_v6  ;;  %19746 = vmatprep.subr.bf16.mxu1 %v25521_v6 }
 0x7bf   :  { %16821 = vmatmul.mubr.f32.vlgmr.msra.gmra.mrb[36].mxu0 %v23257_v9 }
 0x7c0   :  { %19718 = vmatpush3.bf16.msra.mxu0 %v22669_v28  ;;  %19748 = vmatpush3.bf16.msra.mxu1 %v22753_v8 }
 0x7c1   :  { %19719 = vmatprep.subr.bf16.mxu0 %v25521_v6  ;;  %19749 = vmatprep.subr.bf16.mxu1 %v25521_v6 }
 0x7c2   :  { %16874 = vmatprep.mubr.msk.f32.mxu0 %vm21482_vm3, %v25523_v52 }
 0x7c4   :  { %19721 = vmatpush3.bf16.msra.mxu0 %v22683_v20  ;;  %19751 = vmatpush3.bf16.msra.mxu1 %v22790_v7 }
 0x7c5   :  { %19722 = vmatprep.subr.bf16.mxu0 %v25521_v6  ;;  %19752 = vmatprep.subr.bf16.mxu1 %v25521_v6 }
 0x7c8   :  { %19724 = vmatpush3.bf16.msra.mxu0 %v22711_v12  ;;  %19754 = vmatpush3.bf16.msra.mxu1 %v22811_v29 }
 0x7c9   :  { %19725 = vmatprep.subr.bf16.mxu0 %v25521_v6  ;;  %19755 = vmatprep.subr.bf16.mxu1 %v25521_v6 }
 0x7cc   :  { %19727 = vmatpush3.bf16.msra.mxu0 %v22741_v42  ;;  %19757 = vmatpush3.bf16.msra.mxu1 %v22823_v51 }
 0x7cd   :  { %19728 = vmatprep.subr.bf16.mxu0 %v25521_v6  ;;  %19758 = vmatprep.subr.bf16.mxu1 %v25521_v6 }
 0x7d0   :  { %19730 = vmatpush3.bf16.msra.mxu0 %v22776_v31  ;;  %19760 = vmatpush3.bf16.msra.mxu1 %v25558_v19 }
 0x7d1   :  { %19731 = vmatprep.subr.bf16.mxu0 %v25521_v6  ;;  %19761 = vmatprep.subr.bf16.mxu1 %v25521_v6 }
 0x7d4   :  { %19733 = vmatpush3.bf16.msra.mxu0 %v22792_v39  ;;  %19763 = vmatpush3.bf16.msra.mxu1 %v25559_v32 }
 0x7d5   :  { %19734 = vmatprep.subr.bf16.mxu0 %v25521_v6  ;;  %19788 = vmatprep.subr.bf16.mxu1 %v25521_v6 }
 0x7d8   :  { %19736 = vmatpush3.bf16.msra.mxu0 %v22808_v24 }
 0x7d9   :  { %19737 = vmatprep.subr.bf16.mxu0 %v25521_v6 }
 0x7dc   :  { %19739 = vmatpush3.bf16.msra.mxu0 %v22856_v18 }
 0x7dd   :  { %19764 = vmatprep.subr.bf16.mxu0 %v25521_v6 }
 0x81a   :  { %v4101_v3 = vpop.f32.mrb[34].mxu1 }
 0x81b   :  { %v16587_v15 = vpop.f32.mrb[35].mxu1 }
 0x822   :  { %v3950_v26 = vpop.f32.mrb[26].mxu0 }
 0x823   :  { %v4102_v38 = vadd.f32 %v4101_v3, %v3950_v26  ;;  %v16552_v9 = vpop.f32.mrb[27].mxu0 }
 0x83a   :  { %v4294_v36 = vpop.f32.mrb[36].mxu1 }
 0x83b   :  { %v16657_v47 = vpop.f32.mrb[37].mxu1 }
 0x842   :  { %v4205_v35 = vpop.f32.mrb[28].mxu0 }
 0x843   :  { %v4206_v14 = vadd.f32 %v4205_v35, %v4102_v38  ;;  %v16622_v32 = vpop.f32.mrb[29].mxu0 }
 0x845   :  { %v4295_v19 = vadd.f32 %v4294_v36, %v4206_v14 }
 0x85a   :  { %v4500_v51 = vpop.f32.mrb[38].mxu1 }
 0x85b   :  { %v16727_v29 = vpop.f32.mrb[39].mxu1 }
 0x862   :  { %v4413_v7 = vpop.f32.mrb[30].mxu0 }
 0x863   :  { %v4414_v8 = vadd.f32 %v4413_v7, %v4295_v19  ;;  %v16692_v58 = vpop.f32.mrb[31].mxu0 }
 0x865   :  { %v4501_v53 = vadd.f32 %v4500_v51, %v4414_v8 }
 0x867   :  { %v4504_v48 = vadd.f32 %v4501_v53, %v23146_v4 }
 0x869   :  { %v13914_v17 = vmul.f32 -1.442695, %v4504_v48 }
 0x86a   :  { %v4724_v44 = vpop.f32.mrb[40].mxu1 }
 0x86b   :  { %21398 = vpow2.f32 %v13914_v17  ;;  %v16765_v15 = vpop.f32.mrb[41].mxu1 }
 0x86c   :  { %v25560_v15 = vld [vmem:[#allocation40_spill] sm:$0xff] }
 0x872   :  { %v4613_v3 = vpop.f32.mrb[32].mxu0 }
 0x873   :  { %v4725_v26 = vadd.f32 %v4724_v44, %v4613_v3  ;;  %v16746_v9 = vpop.f32.mrb[33].mxu0 }
 0x875   :  { %v21399_v47 = vpop.eup %21398 }
 0x876   :  { %v4508_v43 = vadd.f32 1.0, %v21399_v47 }
 0x878   :  { %21400 = vrcp.f32 %v4508_v43 }
 0x87a   :  { %v4893_v32 = vpop.f32.mrb[42].mxu1 }
 0x87b   :  { %v16803_v38 = vpop.f32.mrb[43].mxu1 }
 0x882   :  { %v21401_v36 = vpop.eup %21400  ;;  %v4812_v29 = vpop.f32.mrb[34].mxu0 }
 0x883   :  { %v4813_v35 = vadd.f32 %v4812_v29, %v4725_v26  ;;  %v16784_v7 = vpop.f32.mrb[35].mxu0  ;;  %v4511_v58 = vmul.f32 2.0, %v21401_v36 }
 0x885   :  { %v13915_v8 = vadd.f32 -1.0, %v4511_v58  ;;  %v4894_v51 = vadd.f32 %v4893_v32, %v4813_v35 }
 0x887   :  { %4515 = vrot.lane.b32.xlu1 %v13915_v8, %s21483_s4  ;;  %v4513_v8 = vmul.f32 %v21401_v36, %v23154_v5 }
 0x88a   :  { %v5067_v53 = vpop.f32.mrb[44].mxu1 }
 0x88b   :  { %v16841_v17 = vpop.f32.mrb[45].mxu1 }
 0x892   :  { %v4988_v48 = vpop.f32.mrb[36].mxu0 }
 0x893   :  { %v4989_v19 = vadd.f32 %v4988_v48, %v4894_v51  ;;  %v16822_v44 = vpop.f32.mrb[37].mxu0 }
 0x895   :  { %v5068_v14 = vadd.f32 %v5067_v53, %v4989_v19 }
 0x897   :  { %v5071_v3 = vadd.f32 %v5068_v14, %v25560_v15 }
 0x899   :  { %v13916_v43 = vmul.f32 -1.442695, %v5071_v3 }
 0x89b   :  { %21402 = vpow2.f32 %v13916_v43 }
 0x8a5   :  { %v21403_v9 = vpop.eup %21402 }
 0x8a6   :  { %v5075_v47 = vadd.f32 1.0, %v21403_v9 }
 0x8a8   :  { %21404 = vrcp.f32 %v5075_v47 }
 0x8b2   :  { %v21405_v26 = vpop.eup %21404 }
 0x8b3   :  { %v5078_v38 = vmul.f32 2.0, %v21405_v26  ;;  %v5080_v48 = vmul.f32 %v21405_v26, %v23159_v22 }
 0x8b5   :  { %v13917_v29 = vadd.f32 -1.0, %v5078_v38 }
 0x8b7   :  { %5082 = vrot.lane.b32.xlu0 %v13917_v29, %s21483_s4 }
 0x8f9   :  { %v4516_v32 = vpop.permute.xlu1 %4515 }
 0x8fa   :  { %v4518_v35 = vmul.f32 %v21401_v36, %v4516_v32 }
 0x8fc   :  { %4520 = vrot.lane.b32.xlu1 %v4518_v35, %s21484_s19 }
 0x929   :  { %v5083_v7 = vpop.permute.xlu0 %5082 }
 0x92a   :  { %v5085_v58 = vmul.f32 %v21405_v26, %v5083_v7 }
 0x92c   :  { %5087 = vrot.lane.b32.xlu0 %v5085_v58, %s21484_s19 }
 0x96e   :  { %v4521_v51 = vpop.permute.xlu1 %4520 }
 0x96f   :  { %v23363_v53 = vadd.f32 %v4521_v51, %v4513_v8 }
 0x971   :  { %21406 = vtanh.f32 %v23363_v53 }
 0x97b   :  { %v21407_v17 = vpop.eup %21406 }
 0x97c   :  { %4526 = vrot.lane.b32.xlu1 %v21407_v17, %s21483_s4 }
 0x99e   :  { %v5088_v19 = vpop.permute.xlu0 %5087 }
 0x99f   :  { %v23368_v44 = vadd.f32 %v5088_v19, %v5080_v48 }
 0x9a1   :  { %21408 = vtanh.f32 %v23368_v44 }
 0x9ab   :  { %v21409_v14 = vpop.eup %21408 }
 0x9ac   :  { %5093 = vrot.lane.b32.xlu0 %v21409_v14, %s21483_s4 }
 0x9ee   :  { %v4527_v3 = vpop.permute.xlu1 %4526 }
 0x9ef   :  { %v4529_v43 = vmul.f32 %v21401_v36, %v4527_v3  ;;  %v25561_v3 = vld [vmem:[#allocation9_spill] sm:$0xff] }
 0xa1e   :  { %v5094_v15 = vpop.permute.xlu0 %5093 }
 0xa1f   :  { %v5096_v5 = vmul.f32 %v21405_v26, %v5094_v15 }
 0xa21   :  { %5101 = vrot.lane.b32.xlu1 %v5096_v5, %s21483_s4  ;;  %5098 = vrot.lane.b32.xlu0 %v5096_v5, %s21484_s19 }
 0xa25   :  { %5105 = vrot.lane.b32.xlu0 %v4529_v43, %s21485_s3 }
 0xa93   :  { %v5099_v9 = vpop.permute.xlu0 %5098  ;;  %v5102_v22 = vpop.permute.xlu1 %5101 }
 0xa94   :  { %v23376_v47 = vsel %vm63_vm1, %v5099_v9, %v5102_v22  ;;  %v25563_v9 = vld [vmem:[#allocation2_spill] sm:$0xff] }
 0xa95   :  { %v5779_v51 = vmul.f32 %v23376_v47, %v22359_v27  ;;  %v25564_v22 = vld [vmem:[#allocation30_spill] sm:$0xff] }
 0xa97   :  { %v5106_v38 = vpop.permute.xlu0 %5105  ;;  %v5781_v17 = vsel %vm65_vm2, %v5779_v51, 0 }
 0xa98   :  { %v5109_v29 = vsel %vm65_vm2, %v23376_v47, %v5106_v38  ;;  %v23466_v48 = vand.u32 4294901760, %v5781_v17  ;;  %v25565_v47 = vld [vmem:[#allocation17_spill] sm:$0xff]  ;;  %v25566_v38 = vld [vmem:[#allocation32_spill] sm:$0xff] }
 0xa99   :  { %v5110_v32 = vsel %vm67_vm4, %v5109_v29, %v4529_v43  ;;  %v25562_v43 = vld [vmem:[#allocation37_spill] sm:$0xff] }
 0xa9a   :  { %v5111_v26 = vmul.f32 %v5110_v32, %v22872_v61  ;;  %v5857_v19 = vsub.f32 %v5781_v17, %v23466_v48  ;;  %v25567_v29 = vld [vmem:[#allocation5_spill] sm:$0xff]  ;;  %v25568_v32 = vld [vmem:[#allocation10_spill] sm:$0xff] }
 0xa9c   :  { %v23382_v35 = vand.u32 4294901760, %v5111_v26  ;;  %v5858_v14 = vand.u32 4294901760, %v5857_v19 }
 0xa9e   :  { %v5194_v7 = vsub.f32 %v5111_v26, %v23382_v35  ;;  %16910 = vmatmul.mubr.f32.vlgmr.msra.gmra.mrb[46].mxu1 %v23382_v35  ;;  %v5859_v15 = vsub.f32 %v5857_v19, %v5858_v14  ;;  %v25569_v26 = vld [vmem:[#allocation6_spill] sm:$0xff] }
 0xa9f   :  { %19790 = vmatpush3.bf16.msra.mxu1 %v22669_v28  ;;  %16979 = vmatprep.mubr.msk.f32.mxu1 %vm21482_vm3, %v25523_v52 }
 0xaa0   :  { %19791 = vmatprep.subr.bf16.mxu1 %v25521_v6  ;;  %v5195_v36 = vand.u32 4294901760, %v5194_v7  ;;  %v5860_v5 = vand.u32 4294901760, %v5859_v15 }
 0xaa2   :  { %v5196_v58 = vsub.f32 %v5194_v7, %v5195_v36 }
 0xaa3   :  { %19793 = vmatpush3.bf16.msra.mxu1 %v22683_v20 }
 0xaa4   :  { %19794 = vmatprep.subr.bf16.mxu1 %v25521_v6  ;;  %v5197_v8 = vand.u32 4294901760, %v5196_v58 }
 0xaa6   :  { %16875 = vmatmul.mubr.f32.vlgmr.msra.gmra.mrb[38].mxu0 %v5197_v8 }
 0xaa7   :  { %19766 = vmatpush3.bf16.msra.mxu0 %v25550_v16  ;;  %19796 = vmatpush3.bf16.msra.mxu1 %v22711_v12 }
 0xaa8   :  { %19767 = vmatprep.subr.bf16.mxu0 %v25521_v6  ;;  %19797 = vmatprep.subr.bf16.mxu1 %v25521_v6 }
 0xaa9   :  { %16944 = vmatprep.mubr.msk.f32.mxu0 %vm21482_vm3, %v25523_v52 }
 0xaab   :  { %19769 = vmatpush3.bf16.msra.mxu0 %v25551_v55  ;;  %19799 = vmatpush3.bf16.msra.mxu1 %v22741_v42 }
 0xaac   :  { %19770 = vmatprep.subr.bf16.mxu0 %v25521_v6  ;;  %19800 = vmatprep.subr.bf16.mxu1 %v25521_v6 }
 0xaaf   :  { %19772 = vmatpush3.bf16.msra.mxu0 %v25552_v57  ;;  %19802 = vmatpush3.bf16.msra.mxu1 %v22776_v31 }
 0xab0   :  { %19773 = vmatprep.subr.bf16.mxu0 %v25521_v6  ;;  %19803 = vmatprep.subr.bf16.mxu1 %v25521_v6 }
 0xab3   :  { %19775 = vmatpush3.bf16.msra.mxu0 %v25553_v23  ;;  %19805 = vmatpush3.bf16.msra.mxu1 %v22792_v39 }
 0xab4   :  { %19776 = vmatprep.subr.bf16.mxu0 %v25521_v6  ;;  %19806 = vmatprep.subr.bf16.mxu1 %v25521_v6 }
 0xab7   :  { %19778 = vmatpush3.bf16.msra.mxu0 %v25554_v21  ;;  %19808 = vmatpush3.bf16.msra.mxu1 %v22808_v24 }
 0xab8   :  { %19779 = vmatprep.subr.bf16.mxu0 %v25521_v6  ;;  %19809 = vmatprep.subr.bf16.mxu1 %v25521_v6 }
 0xabb   :  { %19781 = vmatpush3.bf16.msra.mxu0 %v25555_v0  ;;  %19811 = vmatpush3.bf16.msra.mxu1 %v22856_v18 }
 0xabc   :  { %19782 = vmatprep.subr.bf16.mxu0 %v25521_v6  ;;  %19836 = vmatprep.subr.bf16.mxu1 %v25521_v6 }
 0xabe   :  { %16980 = vmatmul.mubr.f32.vlgmr.msra.gmra.mrb[48].mxu1 %v5195_v36  ;;  %v25572_v36 = vld [vmem:[#allocation13_spill] sm:$0xff] }
 0xabf   :  { %19784 = vmatpush3.bf16.msra.mxu0 %v25556_v41  ;;  %19838 = vmatpush3.bf16.msra.mxu1 %v22669_v28 }
 0xac0   :  { %19785 = vmatprep.subr.bf16.mxu0 %v25521_v6  ;;  %19839 = vmatprep.subr.bf16.mxu1 %v25521_v6 }
 0xac1   :  { %17049 = vmatprep.mubr.msk.f32.mxu1 %vm21482_vm3, %v25523_v52 }
 0xac3   :  { %19787 = vmatpush3.bf16.msra.mxu0 %v25557_v30  ;;  %19841 = vmatpush3.bf16.msra.mxu1 %v22683_v20 }
 0xac4   :  { %19812 = vmatprep.subr.bf16.mxu0 %v25521_v6  ;;  %19842 = vmatprep.subr.bf16.mxu1 %v25521_v6 }
 0xac6   :  { %16945 = vmatmul.mubr.f32.vlgmr.msra.gmra.mrb[40].mxu0 %v5194_v7  ;;  %v25571_v7 = vld [vmem:[#allocation8_spill] sm:$0xff] }
 0xac7   :  { %19814 = vmatpush3.bf16.msra.mxu0 %v22957_v10  ;;  %19844 = vmatpush3.bf16.msra.mxu1 %v22711_v12 }
 0xac8   :  { %19815 = vmatprep.subr.bf16.mxu0 %v25521_v6  ;;  %19845 = vmatprep.subr.bf16.mxu1 %v25521_v6 }
 0xac9   :  { %17014 = vmatprep.mubr.msk.f32.mxu0 %vm21482_vm3, %v25523_v52 }
 0xacb   :  { %19817 = vmatpush3.bf16.msra.mxu0 %v22967_v34  ;;  %19847 = vmatpush3.bf16.msra.mxu1 %v22741_v42 }
 0xacc   :  { %19818 = vmatprep.subr.bf16.mxu0 %v25521_v6  ;;  %19848 = vmatprep.subr.bf16.mxu1 %v25521_v6 }
 0xacf   :  { %19820 = vmatpush3.bf16.msra.mxu0 %v22979_v63  ;;  %19850 = vmatpush3.bf16.msra.mxu1 %v22776_v31 }
 0xad0   :  { %19821 = vmatprep.subr.bf16.mxu0 %v25521_v6  ;;  %19851 = vmatprep.subr.bf16.mxu1 %v25521_v6 }
 0xad3   :  { %19823 = vmatpush3.bf16.msra.mxu0 %v22989_v13  ;;  %19853 = vmatpush3.bf16.msra.mxu1 %v22792_v39 }
 0xad4   :  { %19824 = vmatprep.subr.bf16.mxu0 %v25521_v6  ;;  %19854 = vmatprep.subr.bf16.mxu1 %v25521_v6 }
 0xad7   :  { %19826 = vmatpush3.bf16.msra.mxu0 %v22999_v46  ;;  %19856 = vmatpush3.bf16.msra.mxu1 %v22808_v24 }
 0xad8   :  { %19827 = vmatprep.subr.bf16.mxu0 %v25521_v6  ;;  %19857 = vmatprep.subr.bf16.mxu1 %v25521_v6 }
 0xadb   :  { %19829 = vmatpush3.bf16.msra.mxu0 %v23009_v59  ;;  %19859 = vmatpush3.bf16.msra.mxu1 %v22856_v18 }
 0xadc   :  { %19830 = vmatprep.subr.bf16.mxu0 %v25521_v6  ;;  %19872 = vmatprep.subr.bf16.mxu1 %v25521_v6 }
 0xade   :  { %17050 = vmatmul.mubr.f32.vlgmr.msra.gmra.mrb[50].mxu1 %v23382_v35 }
 0xadf   :  { %19832 = vmatpush3.bf16.msra.mxu0 %v23019_v33  ;;  %19874 = vmatpush3.bf16.msra.mxu1 %v22543_v11 }
 0xae0   :  { %19833 = vmatprep.subr.bf16.mxu0 %v25521_v6  ;;  %19875 = vmatprep.subr.bf16.mxu1 %v25521_v6 }
 0xae1   :  { %17087 = vmatprep.mubr.msk.f32.mxu1 %vm21482_vm3, %v25523_v52 }
 0xae3   :  { %19835 = vmatpush3.bf16.msra.mxu0 %v23032_v60  ;;  %19877 = vmatpush3.bf16.msra.mxu1 %v22552_v56 }
 0xae4   :  { %19860 = vmatprep.subr.bf16.mxu0 %v25521_v6  ;;  %19878 = vmatprep.subr.bf16.mxu1 %v25521_v6 }
 0xae6   :  { %17015 = vmatmul.mubr.f32.vlgmr.msra.gmra.mrb[42].mxu0 %v23382_v35  ;;  %v25570_v35 = vld [vmem:[#allocation11_spill] sm:$0xff] }
 0xae7   :  { %19862 = vmatpush3.bf16.msra.mxu0 %v22387_v45  ;;  %19880 = vmatpush3.bf16.msra.mxu1 %v22562_v50 }
 0xae8   :  { %19863 = vmatprep.subr.bf16.mxu0 %v25521_v6  ;;  %19881 = vmatprep.subr.bf16.mxu1 %v25521_v6 }
 0xae9   :  { %17068 = vmatprep.mubr.msk.f32.mxu0 %vm21482_vm3, %v25523_v52 }
 0xaeb   :  { %19865 = vmatpush3.bf16.msra.mxu0 %v22419_v40  ;;  %19883 = vmatpush3.bf16.msra.mxu1 %v22568_v62 }
 0xaec   :  { %19866 = vmatprep.subr.bf16.mxu0 %v25521_v6  ;;  %19896 = vmatprep.subr.bf16.mxu1 %v25521_v6 }
 0xaee   :  { %17088 = vmatmul.mubr.f32.vlgmr.msra.gmra.mrb[52].mxu1 %v23466_v48 }
 0xaef   :  { %19868 = vmatpush3.bf16.msra.mxu0 %v22434_v25  ;;  %19898 = vmatpush3.bf16.msra.mxu1 %v22387_v45 }
 0xaf0   :  { %19869 = vmatprep.subr.bf16.mxu0 %v25521_v6  ;;  %19899 = vmatprep.subr.bf16.mxu1 %v25521_v6 }
 0xaf1   :  { %17125 = vmatprep.mubr.msk.f32.mxu1 %vm21482_vm3, %v25523_v52 }
 0xaf3   :  { %19871 = vmatpush3.bf16.msra.mxu0 %v22446_v54  ;;  %19901 = vmatpush3.bf16.msra.mxu1 %v22419_v40 }
 0xaf4   :  { %19884 = vmatprep.subr.bf16.mxu0 %v25521_v6  ;;  %19902 = vmatprep.subr.bf16.mxu1 %v25521_v6 }
 0xaf6   :  { %17069 = vmatmul.mubr.f32.vlgmr.msra.gmra.mrb[44].mxu0 %v5860_v5 }
 0xaf7   :  { %19886 = vmatpush3.bf16.msra.mxu0 %v22460_v49  ;;  %19904 = vmatpush3.bf16.msra.mxu1 %v22434_v25 }
 0xaf8   :  { %19887 = vmatprep.subr.bf16.mxu0 %v25521_v6  ;;  %19905 = vmatprep.subr.bf16.mxu1 %v25521_v6 }
 0xaf9   :  { %17106 = vmatprep.mubr.msk.f32.mxu0 %vm21482_vm3, %v25523_v52 }
 0xafb   :  { %19889 = vmatpush3.bf16.msra.mxu0 %v22466_v1  ;;  %19907 = vmatpush3.bf16.msra.mxu1 %v22446_v54 }
 0xafc   :  { %19890 = vmatprep.subr.bf16.mxu0 %v25521_v6  ;;  %19920 = vmatprep.subr.bf16.mxu1 %v25521_v6 }
 0xafe   :  { %17126 = vmatmul.mubr.f32.vlgmr.msra.gmra.mrb[54].mxu1 %v5858_v14 }
 0xaff   :  { %19892 = vmatpush3.bf16.msra.mxu0 %v22482_v2  ;;  %19922 = vmatpush3.bf16.msra.mxu1 %v22387_v45 }
 0xb00   :  { %19893 = vmatprep.subr.bf16.mxu0 %v25521_v6  ;;  %19923 = vmatprep.subr.bf16.mxu1 %v25521_v6 }
 0xb01   :  { %17163 = vmatprep.mubr.msk.f32.mxu1 %vm21482_vm3, %v25523_v52 }
 0xb03   :  { %19895 = vmatpush3.bf16.msra.mxu0 %v22496_v37  ;;  %19925 = vmatpush3.bf16.msra.mxu1 %v22419_v40 }
 0xb04   :  { %19908 = vmatprep.subr.bf16.mxu0 %v25521_v6  ;;  %19926 = vmatprep.subr.bf16.mxu1 %v25521_v6 }
 0xb06   :  { %17107 = vmatmul.mubr.f32.vlgmr.msra.gmra.mrb[46].mxu0 %v5857_v19 }
 0xb07   :  { %19910 = vmatpush3.bf16.msra.mxu0 %v25561_v3  ;;  %19928 = vmatpush3.bf16.msra.mxu1 %v22434_v25 }
 0xb08   :  { %19911 = vmatprep.subr.bf16.mxu0 %v25521_v6  ;;  %19929 = vmatprep.subr.bf16.mxu1 %v25521_v6 }
 0xb09   :  { %17144 = vmatprep.mubr.msk.f32.mxu0 %vm21482_vm3, %v25523_v52 }
 0xb0b   :  { %19913 = vmatpush3.bf16.msra.mxu0 %v25562_v43  ;;  %19931 = vmatpush3.bf16.msra.mxu1 %v22446_v54 }
 0xb0c   :  { %19914 = vmatprep.subr.bf16.mxu0 %v25521_v6  ;;  %19956 = vmatprep.subr.bf16.mxu1 %v25521_v6 }
 0xb0e   :  { %17164 = vmatmul.mubr.f32.vlgmr.msra.gmra.mrb[56].mxu1 %v23466_v48 }
 0xb0f   :  { %19916 = vmatpush3.bf16.msra.mxu0 %v25563_v9  ;;  %19958 = vmatpush3.bf16.msra.mxu1 %v25564_v22 }
 0xb10   :  { %19917 = vmatprep.subr.bf16.mxu0 %v25521_v6  ;;  %19959 = vmatprep.subr.bf16.mxu1 %v25521_v6 }
 0xb11   :  { %17233 = vmatprep.mubr.msk.f32.mxu1 %vm21482_vm3, %v25523_v52 }
 0xb13   :  { %19919 = vmatpush3.bf16.msra.mxu0 %v25565_v47  ;;  %19961 = vmatpush3.bf16.msra.mxu1 %v25566_v38 }
 0xb14   :  { %19932 = vmatprep.subr.bf16.mxu0 %v25521_v6  ;;  %19962 = vmatprep.subr.bf16.mxu1 %v25521_v6 }
 0xb16   :  { %17145 = vmatmul.mubr.f32.vlgmr.msra.gmra.mrb[48].mxu0 %v23466_v48 }
 0xb17   :  { %19934 = vmatpush3.bf16.msra.mxu0 %v22669_v28  ;;  %19964 = vmatpush3.bf16.msra.mxu1 %v25567_v29 }
 0xb18   :  { %19935 = vmatprep.subr.bf16.mxu0 %v25521_v6  ;;  %19965 = vmatprep.subr.bf16.mxu1 %v25521_v6 }
 0xb19   :  { %17198 = vmatprep.mubr.msk.f32.mxu0 %vm21482_vm3, %v25523_v52 }
 0xb1b   :  { %19937 = vmatpush3.bf16.msra.mxu0 %v22683_v20  ;;  %19967 = vmatpush3.bf16.msra.mxu1 %v25568_v32 }
 0xb1c   :  { %19938 = vmatprep.subr.bf16.mxu0 %v25521_v6  ;;  %19968 = vmatprep.subr.bf16.mxu1 %v25521_v6 }
 0xb1f   :  { %19940 = vmatpush3.bf16.msra.mxu0 %v22711_v12  ;;  %19970 = vmatpush3.bf16.msra.mxu1 %v25569_v26 }
 0xb20   :  { %19941 = vmatprep.subr.bf16.mxu0 %v25521_v6  ;;  %19971 = vmatprep.subr.bf16.mxu1 %v25521_v6 }
 0xb23   :  { %19943 = vmatpush3.bf16.msra.mxu0 %v22741_v42  ;;  %19973 = vmatpush3.bf16.msra.mxu1 %v25570_v35 }
 0xb24   :  { %19944 = vmatprep.subr.bf16.mxu0 %v25521_v6  ;;  %19974 = vmatprep.subr.bf16.mxu1 %v25521_v6 }
 0xb27   :  { %19946 = vmatpush3.bf16.msra.mxu0 %v22776_v31  ;;  %19976 = vmatpush3.bf16.msra.mxu1 %v25571_v7 }
 0xb28   :  { %19947 = vmatprep.subr.bf16.mxu0 %v25521_v6  ;;  %19977 = vmatprep.subr.bf16.mxu1 %v25521_v6 }
 0xb2b   :  { %19949 = vmatpush3.bf16.msra.mxu0 %v22792_v39  ;;  %19979 = vmatpush3.bf16.msra.mxu1 %v25572_v36 }
 0xb2c   :  { %19950 = vmatprep.subr.bf16.mxu0 %v25521_v6  ;;  %20004 = vmatprep.subr.bf16.mxu1 %v25521_v6 }
 0xb2f   :  { %19952 = vmatpush3.bf16.msra.mxu0 %v22808_v24 }
 0xb30   :  { %19953 = vmatprep.subr.bf16.mxu0 %v25521_v6 }
 0xb33   :  { %19955 = vmatpush3.bf16.msra.mxu0 %v22856_v18 }
 0xb34   :  { %19980 = vmatprep.subr.bf16.mxu0 %v25521_v6 }
 0xb71   :  { %v5350_v58 = vpop.f32.mrb[46].mxu1 }
 0xb72   :  { %v16911_v8 = vpop.f32.mrb[47].mxu1 }
 0xb79   :  { %v5199_v51 = vpop.f32.mrb[38].mxu0 }
 0xb7a   :  { %v5351_v17 = vadd.f32 %v5350_v58, %v5199_v51  ;;  %v16876_v48 = vpop.f32.mrb[39].mxu0 }
 0xb91   :  { %v5543_v19 = vpop.f32.mrb[48].mxu1 }
 0xb92   :  { %v16981_v14 = vpop.f32.mrb[49].mxu1 }
 0xb99   :  { %v5454_v15 = vpop.f32.mrb[40].mxu0 }
 0xb9a   :  { %v5455_v5 = vadd.f32 %v5454_v15, %v5351_v17  ;;  %v16946_v36 = vpop.f32.mrb[41].mxu0 }
 0xb9c   :  { %v5544_v7 = vadd.f32 %v5543_v19, %v5455_v5 }
 0xbb1   :  { %v5749_v35 = vpop.f32.mrb[50].mxu1 }
 0xbb2   :  { %v17051_v26 = vpop.f32.mrb[51].mxu1 }
 0xbb9   :  { %v5662_v32 = vpop.f32.mrb[42].mxu0 }
 0xbba   :  { %v5663_v29 = vadd.f32 %v5662_v32, %v5544_v7  ;;  %v17016_v38 = vpop.f32.mrb[43].mxu0 }
 0xbbc   :  { %v5750_v47 = vadd.f32 %v5749_v35, %v5663_v29 }
 0xbbe   :  { %v5753_v22 = vadd.f32 %v5750_v47, %v23146_v4 }
 0xbc0   :  { %v13918_v9 = vmul.f32 -1.442695, %v5753_v22 }
 0xbc1   :  { %v5973_v43 = vpop.f32.mrb[52].mxu1 }
 0xbc2   :  { %21410 = vpow2.f32 %v13918_v9  ;;  %v17089_v8 = vpop.f32.mrb[53].mxu1 }
 0xbc3   :  { %v25573_v8 = vld [vmem:[#allocation18_spill] sm:$0xff] }
 0xbc9   :  { %v5862_v58 = vpop.f32.mrb[44].mxu0 }
 0xbca   :  { %v5974_v51 = vadd.f32 %v5973_v43, %v5862_v58  ;;  %v17070_v48 = vpop.f32.mrb[45].mxu0 }
 0xbcc   :  { %v21411_v14 = vpop.eup %21410 }
 0xbcd   :  { %v5757_v3 = vadd.f32 1.0, %v21411_v14 }
 0xbcf   :  { %21412 = vrcp.f32 %v5757_v3 }
 0xbd1   :  { %v6142_v36 = vpop.f32.mrb[54].mxu1 }
 0xbd2   :  { %v17127_v17 = vpop.f32.mrb[55].mxu1 }
 0xbd9   :  { %v21413_v19 = vpop.eup %21412  ;;  %v6061_v26 = vpop.f32.mrb[46].mxu0 }
 0xbda   :  { %v6062_v15 = vadd.f32 %v6061_v26, %v5974_v51  ;;  %v17108_v32 = vpop.f32.mrb[47].mxu0  ;;  %v5760_v38 = vmul.f32 2.0, %v21413_v19 }
 0xbdc   :  { %v13919_v29 = vadd.f32 -1.0, %v5760_v38  ;;  %v6143_v35 = vadd.f32 %v6142_v36, %v6062_v15 }
 0xbde   :  { %5764 = vrot.lane.b32.xlu0 %v13919_v29, %s21483_s4  ;;  %v5762_v29 = vmul.f32 %v21413_v19, %v23363_v53 }
 0xbe1   :  { %v6316_v22 = vpop.f32.mrb[56].mxu1 }
 0xbe2   :  { %v17165_v9 = vpop.f32.mrb[57].mxu1 }
 0xbe9   :  { %v6237_v47 = vpop.f32.mrb[48].mxu0 }
 0xbea   :  { %v6238_v7 = vadd.f32 %v6237_v47, %v6143_v35  ;;  %v17146_v43 = vpop.f32.mrb[49].mxu0 }
 0xbec   :  { %v6317_v5 = vadd.f32 %v6316_v22, %v6238_v7 }
 0xbee   :  { %v6320_v58 = vadd.f32 %v6317_v5, %v25573_v8 }
 0xbf0   :  { %v13920_v3 = vmul.f32 -1.442695, %v6320_v58 }
 0xbf2   :  { %21414 = vpow2.f32 %v13920_v3 }
 0xbfc   :  { %v21415_v48 = vpop.eup %21414 }
 0xbfd   :  { %v6324_v14 = vadd.f32 1.0, %v21415_v48 }
 0xbff   :  { %21416 = vrcp.f32 %v6324_v14 }
 0xc09   :  { %v21417_v51 = vpop.eup %21416 }
 0xc0a   :  { %v6327_v17 = vmul.f32 2.0, %v21417_v51  ;;  %v6329_v47 = vmul.f32 %v21417_v51, %v23368_v44 }
 0xc0c   :  { %v13921_v26 = vadd.f32 -1.0, %v6327_v17 }
 0xc0e   :  { %6331 = vrot.lane.b32.xlu1 %v13921_v26, %s21483_s4 }
 0xc50   :  { %v5765_v36 = vpop.permute.xlu0 %5764 }
 0xc51   :  { %v5767_v15 = vmul.f32 %v21413_v19, %v5765_v36 }
 0xc53   :  { %5769 = vrot.lane.b32.xlu0 %v5767_v15, %s21484_s19 }
 0xc80   :  { %v6332_v32 = vpop.permute.xlu1 %6331 }
 0xc81   :  { %v6334_v38 = vmul.f32 %v21417_v51, %v6332_v32 }
 0xc83   :  { %6336 = vrot.lane.b32.xlu1 %v6334_v38, %s21484_s19 }
 0xcc5   :  { %v5770_v35 = vpop.permute.xlu0 %5769 }
 0xcc6   :  { %v23572_v22 = vadd.f32 %v5770_v35, %v5762_v29 }
 0xcc8   :  { %21418 = vtanh.f32 %v23572_v22 }
 0xcd2   :  { %v21419_v9 = vpop.eup %21418 }
 0xcd3   :  { %5775 = vrot.lane.b32.xlu0 %v21419_v9, %s21483_s4 }
 0xcf5   :  { %v6337_v7 = vpop.permute.xlu1 %6336 }
 0xcf6   :  { %v23577_v43 = vadd.f32 %v6337_v7, %v6329_v47 }
 0xcf8   :  { %21420 = vtanh.f32 %v23577_v43 }
 0xd02   :  { %v21421_v5 = vpop.eup %21420 }
 0xd03   :  { %6342 = vrot.lane.b32.xlu1 %v21421_v5, %s21483_s4 }
 0xd45   :  { %v5776_v58 = vpop.permute.xlu0 %5775 }
 0xd46   :  { %v5778_v3 = vmul.f32 %v21413_v19, %v5776_v58  ;;  %v25574_v58 = vld [vmem:[#allocation9_spill] sm:$0xff] }
 0xd75   :  { %v6343_v8 = vpop.permute.xlu1 %6342 }
 0xd76   :  { %v6345_v53 = vmul.f32 %v21417_v51, %v6343_v8 }
 0xd78   :  { %6350 = vrot.lane.b32.xlu0 %v6345_v53, %s21483_s4  ;;  %6347 = vrot.lane.b32.xlu1 %v6345_v53, %s21484_s19 }
 0xd7c   :  { %6354 = vrot.lane.b32.xlu1 %v5778_v3, %s21485_s3 }
 0xdea   :  { %v6348_v48 = vpop.permute.xlu1 %6347  ;;  %v6351_v44 = vpop.permute.xlu0 %6350 }
 0xdeb   :  { %v23585_v14 = vsel %vm63_vm1, %v6348_v48, %v6351_v44  ;;  %v25576_v48 = vld [vmem:[#allocation2_spill] sm:$0xff] }
 0xdec   :  { %v7028_v35 = vmul.f32 %v23585_v14, %v22359_v27  ;;  %v25577_v44 = vld [vmem:[#allocation30_spill] sm:$0xff] }
 0xdee   :  { %v6355_v17 = vpop.permute.xlu1 %6354  ;;  %v7030_v9 = vsel %vm65_vm2, %v7028_v35, 0 }
 0xdef   :  { %v6358_v26 = vsel %vm65_vm2, %v23585_v14, %v6355_v17  ;;  %v23675_v47 = vand.u32 4294901760, %v7030_v9  ;;  %v25578_v14 = vld [vmem:[#allocation17_spill] sm:$0xff]  ;;  %v25579_v17 = vld [vmem:[#allocation32_spill] sm:$0xff] }
 0xdf0   :  { %v6359_v36 = vsel %vm67_vm4, %v6358_v26, %v5778_v3  ;;  %v25575_v3 = vld [vmem:[#allocation37_spill] sm:$0xff] }
 0xdf1   :  { %v6360_v51 = vmul.f32 %v6359_v36, %v22872_v61  ;;  %v7106_v7 = vsub.f32 %v7030_v9, %v23675_v47  ;;  %v25580_v26 = vld [vmem:[#allocation5_spill] sm:$0xff]  ;;  %v25581_v36 = vld [vmem:[#allocation10_spill] sm:$0xff] }
 0xdf3   :  { %v23591_v15 = vand.u32 4294901760, %v6360_v51  ;;  %v7107_v5 = vand.u32 4294901760, %v7106_v7 }
 0xdf5   :  { %v6443_v32 = vsub.f32 %v6360_v51, %v23591_v15  ;;  %17234 = vmatmul.mubr.f32.vlgmr.msra.gmra.mrb[58].mxu1 %v23591_v15  ;;  %v7108_v8 = vsub.f32 %v7106_v7, %v7107_v5  ;;  %v25582_v51 = vld [vmem:[#allocation6_spill] sm:$0xff] }
 0xdf6   :  { %20006 = vmatpush3.bf16.msra.mxu1 %v22669_v28  ;;  %17303 = vmatprep.mubr.msk.f32.mxu1 %vm21482_vm3, %v25523_v52 }
 0xdf7   :  { %20007 = vmatprep.subr.bf16.mxu1 %v25521_v6  ;;  %v6444_v19 = vand.u32 4294901760, %v6443_v32  ;;  %v7109_v53 = vand.u32 4294901760, %v7108_v8 }
 0xdf9   :  { %v6445_v38 = vsub.f32 %v6443_v32, %v6444_v19 }
 0xdfa   :  { %20009 = vmatpush3.bf16.msra.mxu1 %v22683_v20 }
 0xdfb   :  { %20010 = vmatprep.subr.bf16.mxu1 %v25521_v6  ;;  %v6446_v29 = vand.u32 4294901760, %v6445_v38 }
 0xdfd   :  { %17199 = vmatmul.mubr.f32.vlgmr.msra.gmra.mrb[50].mxu0 %v6446_v29 }
 0xdfe   :  { %19982 = vmatpush3.bf16.msra.mxu0 %v25550_v16  ;;  %20012 = vmatpush3.bf16.msra.mxu1 %v22711_v12 }
 0xdff   :  { %19983 = vmatprep.subr.bf16.mxu0 %v25521_v6  ;;  %20013 = vmatprep.subr.bf16.mxu1 %v25521_v6 }
 0xe00   :  { %17268 = vmatprep.mubr.msk.f32.mxu0 %vm21482_vm3, %v25523_v52 }
 0xe02   :  { %19985 = vmatpush3.bf16.msra.mxu0 %v25551_v55  ;;  %20015 = vmatpush3.bf16.msra.mxu1 %v22741_v42 }
 0xe03   :  { %19986 = vmatprep.subr.bf16.mxu0 %v25521_v6  ;;  %20016 = vmatprep.subr.bf16.mxu1 %v25521_v6 }
 0xe06   :  { %19988 = vmatpush3.bf16.msra.mxu0 %v25552_v57  ;;  %20018 = vmatpush3.bf16.msra.mxu1 %v22776_v31 }
 0xe07   :  { %19989 = vmatprep.subr.bf16.mxu0 %v25521_v6  ;;  %20019 = vmatprep.subr.bf16.mxu1 %v25521_v6 }
 0xe0a   :  { %19991 = vmatpush3.bf16.msra.mxu0 %v25553_v23  ;;  %20021 = vmatpush3.bf16.msra.mxu1 %v22792_v39 }
 0xe0b   :  { %19992 = vmatprep.subr.bf16.mxu0 %v25521_v6  ;;  %20022 = vmatprep.subr.bf16.mxu1 %v25521_v6 }
 0xe0e   :  { %19994 = vmatpush3.bf16.msra.mxu0 %v25554_v21  ;;  %20024 = vmatpush3.bf16.msra.mxu1 %v22808_v24 }
 0xe0f   :  { %19995 = vmatprep.subr.bf16.mxu0 %v25521_v6  ;;  %20025 = vmatprep.subr.bf16.mxu1 %v25521_v6 }
 0xe12   :  { %19997 = vmatpush3.bf16.msra.mxu0 %v25555_v0  ;;  %20027 = vmatpush3.bf16.msra.mxu1 %v22856_v18 }
 0xe13   :  { %19998 = vmatprep.subr.bf16.mxu0 %v25521_v6  ;;  %20052 = vmatprep.subr.bf16.mxu1 %v25521_v6 }
 0xe15   :  { %17304 = vmatmul.mubr.f32.vlgmr.msra.gmra.mrb[60].mxu1 %v6444_v19  ;;  %v25585_v19 = vld [vmem:[#allocation13_spill] sm:$0xff] }
 0xe16   :  { %20000 = vmatpush3.bf16.msra.mxu0 %v25556_v41  ;;  %20054 = vmatpush3.bf16.msra.mxu1 %v22669_v28 }
 0xe17   :  { %20001 = vmatprep.subr.bf16.mxu0 %v25521_v6  ;;  %20055 = vmatprep.subr.bf16.mxu1 %v25521_v6 }
 0xe18   :  { %17373 = vmatprep.mubr.msk.f32.mxu1 %vm21482_vm3, %v25523_v52 }
 0xe1a   :  { %20003 = vmatpush3.bf16.msra.mxu0 %v25557_v30  ;;  %20057 = vmatpush3.bf16.msra.mxu1 %v22683_v20 }
 0xe1b   :  { %20028 = vmatprep.subr.bf16.mxu0 %v25521_v6  ;;  %20058 = vmatprep.subr.bf16.mxu1 %v25521_v6 }
 0xe1d   :  { %17269 = vmatmul.mubr.f32.vlgmr.msra.gmra.mrb[52].mxu0 %v6443_v32  ;;  %v25584_v32 = vld [vmem:[#allocation8_spill] sm:$0xff] }
 0xe1e   :  { %20030 = vmatpush3.bf16.msra.mxu0 %v22957_v10  ;;  %20060 = vmatpush3.bf16.msra.mxu1 %v22711_v12 }
 0xe1f   :  { %20031 = vmatprep.subr.bf16.mxu0 %v25521_v6  ;;  %20061 = vmatprep.subr.bf16.mxu1 %v25521_v6 }
 0xe20   :  { %17338 = vmatprep.mubr.msk.f32.mxu0 %vm21482_vm3, %v25523_v52 }
 0xe22   :  { %20033 = vmatpush3.bf16.msra.mxu0 %v22967_v34  ;;  %20063 = vmatpush3.bf16.msra.mxu1 %v22741_v42 }
 0xe23   :  { %20034 = vmatprep.subr.bf16.mxu0 %v25521_v6  ;;  %20064 = vmatprep.subr.bf16.mxu1 %v25521_v6 }
 0xe26   :  { %20036 = vmatpush3.bf16.msra.mxu0 %v22979_v63  ;;  %20066 = vmatpush3.bf16.msra.mxu1 %v22776_v31 }
 0xe27   :  { %20037 = vmatprep.subr.bf16.mxu0 %v25521_v6  ;;  %20067 = vmatprep.subr.bf16.mxu1 %v25521_v6 }
 0xe2a   :  { %20039 = vmatpush3.bf16.msra.mxu0 %v22989_v13  ;;  %20069 = vmatpush3.bf16.msra.mxu1 %v22792_v39 }
 0xe2b   :  { %20040 = vmatprep.subr.bf16.mxu0 %v25521_v6  ;;  %20070 = vmatprep.subr.bf16.mxu1 %v25521_v6 }
 0xe2e   :  { %20042 = vmatpush3.bf16.msra.mxu0 %v22999_v46  ;;  %20072 = vmatpush3.bf16.msra.mxu1 %v22808_v24 }
 0xe2f   :  { %20043 = vmatprep.subr.bf16.mxu0 %v25521_v6  ;;  %20073 = vmatprep.subr.bf16.mxu1 %v25521_v6 }
 0xe32   :  { %20045 = vmatpush3.bf16.msra.mxu0 %v23009_v59  ;;  %20075 = vmatpush3.bf16.msra.mxu1 %v22856_v18 }
 0xe33   :  { %20046 = vmatprep.subr.bf16.mxu0 %v25521_v6  ;;  %20088 = vmatprep.subr.bf16.mxu1 %v25521_v6 }
 0xe35   :  { %17374 = vmatmul.mubr.f32.vlgmr.msra.gmra.mrb[62].mxu1 %v23591_v15 }
 0xe36   :  { %20048 = vmatpush3.bf16.msra.mxu0 %v23019_v33  ;;  %20090 = vmatpush3.bf16.msra.mxu1 %v22543_v11 }
 0xe37   :  { %20049 = vmatprep.subr.bf16.mxu0 %v25521_v6  ;;  %20091 = vmatprep.subr.bf16.mxu1 %v25521_v6 }
 0xe38   :  { %17411 = vmatprep.mubr.msk.f32.mxu1 %vm21482_vm3, %v25523_v52 }
 0xe3a   :  { %20051 = vmatpush3.bf16.msra.mxu0 %v23032_v60  ;;  %20093 = vmatpush3.bf16.msra.mxu1 %v22552_v56 }
 0xe3b   :  { %20076 = vmatprep.subr.bf16.mxu0 %v25521_v6  ;;  %20094 = vmatprep.subr.bf16.mxu1 %v25521_v6 }
 0xe3d   :  { %17339 = vmatmul.mubr.f32.vlgmr.msra.gmra.mrb[54].mxu0 %v23591_v15  ;;  %v25583_v15 = vld [vmem:[#allocation11_spill] sm:$0xff] }
 0xe3e   :  { %20078 = vmatpush3.bf16.msra.mxu0 %v22387_v45  ;;  %20096 = vmatpush3.bf16.msra.mxu1 %v22562_v50 }
 0xe3f   :  { %20079 = vmatprep.subr.bf16.mxu0 %v25521_v6  ;;  %20097 = vmatprep.subr.bf16.mxu1 %v25521_v6 }
 0xe40   :  { %17392 = vmatprep.mubr.msk.f32.mxu0 %vm21482_vm3, %v25523_v52 }
 0xe42   :  { %20081 = vmatpush3.bf16.msra.mxu0 %v22419_v40  ;;  %20099 = vmatpush3.bf16.msra.mxu1 %v22568_v62 }
 0xe43   :  { %20082 = vmatprep.subr.bf16.mxu0 %v25521_v6  ;;  %20112 = vmatprep.subr.bf16.mxu1 %v25521_v6 }
 0xe45   :  { %17412 = vmatmul.mubr.f32.vlgmr.msra.gmra.mrb[64].mxu1 %v23675_v47 }
 0xe46   :  { %20084 = vmatpush3.bf16.msra.mxu0 %v22434_v25  ;;  %20114 = vmatpush3.bf16.msra.mxu1 %v22387_v45 }
 0xe47   :  { %20085 = vmatprep.subr.bf16.mxu0 %v25521_v6  ;;  %20115 = vmatprep.subr.bf16.mxu1 %v25521_v6 }
 0xe48   :  { %17449 = vmatprep.mubr.msk.f32.mxu1 %vm21482_vm3, %v25523_v52 }
 0xe4a   :  { %20087 = vmatpush3.bf16.msra.mxu0 %v22446_v54  ;;  %20117 = vmatpush3.bf16.msra.mxu1 %v22419_v40 }
 0xe4b   :  { %20100 = vmatprep.subr.bf16.mxu0 %v25521_v6  ;;  %20118 = vmatprep.subr.bf16.mxu1 %v25521_v6 }
 0xe4d   :  { %17393 = vmatmul.mubr.f32.vlgmr.msra.gmra.mrb[56].mxu0 %v7109_v53 }
 0xe4e   :  { %20102 = vmatpush3.bf16.msra.mxu0 %v22460_v49  ;;  %20120 = vmatpush3.bf16.msra.mxu1 %v22434_v25 }
 0xe4f   :  { %20103 = vmatprep.subr.bf16.mxu0 %v25521_v6  ;;  %20121 = vmatprep.subr.bf16.mxu1 %v25521_v6 }
 0xe50   :  { %17430 = vmatprep.mubr.msk.f32.mxu0 %vm21482_vm3, %v25523_v52 }
 0xe52   :  { %20105 = vmatpush3.bf16.msra.mxu0 %v22466_v1  ;;  %20123 = vmatpush3.bf16.msra.mxu1 %v22446_v54 }
 0xe53   :  { %20106 = vmatprep.subr.bf16.mxu0 %v25521_v6  ;;  %20136 = vmatprep.subr.bf16.mxu1 %v25521_v6 }
 0xe55   :  { %17450 = vmatmul.mubr.f32.vlgmr.msra.gmra.mrb[66].mxu1 %v7107_v5 }
 0xe56   :  { %20108 = vmatpush3.bf16.msra.mxu0 %v22482_v2  ;;  %20138 = vmatpush3.bf16.msra.mxu1 %v22387_v45 }
 0xe57   :  { %20109 = vmatprep.subr.bf16.mxu0 %v25521_v6  ;;  %20139 = vmatprep.subr.bf16.mxu1 %v25521_v6 }
 0xe58   :  { %17487 = vmatprep.mubr.msk.f32.mxu1 %vm21482_vm3, %v25523_v52 }
 0xe5a   :  { %20111 = vmatpush3.bf16.msra.mxu0 %v22496_v37  ;;  %20141 = vmatpush3.bf16.msra.mxu1 %v22419_v40 }
 0xe5b   :  { %20124 = vmatprep.subr.bf16.mxu0 %v25521_v6  ;;  %20142 = vmatprep.subr.bf16.mxu1 %v25521_v6 }
 0xe5d   :  { %17431 = vmatmul.mubr.f32.vlgmr.msra.gmra.mrb[58].mxu0 %v7106_v7 }
 0xe5e   :  { %20126 = vmatpush3.bf16.msra.mxu0 %v25574_v58  ;;  %20144 = vmatpush3.bf16.msra.mxu1 %v22434_v25 }
 0xe5f   :  { %20127 = vmatprep.subr.bf16.mxu0 %v25521_v6  ;;  %20145 = vmatprep.subr.bf16.mxu1 %v25521_v6 }
 0xe60   :  { %17468 = vmatprep.mubr.msk.f32.mxu0 %vm21482_vm3, %v25523_v52 }
 0xe62   :  { %20129 = vmatpush3.bf16.msra.mxu0 %v25575_v3  ;;  %20147 = vmatpush3.bf16.msra.mxu1 %v22446_v54 }
 0xe63   :  { %20130 = vmatprep.subr.bf16.mxu0 %v25521_v6  ;;  %20172 = vmatprep.subr.bf16.mxu1 %v25521_v6 }
 0xe65   :  { %17488 = vmatmul.mubr.f32.vlgmr.msra.gmra.mrb[68].mxu1 %v23675_v47 }
 0xe66   :  { %20132 = vmatpush3.bf16.msra.mxu0 %v25576_v48  ;;  %20174 = vmatpush3.bf16.msra.mxu1 %v25577_v44 }
 0xe67   :  { %20133 = vmatprep.subr.bf16.mxu0 %v25521_v6  ;;  %20175 = vmatprep.subr.bf16.mxu1 %v25521_v6 }
 0xe68   :  { %17557 = vmatprep.mubr.msk.f32.mxu1 %vm21482_vm3, %v25523_v52 }
 0xe6a   :  { %20135 = vmatpush3.bf16.msra.mxu0 %v25578_v14  ;;  %20177 = vmatpush3.bf16.msra.mxu1 %v25579_v17 }
 0xe6b   :  { %20148 = vmatprep.subr.bf16.mxu0 %v25521_v6  ;;  %20178 = vmatprep.subr.bf16.mxu1 %v25521_v6 }
 0xe6d   :  { %17469 = vmatmul.mubr.f32.vlgmr.msra.gmra.mrb[60].mxu0 %v23675_v47 }
 0xe6e   :  { %20150 = vmatpush3.bf16.msra.mxu0 %v22669_v28  ;;  %20180 = vmatpush3.bf16.msra.mxu1 %v25580_v26 }
 0xe6f   :  { %20151 = vmatprep.subr.bf16.mxu0 %v25521_v6  ;;  %20181 = vmatprep.subr.bf16.mxu1 %v25521_v6 }
 0xe70   :  { %17522 = vmatprep.mubr.msk.f32.mxu0 %vm21482_vm3, %v25523_v52 }
 0xe72   :  { %20153 = vmatpush3.bf16.msra.mxu0 %v22683_v20  ;;  %20183 = vmatpush3.bf16.msra.mxu1 %v25581_v36 }
 0xe73   :  { %20154 = vmatprep.subr.bf16.mxu0 %v25521_v6  ;;  %20184 = vmatprep.subr.bf16.mxu1 %v25521_v6 }
 0xe76   :  { %20156 = vmatpush3.bf16.msra.mxu0 %v22711_v12  ;;  %20186 = vmatpush3.bf16.msra.mxu1 %v25582_v51 }
 0xe77   :  { %20157 = vmatprep.subr.bf16.mxu0 %v25521_v6  ;;  %20187 = vmatprep.subr.bf16.mxu1 %v25521_v6 }
 0xe7a   :  { %20159 = vmatpush3.bf16.msra.mxu0 %v22741_v42  ;;  %20189 = vmatpush3.bf16.msra.mxu1 %v25583_v15 }
 0xe7b   :  { %20160 = vmatprep.subr.bf16.mxu0 %v25521_v6  ;;  %20190 = vmatprep.subr.bf16.mxu1 %v25521_v6 }
 0xe7e   :  { %20162 = vmatpush3.bf16.msra.mxu0 %v22776_v31  ;;  %20192 = vmatpush3.bf16.msra.mxu1 %v25584_v32 }
 0xe7f   :  { %20163 = vmatprep.subr.bf16.mxu0 %v25521_v6  ;;  %20193 = vmatprep.subr.bf16.mxu1 %v25521_v6 }
 0xe82   :  { %20165 = vmatpush3.bf16.msra.mxu0 %v22792_v39  ;;  %20195 = vmatpush3.bf16.msra.mxu1 %v25585_v19 }
 0xe83   :  { %20166 = vmatprep.subr.bf16.mxu0 %v25521_v6  ;;  %20220 = vmatprep.subr.bf16.mxu1 %v25521_v6 }
 0xe86   :  { %20168 = vmatpush3.bf16.msra.mxu0 %v22808_v24 }
 0xe87   :  { %20169 = vmatprep.subr.bf16.mxu0 %v25521_v6 }
 0xe8a   :  { %20171 = vmatpush3.bf16.msra.mxu0 %v22856_v18 }
 0xe8b   :  { %20196 = vmatprep.subr.bf16.mxu0 %v25521_v6 }
 0xec8   :  { %v6599_v38 = vpop.f32.mrb[58].mxu1 }
 0xec9   :  { %v17235_v29 = vpop.f32.mrb[59].mxu1 }
 0xed0   :  { %v6448_v35 = vpop.f32.mrb[50].mxu0 }
 0xed1   :  { %v6600_v9 = vadd.f32 %v6599_v38, %v6448_v35  ;;  %v17200_v47 = vpop.f32.mrb[51].mxu0 }
 0xee8   :  { %v6792_v7 = vpop.f32.mrb[60].mxu1 }
 0xee9   :  { %v17305_v5 = vpop.f32.mrb[61].mxu1 }
 0xef0   :  { %v6703_v8 = vpop.f32.mrb[52].mxu0 }
 0xef1   :  { %v6704_v53 = vadd.f32 %v6703_v8, %v6600_v9  ;;  %v17270_v19 = vpop.f32.mrb[53].mxu0 }
 0xef3   :  { %v6793_v32 = vadd.f32 %v6792_v7, %v6704_v53 }
 0xf08   :  { %v6998_v15 = vpop.f32.mrb[62].mxu1 }
 0xf09   :  { %v17375_v51 = vpop.f32.mrb[63].mxu1 }
 0xf10   :  { %v6911_v36 = vpop.f32.mrb[54].mxu0 }
 0xf11   :  { %v6912_v26 = vadd.f32 %v6911_v36, %v6793_v32  ;;  %v17340_v17 = vpop.f32.mrb[55].mxu0 }
 0xf13   :  { %v6999_v14 = vadd.f32 %v6998_v15, %v6912_v26 }
 0xf15   :  { %v7002_v44 = vadd.f32 %v6999_v14, %v23146_v4 }
 0xf17   :  { %v13922_v48 = vmul.f32 -1.442695, %v7002_v44 }
 0xf18   :  { %v7222_v3 = vpop.f32.mrb[64].mxu1 }
 0xf19   :  { %21422 = vpow2.f32 %v13922_v48  ;;  %v17413_v29 = vpop.f32.mrb[65].mxu1 }
 0xf1a   :  { %v25586_v29 = vld [vmem:[#allocation24_spill] sm:$0xff] }
 0xf20   :  { %v7111_v38 = vpop.f32.mrb[56].mxu0 }
 0xf21   :  { %v7223_v35 = vadd.f32 %v7222_v3, %v7111_v38  ;;  %v17394_v47 = vpop.f32.mrb[57].mxu0 }
 0xf23   :  { %v21423_v5 = vpop.eup %21422 }
 0xf24   :  { %v7006_v58 = vadd.f32 1.0, %v21423_v5 }
 0xf26   :  { %21424 = vrcp.f32 %v7006_v58 }
 0xf28   :  { %v7391_v19 = vpop.f32.mrb[66].mxu1 }
 0xf29   :  { %v17451_v9 = vpop.f32.mrb[67].mxu1 }
 0xf30   :  { %v21425_v7 = vpop.eup %21424  ;;  %v7310_v51 = vpop.f32.mrb[58].mxu0 }
 0xf31   :  { %v7311_v8 = vadd.f32 %v7310_v51, %v7223_v35  ;;  %v17432_v36 = vpop.f32.mrb[59].mxu0  ;;  %v7009_v17 = vmul.f32 2.0, %v21425_v7 }
 0xf33   :  { %v13923_v26 = vadd.f32 -1.0, %v7009_v17  ;;  %v7392_v15 = vadd.f32 %v7391_v19, %v7311_v8 }
 0xf35   :  { %7013 = vrot.lane.b32.xlu1 %v13923_v26, %s21483_s4  ;;  %v7011_v26 = vmul.f32 %v21425_v7, %v23572_v22 }
 0xf38   :  { %v7565_v44 = vpop.f32.mrb[68].mxu1 }
 0xf39   :  { %v17489_v48 = vpop.f32.mrb[69].mxu1 }
 0xf40   :  { %v7486_v14 = vpop.f32.mrb[60].mxu0 }
 0xf41   :  { %v7487_v32 = vadd.f32 %v7486_v14, %v7392_v15  ;;  %v17470_v3 = vpop.f32.mrb[61].mxu0 }
 0xf43   :  { %v7566_v53 = vadd.f32 %v7565_v44, %v7487_v32 }
 0xf45   :  { %v7569_v38 = vadd.f32 %v7566_v53, %v25586_v29 }
 0xf47   :  { %v13924_v58 = vmul.f32 -1.442695, %v7569_v38 }
 0xf49   :  { %21426 = vpow2.f32 %v13924_v58 }
 0xf53   :  { %v21427_v47 = vpop.eup %21426 }
 0xf54   :  { %v7573_v5 = vadd.f32 1.0, %v21427_v47 }
 0xf56   :  { %21428 = vrcp.f32 %v7573_v5 }
 0xf60   :  { %v21429_v35 = vpop.eup %21428 }
 0xf61   :  { %v7576_v9 = vmul.f32 2.0, %v21429_v35  ;;  %v7578_v14 = vmul.f32 %v21429_v35, %v23577_v43 }
 0xf63   :  { %v13925_v51 = vadd.f32 -1.0, %v7576_v9 }
 0xf65   :  { %7580 = vrot.lane.b32.xlu0 %v13925_v51, %s21483_s4 }
 0xfa7   :  { %v7014_v19 = vpop.permute.xlu1 %7013 }
 0xfa8   :  { %v7016_v8 = vmul.f32 %v21425_v7, %v7014_v19 }
 0xfaa   :  { %7018 = vrot.lane.b32.xlu1 %v7016_v8, %s21484_s19 }
 0xfd7   :  { %v7581_v36 = vpop.permute.xlu0 %7580 }
 0xfd8   :  { %v7583_v17 = vmul.f32 %v21429_v35, %v7581_v36 }
 0xfda   :  { %7585 = vrot.lane.b32.xlu0 %v7583_v17, %s21484_s19 }
0x101c   :  { %v7019_v15 = vpop.permute.xlu1 %7018 }
0x101d   :  { %v23781_v44 = vadd.f32 %v7019_v15, %v7011_v26 }
0x101f   :  { %21430 = vtanh.f32 %v23781_v44 }
0x1029   :  { %v21431_v48 = vpop.eup %21430 }
0x102a   :  { %7024 = vrot.lane.b32.xlu1 %v21431_v48, %s21483_s4 }
0x104c   :  { %v7586_v32 = vpop.permute.xlu0 %7585 }
0x104d   :  { %v23786_v3 = vadd.f32 %v7586_v32, %v7578_v14 }
0x104f   :  { %21432 = vtanh.f32 %v23786_v3 }
0x1059   :  { %v21433_v53 = vpop.eup %21432 }
0x105a   :  { %7591 = vrot.lane.b32.xlu0 %v21433_v53, %s21483_s4 }
0x109c   :  { %v7025_v38 = vpop.permute.xlu1 %7024 }
0x109d   :  { %v7027_v58 = vmul.f32 %v21425_v7, %v7025_v38  ;;  %v25587_v38 = vld [vmem:[#allocation9_spill] sm:$0xff] }
0x10cc   :  { %v7592_v29 = vpop.permute.xlu0 %7591 }
0x10cd   :  { %v7594_v22 = vmul.f32 %v21429_v35, %v7592_v29 }
0x10cf   :  { %7599 = vrot.lane.b32.xlu1 %v7594_v22, %s21483_s4  ;;  %7596 = vrot.lane.b32.xlu0 %v7594_v22, %s21484_s19 }
0x10d3   :  { %7603 = vrot.lane.b32.xlu0 %v7027_v58, %s21485_s3 }
0x1141   :  { %v7597_v47 = vpop.permute.xlu0 %7596  ;;  %v7600_v43 = vpop.permute.xlu1 %7599 }
0x1142   :  { %v23794_v5 = vsel %vm63_vm1, %v7597_v47, %v7600_v43  ;;  %v25589_v47 = vld [vmem:[#allocation2_spill] sm:$0xff] }
0x1143   :  { %v8277_v15 = vmul.f32 %v23794_v5, %v22359_v27  ;;  %v25590_v43 = vld [vmem:[#allocation30_spill] sm:$0xff] }
0x1145   :  { %v7604_v9 = vpop.permute.xlu0 %7603  ;;  %v8279_v48 = vsel %vm65_vm2, %v8277_v15, 0 }
0x1146   :  { %v7607_v51 = vsel %vm65_vm2, %v23794_v5, %v7604_v9  ;;  %v23884_v14 = vand.u32 4294901760, %v8279_v48  ;;  %v25591_v5 = vld [vmem:[#allocation17_spill] sm:$0xff]  ;;  %v25592_v9 = vld [vmem:[#allocation32_spill] sm:$0xff] }
0x1147   :  { %v7608_v19 = vsel %vm67_vm4, %v7607_v51, %v7027_v58  ;;  %v25588_v58 = vld [vmem:[#allocation37_spill] sm:$0xff] }
0x1148   :  { %v7609_v35 = vmul.f32 %v7608_v19, %v22872_v61  ;;  %v8355_v32 = vsub.f32 %v8279_v48, %v23884_v14  ;;  %v25593_v51 = vld [vmem:[#allocation5_spill] sm:$0xff]  ;;  %v25594_v19 = vld [vmem:[#allocation10_spill] sm:$0xff] }
0x114a   :  { %v23800_v8 = vand.u32 4294901760, %v7609_v35  ;;  %v8356_v53 = vand.u32 4294901760, %v8355_v32 }
0x114c   :  { %v7692_v36 = vsub.f32 %v7609_v35, %v23800_v8  ;;  %17558 = vmatmul.mubr.f32.vlgmr.msra.gmra.mrb[70].mxu1 %v23800_v8  ;;  %v8357_v29 = vsub.f32 %v8355_v32, %v8356_v53  ;;  %v25595_v35 = vld [vmem:[#allocation6_spill] sm:$0xff] }
0x114d   :  { %20222 = vmatpush3.bf16.msra.mxu1 %v22669_v28  ;;  %17627 = vmatprep.mubr.msk.f32.mxu1 %vm21482_vm3, %v25523_v52 }
0x114e   :  { %20223 = vmatprep.subr.bf16.mxu1 %v25521_v6  ;;  %v7693_v7 = vand.u32 4294901760, %v7692_v36  ;;  %v8358_v22 = vand.u32 4294901760, %v8357_v29 }
0x1150   :  { %v7694_v17 = vsub.f32 %v7692_v36, %v7693_v7 }
0x1151   :  { %20225 = vmatpush3.bf16.msra.mxu1 %v22683_v20 }
0x1152   :  { %20226 = vmatprep.subr.bf16.mxu1 %v25521_v6  ;;  %v7695_v26 = vand.u32 4294901760, %v7694_v17 }
0x1154   :  { %17523 = vmatmul.mubr.f32.vlgmr.msra.gmra.mrb[62].mxu0 %v7695_v26 }
0x1155   :  { %20198 = vmatpush3.bf16.msra.mxu0 %v25550_v16  ;;  %20228 = vmatpush3.bf16.msra.mxu1 %v22711_v12 }
0x1156   :  { %20199 = vmatprep.subr.bf16.mxu0 %v25521_v6  ;;  %20229 = vmatprep.subr.bf16.mxu1 %v25521_v6 }
0x1157   :  { %17592 = vmatprep.mubr.msk.f32.mxu0 %vm21482_vm3, %v25523_v52 }
0x1159   :  { %20201 = vmatpush3.bf16.msra.mxu0 %v25551_v55  ;;  %20231 = vmatpush3.bf16.msra.mxu1 %v22741_v42 }
0x115a   :  { %20202 = vmatprep.subr.bf16.mxu0 %v25521_v6  ;;  %20232 = vmatprep.subr.bf16.mxu1 %v25521_v6 }
0x115d   :  { %20204 = vmatpush3.bf16.msra.mxu0 %v25552_v57  ;;  %20234 = vmatpush3.bf16.msra.mxu1 %v22776_v31 }
0x115e   :  { %20205 = vmatprep.subr.bf16.mxu0 %v25521_v6  ;;  %20235 = vmatprep.subr.bf16.mxu1 %v25521_v6 }
0x1161   :  { %20207 = vmatpush3.bf16.msra.mxu0 %v25553_v23  ;;  %20237 = vmatpush3.bf16.msra.mxu1 %v22792_v39 }
0x1162   :  { %20208 = vmatprep.subr.bf16.mxu0 %v25521_v6  ;;  %20238 = vmatprep.subr.bf16.mxu1 %v25521_v6 }
0x1165   :  { %20210 = vmatpush3.bf16.msra.mxu0 %v25554_v21  ;;  %20240 = vmatpush3.bf16.msra.mxu1 %v22808_v24 }
0x1166   :  { %20211 = vmatprep.subr.bf16.mxu0 %v25521_v6  ;;  %20241 = vmatprep.subr.bf16.mxu1 %v25521_v6 }
0x1169   :  { %20213 = vmatpush3.bf16.msra.mxu0 %v25555_v0  ;;  %20243 = vmatpush3.bf16.msra.mxu1 %v22856_v18 }
0x116a   :  { %20214 = vmatprep.subr.bf16.mxu0 %v25521_v6  ;;  %20268 = vmatprep.subr.bf16.mxu1 %v25521_v6 }
0x116c   :  { %17628 = vmatmul.mubr.f32.vlgmr.msra.gmra.mrb[72].mxu1 %v7693_v7  ;;  %v25598_v7 = vld [vmem:[#allocation13_spill] sm:$0xff] }
0x116d   :  { %20216 = vmatpush3.bf16.msra.mxu0 %v25556_v41  ;;  %20270 = vmatpush3.bf16.msra.mxu1 %v22669_v28 }
0x116e   :  { %20217 = vmatprep.subr.bf16.mxu0 %v25521_v6  ;;  %20271 = vmatprep.subr.bf16.mxu1 %v25521_v6 }
0x116f   :  { %17697 = vmatprep.mubr.msk.f32.mxu1 %vm21482_vm3, %v25523_v52 }
0x1171   :  { %20219 = vmatpush3.bf16.msra.mxu0 %v25557_v30  ;;  %20273 = vmatpush3.bf16.msra.mxu1 %v22683_v20 }
0x1172   :  { %20244 = vmatprep.subr.bf16.mxu0 %v25521_v6  ;;  %20274 = vmatprep.subr.bf16.mxu1 %v25521_v6 }
0x1174   :  { %17593 = vmatmul.mubr.f32.vlgmr.msra.gmra.mrb[64].mxu0 %v7692_v36  ;;  %v25597_v36 = vld [vmem:[#allocation8_spill] sm:$0xff] }
0x1175   :  { %20246 = vmatpush3.bf16.msra.mxu0 %v22957_v10  ;;  %20276 = vmatpush3.bf16.msra.mxu1 %v22711_v12 }
0x1176   :  { %20247 = vmatprep.subr.bf16.mxu0 %v25521_v6  ;;  %20277 = vmatprep.subr.bf16.mxu1 %v25521_v6 }
0x1177   :  { %17662 = vmatprep.mubr.msk.f32.mxu0 %vm21482_vm3, %v25523_v52 }
0x1179   :  { %20249 = vmatpush3.bf16.msra.mxu0 %v22967_v34  ;;  %20279 = vmatpush3.bf16.msra.mxu1 %v22741_v42 }
0x117a   :  { %20250 = vmatprep.subr.bf16.mxu0 %v25521_v6  ;;  %20280 = vmatprep.subr.bf16.mxu1 %v25521_v6 }
0x117d   :  { %20252 = vmatpush3.bf16.msra.mxu0 %v22979_v63  ;;  %20282 = vmatpush3.bf16.msra.mxu1 %v22776_v31 }
0x117e   :  { %20253 = vmatprep.subr.bf16.mxu0 %v25521_v6  ;;  %20283 = vmatprep.subr.bf16.mxu1 %v25521_v6 }
0x1181   :  { %20255 = vmatpush3.bf16.msra.mxu0 %v22989_v13  ;;  %20285 = vmatpush3.bf16.msra.mxu1 %v22792_v39 }
0x1182   :  { %20256 = vmatprep.subr.bf16.mxu0 %v25521_v6  ;;  %20286 = vmatprep.subr.bf16.mxu1 %v25521_v6 }
0x1185   :  { %20258 = vmatpush3.bf16.msra.mxu0 %v22999_v46  ;;  %20288 = vmatpush3.bf16.msra.mxu1 %v22808_v24 }
0x1186   :  { %20259 = vmatprep.subr.bf16.mxu0 %v25521_v6  ;;  %20289 = vmatprep.subr.bf16.mxu1 %v25521_v6 }
0x1189   :  { %20261 = vmatpush3.bf16.msra.mxu0 %v23009_v59  ;;  %20291 = vmatpush3.bf16.msra.mxu1 %v22856_v18 }
0x118a   :  { %20262 = vmatprep.subr.bf16.mxu0 %v25521_v6  ;;  %20304 = vmatprep.subr.bf16.mxu1 %v25521_v6 }
0x118c   :  { %17698 = vmatmul.mubr.f32.vlgmr.msra.gmra.mrb[74].mxu1 %v23800_v8 }
0x118d   :  { %20264 = vmatpush3.bf16.msra.mxu0 %v23019_v33  ;;  %20306 = vmatpush3.bf16.msra.mxu1 %v22543_v11 }
0x118e   :  { %20265 = vmatprep.subr.bf16.mxu0 %v25521_v6  ;;  %20307 = vmatprep.subr.bf16.mxu1 %v25521_v6 }
0x118f   :  { %17735 = vmatprep.mubr.msk.f32.mxu1 %vm21482_vm3, %v25523_v52 }
0x1191   :  { %20267 = vmatpush3.bf16.msra.mxu0 %v23032_v60  ;;  %20309 = vmatpush3.bf16.msra.mxu1 %v22552_v56 }
0x1192   :  { %20292 = vmatprep.subr.bf16.mxu0 %v25521_v6  ;;  %20310 = vmatprep.subr.bf16.mxu1 %v25521_v6 }
0x1194   :  { %17663 = vmatmul.mubr.f32.vlgmr.msra.gmra.mrb[66].mxu0 %v23800_v8  ;;  %v25596_v8 = vld [vmem:[#allocation11_spill] sm:$0xff] }
0x1195   :  { %20294 = vmatpush3.bf16.msra.mxu0 %v22387_v45  ;;  %20312 = vmatpush3.bf16.msra.mxu1 %v22562_v50 }
0x1196   :  { %20295 = vmatprep.subr.bf16.mxu0 %v25521_v6  ;;  %20313 = vmatprep.subr.bf16.mxu1 %v25521_v6 }
0x1197   :  { %17716 = vmatprep.mubr.msk.f32.mxu0 %vm21482_vm3, %v25523_v52 }
0x1199   :  { %20297 = vmatpush3.bf16.msra.mxu0 %v22419_v40  ;;  %20315 = vmatpush3.bf16.msra.mxu1 %v22568_v62 }
0x119a   :  { %20298 = vmatprep.subr.bf16.mxu0 %v25521_v6  ;;  %20328 = vmatprep.subr.bf16.mxu1 %v25521_v6 }
0x119c   :  { %17736 = vmatmul.mubr.f32.vlgmr.msra.gmra.mrb[76].mxu1 %v23884_v14 }
0x119d   :  { %20300 = vmatpush3.bf16.msra.mxu0 %v22434_v25  ;;  %20330 = vmatpush3.bf16.msra.mxu1 %v22387_v45 }
0x119e   :  { %20301 = vmatprep.subr.bf16.mxu0 %v25521_v6  ;;  %20331 = vmatprep.subr.bf16.mxu1 %v25521_v6 }
0x119f   :  { %17773 = vmatprep.mubr.msk.f32.mxu1 %vm21482_vm3, %v25523_v52 }
0x11a1   :  { %20303 = vmatpush3.bf16.msra.mxu0 %v22446_v54  ;;  %20333 = vmatpush3.bf16.msra.mxu1 %v22419_v40 }
0x11a2   :  { %20316 = vmatprep.subr.bf16.mxu0 %v25521_v6  ;;  %20334 = vmatprep.subr.bf16.mxu1 %v25521_v6 }
0x11a4   :  { %17717 = vmatmul.mubr.f32.vlgmr.msra.gmra.mrb[68].mxu0 %v8358_v22 }
0x11a5   :  { %20318 = vmatpush3.bf16.msra.mxu0 %v22460_v49  ;;  %20336 = vmatpush3.bf16.msra.mxu1 %v22434_v25 }
0x11a6   :  { %20319 = vmatprep.subr.bf16.mxu0 %v25521_v6  ;;  %20337 = vmatprep.subr.bf16.mxu1 %v25521_v6 }
0x11a7   :  { %17754 = vmatprep.mubr.msk.f32.mxu0 %vm21482_vm3, %v25523_v52 }
0x11a9   :  { %20321 = vmatpush3.bf16.msra.mxu0 %v22466_v1  ;;  %20339 = vmatpush3.bf16.msra.mxu1 %v22446_v54 }
0x11aa   :  { %20322 = vmatprep.subr.bf16.mxu0 %v25521_v6  ;;  %20352 = vmatprep.subr.bf16.mxu1 %v25521_v6 }
0x11ac   :  { %17774 = vmatmul.mubr.f32.vlgmr.msra.gmra.mrb[78].mxu1 %v8356_v53 }
0x11ad   :  { %20324 = vmatpush3.bf16.msra.mxu0 %v22482_v2  ;;  %20354 = vmatpush3.bf16.msra.mxu1 %v22387_v45 }
0x11ae   :  { %20325 = vmatprep.subr.bf16.mxu0 %v25521_v6  ;;  %20355 = vmatprep.subr.bf16.mxu1 %v25521_v6 }
0x11af   :  { %17811 = vmatprep.mubr.msk.f32.mxu1 %vm21482_vm3, %v25523_v52 }
0x11b1   :  { %20327 = vmatpush3.bf16.msra.mxu0 %v22496_v37  ;;  %20357 = vmatpush3.bf16.msra.mxu1 %v22419_v40 }
0x11b2   :  { %20340 = vmatprep.subr.bf16.mxu0 %v25521_v6  ;;  %20358 = vmatprep.subr.bf16.mxu1 %v25521_v6 }
0x11b4   :  { %17755 = vmatmul.mubr.f32.vlgmr.msra.gmra.mrb[70].mxu0 %v8355_v32 }
0x11b5   :  { %20342 = vmatpush3.bf16.msra.mxu0 %v25587_v38  ;;  %20360 = vmatpush3.bf16.msra.mxu1 %v22434_v25 }
0x11b6   :  { %20343 = vmatprep.subr.bf16.mxu0 %v25521_v6  ;;  %20361 = vmatprep.subr.bf16.mxu1 %v25521_v6 }
0x11b7   :  { %17792 = vmatprep.mubr.msk.f32.mxu0 %vm21482_vm3, %v25523_v52 }
0x11b9   :  { %20345 = vmatpush3.bf16.msra.mxu0 %v25588_v58  ;;  %20363 = vmatpush3.bf16.msra.mxu1 %v22446_v54 }
0x11ba   :  { %20346 = vmatprep.subr.bf16.mxu0 %v25521_v6  ;;  %20388 = vmatprep.subr.bf16.mxu1 %v25521_v6 }
0x11bc   :  { %17812 = vmatmul.mubr.f32.vlgmr.msra.gmra.mrb[80].mxu1 %v23884_v14 }
0x11bd   :  { %20348 = vmatpush3.bf16.msra.mxu0 %v25589_v47  ;;  %20390 = vmatpush3.bf16.msra.mxu1 %v25590_v43 }
0x11be   :  { %20349 = vmatprep.subr.bf16.mxu0 %v25521_v6  ;;  %20391 = vmatprep.subr.bf16.mxu1 %v25521_v6 }
0x11bf   :  { %17881 = vmatprep.mubr.msk.f32.mxu1 %vm21482_vm3, %v25523_v52 }
0x11c1   :  { %20351 = vmatpush3.bf16.msra.mxu0 %v25591_v5  ;;  %20393 = vmatpush3.bf16.msra.mxu1 %v25592_v9 }
0x11c2   :  { %20364 = vmatprep.subr.bf16.mxu0 %v25521_v6  ;;  %20394 = vmatprep.subr.bf16.mxu1 %v25521_v6 }
0x11c4   :  { %17793 = vmatmul.mubr.f32.vlgmr.msra.gmra.mrb[72].mxu0 %v23884_v14 }
0x11c5   :  { %20366 = vmatpush3.bf16.msra.mxu0 %v22669_v28  ;;  %20396 = vmatpush3.bf16.msra.mxu1 %v25593_v51 }
0x11c6   :  { %20367 = vmatprep.subr.bf16.mxu0 %v25521_v6  ;;  %20397 = vmatprep.subr.bf16.mxu1 %v25521_v6 }
0x11c7   :  { %17846 = vmatprep.mubr.msk.f32.mxu0 %vm21482_vm3, %v25523_v52 }
0x11c9   :  { %20369 = vmatpush3.bf16.msra.mxu0 %v22683_v20  ;;  %20399 = vmatpush3.bf16.msra.mxu1 %v25594_v19 }
0x11ca   :  { %20370 = vmatprep.subr.bf16.mxu0 %v25521_v6  ;;  %20400 = vmatprep.subr.bf16.mxu1 %v25521_v6 }
0x11cd   :  { %20372 = vmatpush3.bf16.msra.mxu0 %v22711_v12  ;;  %20402 = vmatpush3.bf16.msra.mxu1 %v25595_v35 }
0x11ce   :  { %20373 = vmatprep.subr.bf16.mxu0 %v25521_v6  ;;  %20403 = vmatprep.subr.bf16.mxu1 %v25521_v6 }
0x11d1   :  { %20375 = vmatpush3.bf16.msra.mxu0 %v22741_v42  ;;  %20405 = vmatpush3.bf16.msra.mxu1 %v25596_v8 }
0x11d2   :  { %20376 = vmatprep.subr.bf16.mxu0 %v25521_v6  ;;  %20406 = vmatprep.subr.bf16.mxu1 %v25521_v6 }
0x11d5   :  { %20378 = vmatpush3.bf16.msra.mxu0 %v22776_v31  ;;  %20408 = vmatpush3.bf16.msra.mxu1 %v25597_v36 }
0x11d6   :  { %20379 = vmatprep.subr.bf16.mxu0 %v25521_v6  ;;  %20409 = vmatprep.subr.bf16.mxu1 %v25521_v6 }
0x11d9   :  { %20381 = vmatpush3.bf16.msra.mxu0 %v22792_v39  ;;  %20411 = vmatpush3.bf16.msra.mxu1 %v25598_v7 }
0x11da   :  { %20382 = vmatprep.subr.bf16.mxu0 %v25521_v6  ;;  %20436 = vmatprep.subr.bf16.mxu1 %v25521_v6 }
0x11dd   :  { %20384 = vmatpush3.bf16.msra.mxu0 %v22808_v24 }
0x11de   :  { %20385 = vmatprep.subr.bf16.mxu0 %v25521_v6 }
0x11e1   :  { %20387 = vmatpush3.bf16.msra.mxu0 %v22856_v18 }
0x11e2   :  { %20412 = vmatprep.subr.bf16.mxu0 %v25521_v6 }
0x121f   :  { %v7848_v17 = vpop.f32.mrb[70].mxu1 }
0x1220   :  { %v17559_v26 = vpop.f32.mrb[71].mxu1 }
0x1227   :  { %v7697_v15 = vpop.f32.mrb[62].mxu0 }
0x1228   :  { %v7849_v48 = vadd.f32 %v7848_v17, %v7697_v15  ;;  %v17524_v14 = vpop.f32.mrb[63].mxu0 }
0x123f   :  { %v8041_v32 = vpop.f32.mrb[72].mxu1 }
0x1240   :  { %v17629_v53 = vpop.f32.mrb[73].mxu1 }
0x1247   :  { %v7952_v29 = vpop.f32.mrb[64].mxu0 }
0x1248   :  { %v7953_v22 = vadd.f32 %v7952_v29, %v7849_v48  ;;  %v17594_v7 = vpop.f32.mrb[65].mxu0 }
0x124a   :  { %v8042_v36 = vadd.f32 %v8041_v32, %v7953_v22 }
0x125f   :  { %v8247_v8 = vpop.f32.mrb[74].mxu1 }
0x1260   :  { %v17699_v35 = vpop.f32.mrb[75].mxu1 }
0x1267   :  { %v8160_v19 = vpop.f32.mrb[66].mxu0 }
0x1268   :  { %v8161_v51 = vadd.f32 %v8160_v19, %v8042_v36  ;;  %v17664_v9 = vpop.f32.mrb[67].mxu0 }
0x126a   :  { %v8248_v5 = vadd.f32 %v8247_v8, %v8161_v51 }
0x126c   :  { %v8251_v43 = vadd.f32 %v8248_v5, %v23146_v4 }
0x126e   :  { %v13926_v47 = vmul.f32 -1.442695, %v8251_v43 }
0x126f   :  { %v8471_v58 = vpop.f32.mrb[76].mxu1 }
0x1270   :  { %21434 = vpow2.f32 %v13926_v47  ;;  %v17737_v26 = vpop.f32.mrb[77].mxu1 }
0x1271   :  { %v25599_v26 = vld [vmem:[#allocation3_spill] sm:$0xff] }
0x1277   :  { %v8360_v17 = vpop.f32.mrb[68].mxu0 }
0x1278   :  { %v8472_v15 = vadd.f32 %v8471_v58, %v8360_v17  ;;  %v17718_v14 = vpop.f32.mrb[69].mxu0 }
0x127a   :  { %v21435_v53 = vpop.eup %21434 }
0x127b   :  { %v8255_v38 = vadd.f32 1.0, %v21435_v53 }
0x127d   :  { %21436 = vrcp.f32 %v8255_v38 }
0x127f   :  { %v8640_v7 = vpop.f32.mrb[78].mxu1 }
0x1280   :  { %v17775_v48 = vpop.f32.mrb[79].mxu1 }
0x1287   :  { %v21437_v32 = vpop.eup %21436  ;;  %v8559_v35 = vpop.f32.mrb[70].mxu0 }
0x1288   :  { %v8560_v29 = vadd.f32 %v8559_v35, %v8472_v15  ;;  %v17756_v19 = vpop.f32.mrb[71].mxu0  ;;  %v8258_v9 = vmul.f32 2.0, %v21437_v32 }
0x128a   :  { %v13927_v51 = vadd.f32 -1.0, %v8258_v9  ;;  %v8641_v8 = vadd.f32 %v8640_v7, %v8560_v29 }
0x128c   :  { %8262 = vrot.lane.b32.xlu0 %v13927_v51, %s21483_s4  ;;  %v8260_v51 = vmul.f32 %v21437_v32, %v23781_v44 }
0x128f   :  { %v8814_v43 = vpop.f32.mrb[80].mxu1 }
0x1290   :  { %v17813_v47 = vpop.f32.mrb[81].mxu1 }
0x1297   :  { %v8735_v5 = vpop.f32.mrb[72].mxu0 }
0x1298   :  { %v8736_v36 = vadd.f32 %v8735_v5, %v8641_v8  ;;  %v17794_v58 = vpop.f32.mrb[73].mxu0 }
0x129a   :  { %v8815_v22 = vadd.f32 %v8814_v43, %v8736_v36 }
0x129c   :  { %v8818_v17 = vadd.f32 %v8815_v22, %v25599_v26 }
0x129e   :  { %v13928_v38 = vmul.f32 -1.442695, %v8818_v17 }
0x12a0   :  { %21438 = vpow2.f32 %v13928_v38 }
0x12aa   :  { %v21439_v14 = vpop.eup %21438 }
0x12ab   :  { %v8822_v53 = vadd.f32 1.0, %v21439_v14 }
0x12ad   :  { %21440 = vrcp.f32 %v8822_v53 }
0x12b7   :  { %v21441_v15 = vpop.eup %21440 }
0x12b8   :  { %v8825_v48 = vmul.f32 2.0, %v21441_v15  ;;  %v8827_v5 = vmul.f32 %v21441_v15, %v23786_v3 }
0x12ba   :  { %v13929_v35 = vadd.f32 -1.0, %v8825_v48 }
0x12bc   :  { %8829 = vrot.lane.b32.xlu1 %v13929_v35, %s21483_s4 }
0x12fe   :  { %v8263_v7 = vpop.permute.xlu0 %8262 }
0x12ff   :  { %v8265_v29 = vmul.f32 %v21437_v32, %v8263_v7 }
0x1301   :  { %8267 = vrot.lane.b32.xlu0 %v8265_v29, %s21484_s19 }
0x132e   :  { %v8830_v19 = vpop.permute.xlu1 %8829 }
0x132f   :  { %v8832_v9 = vmul.f32 %v21441_v15, %v8830_v19 }
0x1331   :  { %8834 = vrot.lane.b32.xlu1 %v8832_v9, %s21484_s19 }
0x1373   :  { %v8268_v8 = vpop.permute.xlu0 %8267 }
0x1374   :  { %v23990_v43 = vadd.f32 %v8268_v8, %v8260_v51 }
0x1376   :  { %21442 = vtanh.f32 %v23990_v43 }
0x1380   :  { %v21443_v47 = vpop.eup %21442 }
0x1381   :  { %8273 = vrot.lane.b32.xlu0 %v21443_v47, %s21483_s4 }
0x13a3   :  { %v8835_v36 = vpop.permute.xlu1 %8834 }
0x13a4   :  { %v23995_v58 = vadd.f32 %v8835_v36, %v8827_v5 }
0x13a6   :  { %21444 = vtanh.f32 %v23995_v58 }
0x13b0   :  { %v21445_v22 = vpop.eup %21444 }
0x13b1   :  { %8840 = vrot.lane.b32.xlu1 %v21445_v22, %s21483_s4 }
0x13f3   :  { %v8274_v17 = vpop.permute.xlu0 %8273 }
0x13f4   :  { %v8276_v38 = vmul.f32 %v21437_v32, %v8274_v17  ;;  %v25600_v17 = vld [vmem:[#allocation9_spill] sm:$0xff] }
0x1423   :  { %v8841_v26 = vpop.permute.xlu1 %8840 }
0x1424   :  { %v8843_v44 = vmul.f32 %v21441_v15, %v8841_v26 }
0x1426   :  { %8848 = vrot.lane.b32.xlu0 %v8843_v44, %s21483_s4  ;;  %8845 = vrot.lane.b32.xlu1 %v8843_v44, %s21484_s19 }
0x142a   :  { %8852 = vrot.lane.b32.xlu1 %v8276_v38, %s21485_s3 }
0x1498   :  { %v8846_v14 = vpop.permute.xlu1 %8845  ;;  %v8849_v3 = vpop.permute.xlu0 %8848 }
0x1499   :  { %v24003_v53 = vsel %vm63_vm1, %v8846_v14, %v8849_v3  ;;  %v25602_v14 = vld [vmem:[#allocation2_spill] sm:$0xff] }
0x149a   :  { %v9526_v8 = vmul.f32 %v24003_v53, %v22359_v27  ;;  %v25603_v3 = vld [vmem:[#allocation30_spill] sm:$0xff] }
0x149c   :  { %v8853_v48 = vpop.permute.xlu1 %8852  ;;  %v9528_v47 = vsel %vm65_vm2, %v9526_v8, 0 }
0x149d   :  { %v8856_v35 = vsel %vm65_vm2, %v24003_v53, %v8853_v48  ;;  %v24093_v5 = vand.u32 4294901760, %v9528_v47  ;;  %v25604_v53 = vld [vmem:[#allocation17_spill] sm:$0xff]  ;;  %v25605_v48 = vld [vmem:[#allocation32_spill] sm:$0xff] }
0x149e   :  { %v8857_v7 = vsel %vm67_vm4, %v8856_v35, %v8276_v38  ;;  %v25601_v38 = vld [vmem:[#allocation37_spill] sm:$0xff] }
0x149f   :  { %v8858_v15 = vmul.f32 %v8857_v7, %v22872_v61  ;;  %v9604_v36 = vsub.f32 %v9528_v47, %v24093_v5  ;;  %v25606_v35 = vld [vmem:[#allocation5_spill] sm:$0xff]  ;;  %v25607_v7 = vld [vmem:[#allocation10_spill] sm:$0xff] }
0x14a1   :  { %v24009_v29 = vand.u32 4294901760, %v8858_v15  ;;  %v9605_v22 = vand.u32 4294901760, %v9604_v36 }
0x14a3   :  { %v8941_v19 = vsub.f32 %v8858_v15, %v24009_v29  ;;  %17882 = vmatmul.mubr.f32.vlgmr.msra.gmra.mrb[82].mxu1 %v24009_v29  ;;  %v9606_v26 = vsub.f32 %v9604_v36, %v9605_v22  ;;  %v25608_v15 = vld [vmem:[#allocation6_spill] sm:$0xff] }
0x14a4   :  { %20438 = vmatpush3.bf16.msra.mxu1 %v22669_v28  ;;  %17951 = vmatprep.mubr.msk.f32.mxu1 %vm21482_vm3, %v25523_v52 }
0x14a5   :  { %20439 = vmatprep.subr.bf16.mxu1 %v25521_v6  ;;  %v8942_v32 = vand.u32 4294901760, %v8941_v19  ;;  %v9607_v44 = vand.u32 4294901760, %v9606_v26 }
0x14a7   :  { %v8943_v9 = vsub.f32 %v8941_v19, %v8942_v32 }
0x14a8   :  { %20441 = vmatpush3.bf16.msra.mxu1 %v22683_v20 }
0x14a9   :  { %20442 = vmatprep.subr.bf16.mxu1 %v25521_v6  ;;  %v8944_v51 = vand.u32 4294901760, %v8943_v9 }
0x14ab   :  { %17847 = vmatmul.mubr.f32.vlgmr.msra.gmra.mrb[74].mxu0 %v8944_v51 }
0x14ac   :  { %20414 = vmatpush3.bf16.msra.mxu0 %v25550_v16  ;;  %20444 = vmatpush3.bf16.msra.mxu1 %v22711_v12 }
0x14ad   :  { %20415 = vmatprep.subr.bf16.mxu0 %v25521_v6  ;;  %20445 = vmatprep.subr.bf16.mxu1 %v25521_v6 }
0x14ae   :  { %17916 = vmatprep.mubr.msk.f32.mxu0 %vm21482_vm3, %v25523_v52 }
0x14b0   :  { %20417 = vmatpush3.bf16.msra.mxu0 %v25551_v55  ;;  %20447 = vmatpush3.bf16.msra.mxu1 %v22741_v42 }
0x14b1   :  { %20418 = vmatprep.subr.bf16.mxu0 %v25521_v6  ;;  %20448 = vmatprep.subr.bf16.mxu1 %v25521_v6 }
0x14b4   :  { %20420 = vmatpush3.bf16.msra.mxu0 %v25552_v57  ;;  %20450 = vmatpush3.bf16.msra.mxu1 %v22776_v31 }
0x14b5   :  { %20421 = vmatprep.subr.bf16.mxu0 %v25521_v6  ;;  %20451 = vmatprep.subr.bf16.mxu1 %v25521_v6 }
0x14b8   :  { %20423 = vmatpush3.bf16.msra.mxu0 %v25553_v23  ;;  %20453 = vmatpush3.bf16.msra.mxu1 %v22792_v39 }
0x14b9   :  { %20424 = vmatprep.subr.bf16.mxu0 %v25521_v6  ;;  %20454 = vmatprep.subr.bf16.mxu1 %v25521_v6 }
0x14bc   :  { %20426 = vmatpush3.bf16.msra.mxu0 %v25554_v21  ;;  %20456 = vmatpush3.bf16.msra.mxu1 %v22808_v24 }
0x14bd   :  { %20427 = vmatprep.subr.bf16.mxu0 %v25521_v6  ;;  %20457 = vmatprep.subr.bf16.mxu1 %v25521_v6 }
0x14c0   :  { %20429 = vmatpush3.bf16.msra.mxu0 %v25555_v0  ;;  %20459 = vmatpush3.bf16.msra.mxu1 %v22856_v18 }
0x14c1   :  { %20430 = vmatprep.subr.bf16.mxu0 %v25521_v6  ;;  %20484 = vmatprep.subr.bf16.mxu1 %v25521_v6 }
0x14c3   :  { %17952 = vmatmul.mubr.f32.vlgmr.msra.gmra.mrb[84].mxu1 %v8942_v32  ;;  %v25611_v32 = vld [vmem:[#allocation13_spill] sm:$0xff] }
0x14c4   :  { %20432 = vmatpush3.bf16.msra.mxu0 %v25556_v41  ;;  %20486 = vmatpush3.bf16.msra.mxu1 %v22669_v28 }
0x14c5   :  { %20433 = vmatprep.subr.bf16.mxu0 %v25521_v6  ;;  %20487 = vmatprep.subr.bf16.mxu1 %v25521_v6 }
0x14c6   :  { %18021 = vmatprep.mubr.msk.f32.mxu1 %vm21482_vm3, %v25523_v52 }
0x14c8   :  { %20435 = vmatpush3.bf16.msra.mxu0 %v25557_v30  ;;  %20489 = vmatpush3.bf16.msra.mxu1 %v22683_v20 }
0x14c9   :  { %20460 = vmatprep.subr.bf16.mxu0 %v25521_v6  ;;  %20490 = vmatprep.subr.bf16.mxu1 %v25521_v6 }
0x14cb   :  { %17917 = vmatmul.mubr.f32.vlgmr.msra.gmra.mrb[76].mxu0 %v8941_v19  ;;  %v25610_v19 = vld [vmem:[#allocation8_spill] sm:$0xff] }
0x14cc   :  { %20462 = vmatpush3.bf16.msra.mxu0 %v22957_v10  ;;  %20492 = vmatpush3.bf16.msra.mxu1 %v22711_v12 }
0x14cd   :  { %20463 = vmatprep.subr.bf16.mxu0 %v25521_v6  ;;  %20493 = vmatprep.subr.bf16.mxu1 %v25521_v6 }
0x14ce   :  { %17986 = vmatprep.mubr.msk.f32.mxu0 %vm21482_vm3, %v25523_v52 }
0x14d0   :  { %20465 = vmatpush3.bf16.msra.mxu0 %v22967_v34  ;;  %20495 = vmatpush3.bf16.msra.mxu1 %v22741_v42 }
0x14d1   :  { %20466 = vmatprep.subr.bf16.mxu0 %v25521_v6  ;;  %20496 = vmatprep.subr.bf16.mxu1 %v25521_v6 }
0x14d4   :  { %20468 = vmatpush3.bf16.msra.mxu0 %v22979_v63  ;;  %20498 = vmatpush3.bf16.msra.mxu1 %v22776_v31 }
0x14d5   :  { %20469 = vmatprep.subr.bf16.mxu0 %v25521_v6  ;;  %20499 = vmatprep.subr.bf16.mxu1 %v25521_v6 }
0x14d8   :  { %20471 = vmatpush3.bf16.msra.mxu0 %v22989_v13  ;;  %20501 = vmatpush3.bf16.msra.mxu1 %v22792_v39 }
0x14d9   :  { %20472 = vmatprep.subr.bf16.mxu0 %v25521_v6  ;;  %20502 = vmatprep.subr.bf16.mxu1 %v25521_v6 }
0x14dc   :  { %20474 = vmatpush3.bf16.msra.mxu0 %v22999_v46  ;;  %20504 = vmatpush3.bf16.msra.mxu1 %v22808_v24 }
0x14dd   :  { %20475 = vmatprep.subr.bf16.mxu0 %v25521_v6  ;;  %20505 = vmatprep.subr.bf16.mxu1 %v25521_v6 }
0x14e0   :  { %20477 = vmatpush3.bf16.msra.mxu0 %v23009_v59  ;;  %20507 = vmatpush3.bf16.msra.mxu1 %v22856_v18 }
0x14e1   :  { %20478 = vmatprep.subr.bf16.mxu0 %v25521_v6  ;;  %20520 = vmatprep.subr.bf16.mxu1 %v25521_v6 }
0x14e3   :  { %18022 = vmatmul.mubr.f32.vlgmr.msra.gmra.mrb[86].mxu1 %v24009_v29 }
0x14e4   :  { %20480 = vmatpush3.bf16.msra.mxu0 %v23019_v33  ;;  %20522 = vmatpush3.bf16.msra.mxu1 %v22543_v11 }
0x14e5   :  { %20481 = vmatprep.subr.bf16.mxu0 %v25521_v6  ;;  %20523 = vmatprep.subr.bf16.mxu1 %v25521_v6 }
0x14e6   :  { %18059 = vmatprep.mubr.msk.f32.mxu1 %vm21482_vm3, %v25523_v52 }
0x14e8   :  { %20483 = vmatpush3.bf16.msra.mxu0 %v23032_v60  ;;  %20525 = vmatpush3.bf16.msra.mxu1 %v22552_v56 }
0x14e9   :  { %20508 = vmatprep.subr.bf16.mxu0 %v25521_v6  ;;  %20526 = vmatprep.subr.bf16.mxu1 %v25521_v6 }
0x14eb   :  { %17987 = vmatmul.mubr.f32.vlgmr.msra.gmra.mrb[78].mxu0 %v24009_v29  ;;  %v25609_v29 = vld [vmem:[#allocation11_spill] sm:$0xff] }
0x14ec   :  { %20510 = vmatpush3.bf16.msra.mxu0 %v22387_v45  ;;  %20528 = vmatpush3.bf16.msra.mxu1 %v22562_v50 }
0x14ed   :  { %20511 = vmatprep.subr.bf16.mxu0 %v25521_v6  ;;  %20529 = vmatprep.subr.bf16.mxu1 %v25521_v6 }
0x14ee   :  { %18040 = vmatprep.mubr.msk.f32.mxu0 %vm21482_vm3, %v25523_v52 }
0x14f0   :  { %20513 = vmatpush3.bf16.msra.mxu0 %v22419_v40  ;;  %20531 = vmatpush3.bf16.msra.mxu1 %v22568_v62 }
0x14f1   :  { %20514 = vmatprep.subr.bf16.mxu0 %v25521_v6  ;;  %20544 = vmatprep.subr.bf16.mxu1 %v25521_v6 }
0x14f3   :  { %18060 = vmatmul.mubr.f32.vlgmr.msra.gmra.mrb[88].mxu1 %v24093_v5 }
0x14f4   :  { %20516 = vmatpush3.bf16.msra.mxu0 %v22434_v25  ;;  %20546 = vmatpush3.bf16.msra.mxu1 %v22387_v45 }
0x14f5   :  { %20517 = vmatprep.subr.bf16.mxu0 %v25521_v6  ;;  %20547 = vmatprep.subr.bf16.mxu1 %v25521_v6 }
0x14f6   :  { %18097 = vmatprep.mubr.msk.f32.mxu1 %vm21482_vm3, %v25523_v52 }
0x14f8   :  { %20519 = vmatpush3.bf16.msra.mxu0 %v22446_v54  ;;  %20549 = vmatpush3.bf16.msra.mxu1 %v22419_v40 }
0x14f9   :  { %20532 = vmatprep.subr.bf16.mxu0 %v25521_v6  ;;  %20550 = vmatprep.subr.bf16.mxu1 %v25521_v6 }
0x14fb   :  { %18041 = vmatmul.mubr.f32.vlgmr.msra.gmra.mrb[80].mxu0 %v9607_v44 }
0x14fc   :  { %20534 = vmatpush3.bf16.msra.mxu0 %v22460_v49  ;;  %20552 = vmatpush3.bf16.msra.mxu1 %v22434_v25 }
0x14fd   :  { %20535 = vmatprep.subr.bf16.mxu0 %v25521_v6  ;;  %20553 = vmatprep.subr.bf16.mxu1 %v25521_v6 }
0x14fe   :  { %18078 = vmatprep.mubr.msk.f32.mxu0 %vm21482_vm3, %v25523_v52 }
0x1500   :  { %20537 = vmatpush3.bf16.msra.mxu0 %v22466_v1  ;;  %20555 = vmatpush3.bf16.msra.mxu1 %v22446_v54 }
0x1501   :  { %20538 = vmatprep.subr.bf16.mxu0 %v25521_v6  ;;  %20568 = vmatprep.subr.bf16.mxu1 %v25521_v6 }
0x1503   :  { %18098 = vmatmul.mubr.f32.vlgmr.msra.gmra.mrb[90].mxu1 %v9605_v22 }
0x1504   :  { %20540 = vmatpush3.bf16.msra.mxu0 %v22482_v2  ;;  %20570 = vmatpush3.bf16.msra.mxu1 %v22387_v45 }
0x1505   :  { %20541 = vmatprep.subr.bf16.mxu0 %v25521_v6  ;;  %20571 = vmatprep.subr.bf16.mxu1 %v25521_v6 }
0x1506   :  { %18135 = vmatprep.mubr.msk.f32.mxu1 %vm21482_vm3, %v25523_v52 }
0x1508   :  { %20543 = vmatpush3.bf16.msra.mxu0 %v22496_v37  ;;  %20573 = vmatpush3.bf16.msra.mxu1 %v22419_v40 }
0x1509   :  { %20556 = vmatprep.subr.bf16.mxu0 %v25521_v6  ;;  %20574 = vmatprep.subr.bf16.mxu1 %v25521_v6 }
0x150b   :  { %18079 = vmatmul.mubr.f32.vlgmr.msra.gmra.mrb[82].mxu0 %v9604_v36 }
0x150c   :  { %20558 = vmatpush3.bf16.msra.mxu0 %v25600_v17  ;;  %20576 = vmatpush3.bf16.msra.mxu1 %v22434_v25 }
0x150d   :  { %20559 = vmatprep.subr.bf16.mxu0 %v25521_v6  ;;  %20577 = vmatprep.subr.bf16.mxu1 %v25521_v6 }
0x150e   :  { %18116 = vmatprep.mubr.msk.f32.mxu0 %vm21482_vm3, %v25523_v52 }
0x1510   :  { %20561 = vmatpush3.bf16.msra.mxu0 %v25601_v38  ;;  %20579 = vmatpush3.bf16.msra.mxu1 %v22446_v54 }
0x1511   :  { %20562 = vmatprep.subr.bf16.mxu0 %v25521_v6  ;;  %20604 = vmatprep.subr.bf16.mxu1 %v25521_v6 }
0x1513   :  { %18136 = vmatmul.mubr.f32.vlgmr.msra.gmra.mrb[92].mxu1 %v24093_v5 }
0x1514   :  { %20564 = vmatpush3.bf16.msra.mxu0 %v25602_v14  ;;  %20606 = vmatpush3.bf16.msra.mxu1 %v25603_v3 }
0x1515   :  { %20565 = vmatprep.subr.bf16.mxu0 %v25521_v6  ;;  %20607 = vmatprep.subr.bf16.mxu1 %v25521_v6 }
0x1516   :  { %18205 = vmatprep.mubr.msk.f32.mxu1 %vm21482_vm3, %v25523_v52 }
0x1518   :  { %20567 = vmatpush3.bf16.msra.mxu0 %v25604_v53  ;;  %20609 = vmatpush3.bf16.msra.mxu1 %v25605_v48 }
0x1519   :  { %20580 = vmatprep.subr.bf16.mxu0 %v25521_v6  ;;  %20610 = vmatprep.subr.bf16.mxu1 %v25521_v6 }
0x151b   :  { %18117 = vmatmul.mubr.f32.vlgmr.msra.gmra.mrb[84].mxu0 %v24093_v5 }
0x151c   :  { %20582 = vmatpush3.bf16.msra.mxu0 %v22669_v28  ;;  %20612 = vmatpush3.bf16.msra.mxu1 %v25606_v35 }
0x151d   :  { %20583 = vmatprep.subr.bf16.mxu0 %v25521_v6  ;;  %20613 = vmatprep.subr.bf16.mxu1 %v25521_v6 }
0x151e   :  { %18170 = vmatprep.mubr.msk.f32.mxu0 %vm21482_vm3, %v25523_v52 }
0x1520   :  { %20585 = vmatpush3.bf16.msra.mxu0 %v22683_v20  ;;  %20615 = vmatpush3.bf16.msra.mxu1 %v25607_v7 }
0x1521   :  { %20586 = vmatprep.subr.bf16.mxu0 %v25521_v6  ;;  %20616 = vmatprep.subr.bf16.mxu1 %v25521_v6 }
0x1524   :  { %20588 = vmatpush3.bf16.msra.mxu0 %v22711_v12  ;;  %20618 = vmatpush3.bf16.msra.mxu1 %v25608_v15 }
0x1525   :  { %20589 = vmatprep.subr.bf16.mxu0 %v25521_v6  ;;  %20619 = vmatprep.subr.bf16.mxu1 %v25521_v6 }
0x1528   :  { %20591 = vmatpush3.bf16.msra.mxu0 %v22741_v42  ;;  %20621 = vmatpush3.bf16.msra.mxu1 %v25609_v29 }
0x1529   :  { %20592 = vmatprep.subr.bf16.mxu0 %v25521_v6  ;;  %20622 = vmatprep.subr.bf16.mxu1 %v25521_v6 }
0x152c   :  { %20594 = vmatpush3.bf16.msra.mxu0 %v22776_v31  ;;  %20624 = vmatpush3.bf16.msra.mxu1 %v25610_v19 }
0x152d   :  { %20595 = vmatprep.subr.bf16.mxu0 %v25521_v6  ;;  %20625 = vmatprep.subr.bf16.mxu1 %v25521_v6 }
0x1530   :  { %20597 = vmatpush3.bf16.msra.mxu0 %v22792_v39  ;;  %20627 = vmatpush3.bf16.msra.mxu1 %v25611_v32 }
0x1531   :  { %20598 = vmatprep.subr.bf16.mxu0 %v25521_v6  ;;  %20652 = vmatprep.subr.bf16.mxu1 %v25521_v6 }
0x1534   :  { %20600 = vmatpush3.bf16.msra.mxu0 %v22808_v24 }
0x1535   :  { %20601 = vmatprep.subr.bf16.mxu0 %v25521_v6 }
0x1538   :  { %20603 = vmatpush3.bf16.msra.mxu0 %v22856_v18 }
0x1539   :  { %20628 = vmatprep.subr.bf16.mxu0 %v25521_v6 }
0x1576   :  { %v9097_v9 = vpop.f32.mrb[82].mxu1 }
0x1577   :  { %v17883_v51 = vpop.f32.mrb[83].mxu1 }
0x157e   :  { %v8946_v8 = vpop.f32.mrb[74].mxu0 }
0x157f   :  { %v9098_v47 = vadd.f32 %v9097_v9, %v8946_v8  ;;  %v17848_v5 = vpop.f32.mrb[75].mxu0 }
0x1596   :  { %v9290_v36 = vpop.f32.mrb[84].mxu1 }
0x1597   :  { %v17953_v22 = vpop.f32.mrb[85].mxu1 }
0x159e   :  { %v9201_v26 = vpop.f32.mrb[76].mxu0 }
0x159f   :  { %v9202_v44 = vadd.f32 %v9201_v26, %v9098_v47  ;;  %v17918_v32 = vpop.f32.mrb[77].mxu0 }
0x15a1   :  { %v9291_v19 = vadd.f32 %v9290_v36, %v9202_v44 }
0x15b6   :  { %v9496_v29 = vpop.f32.mrb[86].mxu1 }
0x15b7   :  { %v18023_v15 = vpop.f32.mrb[87].mxu1 }
0x15be   :  { %v9409_v7 = vpop.f32.mrb[78].mxu0 }
0x15bf   :  { %v9410_v35 = vadd.f32 %v9409_v7, %v9291_v19  ;;  %v17988_v48 = vpop.f32.mrb[79].mxu0 }
0x15c1   :  { %v9497_v53 = vadd.f32 %v9496_v29, %v9410_v35 }
0x15c3   :  { %v9500_v3 = vadd.f32 %v9497_v53, %v23146_v4 }
0x15c5   :  { %v13930_v14 = vmul.f32 -1.442695, %v9500_v3 }
0x15c6   :  { %v9720_v38 = vpop.f32.mrb[88].mxu1 }
0x15c7   :  { %21446 = vpow2.f32 %v13930_v14  ;;  %v18061_v51 = vpop.f32.mrb[89].mxu1 }
0x15c8   :  { %v25612_v51 = vld [vmem:[#allocation25_spill] sm:$0xff] }
0x15ce   :  { %v9609_v9 = vpop.f32.mrb[80].mxu0 }
0x15cf   :  { %v9721_v8 = vadd.f32 %v9720_v38, %v9609_v9  ;;  %v18042_v5 = vpop.f32.mrb[81].mxu0 }
0x15d1   :  { %v21447_v22 = vpop.eup %21446 }
0x15d2   :  { %v9504_v17 = vadd.f32 1.0, %v21447_v22 }
0x15d4   :  { %21448 = vrcp.f32 %v9504_v17 }
0x15d6   :  { %v9889_v32 = vpop.f32.mrb[90].mxu1 }
0x15d7   :  { %v18099_v47 = vpop.f32.mrb[91].mxu1 }
0x15de   :  { %v21449_v36 = vpop.eup %21448  ;;  %v9808_v15 = vpop.f32.mrb[82].mxu0 }
0x15df   :  { %v9809_v26 = vadd.f32 %v9808_v15, %v9721_v8  ;;  %v18080_v7 = vpop.f32.mrb[83].mxu0  ;;  %v9507_v48 = vmul.f32 2.0, %v21449_v36 }
0x15e1   :  { %v13931_v35 = vadd.f32 -1.0, %v9507_v48  ;;  %v9890_v29 = vadd.f32 %v9889_v32, %v9809_v26 }
0x15e3   :  { %9511 = vrot.lane.b32.xlu1 %v13931_v35, %s21483_s4  ;;  %v9509_v35 = vmul.f32 %v21449_v36, %v23990_v43 }
0x15e6   :  { %v10063_v3 = vpop.f32.mrb[92].mxu1 }
0x15e7   :  { %v18137_v14 = vpop.f32.mrb[93].mxu1 }
0x15ee   :  { %v9984_v53 = vpop.f32.mrb[84].mxu0 }
0x15ef   :  { %v9985_v19 = vadd.f32 %v9984_v53, %v9890_v29  ;;  %v18118_v38 = vpop.f32.mrb[85].mxu0 }
0x15f1   :  { %v10064_v44 = vadd.f32 %v10063_v3, %v9985_v19 }
0x15f3   :  { %v10067_v9 = vadd.f32 %v10064_v44, %v25612_v51 }
0x15f5   :  { %v13932_v17 = vmul.f32 -1.442695, %v10067_v9 }
0x15f7   :  { %21450 = vpow2.f32 %v13932_v17 }
0x1601   :  { %v21451_v5 = vpop.eup %21450 }
0x1602   :  { %v10071_v22 = vadd.f32 1.0, %v21451_v5 }
0x1604   :  { %21452 = vrcp.f32 %v10071_v22 }
0x160e   :  { %v21453_v8 = vpop.eup %21452 }
0x160f   :  { %v10074_v47 = vmul.f32 2.0, %v21453_v8  ;;  %v10076_v53 = vmul.f32 %v21453_v8, %v23995_v58 }
0x1611   :  { %v13933_v15 = vadd.f32 -1.0, %v10074_v47 }
0x1613   :  { %10078 = vrot.lane.b32.xlu0 %v13933_v15, %s21483_s4 }
0x1655   :  { %v9512_v32 = vpop.permute.xlu1 %9511 }
0x1656   :  { %v9514_v26 = vmul.f32 %v21449_v36, %v9512_v32 }
0x1658   :  { %9516 = vrot.lane.b32.xlu1 %v9514_v26, %s21484_s19 }
0x1685   :  { %v10079_v7 = vpop.permute.xlu0 %10078 }
0x1686   :  { %v10081_v48 = vmul.f32 %v21453_v8, %v10079_v7 }
0x1688   :  { %10083 = vrot.lane.b32.xlu0 %v10081_v48, %s21484_s19 }
0x16ca   :  { %v9517_v29 = vpop.permute.xlu1 %9516 }
0x16cb   :  { %v24199_v3 = vadd.f32 %v9517_v29, %v9509_v35 }
0x16cd   :  { %21454 = vtanh.f32 %v24199_v3 }
0x16d7   :  { %v21455_v14 = vpop.eup %21454 }
0x16d8   :  { %9522 = vrot.lane.b32.xlu1 %v21455_v14, %s21483_s4 }
0x16fa   :  { %v10084_v19 = vpop.permute.xlu0 %10083 }
0x16fb   :  { %v24204_v38 = vadd.f32 %v10084_v19, %v10076_v53  ;;  %v25621_v53 = vld [vmem:[#allocation6_spill] sm:$0xff]  ;;  %v25622_v19 = vld [vmem:[#allocation11_spill] sm:$0xff] }
0x16fd   :  { %21456 = vtanh.f32 %v24204_v38 }
0x1707   :  { %v21457_v44 = vpop.eup %21456 }
0x1708   :  { %10089 = vrot.lane.b32.xlu0 %v21457_v44, %s21483_s4  ;;  %v25623_v44 = vld [vmem:[#allocation8_spill] sm:$0xff] }
0x174a   :  { %v9523_v9 = vpop.permute.xlu1 %9522 }
0x174b   :  { %v9525_v17 = vmul.f32 %v21449_v36, %v9523_v9 }
0x177a   :  { %v10090_v51 = vpop.permute.xlu0 %10089 }
0x177b   :  { %v10092_v43 = vmul.f32 %v21453_v8, %v10090_v51  ;;  %v25624_v51 = vld [vmem:[#allocation13_spill] sm:$0xff] }
0x177d   :  { %10097 = vrot.lane.b32.xlu1 %v10092_v43, %s21483_s4  ;;  %10094 = vrot.lane.b32.xlu0 %v10092_v43, %s21484_s19 }
0x1781   :  { %10101 = vrot.lane.b32.xlu0 %v9525_v17, %s21485_s3 }
0x17ef   :  { %v10095_v5 = vpop.permute.xlu0 %10094  ;;  %v10098_v58 = vpop.permute.xlu1 %10097 }
0x17f0   :  { %v24212_v22 = vsel %vm63_vm1, %v10095_v5, %v10098_v58 }
0x17f1   :  { %v10775_v29 = vmul.f32 %v24212_v22, %v22359_v27 }
0x17f3   :  { %v10102_v47 = vpop.permute.xlu0 %10101  ;;  %v10777_v14 = vsel %vm65_vm2, %v10775_v29, 0 }
0x17f4   :  { %v10105_v15 = vsel %vm65_vm2, %v24212_v22, %v10102_v47  ;;  %v24302_v27 = vand.u32 4294901760, %v10777_v14 }
0x17f5   :  { %v10106_v32 = vsel %vm67_vm4, %v10105_v15, %v9525_v17 }
0x17f6   :  { %v10107_v8 = vmul.f32 %v10106_v32, %v22872_v61 }
0x17f8   :  { %v24218_v26 = vand.u32 4294901760, %v10107_v8 }
0x17fa   :  { %v10190_v7 = vsub.f32 %v10107_v8, %v24218_v26  ;;  %18206 = vmatmul.mubr.f32.vlgmr.msra.gmra.mrb[94].mxu1 %v24218_v26 }
0x17fb   :  { %20654 = vmatpush3.bf16.msra.mxu1 %v22669_v28  ;;  %18275 = vmatprep.mubr.msk.f32.mxu1 %vm21482_vm3, %v25523_v52 }
0x17fc   :  { %20655 = vmatprep.subr.bf16.mxu1 %v25521_v6  ;;  %v10191_v36 = vand.u32 4294901760, %v10190_v7 }
0x17fe   :  { %v10192_v48 = vsub.f32 %v10190_v7, %v10191_v36 }
0x17ff   :  { %20657 = vmatpush3.bf16.msra.mxu1 %v22683_v20 }
0x1800   :  { %20658 = vmatprep.subr.bf16.mxu1 %v25521_v6  ;;  %v10193_v35 = vand.u32 4294901760, %v10192_v48 }
0x1802   :  { %18171 = vmatmul.mubr.f32.vlgmr.msra.gmra.mrb[86].mxu0 %v10193_v35 }
0x1803   :  { %20630 = vmatpush3.bf16.msra.mxu0 %v25550_v16  ;;  %20660 = vmatpush3.bf16.msra.mxu1 %v22711_v12 }
0x1804   :  { %20631 = vmatprep.subr.bf16.mxu0 %v25521_v6  ;;  %20661 = vmatprep.subr.bf16.mxu1 %v25521_v6 }
0x1805   :  { %18240 = vmatprep.mubr.msk.f32.mxu0 %vm21482_vm3, %v25523_v52 }
0x1807   :  { %20633 = vmatpush3.bf16.msra.mxu0 %v25551_v55  ;;  %20663 = vmatpush3.bf16.msra.mxu1 %v22741_v42 }
0x1808   :  { %20634 = vmatprep.subr.bf16.mxu0 %v25521_v6  ;;  %20664 = vmatprep.subr.bf16.mxu1 %v25521_v6 }
0x180b   :  { %20636 = vmatpush3.bf16.msra.mxu0 %v25552_v57  ;;  %20666 = vmatpush3.bf16.msra.mxu1 %v22776_v31 }
0x180c   :  { %20637 = vmatprep.subr.bf16.mxu0 %v25521_v6  ;;  %20667 = vmatprep.subr.bf16.mxu1 %v25521_v6 }
0x180f   :  { %20639 = vmatpush3.bf16.msra.mxu0 %v25553_v23  ;;  %20669 = vmatpush3.bf16.msra.mxu1 %v22792_v39 }
0x1810   :  { %20640 = vmatprep.subr.bf16.mxu0 %v25521_v6  ;;  %20670 = vmatprep.subr.bf16.mxu1 %v25521_v6 }
0x1813   :  { %20642 = vmatpush3.bf16.msra.mxu0 %v25554_v21  ;;  %20672 = vmatpush3.bf16.msra.mxu1 %v22808_v24 }
0x1814   :  { %20643 = vmatprep.subr.bf16.mxu0 %v25521_v6  ;;  %20673 = vmatprep.subr.bf16.mxu1 %v25521_v6 }
0x1817   :  { %20645 = vmatpush3.bf16.msra.mxu0 %v25555_v0  ;;  %20675 = vmatpush3.bf16.msra.mxu1 %v22856_v18 }
0x1818   :  { %20646 = vmatprep.subr.bf16.mxu0 %v25521_v6  ;;  %20700 = vmatprep.subr.bf16.mxu1 %v25521_v6 }
0x181a   :  { %18276 = vmatmul.mubr.f32.vlgmr.msra.gmra.mrb[96].mxu1 %v10191_v36 }
0x181b   :  { %20648 = vmatpush3.bf16.msra.mxu0 %v25556_v41  ;;  %20702 = vmatpush3.bf16.msra.mxu1 %v22669_v28 }
0x181c   :  { %20649 = vmatprep.subr.bf16.mxu0 %v25521_v6  ;;  %20703 = vmatprep.subr.bf16.mxu1 %v25521_v6 }
0x181d   :  { %18345 = vmatprep.mubr.msk.f32.mxu1 %vm21482_vm3, %v25523_v52 }
0x181f   :  { %20651 = vmatpush3.bf16.msra.mxu0 %v25557_v30  ;;  %20705 = vmatpush3.bf16.msra.mxu1 %v22683_v20 }
0x1820   :  { %20676 = vmatprep.subr.bf16.mxu0 %v25521_v6  ;;  %20706 = vmatprep.subr.bf16.mxu1 %v25521_v6 }
0x1822   :  { %18241 = vmatmul.mubr.f32.vlgmr.msra.gmra.mrb[88].mxu0 %v10190_v7 }
0x1823   :  { %20678 = vmatpush3.bf16.msra.mxu0 %v22957_v10  ;;  %20708 = vmatpush3.bf16.msra.mxu1 %v22711_v12 }
0x1824   :  { %20679 = vmatprep.subr.bf16.mxu0 %v25521_v6  ;;  %20709 = vmatprep.subr.bf16.mxu1 %v25521_v6 }
0x1825   :  { %18310 = vmatprep.mubr.msk.f32.mxu0 %vm21482_vm3, %v25523_v52 }
0x1827   :  { %20681 = vmatpush3.bf16.msra.mxu0 %v22967_v34  ;;  %20711 = vmatpush3.bf16.msra.mxu1 %v22741_v42 }
0x1828   :  { %20682 = vmatprep.subr.bf16.mxu0 %v25521_v6  ;;  %20712 = vmatprep.subr.bf16.mxu1 %v25521_v6 }
0x182b   :  { %20684 = vmatpush3.bf16.msra.mxu0 %v22979_v63  ;;  %20714 = vmatpush3.bf16.msra.mxu1 %v22776_v31 }
0x182c   :  { %20685 = vmatprep.subr.bf16.mxu0 %v25521_v6  ;;  %20715 = vmatprep.subr.bf16.mxu1 %v25521_v6 }
0x182f   :  { %20687 = vmatpush3.bf16.msra.mxu0 %v22989_v13  ;;  %20717 = vmatpush3.bf16.msra.mxu1 %v22792_v39 }
0x1830   :  { %20688 = vmatprep.subr.bf16.mxu0 %v25521_v6  ;;  %20718 = vmatprep.subr.bf16.mxu1 %v25521_v6 }
0x1833   :  { %20690 = vmatpush3.bf16.msra.mxu0 %v22999_v46  ;;  %20720 = vmatpush3.bf16.msra.mxu1 %v22808_v24 }
0x1834   :  { %20691 = vmatprep.subr.bf16.mxu0 %v25521_v6  ;;  %20721 = vmatprep.subr.bf16.mxu1 %v25521_v6 }
0x1837   :  { %20693 = vmatpush3.bf16.msra.mxu0 %v23009_v59  ;;  %20723 = vmatpush3.bf16.msra.mxu1 %v22856_v18 }
0x1838   :  { %20694 = vmatprep.subr.bf16.mxu0 %v25521_v6  ;;  %20736 = vmatprep.subr.bf16.mxu1 %v25521_v6 }
0x183a   :  { %18346 = vmatmul.mubr.f32.vlgmr.msra.gmra.mrb[98].mxu1 %v24218_v26 }
0x183b   :  { %20696 = vmatpush3.bf16.msra.mxu0 %v23019_v33  ;;  %20738 = vmatpush3.bf16.msra.mxu1 %v22543_v11  ;;  %v10853_v11 = vsub.f32 %v10777_v14, %v24302_v27 }
0x183c   :  { %20697 = vmatprep.subr.bf16.mxu0 %v25521_v6  ;;  %20739 = vmatprep.subr.bf16.mxu1 %v25521_v6 }
0x183d   :  { %18383 = vmatprep.mubr.msk.f32.mxu1 %vm21482_vm3, %v25523_v52 }
0x183f   :  { %20699 = vmatpush3.bf16.msra.mxu0 %v23032_v60  ;;  %20741 = vmatpush3.bf16.msra.mxu1 %v22552_v56  ;;  %v10854_v56 = vand.u32 4294901760, %v10853_v11 }
0x1840   :  { %20724 = vmatprep.subr.bf16.mxu0 %v25521_v6  ;;  %20742 = vmatprep.subr.bf16.mxu1 %v25521_v6 }
0x1842   :  { %18311 = vmatmul.mubr.f32.vlgmr.msra.gmra.mrb[90].mxu0 %v24218_v26 }
0x1843   :  { %20726 = vmatpush3.bf16.msra.mxu0 %v22387_v45  ;;  %20744 = vmatpush3.bf16.msra.mxu1 %v22562_v50  ;;  %v10855_v50 = vsub.f32 %v10853_v11, %v10854_v56 }
0x1844   :  { %20727 = vmatprep.subr.bf16.mxu0 %v25521_v6  ;;  %20745 = vmatprep.subr.bf16.mxu1 %v25521_v6 }
0x1845   :  { %18364 = vmatprep.mubr.msk.f32.mxu0 %vm21482_vm3, %v25523_v52 }
0x1847   :  { %20729 = vmatpush3.bf16.msra.mxu0 %v22419_v40  ;;  %20747 = vmatpush3.bf16.msra.mxu1 %v22568_v62  ;;  %v10856_v62 = vand.u32 4294901760, %v10855_v50 }
0x1848   :  { %20730 = vmatprep.subr.bf16.mxu0 %v25521_v6  ;;  %20760 = vmatprep.subr.bf16.mxu1 %v25521_v6 }
0x184a   :  { %18384 = vmatmul.mubr.f32.vlgmr.msra.gmra.mrb[100].mxu1 %v24302_v27 }
0x184b   :  { %20732 = vmatpush3.bf16.msra.mxu0 %v22434_v25  ;;  %20762 = vmatpush3.bf16.msra.mxu1 %v22387_v45 }
0x184c   :  { %20733 = vmatprep.subr.bf16.mxu0 %v25521_v6  ;;  %20763 = vmatprep.subr.bf16.mxu1 %v25521_v6 }
0x184d   :  { %18421 = vmatprep.mubr.msk.f32.mxu1 %vm21482_vm3, %v25523_v52 }
0x184f   :  { %20735 = vmatpush3.bf16.msra.mxu0 %v22446_v54  ;;  %20765 = vmatpush3.bf16.msra.mxu1 %v22419_v40 }
0x1850   :  { %20748 = vmatprep.subr.bf16.mxu0 %v25521_v6  ;;  %20766 = vmatprep.subr.bf16.mxu1 %v25521_v6 }
0x1852   :  { %18365 = vmatmul.mubr.f32.vlgmr.msra.gmra.mrb[92].mxu0 %v10856_v62 }
0x1853   :  { %20750 = vmatpush3.bf16.msra.mxu0 %v22460_v49  ;;  %20768 = vmatpush3.bf16.msra.mxu1 %v22434_v25  ;;  %v25613_v49 = vld [vmem:[#allocation9_spill] sm:$0xff] }
0x1854   :  { %20751 = vmatprep.subr.bf16.mxu0 %v25521_v6  ;;  %20769 = vmatprep.subr.bf16.mxu1 %v25521_v6 }
0x1855   :  { %18402 = vmatprep.mubr.msk.f32.mxu0 %vm21482_vm3, %v25523_v52 }
0x1857   :  { %20753 = vmatpush3.bf16.msra.mxu0 %v22466_v1  ;;  %20771 = vmatpush3.bf16.msra.mxu1 %v22446_v54  ;;  %v25617_v1 = vld [vmem:[#allocation17_spill] sm:$0xff] }
0x1858   :  { %20754 = vmatprep.subr.bf16.mxu0 %v25521_v6  ;;  %20784 = vmatprep.subr.bf16.mxu1 %v25521_v6 }
0x185a   :  { %18422 = vmatmul.mubr.f32.vlgmr.msra.gmra.mrb[102].mxu1 %v10854_v56 }
0x185b   :  { %20756 = vmatpush3.bf16.msra.mxu0 %v22482_v2  ;;  %20786 = vmatpush3.bf16.msra.mxu1 %v22387_v45  ;;  %v25614_v45 = vld [vmem:[#allocation37_spill] sm:$0xff] }
0x185c   :  { %20757 = vmatprep.subr.bf16.mxu0 %v25521_v6  ;;  %20787 = vmatprep.subr.bf16.mxu1 %v25521_v6  ;;  %v25619_v2 = vld [vmem:[#allocation5_spill] sm:$0xff] }
0x185d   :  { %18459 = vmatprep.mubr.msk.f32.mxu1 %vm21482_vm3, %v25523_v52 }
0x185f   :  { %20759 = vmatpush3.bf16.msra.mxu0 %v22496_v37  ;;  %20789 = vmatpush3.bf16.msra.mxu1 %v22419_v40  ;;  %v25615_v40 = vld [vmem:[#allocation2_spill] sm:$0xff] }
0x1860   :  { %20772 = vmatprep.subr.bf16.mxu0 %v25521_v6  ;;  %20790 = vmatprep.subr.bf16.mxu1 %v25521_v6  ;;  %v25620_v37 = vld [vmem:[#allocation10_spill] sm:$0xff] }
0x1862   :  { %18403 = vmatmul.mubr.f32.vlgmr.msra.gmra.mrb[94].mxu0 %v10853_v11 }
0x1863   :  { %20774 = vmatpush3.bf16.msra.mxu0 %v25613_v49  ;;  %20792 = vmatpush3.bf16.msra.mxu1 %v22434_v25  ;;  %v25616_v25 = vld [vmem:[#allocation30_spill] sm:$0xff] }
0x1864   :  { %20775 = vmatprep.subr.bf16.mxu0 %v25521_v6  ;;  %20793 = vmatprep.subr.bf16.mxu1 %v25521_v6 }
0x1865   :  { %18440 = vmatprep.mubr.msk.f32.mxu0 %vm21482_vm3, %v25523_v52 }
0x1867   :  { %20777 = vmatpush3.bf16.msra.mxu0 %v25614_v45  ;;  %20795 = vmatpush3.bf16.msra.mxu1 %v22446_v54  ;;  %v25618_v54 = vld [vmem:[#allocation32_spill] sm:$0xff] }
0x1868   :  { %20778 = vmatprep.subr.bf16.mxu0 %v25521_v6  ;;  %20820 = vmatprep.subr.bf16.mxu1 %v25521_v6 }
0x186a   :  { %18460 = vmatmul.mubr.f32.vlgmr.msra.gmra.mrb[104].mxu1 %v24302_v27 }
0x186b   :  { %20780 = vmatpush3.bf16.msra.mxu0 %v25615_v40  ;;  %20822 = vmatpush3.bf16.msra.mxu1 %v25616_v25 }
0x186c   :  { %20781 = vmatprep.subr.bf16.mxu0 %v25521_v6  ;;  %20823 = vmatprep.subr.bf16.mxu1 %v25521_v6 }
0x186d   :  { %18529 = vmatprep.mubr.msk.f32.mxu1 %vm21482_vm3, %v25523_v52 }
0x186f   :  { %20783 = vmatpush3.bf16.msra.mxu0 %v25617_v1  ;;  %20825 = vmatpush3.bf16.msra.mxu1 %v25618_v54 }
0x1870   :  { %20796 = vmatprep.subr.bf16.mxu0 %v25521_v6  ;;  %20826 = vmatprep.subr.bf16.mxu1 %v25521_v6 }
0x1872   :  { %18441 = vmatmul.mubr.f32.vlgmr.msra.gmra.mrb[96].mxu0 %v24302_v27 }
0x1873   :  { %20798 = vmatpush3.bf16.msra.mxu0 %v22669_v28  ;;  %20828 = vmatpush3.bf16.msra.mxu1 %v25619_v2 }
0x1874   :  { %20799 = vmatprep.subr.bf16.mxu0 %v25521_v6  ;;  %20829 = vmatprep.subr.bf16.mxu1 %v25521_v6 }
0x1875   :  { %18494 = vmatprep.mubr.msk.f32.mxu0 %vm21482_vm3, %v25523_v52 }
0x1877   :  { %20801 = vmatpush3.bf16.msra.mxu0 %v22683_v20  ;;  %20831 = vmatpush3.bf16.msra.mxu1 %v25620_v37 }
0x1878   :  { %20802 = vmatprep.subr.bf16.mxu0 %v25521_v6  ;;  %20832 = vmatprep.subr.bf16.mxu1 %v25521_v6 }
0x187b   :  { %20804 = vmatpush3.bf16.msra.mxu0 %v22711_v12  ;;  %20834 = vmatpush3.bf16.msra.mxu1 %v25621_v53 }
0x187c   :  { %20805 = vmatprep.subr.bf16.mxu0 %v25521_v6  ;;  %20835 = vmatprep.subr.bf16.mxu1 %v25521_v6 }
0x187f   :  { %20807 = vmatpush3.bf16.msra.mxu0 %v22741_v42  ;;  %20837 = vmatpush3.bf16.msra.mxu1 %v25622_v19 }
0x1880   :  { %20808 = vmatprep.subr.bf16.mxu0 %v25521_v6  ;;  %20838 = vmatprep.subr.bf16.mxu1 %v25521_v6 }
0x1883   :  { %20810 = vmatpush3.bf16.msra.mxu0 %v22776_v31  ;;  %20840 = vmatpush3.bf16.msra.mxu1 %v25623_v44 }
0x1884   :  { %20811 = vmatprep.subr.bf16.mxu0 %v25521_v6  ;;  %20841 = vmatprep.subr.bf16.mxu1 %v25521_v6 }
0x1887   :  { %20813 = vmatpush3.bf16.msra.mxu0 %v22792_v39  ;;  %20843 = vmatpush3.bf16.msra.mxu1 %v25624_v51 }
0x1888   :  { %20814 = vmatprep.subr.bf16.mxu0 %v25521_v6  ;;  %20868 = vmatprep.subr.bf16.mxu1 %v25521_v6 }
0x188b   :  { %20816 = vmatpush3.bf16.msra.mxu0 %v22808_v24 }
0x188c   :  { %20817 = vmatprep.subr.bf16.mxu0 %v25521_v6 }
0x188f   :  { %20819 = vmatpush3.bf16.msra.mxu0 %v22856_v18 }
0x1890   :  { %20844 = vmatprep.subr.bf16.mxu0 %v25521_v6 }
0x18cd   :  { %v10346_v43 = vpop.f32.mrb[94].mxu1 }
0x18ce   :  { %v18207_v9 = vpop.f32.mrb[95].mxu1 }
0x18d5   :  { %v10195_v17 = vpop.f32.mrb[86].mxu0 }
0x18d6   :  { %v10347_v5 = vadd.f32 %v10346_v43, %v10195_v17  ;;  %v18172_v58 = vpop.f32.mrb[87].mxu0 }
0x18ed   :  { %v10539_v22 = vpop.f32.mrb[96].mxu1 }
0x18ee   :  { %v18277_v47 = vpop.f32.mrb[97].mxu1 }
0x18f5   :  { %v10450_v15 = vpop.f32.mrb[88].mxu0 }
0x18f6   :  { %v10451_v32 = vadd.f32 %v10450_v15, %v10347_v5  ;;  %v18242_v8 = vpop.f32.mrb[89].mxu0  ;;  %v25625_v15 = vld [vmem:[#allocation7_spill] sm:$0xff] }
0x18f8   :  { %v10540_v26 = vadd.f32 %v10539_v22, %v10451_v32 }
0x190d   :  { %v10745_v7 = vpop.f32.mrb[98].mxu1 }
0x190e   :  { %v18347_v36 = vpop.f32.mrb[99].mxu1 }
0x1915   :  { %v10658_v48 = vpop.f32.mrb[90].mxu0 }
0x1916   :  { %v10659_v35 = vadd.f32 %v10658_v48, %v10540_v26  ;;  %v18312_v29 = vpop.f32.mrb[91].mxu0 }
0x1918   :  { %v10746_v14 = vadd.f32 %v10745_v7, %v10659_v35 }
0x191a   :  { %v10749_v27 = vadd.f32 %v10746_v14, %v23146_v4 }
0x191c   :  { %v13934_v11 = vmul.f32 -1.442695, %v10749_v27 }
0x191d   :  { %v10969_v56 = vpop.f32.mrb[100].mxu1 }
0x191e   :  { %21458 = vpow2.f32 %v13934_v11  ;;  %v18385_v50 = vpop.f32.mrb[101].mxu1 }
0x1925   :  { %v10858_v62 = vpop.f32.mrb[92].mxu0 }
0x1926   :  { %v10970_v49 = vadd.f32 %v10969_v56, %v10858_v62  ;;  %v18366_v45 = vpop.f32.mrb[93].mxu0 }
0x1928   :  { %v21459_v40 = vpop.eup %21458 }
0x1929   :  { %v10753_v25 = vadd.f32 1.0, %v21459_v40 }
0x192b   :  { %21460 = vrcp.f32 %v10753_v25 }
0x192d   :  { %v11138_v1 = vpop.f32.mrb[102].mxu1 }
0x192e   :  { %v18423_v54 = vpop.f32.mrb[103].mxu1 }
0x1935   :  { %v21461_v2 = vpop.eup %21460  ;;  %v11057_v37 = vpop.f32.mrb[94].mxu0 }
0x1936   :  { %v11058_v53 = vadd.f32 %v11057_v37, %v10970_v49  ;;  %v18404_v19 = vpop.f32.mrb[95].mxu0  ;;  %v10756_v44 = vmul.f32 2.0, %v21461_v2  ;;  %v10758_v56 = vmul.f32 %v21461_v2, %v24199_v3 }
0x1938   :  { %v13935_v51 = vadd.f32 -1.0, %v10756_v44  ;;  %v11139_v43 = vadd.f32 %v11138_v1, %v11058_v53 }
0x193a   :  { %10760 = vrot.lane.b32.xlu0 %v13935_v51, %s21483_s4 }
0x193d   :  { %v11312_v9 = vpop.f32.mrb[104].mxu1 }
0x193e   :  { %v18461_v17 = vpop.f32.mrb[105].mxu1 }
0x1945   :  { %v11233_v5 = vpop.f32.mrb[96].mxu0 }
0x1946   :  { %v11234_v58 = vadd.f32 %v11233_v5, %v11139_v43  ;;  %v18442_v22 = vpop.f32.mrb[97].mxu0 }
0x1948   :  { %v11313_v47 = vadd.f32 %v11312_v9, %v11234_v58 }
0x194a   :  { %v11316_v32 = vadd.f32 %v11313_v47, %v25625_v15 }
0x194c   :  { %v13936_v8 = vmul.f32 -1.442695, %v11316_v32 }
0x194e   :  { %21462 = vpow2.f32 %v13936_v8 }
0x1958   :  { %v21463_v26 = vpop.eup %21462 }
0x1959   :  { %v11320_v7 = vadd.f32 1.0, %v21463_v26 }
0x195b   :  { %21464 = vrcp.f32 %v11320_v7  ;;  %v12052_v7 = vld [vmem:[%s25194_s5] sm:$0xff] }
0x1965   :  { %v21465_v36 = vpop.eup %21464 }
0x1966   :  { %v11323_v48 = vmul.f32 2.0, %v21465_v36  ;;  %v11325_v45 = vmul.f32 %v21465_v36, %v24204_v38 }
0x1968   :  { %v13937_v35 = vadd.f32 -1.0, %v11323_v48  ;;  %v12054_v48 = vld [vmem:[%s25194_s5 + $0x10] sm:$0xff] }
0x196a   :  { %11327 = vrot.lane.b32.xlu1 %v13937_v35, %s21483_s4  ;;  %v12089_v35 = vand.u32 4294901760, %v12052_v7 }
0x19ac   :  { %v10761_v29 = vpop.permute.xlu0 %10760 }
0x19ad   :  { %v10763_v14 = vmul.f32 %v21461_v2, %v10761_v29 }
0x19af   :  { %10765 = vrot.lane.b32.xlu0 %v10763_v14, %s21484_s19  ;;  %v12055_v14 = vld [vmem:[%s25194_s5 + $0x18] sm:$0xff] }
0x19dc   :  { %v11328_v27 = vpop.permute.xlu1 %11327 }
0x19dd   :  { %v11330_v11 = vmul.f32 %v21465_v36, %v11328_v27  ;;  %v12095_v27 = vand.u32 4294901760, %v12054_v48 }
0x19df   :  { %11332 = vrot.lane.b32.xlu1 %v11330_v11, %s21484_s19  ;;  %v12056_v11 = vld [vmem:[%s25194_s5 + $0x20] sm:$0xff] }
0x1a21   :  { %v10766_v50 = vpop.permute.xlu0 %10765 }
0x1a22   :  { %v24408_v62 = vadd.f32 %v10766_v50, %v10758_v56  ;;  %v12057_v56 = vld [vmem:[%s25194_s5 + $0x28] sm:$0xff]  ;;  %v12098_v50 = vand.u32 4294901760, %v12055_v14 }
0x1a24   :  { %21466 = vtanh.f32 %v24408_v62 }
0x1a2e   :  { %v21467_v49 = vpop.eup %21466 }
0x1a2f   :  { %10771 = vrot.lane.b32.xlu0 %v21467_v49, %s21483_s4  ;;  %v12104_v49 = vand.u32 4294901760, %v12057_v56 }
0x1a51   :  { %v11333_v40 = vpop.permute.xlu1 %11332 }
0x1a52   :  { %v11335_v25 = vadd.f32 %v11333_v40, %v11325_v45  ;;  %v24530_v45 = vld [vmem:[%s25194_s5 + $0x30] sm:$0xff]  ;;  %v24535_v40 = vld [vmem:[%s25194_s5 + $0x38] sm:$0xff] }
0x1a54   :  { %21468 = vtanh.f32 %v11335_v25  ;;  %v24537_v25 = vsub.f32 %v12052_v7, %v12089_v35 }
0x1a5e   :  { %v21469_v1 = vpop.eup %21468 }
0x1a5f   :  { %11338 = vrot.lane.b32.xlu1 %v21469_v1, %s21483_s4 }
0x1aa1   :  { %v10772_v53 = vpop.permute.xlu0 %10771 }
0x1aa2   :  { %v10774_v3 = vmul.f32 %v21461_v2, %v10772_v53  ;;  %v24545_v53 = vsub.f32 %v12055_v14, %v12098_v50  ;;  %v24633_v14 = vld [vmem:[%s25194_s5 + $0x70] sm:$0xff] }
0x1ad1   :  { %v11339_v54 = vpop.permute.xlu1 %11338 }
0x1ad2   :  { %v11341_v37 = vmul.f32 %v21465_v36, %v11339_v54  ;;  %v12053_v36 = vld [vmem:[%s25194_s5 + $0x8] sm:$0xff]  ;;  %v24541_v54 = vsub.f32 %v12054_v48, %v12095_v27 }
0x1ad3   :  { %v12092_v29 = vand.u32 4294901760, %v12053_v36 }
0x1ad4   :  { %11346 = vrot.lane.b32.xlu0 %v11341_v37, %s21483_s4  ;;  %11343 = vrot.lane.b32.xlu1 %v11341_v37, %s21484_s19 }
0x1ad5   :  { %v24539_v1 = vsub.f32 %v12053_v36, %v12092_v29  ;;  %v24543_v37 = vpack.c.bf16 %v12092_v29, %v12089_v35 }
0x1ad8   :  { %11350 = vrot.lane.b32.xlu1 %v10774_v3, %s21485_s3 }
0x1b46   :  { %v11344_v19 = vpop.permute.xlu1 %11343  ;;  %v11347_v44 = vpop.permute.xlu0 %11346 }
0x1b47   :  { %v11353_v38 = vsel %vm63_vm1, %v11344_v19, %v11347_v44  ;;  %v24549_v19 = vsub.f32 %v12057_v56, %v12104_v49  ;;  %v12107_v44 = vand.u32 4294901760, %v24530_v45 }
0x1b4a   :  { %v11351_v51 = vpop.permute.xlu1 %11350 }
0x1b4b   :  { %v11354_v43 = vsel %vm65_vm2, %v11353_v38, %v11351_v51  ;;  %v12195_v38 = vand.u32 4294901760, %v24537_v25  ;;  %v12202_v51 = vand.u32 4294901760, %v24539_v1 }
0x1b4c   :  { %v11355_v9 = vsel %vm67_vm4, %v11354_v43, %v10774_v3  ;;  %v12209_v43 = vand.u32 4294901760, %v24541_v54 }
0x1b4d   :  { %v11356_v17 = vmul.f32 %v11355_v9, %v22872_v61  ;;  %v12110_v9 = vand.u32 4294901760, %v24535_v40 }
0x1b4f   :  { %v24421_v5 = vand.u32 4294901760, %v11356_v17 }
0x1b51   :  { %v11439_v58 = vsub.f32 %v11356_v17, %v24421_v5  ;;  %18530 = vmatmul.mubr.f32.vlgmr.msra.gmra.mrb[106].mxu1 %v24421_v5  ;;  %v12216_v17 = vand.u32 4294901760, %v24545_v53 }
0x1b52   :  { %20870 = vmatpush3.bf16.msra.mxu1 %v22669_v28  ;;  %18599 = vmatprep.mubr.msk.f32.mxu1 %vm21482_vm3, %v25523_v52 }
0x1b53   :  { %20871 = vmatprep.subr.bf16.mxu1 %v25521_v6  ;;  %v11440_v2 = vand.u32 4294901760, %v11439_v58 }
0x1b55   :  { %v11441_v22 = vsub.f32 %v11439_v58, %v11440_v2 }
0x1b56   :  { %20873 = vmatpush3.bf16.msra.mxu1 %v22683_v20 }
0x1b57   :  { %20874 = vmatprep.subr.bf16.mxu1 %v25521_v6  ;;  %v11442_v61 = vand.u32 4294901760, %v11441_v22  ;;  %v12196_v22 = vsub.f32 %v24537_v25, %v12195_v38 }
0x1b59   :  { %18495 = vmatmul.mubr.f32.vlgmr.msra.gmra.mrb[98].mxu0 %v11442_v61  ;;  %v12203_v61 = vsub.f32 %v24539_v1, %v12202_v51 }
0x1b5a   :  { %20846 = vmatpush3.bf16.msra.mxu0 %v25550_v16  ;;  %20876 = vmatpush3.bf16.msra.mxu1 %v22711_v12 }
0x1b5b   :  { %20847 = vmatprep.subr.bf16.mxu0 %v25521_v6  ;;  %20877 = vmatprep.subr.bf16.mxu1 %v25521_v6 }
0x1b5c   :  { %18564 = vmatprep.mubr.msk.f32.mxu0 %vm21482_vm3, %v25523_v52 }
0x1b5e   :  { %20849 = vmatpush3.bf16.msra.mxu0 %v25551_v55  ;;  %20879 = vmatpush3.bf16.msra.mxu1 %v22741_v42 }
0x1b5f   :  { %20850 = vmatprep.subr.bf16.mxu0 %v25521_v6  ;;  %20880 = vmatprep.subr.bf16.mxu1 %v25521_v6 }
0x1b62   :  { %20852 = vmatpush3.bf16.msra.mxu0 %v25552_v57  ;;  %20882 = vmatpush3.bf16.msra.mxu1 %v22776_v31 }
0x1b63   :  { %20853 = vmatprep.subr.bf16.mxu0 %v25521_v6  ;;  %20883 = vmatprep.subr.bf16.mxu1 %v25521_v6 }
0x1b66   :  { %20855 = vmatpush3.bf16.msra.mxu0 %v25553_v23  ;;  %20885 = vmatpush3.bf16.msra.mxu1 %v22792_v39 }
0x1b67   :  { %20856 = vmatprep.subr.bf16.mxu0 %v25521_v6  ;;  %20886 = vmatprep.subr.bf16.mxu1 %v25521_v6 }
0x1b6a   :  { %20858 = vmatpush3.bf16.msra.mxu0 %v25554_v21  ;;  %20888 = vmatpush3.bf16.msra.mxu1 %v22808_v24 }
0x1b6b   :  { %20859 = vmatprep.subr.bf16.mxu0 %v25521_v6  ;;  %20889 = vmatprep.subr.bf16.mxu1 %v25521_v6 }
0x1b6e   :  { %20861 = vmatpush3.bf16.msra.mxu0 %v25555_v0  ;;  %20891 = vmatpush3.bf16.msra.mxu1 %v22856_v18 }
0x1b6f   :  { %20862 = vmatprep.subr.bf16.mxu0 %v25521_v6  ;;  %20916 = vmatprep.subr.bf16.mxu1 %v25521_v6 }
0x1b71   :  { %18600 = vmatmul.mubr.f32.vlgmr.msra.gmra.mrb[108].mxu1 %v11440_v2  ;;  %v24562_v2 = vsub.f32 %v24530_v45, %v12107_v44 }
0x1b72   :  { %20864 = vmatpush3.bf16.msra.mxu0 %v25556_v41  ;;  %20918 = vmatpush3.bf16.msra.mxu1 %v22669_v28 }
0x1b73   :  { %20865 = vmatprep.subr.bf16.mxu0 %v25521_v6  ;;  %20919 = vmatprep.subr.bf16.mxu1 %v25521_v6 }
0x1b74   :  { %18669 = vmatprep.mubr.msk.f32.mxu1 %vm21482_vm3, %v25523_v52 }
0x1b76   :  { %20867 = vmatpush3.bf16.msra.mxu0 %v25557_v30  ;;  %20921 = vmatpush3.bf16.msra.mxu1 %v22683_v20 }
0x1b77   :  { %20892 = vmatprep.subr.bf16.mxu0 %v25521_v6  ;;  %20922 = vmatprep.subr.bf16.mxu1 %v25521_v6 }
0x1b79   :  { %18565 = vmatmul.mubr.f32.vlgmr.msra.gmra.mrb[100].mxu0 %v11439_v58  ;;  %v12230_v58 = vand.u32 4294901760, %v24549_v19 }
0x1b7a   :  { %20894 = vmatpush3.bf16.msra.mxu0 %v22957_v10  ;;  %20924 = vmatpush3.bf16.msra.mxu1 %v22711_v12 }
0x1b7b   :  { %20895 = vmatprep.subr.bf16.mxu0 %v25521_v6  ;;  %20925 = vmatprep.subr.bf16.mxu1 %v25521_v6 }
0x1b7c   :  { %18634 = vmatprep.mubr.msk.f32.mxu0 %vm21482_vm3, %v25523_v52 }
0x1b7e   :  { %20897 = vmatpush3.bf16.msra.mxu0 %v22967_v34  ;;  %20927 = vmatpush3.bf16.msra.mxu1 %v22741_v42 }
0x1b7f   :  { %20898 = vmatprep.subr.bf16.mxu0 %v25521_v6  ;;  %20928 = vmatprep.subr.bf16.mxu1 %v25521_v6 }
0x1b82   :  { %20900 = vmatpush3.bf16.msra.mxu0 %v22979_v63  ;;  %20930 = vmatpush3.bf16.msra.mxu1 %v22776_v31 }
0x1b83   :  { %20901 = vmatprep.subr.bf16.mxu0 %v25521_v6  ;;  %20931 = vmatprep.subr.bf16.mxu1 %v25521_v6 }
0x1b86   :  { %20903 = vmatpush3.bf16.msra.mxu0 %v22989_v13  ;;  %20933 = vmatpush3.bf16.msra.mxu1 %v22792_v39 }
0x1b87   :  { %20904 = vmatprep.subr.bf16.mxu0 %v25521_v6  ;;  %20934 = vmatprep.subr.bf16.mxu1 %v25521_v6 }
0x1b8a   :  { %20906 = vmatpush3.bf16.msra.mxu0 %v22999_v46  ;;  %20936 = vmatpush3.bf16.msra.mxu1 %v22808_v24 }
0x1b8b   :  { %20907 = vmatprep.subr.bf16.mxu0 %v25521_v6  ;;  %20937 = vmatprep.subr.bf16.mxu1 %v25521_v6 }
0x1b8e   :  { %20909 = vmatpush3.bf16.msra.mxu0 %v23009_v59  ;;  %20939 = vmatpush3.bf16.msra.mxu1 %v22856_v18 }
0x1b8f   :  { %20910 = vmatprep.subr.bf16.mxu0 %v25521_v6  ;;  %20940 = vmatprep.subr.bf16.mxu1 %v25521_v6 }
0x1b91   :  { %18670 = vmatmul.mubr.f32.vlgmr.msra.gmra.mrb[110].mxu1 %v24421_v5 }
0x1b92   :  { %20912 = vmatpush3.bf16.msra.mxu0 %v23019_v33  ;;  %20942 = vmatpush1.bf16.msra.mxu1 %v24543_v37 }
0x1b93   :  { %20913 = vmatprep.subr.bf16.mxu0 %v25521_v6  ;;  %20943 = vmatprep.subr.bf16.mxu1 %v25521_v6 }
0x1b96   :  { %20915 = vmatpush3.bf16.msra.mxu0 %v23032_v60 }
0x1b97   :  { %20976 = vmatprep.subr.bf16.mxu0 %v25521_v6 }
0x1b99   :  { %18635 = vmatmul.mubr.f32.vlgmr.msra.gmra.mrb[102].mxu0 %v24421_v5 }
0x1c24   :  { %v11595_v42 = vpop.f32.mrb[106].mxu1 }
0x1c25   :  { %v18531_v28 = vpop.f32.mrb[107].mxu1 }
0x1c26   :  { %v24574_v28 = vsub.f32 %v24535_v40, %v12110_v9  ;;  %v24648_v40 = vpack.c.bf16 %v12110_v9, %v12107_v44  ;;  %v12131_v44 = vand.u32 4294901760, %v24633_v14 }
0x1c2c   :  { %v11444_v20 = vpop.f32.mrb[98].mxu0 }
0x1c2d   :  { %v11596_v12 = vadd.f32 %v11595_v42, %v11444_v20  ;;  %v18496_v31 = vpop.f32.mrb[99].mxu0  ;;  %v12210_v42 = vsub.f32 %v24541_v54, %v12209_v43  ;;  %v12217_v20 = vsub.f32 %v24545_v53, %v12216_v17 }
0x1c2e   :  { %v12231_v31 = vsub.f32 %v24549_v19, %v12230_v58 }
0x1c44   :  { %v11788_v39 = vpop.f32.mrb[108].mxu1 }
0x1c45   :  { %v18601_v24 = vpop.f32.mrb[109].mxu1 }
0x1c46   :  { %v12060_v24 = vld [vmem:[%s25194_s5 + $0x40] sm:$0xff] }
0x1c4c   :  { %v11699_v18 = vpop.f32.mrb[100].mxu0 }
0x1c4d   :  { %v11700_v34 = vadd.f32 %v11699_v18, %v11596_v12  ;;  %v18566_v10 = vpop.f32.mrb[101].mxu0  ;;  %v12197_v18 = vand.u32 4294901760, %v12196_v22 }
0x1c4e   :  { %v12211_v10 = vand.u32 4294901760, %v12210_v42 }
0x1c4f   :  { %v11789_v63 = vadd.f32 %v11788_v39, %v11700_v34  ;;  %v12237_v39 = vand.u32 4294901760, %v24562_v2  ;;  %v12204_v34 = vand.u32 4294901760, %v12203_v61 }
0x1c64   :  { %v11994_v13 = vpop.f32.mrb[110].mxu1 }
0x1c65   :  { %v18671_v46 = vpop.f32.mrb[111].mxu1 }
0x1c66   :  { %v12218_v46 = vand.u32 4294901760, %v12217_v20 }
0x1c6c   :  { %v11907_v59 = vpop.f32.mrb[102].mxu0 }
0x1c6d   :  { %v11908_v33 = vadd.f32 %v11907_v59, %v11789_v63  ;;  %v18636_v60 = vpop.f32.mrb[103].mxu0  ;;  %v25372_v63 = vand.u32 4294901760, %v24574_v28 }
0x1c6e   :  { %v12238_v60 = vsub.f32 %v24562_v2, %v12237_v39 }
0x1c6f   :  { %v11995_v16 = vadd.f32 %v11994_v13, %v11908_v33  ;;  %v12061_v13 = vld [vmem:[%s25194_s5 + $0x48] sm:$0xff]  ;;  %v12232_v33 = vand.u32 4294901760, %v12231_v31 }
0x1c70   :  { %v12239_v36 = vand.u32 4294901760, %v12238_v60 }
0x1c71   :  { %v11998_v55 = vadd.f32 %v11995_v16, %v23146_v4  ;;  %v24599_v16 = vld [vmem:[%s25194_s5 + $0x50] sm:$0xff] }
0x1c72   :  { %v12119_v7 = vand.u32 4294901760, %v24599_v16 }
0x1c73   :  { %v13938_v57 = vmul.f32 -1.442695, %v11998_v55  ;;  %v20977_v55 = vpack.c.bf16 %v12204_v34, %v12197_v18 }
0x1c74   :  { %v24637_v56 = vsub.f32 %v24599_v16, %v12119_v7 }
0x1c75   :  { %21470 = vpow2.f32 %v13938_v57  ;;  %v12245_v57 = vsub.f32 %v24574_v28, %v25372_v63  ;;  %20978 = vmatpush1.bf16.msra.mxu0 %v20977_v55 }
0x1c76   :  { %20979 = vmatprep.subr.bf16.mxu0 %v25521_v6  ;;  %v25363_v42 = vand.u32 4294901760, %v24637_v56 }
0x1c78   :  { %v12266_v34 = vsub.f32 %v24637_v56, %v25363_v42 }
0x1c7a   :  { %v12267_v55 = vand.u32 4294901760, %v12266_v34 }
0x1c7f   :  { %v21471_v23 = vpop.eup %21470 }
0x1c80   :  { %v12002_v21 = vadd.f32 1.0, %v21471_v23  ;;  %v24604_v23 = vpack.c.bf16 %v12098_v50, %v12095_v27  ;;  %v12246_v27 = vand.u32 4294901760, %v12245_v57 }
0x1c82   :  { %21472 = vrcp.f32 %v12002_v21  ;;  %v12113_v21 = vand.u32 4294901760, %v12060_v24  ;;  %20945 = vmatpush1.bf16.msra.mxu1 %v24604_v23 }
0x1c83   :  { %20946 = vmatprep.subr.bf16.mxu1 %v25521_v6 }
0x1c8c   :  { %v24500_v0 = vpop.eup %21472 }
0x1c8d   :  { %v12005_v41 = vmul.f32 2.0, %v24500_v0  ;;  %v12007_v4 = vmul.f32 %v24500_v0, %v24408_v62  ;;  %v12101_v62 = vand.u32 4294901760, %v12056_v11 }
0x1c8f   :  { %v13939_v30 = vadd.f32 -1.0, %v12005_v41  ;;  %v24547_v3 = vsub.f32 %v12056_v11, %v12101_v62  ;;  %v12063_v41 = vld [vmem:[%s25194_s5 + $0x58] sm:$0xff] }
0x1c90   :  { %v12122_v35 = vand.u32 4294901760, %v12063_v41 }
0x1c91   :  { %12009 = vrot.lane.b32.xlu0 %v13939_v30, %s21483_s4  ;;  %v12223_v5 = vand.u32 4294901760, %v24547_v3  ;;  %v24612_v30 = vld [vmem:[%s25194_s5 + $0x60] sm:$0xff] }
0x1c92   :  { %v12125_v29 = vand.u32 4294901760, %v24612_v30  ;;  %v24646_v45 = vsub.f32 %v12063_v41, %v12122_v35 }
0x1c93   :  { %v12224_v12 = vsub.f32 %v24547_v3, %v12223_v5 }
0x1c94   :  { %v24653_v22 = vsub.f32 %v24612_v30, %v12125_v29  ;;  %v12074_v30 = vld [vmem:[%s25194_s5 + $0xb0] sm:$0xff] }
0x1c95   :  { %v12225_v59 = vand.u32 4294901760, %v12224_v12  ;;  %v25362_v12 = vand.u32 4294901760, %v24646_v45 }
0x1c97   :  { %v12273_v60 = vsub.f32 %v24646_v45, %v25362_v12 }
0x1d03   :  { %v12010_v47 = vpop.permute.xlu0 %12009 }
0x1d04   :  { %v12012_v15 = vmul.f32 %v24500_v0, %v12010_v47  ;;  %v20980_v47 = vpack.c.bf16 %v12218_v46, %v12211_v10  ;;  %v25361_v10 = vand.u32 4294901760, %v24653_v22  ;;  %v24683_v46 = vsub.f32 %v24633_v14, %v12131_v44 }
0x1d06   :  { %12014 = vrot.lane.b32.xlu1 %v12012_v15, %s21484_s19  ;;  %v12116_v15 = vand.u32 4294901760, %v12061_v13  ;;  %20981 = vmatpush1.bf16.msra.mxu0 %v20980_v47  ;;  %v12280_v57 = vsub.f32 %v24653_v22, %v25361_v10  ;;  %v25358_v41 = vand.u32 4294901760, %v24683_v46 }
0x1d07   :  { %20982 = vmatprep.subr.bf16.mxu0 %v25521_v6 }
0x1d08   :  { %v24627_v48 = vsub.f32 %v12061_v13, %v12116_v15  ;;  %v24673_v18 = vpack.c.bf16 %v12116_v15, %v12113_v21  ;;  %v12274_v15 = vand.u32 4294901760, %v12273_v60  ;;  %v12068_v60 = vld [vmem:[%s25194_s5 + $0x80] sm:$0xff] }
0x1d78   :  { %v12015_v32 = vpop.permute.xlu1 %12014 }
0x1d79   :  { %v12017_v8 = vadd.f32 %v12015_v32, %v12007_v4  ;;  %v24617_v4 = vld [vmem:[%s25194_s5 + $0x68] sm:$0xff]  ;;  %v20983_v32 = vpack.c.bf16 %v12232_v33, %v12225_v59 }
0x1d7a   :  { %v12128_v50 = vand.u32 4294901760, %v24617_v4 }
0x1d7b   :  { %21474 = vtanh.f32 %v12017_v8  ;;  %v24620_v8 = vsub.f32 %v12060_v24, %v12113_v21  ;;  %v20986_v24 = vpack.c.bf16 %v12246_v27, %v12239_v36  ;;  %20984 = vmatpush1.bf16.msra.mxu0 %v20983_v32  ;;  %v24705_v36 = vpack.c.bf16 %v12122_v35, %v12119_v7 }
0x1d7c   :  { %v24663_v20 = vsub.f32 %v24617_v4, %v12128_v50  ;;  %20985 = vmatprep.subr.bf16.mxu0 %v25521_v6  ;;  %v12281_v27 = vand.u32 4294901760, %v12280_v57  ;;  %v12137_v57 = vand.u32 4294901760, %v12068_v60  ;;  %v24775_v12 = vpack.c.bf16 %v12128_v50, %v12125_v29  ;;  %v12075_v4 = vld [vmem:[%s25194_s5 + $0xb8] sm:$0xff] }
0x1d7d   :  { %v25367_v11 = vand.u32 4294901760, %v24620_v8 }
0x1d7e   :  { %v25360_v13 = vand.u32 4294901760, %v24663_v20 }
0x1d7f   :  { %v12252_v61 = vsub.f32 %v24620_v8, %v25367_v11  ;;  %20987 = vmatpush1.bf16.msra.mxu0 %v20986_v24  ;;  %v12294_v24 = vsub.f32 %v24683_v46, %v25358_v41 }
0x1d80   :  { %v12287_v21 = vsub.f32 %v24663_v20, %v25360_v13  ;;  %20988 = vmatprep.subr.bf16.mxu0 %v25521_v6 }
0x1d81   :  { %v12253_v59 = vand.u32 4294901760, %v12252_v61  ;;  %v20992_v61 = vpack.c.bf16 %v12274_v15, %v12267_v55  ;;  %v12295_v35 = vand.u32 4294901760, %v12294_v24  ;;  %v12069_v55 = vld [vmem:[%s25194_s5 + $0x88] sm:$0xff] }
0x1d85   :  { %v21475_v26 = vpop.eup %21474 }
0x1d86   :  { %12020 = vrot.lane.b32.xlu0 %v21475_v26, %s21483_s4  ;;  %v24622_v26 = vpack.c.bf16 %v12104_v49, %v12101_v62  ;;  %v24643_v62 = vld [vmem:[%s25194_s5 + $0x78] sm:$0xff]  ;;  %v25364_v49 = vand.u32 4294901760, %v24627_v48 }
0x1d87   :  { %v12134_v31 = vand.u32 4294901760, %v24643_v62 }
0x1d88   :  { %20948 = vmatpush1.bf16.msra.mxu1 %v24622_v26  ;;  %v12259_v9 = vsub.f32 %v24627_v48, %v25364_v49 }
0x1d89   :  { %20949 = vmatprep.subr.bf16.mxu1 %v25521_v6  ;;  %v24692_v16 = vsub.f32 %v24643_v62, %v12134_v31 }
0x1d8a   :  { %v12260_v33 = vand.u32 4294901760, %v12259_v9  ;;  %v12288_v9 = vand.u32 4294901760, %v12287_v21  ;;  %v12140_v21 = vand.u32 4294901760, %v12069_v55 }
0x1d8b   :  { %v25356_v32 = vand.u32 4294901760, %v24692_v16 }
0x1d8c   :  { %20951 = vmatpush1.bf16.msra.mxu1 %v24648_v40  ;;  %v20989_v47 = vpack.c.bf16 %v12260_v33, %v12253_v59  ;;  %v20995_v7 = vpack.c.bf16 %v12288_v9, %v12281_v27  ;;  %v24729_v15 = vsub.f32 %v12069_v55, %v12140_v21  ;;  %v24734_v27 = vld [vmem:[%s25194_s5 + $0x90] sm:$0xff]  ;;  %v24760_v55 = vld [vmem:[%s25194_s5 + $0xa0] sm:$0xff] }
0x1d8d   :  { %20952 = vmatprep.subr.bf16.mxu1 %v25521_v6  ;;  %v12301_v34 = vsub.f32 %v24692_v16, %v25356_v32  ;;  %v24765_v32 = vld [vmem:[%s25194_s5 + $0xa8] sm:$0xff]  ;;  %v12149_v13 = vand.u32 4294901760, %v24760_v55 }
0x1d8e   :  { %20990 = vmatpush1.bf16.msra.mxu0 %v20989_v47  ;;  %v24727_v47 = vsub.f32 %v12068_v60, %v12137_v57  ;;  %v25359_v24 = vand.u32 4294901760, %v24729_v15 }
0x1d8f   :  { %20991 = vmatprep.subr.bf16.mxu0 %v25521_v6  ;;  %v12302_v59 = vand.u32 4294901760, %v12301_v34  ;;  %v12143_v34 = vand.u32 4294901760, %v24734_v27  ;;  %v24784_v42 = vsub.f32 %v24760_v55, %v12149_v13 }
0x1d90   :  { %20954 = vmatpush1.bf16.msra.mxu1 %v24673_v18  ;;  %v25357_v9 = vand.u32 4294901760, %v24727_v47 }
0x1d91   :  { %20955 = vmatprep.subr.bf16.mxu1 %v25521_v6  ;;  %v20998_v33 = vpack.c.bf16 %v12302_v59, %v12295_v35  ;;  %v12315_v59 = vsub.f32 %v24729_v15, %v25359_v24 }
0x1d92   :  { %20993 = vmatpush1.bf16.msra.mxu0 %v20992_v61  ;;  %v24739_v61 = vld [vmem:[%s25194_s5 + $0x98] sm:$0xff]  ;;  %v12308_v35 = vsub.f32 %v24727_v47, %v25357_v9 }
0x1d93   :  { %20994 = vmatprep.subr.bf16.mxu0 %v25521_v6  ;;  %v12316_v41 = vand.u32 4294901760, %v12315_v59 }
0x1d94   :  { %20957 = vmatpush1.bf16.msra.mxu1 %v24705_v36  ;;  %v12309_v9 = vand.u32 4294901760, %v12308_v35 }
0x1d95   :  { %20958 = vmatprep.subr.bf16.mxu1 %v25521_v6 }
0x1d96   :  { %20996 = vmatpush1.bf16.msra.mxu0 %v20995_v7  ;;  %v12146_v7 = vand.u32 4294901760, %v24739_v61  ;;  %v21001_v10 = vpack.c.bf16 %v12316_v41, %v12309_v9  ;;  %v12155_v41 = vand.u32 4294901760, %v12074_v30  ;;  %v12158_v9 = vand.u32 4294901760, %v12075_v4 }
0x1d97   :  { %20997 = vmatprep.subr.bf16.mxu0 %v25521_v6 }
0x1d98   :  { %v24755_v60 = vsub.f32 %v24739_v61, %v12146_v7  ;;  %v12152_v61 = vand.u32 4294901760, %v24765_v32  ;;  %20960 = vmatpush1.bf16.msra.mxu1 %v24775_v12  ;;  %v24802_v11 = vsub.f32 %v12075_v4, %v12158_v9 }
0x1d99   :  { %20961 = vmatprep.subr.bf16.mxu1 %v25521_v6 }
0x1d9a   :  { %20999 = vmatpush1.bf16.msra.mxu0 %v20998_v33  ;;  %v24752_v33 = vsub.f32 %v24734_v27, %v12143_v34  ;;  %v25365_v27 = vand.u32 4294901760, %v24755_v60  ;;  %v24787_v49 = vsub.f32 %v24765_v32, %v12152_v61  ;;  %v25369_v32 = vand.u32 4294901760, %v24784_v42 }
0x1d9b   :  { %21000 = vmatprep.subr.bf16.mxu0 %v25521_v6  ;;  %v25371_v4 = vand.u32 4294901760, %v24802_v11 }
0x1d9c   :  { %v25366_v24 = vand.u32 4294901760, %v24752_v33  ;;  %v12329_v59 = vsub.f32 %v24755_v60, %v25365_v27  ;;  %v25368_v55 = vand.u32 4294901760, %v24787_v49 }
0x1d9e   :  { %v12322_v35 = vsub.f32 %v24752_v33, %v25366_v24  ;;  %21002 = vmatpush1.bf16.msra.mxu0 %v21001_v10  ;;  %v12330_v50 = vand.u32 4294901760, %v12329_v59  ;;  %v24800_v24 = vsub.f32 %v12074_v30, %v12155_v41  ;;  %v24808_v10 = vpack.c.bf16 %v12134_v31, %v12131_v44 }
0x1d9f   :  { %21003 = vmatprep.subr.bf16.mxu0 %v25521_v6  ;;  %v12343_v59 = vsub.f32 %v24787_v49, %v25368_v55  ;;  %v12357_v31 = vsub.f32 %v24802_v11, %v25371_v4 }
0x1da0   :  { %v12323_v29 = vand.u32 4294901760, %v12322_v35  ;;  %v12336_v35 = vsub.f32 %v24784_v42, %v25369_v32  ;;  %v25370_v30 = vand.u32 4294901760, %v24800_v24  ;;  %20963 = vmatpush1.bf16.msra.mxu1 %v24808_v10 }
0x1da1   :  { %v12344_v62 = vand.u32 4294901760, %v12343_v59  ;;  %20964 = vmatprep.subr.bf16.mxu1 %v25521_v6  ;;  %v12358_v55 = vand.u32 4294901760, %v12357_v31 }
0x1da2   :  { %v21004_v27 = vpack.c.bf16 %v12330_v50, %v12323_v29  ;;  %v12337_v14 = vand.u32 4294901760, %v12336_v35  ;;  %v12350_v44 = vsub.f32 %v24800_v24, %v25370_v30  ;;  %v24827_v29 = vpack.c.bf16 %v12140_v21, %v12137_v57 }
0x1da3   :  { %v24833_v30 = vpack.c.bf16 %v12146_v7, %v12143_v34  ;;  %v24840_v21 = vpack.c.bf16 %v12152_v61, %v12149_v13  ;;  %v24846_v7 = vpack.c.bf16 %v12158_v9, %v12155_v41  ;;  %v21037_v13 = vpack.c.bf16 %v24729_v15, %v24727_v47 }
0x1da4   :  { %21005 = vmatpush1.bf16.msra.mxu0 %v21004_v27  ;;  %v21007_v27 = vpack.c.bf16 %v12344_v62, %v12337_v14  ;;  %v12351_v50 = vand.u32 4294901760, %v12350_v44  ;;  %20966 = vmatpush1.bf16.msra.mxu1 %v24827_v29  ;;  %v21040_v61 = vpack.c.bf16 %v24755_v60, %v24752_v33 }
0x1da5   :  { %21006 = vmatprep.subr.bf16.mxu0 %v25521_v6  ;;  %20967 = vmatprep.subr.bf16.mxu1 %v25521_v6 }
0x1da6   :  { %v21010_v59 = vpack.c.bf16 %v12358_v55, %v12351_v50  ;;  %v21046_v55 = vpack.c.bf16 %v24802_v11, %v24800_v24 }
0x1da8   :  { %21008 = vmatpush1.bf16.msra.mxu0 %v21007_v27  ;;  %20969 = vmatpush1.bf16.msra.mxu1 %v24833_v30 }
0x1da9   :  { %21009 = vmatprep.subr.bf16.mxu0 %v25521_v6  ;;  %20970 = vmatprep.subr.bf16.mxu1 %v25521_v6 }
0x1dac   :  { %21011 = vmatpush1.bf16.msra.mxu0 %v21010_v59  ;;  %20972 = vmatpush1.bf16.msra.mxu1 %v24840_v21 }
0x1dad   :  { %21012 = vmatprep.subr.bf16.mxu0 %v25521_v6  ;;  %20973 = vmatprep.subr.bf16.mxu1 %v25521_v6 }
0x1db0   :  { %20975 = vmatpush1.bf16.msra.mxu1 %v24846_v7 }
0x1db1   :  { %21156 = vmatprep.subr.bf16.mxu1 %v25521_v6 }
0x1df8   :  { %v12021_v32 = vpop.permute.xlu0 %12020 }
0x1df9   :  { %v12023_v35 = vmul.f32 %v24500_v0, %v12021_v32  ;;  %v21043_v32 = vpack.c.bf16 %v24787_v49, %v24784_v42 }
0x1dfb   :  { %12042 = vrot.lane.b32.xlu1 %v12023_v35, %s21484_s19  ;;  %v12025_v14 = vrot.slane %v12023_v35, 2  ;;  %v12036_v34 = vrot.slane %v12023_v35, 4  ;;  %v12040_v31 = vrot.slane %v12023_v35, 6 }
0x1dfd   :  { %v12027_v57 = vsub.f32 %v12023_v35, %v12025_v14 }
0x1dff   :  { %12029 = vrot.lane.b32.xlu1 %v12027_v57, %s21484_s19  ;;  %v12032_v0 = vrot.slane %v12027_v57, 4 }
0x1e01   :  { %12033 = vrot.lane.b32.xlu0 %v12032_v0, %s21483_s4 }
0x1e03   :  { %12037 = vrot.lane.b32.xlu1 %v12036_v34, %s21485_s3 }
0x1e05   :  { %12045 = vrot.lane.b32.xlu0 %v12025_v14, %s21483_s4 }
0x1e6d   :  { %v12043_v41 = vpop.permute.xlu1 %12042 }
0x1e71   :  { %v12030_v9 = vpop.permute.xlu1 %12029 }
0x1e73   :  { %v12034_v62 = vpop.permute.xlu0 %12033 }
0x1e74   :  { %v12048_v44 = vsel %vm63_vm1, %v12030_v9, %v12034_v62  ;;  %v21013_v62 = vpack.c.bf16 %v24539_v1, %v24537_v25  ;;  %v21091_v25 = vpack.c.bf16 %v12230_v58, %v12223_v5  ;;  %v25626_v1 = vand.u32 4294901760, %v24574_v28 }
0x1e75   :  { %v12038_v27 = vpop.permute.xlu1 %12037  ;;  %v25632_v5 = vand.u32 4294901760, %v24663_v20 }
0x1e76   :  { %v12049_v50 = vsel %vm65_vm2, %v12048_v44, %v12038_v27 }
0x1e77   :  { %v24862_v59 = vsel %vm67_vm4, %v12049_v50, %v12040_v31  ;;  %v12046_v14 = vpop.permute.xlu0 %12045  ;;  %v21016_v31 = vpack.c.bf16 %v24545_v53, %v24541_v54  ;;  %v25627_v54 = vand.u32 4294901760, %v24620_v8  ;;  %v25628_v53 = vand.u32 4294901760, %v24627_v48 }
0x1e78   :  { %v12083_v57 = vrot.slane %v24862_v59, 4  ;;  %v24866_v0 = vsel %vm63_vm1, %v12043_v41, %v12046_v14 }
0x1e79   :  { %v12084_v34 = vrot.slane %v24866_v0, 4 }
0x1e7a   :  { %v24869_v4 = vand.u32 4294901760, %v12083_v57 }
0x1e7b   :  { %v12086_v63 = vsel %vm65_vm2, %v12084_v34, 0 }
0x1e7c   :  { %v24873_v35 = vsub.f32 %v12083_v57, %v24869_v4  ;;  %v24875_v9 = vand.u32 4294901760, %v12086_v63 }
0x1e7e   :  { %12377 = vmatprep.mubr.f32.mxu0 %v24875_v9  ;;  %v12177_v44 = vsub.f32 %v12086_v63, %v24875_v9  ;;  %v12184_v41 = vand.u32 4294901760, %v24873_v35  ;;  %v21019_v63 = vpack.c.bf16 %v24549_v19, %v24547_v3  ;;  %v25629_v3 = vand.u32 4294901760, %v24637_v56 }
0x1e7f   :  { %12379 = vmatmul.mubr.f32.vlgmr.msra.gmra.mrb[104].mxu0 %v24869_v4  ;;  %v25630_v19 = vand.u32 4294901760, %v24646_v45 }
0x1e80   :  { %21014 = vmatpush1.bf16.msra.mxu0 %v21013_v62  ;;  %12498 = vmatprep.mubr.f32.mxu0 %v12177_v44  ;;  %v12178_v27 = vand.u32 4294901760, %v12177_v44  ;;  %v12185_v50 = vsub.f32 %v24873_v35, %v12184_v41  ;;  %v21022_v62 = vpack.c.bf16 %v24574_v28, %v24562_v2  ;;  %v25633_v2 = vand.u32 4294901760, %v24683_v46 }
0x1e81   :  { %21015 = vmatprep.subr.bf16.mxu0 %v25521_v6  ;;  %v25634_v28 = vand.u32 4294901760, %v24692_v16 }
0x1e82   :  { %v12179_v14 = vsub.f32 %v12177_v44, %v12178_v27  ;;  %v12186_v34 = vand.u32 4294901760, %v12185_v50  ;;  %v21025_v44 = vpack.c.bf16 %v24627_v48, %v24620_v8  ;;  %v21031_v50 = vpack.c.bf16 %v24663_v20, %v24653_v22 }
0x1e83   :  { %v25635_v8 = vand.u32 4294901760, %v24727_v47  ;;  %v25636_v48 = vand.u32 4294901760, %v24729_v15  ;;  %v25641_v47 = vand.u32 4294901760, %v24800_v24  ;;  %v25642_v15 = vand.u32 4294901760, %v24802_v11  ;;  %v12848_v11 = vld [vmem:[%s25195_s6 + $0x8] sm:$0xff] }
0x1e84   :  { %21017 = vmatpush1.bf16.msra.mxu0 %v21016_v31  ;;  %v12180_v57 = vand.u32 4294901760, %v12179_v14  ;;  %v21028_v31 = vpack.c.bf16 %v24646_v45, %v24637_v56  ;;  %v21034_v14 = vpack.c.bf16 %v24692_v16, %v24683_v46  ;;  %v25637_v45 = vand.u32 4294901760, %v24752_v33 }
0x1e85   :  { %21018 = vmatprep.subr.bf16.mxu0 %v25521_v6  ;;  %v21109_v56 = vpack.c.bf16 %v25636_v48, %v25635_v8  ;;  %v25639_v46 = vand.u32 4294901760, %v24784_v42  ;;  %v25640_v16 = vand.u32 4294901760, %v24787_v49 }
0x1e86   :  { %12181 = vmatprep.mubr.f32.mxu1 %v12180_v57 }
0x1e87   :  { %12187 = vmatmul.mubr.f32.vlgmr.msra.gmra.mrb[112].mxu1 %v12186_v34 }
0x1e88   :  { %21020 = vmatpush1.bf16.msra.mxu0 %v21019_v63  ;;  %18688 = vmatprep.mubr.msk.f32.mxu1 %vm21482_vm3, %v25523_v52 }
0x1e89   :  { %21021 = vmatprep.subr.bf16.mxu0 %v25521_v6 }
0x1e8c   :  { %21023 = vmatpush1.bf16.msra.mxu0 %v21022_v62 }
0x1e8d   :  { %21024 = vmatprep.subr.bf16.mxu0 %v25521_v6 }
0x1e90   :  { %21026 = vmatpush1.bf16.msra.mxu0 %v21025_v44 }
0x1e91   :  { %21027 = vmatprep.subr.bf16.mxu0 %v25521_v6 }
0x1e94   :  { %21029 = vmatpush1.bf16.msra.mxu0 %v21028_v31 }
0x1e95   :  { %21030 = vmatprep.subr.bf16.mxu0 %v25521_v6 }
0x1e98   :  { %21032 = vmatpush1.bf16.msra.mxu0 %v21031_v50 }
0x1e99   :  { %21033 = vmatprep.subr.bf16.mxu0 %v25521_v6 }
0x1e9c   :  { %21035 = vmatpush1.bf16.msra.mxu0 %v21034_v14 }
0x1e9d   :  { %21036 = vmatprep.subr.bf16.mxu0 %v25521_v6 }
0x1ea0   :  { %21038 = vmatpush1.bf16.msra.mxu0 %v21037_v13  ;;  %v21085_v13 = vpack.c.bf16 %v12202_v51, %v12195_v38  ;;  %v21094_v38 = vpack.c.bf16 %v25626_v1, %v12237_v39  ;;  %v21097_v51 = vpack.c.bf16 %v25628_v53, %v25627_v54  ;;  %v21106_v39 = vpack.c.bf16 %v25634_v28, %v25633_v2 }
0x1ea1   :  { %21039 = vmatprep.subr.bf16.mxu0 %v25521_v6 }
0x1ea4   :  { %21041 = vmatpush1.bf16.msra.mxu0 %v21040_v61  ;;  %v21088_v61 = vpack.c.bf16 %v12216_v17, %v12209_v43  ;;  %v21100_v43 = vpack.c.bf16 %v25630_v19, %v25629_v3  ;;  %v25631_v17 = vand.u32 4294901760, %v24653_v22  ;;  %v25638_v22 = vand.u32 4294901760, %v24755_v60  ;;  %v12851_v60 = vld [vmem:[%s25195_s6 + $0x20] sm:$0xff] }
0x1ea5   :  { %21042 = vmatprep.subr.bf16.mxu0 %v25521_v6 }
0x1ea6   :  { %v21103_v58 = vpack.c.bf16 %v25632_v5, %v25631_v17  ;;  %v21112_v20 = vpack.c.bf16 %v25638_v22, %v25637_v45 }
0x1ea8   :  { %21044 = vmatpush1.bf16.msra.mxu0 %v21043_v32  ;;  %v21115_v32 = vpack.c.bf16 %v25640_v16, %v25639_v46 }
0x1ea9   :  { %21045 = vmatprep.subr.bf16.mxu0 %v25521_v6 }
0x1eac   :  { %21047 = vmatpush1.bf16.msra.mxu0 %v21046_v55  ;;  %v21118_v55 = vpack.c.bf16 %v25642_v15, %v25641_v47 }
0x1ead   :  { %21048 = vmatprep.subr.bf16.mxu0 %v25521_v6 }
0x1eaf   :  { %12501 = vmatmul.mubr.f32.vlgmr.msra.gmra.mrb[104].mxu0 %v24873_v35  ;;  %v12853_v35 = vld [vmem:[%s25195_s6 + $0x30] sm:$0xff] }
0x1eb0   :  { %21050 = vmatpush1.bf16.msra.mxu0 %v24543_v37  ;;  %12597 = vmatprep.mubr.f32.mxu0 %v12178_v27 }
0x1eb1   :  { %21051 = vmatprep.subr.bf16.mxu0 %v25521_v6 }
0x1eb4   :  { %21053 = vmatpush1.bf16.msra.mxu0 %v24604_v23 }
0x1eb5   :  { %21054 = vmatprep.subr.bf16.mxu0 %v25521_v6 }
0x1eb8   :  { %21056 = vmatpush1.bf16.msra.mxu0 %v24622_v26 }
0x1eb9   :  { %21057 = vmatprep.subr.bf16.mxu0 %v25521_v6 }
0x1ebc   :  { %21059 = vmatpush1.bf16.msra.mxu0 %v24648_v40 }
0x1ebd   :  { %21060 = vmatprep.subr.bf16.mxu0 %v25521_v6 }
0x1ec0   :  { %21062 = vmatpush1.bf16.msra.mxu0 %v24673_v18 }
0x1ec1   :  { %21063 = vmatprep.subr.bf16.mxu0 %v25521_v6 }
0x1ec4   :  { %21065 = vmatpush1.bf16.msra.mxu0 %v24705_v36 }
0x1ec5   :  { %21066 = vmatprep.subr.bf16.mxu0 %v25521_v6 }
0x1ec8   :  { %21068 = vmatpush1.bf16.msra.mxu0 %v24775_v12 }
0x1ec9   :  { %21069 = vmatprep.subr.bf16.mxu0 %v25521_v6 }
0x1ecc   :  { %21071 = vmatpush1.bf16.msra.mxu0 %v24808_v10 }
0x1ecd   :  { %21072 = vmatprep.subr.bf16.mxu0 %v25521_v6 }
0x1ed0   :  { %21074 = vmatpush1.bf16.msra.mxu0 %v24827_v29 }
0x1ed1   :  { %21075 = vmatprep.subr.bf16.mxu0 %v25521_v6 }
0x1ed4   :  { %21077 = vmatpush1.bf16.msra.mxu0 %v24833_v30 }
0x1ed5   :  { %21078 = vmatprep.subr.bf16.mxu0 %v25521_v6 }
0x1ed8   :  { %21080 = vmatpush1.bf16.msra.mxu0 %v24840_v21 }
0x1ed9   :  { %21081 = vmatprep.subr.bf16.mxu0 %v25521_v6 }
0x1edc   :  { %21083 = vmatpush1.bf16.msra.mxu0 %v24846_v7 }
0x1edd   :  { %21084 = vmatprep.subr.bf16.mxu0 %v25521_v6 }
0x1edf   :  { %12601 = vmatmul.mubr.f32.vlgmr.msra.gmra.mrb[104].mxu0 %v12184_v41  ;;  %v12882_v41 = vand.u32 4294901760, %v12853_v35 }
0x1ee0   :  { %21086 = vmatpush1.bf16.msra.mxu0 %v21085_v13  ;;  %12743 = vmatprep.mubr.f32.mxu0 %v24875_v9 }
0x1ee1   :  { %21087 = vmatprep.subr.bf16.mxu0 %v25521_v6  ;;  %v25082_v14 = vsub.f32 %v12853_v35, %v12882_v41 }
0x1ee4   :  { %21089 = vmatpush1.bf16.msra.mxu0 %v21088_v61 }
0x1ee5   :  { %21090 = vmatprep.subr.bf16.mxu0 %v25521_v6 }
0x1ee8   :  { %21092 = vmatpush1.bf16.msra.mxu0 %v21091_v25 }
0x1ee9   :  { %21093 = vmatprep.subr.bf16.mxu0 %v25521_v6 }
0x1eec   :  { %21095 = vmatpush1.bf16.msra.mxu0 %v21094_v38 }
0x1eed   :  { %21096 = vmatprep.subr.bf16.mxu0 %v25521_v6 }
0x1ef0   :  { %21098 = vmatpush1.bf16.msra.mxu0 %v21097_v51 }
0x1ef1   :  { %21099 = vmatprep.subr.bf16.mxu0 %v25521_v6 }
0x1ef4   :  { %21101 = vmatpush1.bf16.msra.mxu0 %v21100_v43 }
0x1ef5   :  { %21102 = vmatprep.subr.bf16.mxu0 %v25521_v6 }
0x1ef8   :  { %21104 = vmatpush1.bf16.msra.mxu0 %v21103_v58 }
0x1ef9   :  { %21105 = vmatprep.subr.bf16.mxu0 %v25521_v6 }
0x1efc   :  { %21107 = vmatpush1.bf16.msra.mxu0 %v21106_v39 }
0x1efd   :  { %21108 = vmatprep.subr.bf16.mxu0 %v25521_v6 }
0x1f00   :  { %21110 = vmatpush1.bf16.msra.mxu0 %v21109_v56  ;;  %v12991_v56 = vand.u32 4294901760, %v25082_v14 }
0x1f01   :  { %21111 = vmatprep.subr.bf16.mxu0 %v25521_v6 }
0x1f04   :  { %21113 = vmatpush1.bf16.msra.mxu0 %v21112_v20  ;;  %v12992_v20 = vsub.f32 %v25082_v14, %v12991_v56 }
0x1f05   :  { %21114 = vmatprep.subr.bf16.mxu0 %v25521_v6 }
0x1f06   :  { %v12993_v16 = vand.u32 4294901760, %v12992_v20 }
0x1f08   :  { %21116 = vmatpush1.bf16.msra.mxu0 %v21115_v32 }
0x1f09   :  { %21117 = vmatprep.subr.bf16.mxu0 %v25521_v6 }
0x1f0c   :  { %21119 = vmatpush1.bf16.msra.mxu0 %v21118_v55 }
0x1f0d   :  { %21120 = vmatprep.subr.bf16.mxu0 %v25521_v6 }
0x1f0f   :  { %12745 = vmatmul.mubr.f32.vlgmr.msra.gmra.mrb[104].mxu0 %v24869_v4 }
0x1f10   :  { %21122 = vmatpush1.bf16.msra.mxu0 %v24543_v37  ;;  %12839 = vmatprep.mubr.f32.mxu0 %v24875_v9  ;;  %v12854_v9 = vld [vmem:[%s25195_s6 + $0x38] sm:$0xff] }
0x1f11   :  { %21123 = vmatprep.subr.bf16.mxu0 %v25521_v6  ;;  %v12885_v27 = vand.u32 4294901760, %v12854_v9 }
0x1f13   :  { %v25080_v50 = vpack.c.bf16 %v12885_v27, %v12882_v41  ;;  %v25084_v13 = vsub.f32 %v12854_v9, %v12885_v27 }
0x1f14   :  { %21125 = vmatpush1.bf16.msra.mxu0 %v24604_v23 }
0x1f15   :  { %21126 = vmatprep.subr.bf16.mxu0 %v25521_v6  ;;  %v12998_v45 = vand.u32 4294901760, %v25084_v13 }
0x1f17   :  { %v12999_v46 = vsub.f32 %v25084_v13, %v12998_v45 }
0x1f18   :  { %21128 = vmatpush1.bf16.msra.mxu0 %v24622_v26  ;;  %v12847_v26 = vld [vmem:[%s25195_s6] sm:$0xff] }
0x1f19   :  { %21129 = vmatprep.subr.bf16.mxu0 %v25521_v6  ;;  %v12864_v49 = vand.u32 4294901760, %v12847_v26  ;;  %v13000_v32 = vand.u32 4294901760, %v12999_v46 }
0x1f1b   :  { %v21178_v47 = vpack.c.bf16 %v13000_v32, %v12993_v16 }
0x1f1c   :  { %21131 = vmatpush1.bf16.msra.mxu0 %v24648_v40  ;;  %v12867_v40 = vand.u32 4294901760, %v12848_v11 }
0x1f1d   :  { %21132 = vmatprep.subr.bf16.mxu0 %v25521_v6 }
0x1f1e   :  { %v25036_v42 = vpack.c.bf16 %v12867_v40, %v12864_v49 }
0x1f20   :  { %21134 = vmatpush1.bf16.msra.mxu0 %v24673_v18  ;;  %v12850_v18 = vld [vmem:[%s25195_s6 + $0x18] sm:$0xff]  ;;  %21158 = vmatpush3.bf16.msra.mxu1 %v25036_v42 }
0x1f21   :  { %21135 = vmatprep.subr.bf16.mxu0 %v25521_v6  ;;  %v12873_v24 = vand.u32 4294901760, %v12850_v18  ;;  %21159 = vmatprep.subr.bf16.mxu1 %v25521_v6 }
0x1f23   :  { %v25074_v62 = vsub.f32 %v12850_v18, %v12873_v24  ;;  %v13940_v18 = vld [vmem:[%s25196_s8] ss:$0 sm:$0xff] }
0x1f24   :  { %21137 = vmatpush1.bf16.msra.mxu0 %v24705_v36 }
0x1f25   :  { %21138 = vmatprep.subr.bf16.mxu0 %v25521_v6  ;;  %v12970_v54 = vand.u32 4294901760, %v25074_v62 }
0x1f27   :  { %v12971_v3 = vsub.f32 %v25074_v62, %v12970_v54 }
0x1f28   :  { %21140 = vmatpush1.bf16.msra.mxu0 %v24775_v12  ;;  %v12849_v12 = vld [vmem:[%s25195_s6 + $0x10] sm:$0xff] }
0x1f29   :  { %21141 = vmatprep.subr.bf16.mxu0 %v25521_v6  ;;  %v12870_v36 = vand.u32 4294901760, %v12849_v12  ;;  %v12972_v17 = vand.u32 4294901760, %v12971_v3 }
0x1f2b   :  { %v25046_v33 = vpack.c.bf16 %v12873_v24, %v12870_v36  ;;  %v25072_v34 = vsub.f32 %v12849_v12, %v12870_v36  ;;  %v21214_v12 = vpack.c.bf16 %v12998_v45, %v12991_v56 }
0x1f2c   :  { %21143 = vmatpush1.bf16.msra.mxu0 %v24808_v10  ;;  %v12852_v10 = vld [vmem:[%s25195_s6 + $0x28] sm:$0xff] }
0x1f2d   :  { %21144 = vmatprep.subr.bf16.mxu0 %v25521_v6  ;;  %21161 = vmatpush3.bf16.msra.mxu1 %v25046_v33  ;;  %v12963_v38 = vand.u32 4294901760, %v25072_v34  ;;  %v21184_v55 = vpack.c.bf16 %v25074_v62, %v25072_v34 }
0x1f2e   :  { %21162 = vmatprep.subr.bf16.mxu1 %v25521_v6 }
0x1f2f   :  { %v12964_v51 = vsub.f32 %v25072_v34, %v12963_v38 }
0x1f30   :  { %21146 = vmatpush1.bf16.msra.mxu0 %v24827_v29  ;;  %v25056_v29 = vsub.f32 %v12847_v26, %v12864_v49  ;;  %v21190_v26 = vpack.c.bf16 %v25084_v13, %v25082_v14  ;;  %v21208_v49 = vpack.c.bf16 %v12970_v54, %v12963_v38 }
0x1f31   :  { %21147 = vmatprep.subr.bf16.mxu0 %v25521_v6  ;;  %v12965_v43 = vand.u32 4294901760, %v12964_v51 }
0x1f32   :  { %v12949_v57 = vand.u32 4294901760, %v25056_v29 }
0x1f33   :  { %v21172_v2 = vpack.c.bf16 %v12972_v17, %v12965_v43 }
0x1f34   :  { %21149 = vmatpush1.bf16.msra.mxu0 %v24833_v30  ;;  %v12876_v30 = vand.u32 4294901760, %v12851_v60  ;;  %v12950_v61 = vsub.f32 %v25056_v29, %v12949_v57 }
0x1f35   :  { %21150 = vmatprep.subr.bf16.mxu0 %v25521_v6 }
0x1f36   :  { %v25076_v44 = vsub.f32 %v12851_v60, %v12876_v30  ;;  %v12951_v1 = vand.u32 4294901760, %v12950_v61 }
0x1f38   :  { %21152 = vmatpush1.bf16.msra.mxu0 %v24840_v21  ;;  %v25058_v21 = vsub.f32 %v12848_v11, %v12867_v40  ;;  %v12977_v5 = vand.u32 4294901760, %v25076_v44 }
0x1f39   :  { %21153 = vmatprep.subr.bf16.mxu0 %v25521_v6 }
0x1f3a   :  { %v12956_v63 = vand.u32 4294901760, %v25058_v21  ;;  %v12978_v28 = vsub.f32 %v25076_v44, %v12977_v5  ;;  %v21181_v15 = vpack.c.bf16 %v25058_v21, %v25056_v29 }
0x1f3c   :  { %21155 = vmatpush1.bf16.msra.mxu0 %v24846_v7  ;;  %v12957_v25 = vsub.f32 %v25058_v21, %v12956_v63  ;;  %v12979_v8 = vand.u32 4294901760, %v12978_v28  ;;  %v21205_v11 = vpack.c.bf16 %v12956_v63, %v12949_v57 }
0x1f3e   :  { %v12958_v53 = vand.u32 4294901760, %v12957_v25 }
0x1f3f   :  { %12841 = vmatmul.mubr.f32.vlgmr.msra.gmra.mrb[104].mxu0 %v24869_v4  ;;  %v12879_v4 = vand.u32 4294901760, %v12852_v10 }
0x1f40   :  { %v21169_v19 = vpack.c.bf16 %v12958_v53, %v12951_v1  ;;  %v13941_v1 = vld [vmem:[%s25196_s8 + $0x1] ss:$0 sm:$0xff] }
0x1f41   :  { %v25060_v7 = vpack.c.bf16 %v12879_v4, %v12876_v30  ;;  %v25078_v31 = vsub.f32 %v12852_v10, %v12879_v4 }
0x1f43   :  { %21164 = vmatpush3.bf16.msra.mxu1 %v25060_v7  ;;  %v12984_v58 = vand.u32 4294901760, %v25078_v31 }
0x1f44   :  { %21165 = vmatprep.subr.bf16.mxu1 %v25521_v6 }
0x1f45   :  { %v12985_v39 = vsub.f32 %v25078_v31, %v12984_v58  ;;  %v21211_v40 = vpack.c.bf16 %v12984_v58, %v12977_v5 }
0x1f47   :  { %21167 = vmatpush3.bf16.msra.mxu1 %v25080_v50  ;;  %v12986_v48 = vand.u32 4294901760, %v12985_v39 }
0x1f48   :  { %21168 = vmatprep.subr.bf16.mxu1 %v25521_v6 }
0x1f49   :  { %v21175_v22 = vpack.c.bf16 %v12986_v48, %v12979_v8 }
0x1f5a   :  { %v25028_v37 = vpop.f32.mrb[112].mxu1 }
0x1f5b   :  { %v12190_v23 = vpop.f32.mrb[113].mxu1  ;;  %v12189_v36 = vadd.f32 %v13940_v18, %v25028_v37  ;;  %v13401_v37 = vld [vmem:[%s25197_s7] sm:$0xff] }
0x1f5c   :  { %v21187_v23 = vpack.c.bf16 %v25078_v31, %v25076_v44 }
0x2012   :  { %v12842_v24 = vpop.f32.mrb[104].mxu0 }
0x2013   :  { %v21271_v60 = vadd.f32 %v12842_v24, %v12189_v36  ;;  %v12844_v10 = vpop.f32.mrb[105].mxu0 }
0x2015   :  { %v12846_v30 = vmax.f32 %v21271_v60, 0.0 }
0x2017   :  { %v12861_v4 = vsel %vm65_vm2, %v12846_v30, 0 }
0x2018   :  { %v12936_v29 = vand.u32 4294901760, %v12861_v4 }
0x201a   :  { %v12937_v21 = vsub.f32 %v12861_v4, %v12936_v29 }
0x201c   :  { %v12938_v35 = vand.u32 4294901760, %v12937_v21 }
0x201e   :  { %v12939_v9 = vsub.f32 %v12937_v21, %v12938_v35 }
0x2020   :  { %v12940_v41 = vand.u32 4294901760, %v12939_v9 }
0x2022   :  { %18689 = vmatmul.mubr.f32.vlgmr.msra.gmra.mrb[114].mxu1 %v12940_v41 }
0x2023   :  { %21170 = vmatpush3.bf16.msra.mxu1 %v21169_v19  ;;  %18707 = vmatprep.mubr.msk.f32.mxu1 %vm21482_vm3, %v25523_v52 }
0x2024   :  { %21171 = vmatprep.subr.bf16.mxu1 %v25521_v6 }
0x2027   :  { %21173 = vmatpush3.bf16.msra.mxu1 %v21172_v2  ;;  %v13942_v2 = vld [vmem:[%s25196_s8 + $0x2] ss:$0 sm:$0xff] }
0x2028   :  { %21174 = vmatprep.subr.bf16.mxu1 %v25521_v6 }
0x202b   :  { %21176 = vmatpush3.bf16.msra.mxu1 %v21175_v22 }
0x202c   :  { %21177 = vmatprep.subr.bf16.mxu1 %v25521_v6 }
0x202f   :  { %21179 = vmatpush3.bf16.msra.mxu1 %v21178_v47 }
0x2030   :  { %21180 = vmatprep.subr.bf16.mxu1 %v25521_v6 }
0x2032   :  { %18708 = vmatmul.mubr.f32.vlgmr.msra.gmra.mrb[114].mxu1 %v12936_v29 }
0x2033   :  { %21182 = vmatpush3.bf16.msra.mxu1 %v21181_v15  ;;  %18726 = vmatprep.mubr.msk.f32.mxu1 %vm21482_vm3, %v25523_v52 }
0x2034   :  { %21183 = vmatprep.subr.bf16.mxu1 %v25521_v6 }
0x2037   :  { %21185 = vmatpush3.bf16.msra.mxu1 %v21184_v55 }
0x2038   :  { %21186 = vmatprep.subr.bf16.mxu1 %v25521_v6 }
0x203b   :  { %21188 = vmatpush3.bf16.msra.mxu1 %v21187_v23 }
0x203c   :  { %21189 = vmatprep.subr.bf16.mxu1 %v25521_v6 }
0x203f   :  { %21191 = vmatpush3.bf16.msra.mxu1 %v21190_v26 }
0x2040   :  { %21192 = vmatprep.subr.bf16.mxu1 %v25521_v6 }
0x2042   :  { %18727 = vmatmul.mubr.f32.vlgmr.msra.gmra.mrb[114].mxu1 %v12937_v21 }
0x2043   :  { %21194 = vmatpush3.bf16.msra.mxu1 %v25036_v42  ;;  %18745 = vmatprep.mubr.msk.f32.mxu1 %vm21482_vm3, %v25523_v52 }
0x2044   :  { %21195 = vmatprep.subr.bf16.mxu1 %v25521_v6 }
0x2047   :  { %21197 = vmatpush3.bf16.msra.mxu1 %v25046_v33 }
0x2048   :  { %21198 = vmatprep.subr.bf16.mxu1 %v25521_v6 }
0x204b   :  { %21200 = vmatpush3.bf16.msra.mxu1 %v25060_v7 }
0x204c   :  { %21201 = vmatprep.subr.bf16.mxu1 %v25521_v6 }
0x204f   :  { %21203 = vmatpush3.bf16.msra.mxu1 %v25080_v50 }
0x2050   :  { %21204 = vmatprep.subr.bf16.mxu1 %v25521_v6 }
0x2052   :  { %18746 = vmatmul.mubr.f32.vlgmr.msra.gmra.mrb[114].mxu1 %v12938_v35 }
0x2053   :  { %21206 = vmatpush3.bf16.msra.mxu1 %v21205_v11  ;;  %18764 = vmatprep.mubr.msk.f32.mxu1 %vm21482_vm3, %v25523_v52 }
0x2054   :  { %21207 = vmatprep.subr.bf16.mxu1 %v25521_v6 }
0x2057   :  { %21209 = vmatpush3.bf16.msra.mxu1 %v21208_v49 }
0x2058   :  { %21210 = vmatprep.subr.bf16.mxu1 %v25521_v6 }
0x205b   :  { %21212 = vmatpush3.bf16.msra.mxu1 %v21211_v40 }
0x205c   :  { %21213 = vmatprep.subr.bf16.mxu1 %v25521_v6 }
0x205f   :  { %21215 = vmatpush3.bf16.msra.mxu1 %v21214_v12 }
0x2060   :  { %21216 = vmatprep.subr.bf16.mxu1 %v25521_v6 }
0x2062   :  { %18765 = vmatmul.mubr.f32.vlgmr.msra.gmra.mrb[114].mxu1 %v12936_v29 }
0x2063   :  { %21218 = vmatpush3.bf16.msra.mxu1 %v25036_v42  ;;  %18783 = vmatprep.mubr.msk.f32.mxu1 %vm21482_vm3, %v25523_v52  ;;  %v13402_v42 = vld [vmem:[%s25197_s7 + $0x8] sm:$0xff] }
0x2064   :  { %21219 = vmatprep.subr.bf16.mxu1 %v25521_v6 }
0x2067   :  { %21221 = vmatpush3.bf16.msra.mxu1 %v25046_v33  ;;  %v13413_v33 = vand.u32 4294901760, %v13401_v37 }
0x2068   :  { %21222 = vmatprep.subr.bf16.mxu1 %v25521_v6 }
0x2069   :  { %v13491_v57 = vsub.f32 %v13401_v37, %v13413_v33 }
0x206b   :  { %21224 = vmatpush3.bf16.msra.mxu1 %v25060_v7  ;;  %v13416_v7 = vand.u32 4294901760, %v13402_v42  ;;  %v13492_v34 = vand.u32 4294901760, %v13491_v57 }
0x206c   :  { %21225 = vmatprep.subr.bf16.mxu1 %v25521_v6 }
0x206d   :  { %v21229_v27 = vpack.c.bf16 %v13416_v7, %v13413_v33  ;;  %v13498_v63 = vsub.f32 %v13402_v42, %v13416_v7  ;;  %v13493_v44 = vsub.f32 %v13491_v57, %v13492_v34 }
0x206f   :  { %21227 = vmatpush3.bf16.msra.mxu1 %v25080_v50  ;;  %v13499_v62 = vand.u32 4294901760, %v13498_v63  ;;  %v13494_v50 = vand.u32 4294901760, %v13493_v44  ;;  %v21235_v61 = vpack.c.bf16 %v13498_v63, %v13491_v57 }
0x2070   :  { %21228 = vmatprep.subr.bf16.mxu1 %v25521_v6 }
0x2071   :  { %v13500_v31 = vsub.f32 %v13498_v63, %v13499_v62  ;;  %v21241_v25 = vpack.c.bf16 %v13499_v62, %v13492_v34 }
0x2072   :  { %18784 = vmatmul.mubr.f32.vlgmr.msra.gmra.mrb[114].mxu1 %v12936_v29 }
0x2073   :  { %18790 = vmatprep.mubr.msk.f32.mxu1 %vm21482_vm3, %v25523_v52  ;;  %21230 = vmatpush3.bf16.msra.mxu1 %v21229_v27  ;;  %v13501_v14 = vand.u32 4294901760, %v13500_v31 }
0x2074   :  { %21231 = vmatprep.subr.bf16.mxu1 %v25521_v6 }
0x2075   :  { %v21232_v13 = vpack.c.bf16 %v13501_v14, %v13494_v50 }
0x2145   :  { %v13396_v38 = vpop.f32.mrb[114].mxu1 }
0x2146   :  { %v21272_v54 = vadd.f32 %v13941_v1, %v13396_v38  ;;  %v18785_v53 = vpop.f32.mrb[115].mxu1 }
0x2148   :  { %v13400_v51 = vmax.f32 %v21272_v54, 0.0 }
0x214a   :  { %v13410_v3 = vsel %vm13408_vm5, %v13400_v51, 0 }
0x214b   :  { %v13479_v19 = vand.u32 4294901760, %v13410_v3 }
0x214d   :  { %v13480_v43 = vsub.f32 %v13410_v3, %v13479_v19 }
0x214f   :  { %v13481_v17 = vand.u32 4294901760, %v13480_v43 }
0x2151   :  { %v13482_v5 = vsub.f32 %v13480_v43, %v13481_v17 }
0x2153   :  { %v13483_v58 = vand.u32 4294901760, %v13482_v5 }
0x2155   :  { %18791 = vmatmul.mubr.f32.vlgmr.msra.gmra.mrb[116].mxu1 %v13483_v58 }
0x2156   :  { %21233 = vmatpush3.bf16.msra.mxu1 %v21232_v13  ;;  %18797 = vmatprep.mubr.msk.f32.mxu1 %vm21482_vm3, %v25523_v52 }
0x2157   :  { %21234 = vmatprep.subr.bf16.mxu1 %v25521_v6 }
0x215d   :  { %18798 = vmatmul.mubr.f32.vlgmr.msra.gmra.mrb[116].mxu1 %v13479_v19 }
0x215e   :  { %21236 = vmatpush3.bf16.msra.mxu1 %v21235_v61  ;;  %18804 = vmatprep.mubr.msk.f32.mxu1 %vm21482_vm3, %v25523_v52 }
0x215f   :  { %21237 = vmatprep.subr.bf16.mxu1 %v25521_v6 }
0x2165   :  { %18805 = vmatmul.mubr.f32.vlgmr.msra.gmra.mrb[116].mxu1 %v13480_v43 }
0x2166   :  { %21239 = vmatpush3.bf16.msra.mxu1 %v21229_v27  ;;  %18811 = vmatprep.mubr.msk.f32.mxu1 %vm21482_vm3, %v25523_v52 }
0x2167   :  { %21240 = vmatprep.subr.bf16.mxu1 %v25521_v6 }
0x216d   :  { %18812 = vmatmul.mubr.f32.vlgmr.msra.gmra.mrb[116].mxu1 %v13481_v17 }
0x216e   :  { %21242 = vmatpush3.bf16.msra.mxu1 %v21241_v25  ;;  %18818 = vmatprep.mubr.msk.f32.mxu1 %vm21482_vm3, %v25523_v52 }
0x216f   :  { %21243 = vmatprep.subr.bf16.mxu1 %v25521_v6 }
0x2175   :  { %18819 = vmatmul.mubr.f32.vlgmr.msra.gmra.mrb[116].mxu1 %v13479_v19 }
0x2176   :  { %21245 = vmatpush3.bf16.msra.mxu1 %v21229_v27  ;;  %18825 = vmatprep.mubr.msk.f32.mxu1 %vm21482_vm3, %v25523_v52 }
0x217d   :  { %18826 = vmatmul.mubr.f32.vlgmr.msra.gmra.mrb[116].mxu1 %v13479_v19 }
0x2250   :  { %v13867_v28 = vpop.f32.mrb[116].mxu1 }
0x2251   :  { %v21273_v39 = vadd.f32 %v13942_v2, %v13867_v28  ;;  %v18827_v8 = vpop.f32.mrb[117].mxu1 }
0x2253   :  { %v13872_v48 = vsel %vm13871_vm6, %v21273_v39, -inf }
0x2254   :  { %13873 = vmax.xlane.f32.xlu0 %v13872_v48 }
0x22e1   :  { %v13874_v56 = vpop.xlane.xlu0 %13873 }
0x22e2   :  { %v13875_v45 = vsub.f32 %v21273_v39, %v13874_v56 }
0x22e4   :  { %v13876_v22 = vmul.f32 1.442695, %v13875_v45 }
0x22e6   :  { %21476 = vpow2.f32 %v13876_v22 }
0x22f0   :  { %v21477_v6 = vpop.eup %21476 }
0x22f1   :  { %v13878_v20 = vsel %vm13871_vm6, %v21477_v6, 0.0 }
0x22f2   :  { %13879 = vadd.xlane.f32.xlu1 %v13878_v20 }
0x237f   :  { %v13880_v46 = vpop.xlane.xlu1 %13879 }
0x2380   :  { %21478 = vlog2.f32 %v13880_v46 }
0x238a   :  { %v21479_v52 = vpop.eup %21478 }
0x238b   :  { %v13882_v16 = vmul.f32 0.6931472, %v21479_v52 }
0x238d   :  { %v13883_v32 = vsub.f32 %v13875_v45, %v13882_v16 }
0x238f   :  { %v13885_v47 = vrot.slane %v13883_v32, 4 }
0x2391   :  { %13886 = vrot.lane.b32.xlu0 %v13885_v47, %s21483_s4 }
0x2403   :  { %v13887_v15 = vpop.permute.xlu0 %13886 }
0x2404   :  { %v13889_v55 = vsel %vm65_vm2, %v24866_v0, %v13887_v15 }
0x2405   :  { %v13891_v23 = vsel %vm13890_vm7, %v13889_v55, 0.0 }
0x2406   :  { %v13893_v26 = vcombine.high %v24862_v59, %v13891_v23 }
0x2408   :  { %13943 = vst.sshfl [vmem:[%s25198_s9] sm:$0x33 pattern:$0x76325410] %v13893_v26 }

</bundles_post_ra>
